<compile_context>
chip_gen: v5e
topology: v5e:2x2
jax: 0.10.0
libtpu: 0.0.40
codegen_flags: <defaults>
</compile_context>

<pallas_src>
import jax
import jax.numpy as jnp
from jax.experimental import pallas as pl
from jax.experimental.pallas import tpu as pltpu


# ---------------------------------------------------------------------------
# Static dimensions (match the PyTorch module)
# ---------------------------------------------------------------------------
_IN_FEATURES = 1 * 64 * 79                    # 5056
_LAYER_DIMS = [(_IN_FEATURES, 1048), (1048, 256), (256, 128), (128, 1)]

_TK = 2560                                    # layer-1 reduction tile (multiple of 128)
_K_PAD = pl.cdiv(_IN_FEATURES, _TK) * _TK     # 5120


# ---------------------------------------------------------------------------
# Fused Pallas kernel: streamed layer-1 matmul + resident layers 2-4 epilogue
# ---------------------------------------------------------------------------
def _fused_mlp_kernel(x_ref, w1_ref, b1_ref, w2_ref, b2_ref,
                      w3_ref, b3_ref, w4_ref, b4_ref, o_ref, acc_ref):
    k = pl.program_id(0)

    @pl.when(k == 0)
    def _():
        acc_ref[...] = jnp.zeros_like(acc_ref)

    # Layer 1 partial product for this K chunk (MXU, f32 accumulation).
    acc_ref[...] += jnp.dot(
        x_ref[...], w1_ref[...], preferred_element_type=jnp.float32
    )

    @pl.when(k == pl.num_programs(0) - 1)
    def _():
        h = jax.nn.sigmoid(acc_ref[...] + b1_ref[...])                      # (B, 1048)
        h = jax.nn.sigmoid(
            jnp.dot(h, w2_ref[...], preferred_element_type=jnp.float32)
            + b2_ref[...]
        )                                                                    # (B, 256)
        h = jax.nn.sigmoid(
            jnp.dot(h, w3_ref[...], preferred_element_type=jnp.float32)
            + b3_ref[...]
        )                                                                    # (B, 128)
        h = jax.nn.sigmoid(
            jnp.dot(h, w4_ref[...], preferred_element_type=jnp.float32)
            + b4_ref[...]
        )                                                                    # (B, 1)
        o_ref[...] = h.astype(o_ref.dtype)


def mlp_pallas(x_flat, params):
    """x_flat: (B, _K_PAD) float32, already flattened + zero-padded."""
    (w1, b1), (w2, b2), (w3, b3), (w4, b4) = params
    B = x_flat.shape[0]
    N1 = w1.shape[1]
    n_k = _K_PAD // _TK

    grid_spec = pltpu.PrefetchScalarGridSpec(
        num_scalar_prefetch=0,
        grid=(n_k,),
        in_specs=[
            pl.BlockSpec((B, _TK), lambda k: (0, k)),      # x chunk (streamed)
            pl.BlockSpec((_TK, N1), lambda k: (k, 0)),     # W1 chunk (streamed)
            pl.BlockSpec(b1.shape, lambda k: (0, 0)),      # resident small tensors
            pl.BlockSpec(w2.shape, lambda k: (0, 0)),
            pl.BlockSpec(b2.shape, lambda k: (0, 0)),
            pl.BlockSpec(w3.shape, lambda k: (0, 0)),
            pl.BlockSpec(b3.shape, lambda k: (0, 0)),
            pl.BlockSpec(w4.shape, lambda k: (0, 0)),
            pl.BlockSpec(b4.shape, lambda k: (0, 0)),
        ],
        out_specs=pl.BlockSpec((B, 1), lambda k: (0, 0)),
        scratch_shapes=[pltpu.VMEM((B, N1), jnp.float32)],  # layer-1 accumulator
    )

    return pl.pallas_call(
        _fused_mlp_kernel,
        out_shape=jax.ShapeDtypeStruct((B, 1), jnp.float32),
        grid_spec=grid_spec,
        compiler_params=pltpu.CompilerParams(
            dimension_semantics=("arbitrary",),            # reduction axis
            vmem_limit_bytes=48 * 1024 * 1024,             # fits v7x (64 MiB physical)
        ),
    )(x_flat, w1, b1, w2, b2, w3, b3, w4, b4)


# ---------------------------------------------------------------------------
# Parameter init (deterministic, torch.nn.Linear-style uniform ranges).
# Weights kept as (in, out) = W.T; layer-1 weight pre-padded ONCE to K_PAD rows.
# ---------------------------------------------------------------------------
def init_params(key):
    params = []
    for i, (fan_in, fan_out) in enumerate(_LAYER_DIMS):
        key, kw, kb = jax.random.split(key, 3)
        bound = 1.0 / jnp.sqrt(jnp.float32(fan_in))
        w_t = jax.random.uniform(
            kw, (fan_in, fan_out), jnp.float32, minval=-bound, maxval=bound
        )
        b = jax.random.uniform(
            kb, (1, fan_out), jnp.float32, minval=-bound, maxval=bound
        )
        if i == 0:
            # Pad the reduction dim with zero rows once at init so the traced
            # forward never copies the ~21 MB weight (zero rows contribute 0).
            w_t = jnp.pad(w_t, ((0, _K_PAD - fan_in), (0, 0)))
        params.append((w_t, b))
    return params


# ---------------------------------------------------------------------------
# Forward pass (flatten + tiny x pad are glue; all math is in the fused kernel)
# ---------------------------------------------------------------------------
@jax.jit
def mlp_forward(input_data, params):
    B = input_data.shape[0]
    x = input_data.reshape(B, -1)                           # nn.Flatten (row-major NCHW)
    x = jnp.pad(x, ((0, 0), (0, _K_PAD - _IN_FEATURES)))    # B x 64 floats, negligible
    return mlp_pallas(x, params)                            # (B, 1), sigmoid applied


# ---------------------------------------------------------------------------
# Pure-JAX reference for a sanity check
# ---------------------------------------------------------------------------
def mlp_reference(input_data, params):
    x = input_data.reshape(input_data.shape[0], -1)
    (w1, b1) = params[0]
    x = jax.nn.sigmoid(x @ w1[:_IN_FEATURES] + b1)          # slice off the zero pad rows
    for w_t, b in params[1:]:
        x = jax.nn.sigmoid(x @ w_t + b)
    return x


if __name__ == "__main__":
    key = jax.random.PRNGKey(0)
    k_in, k_params = jax.random.split(key)

    # Input shape implied by the module: (B, 1, 64, 79). Use B = 2.
    x = jax.random.normal(k_in, (2, 1, 64, 79), jnp.float32)
    params = init_params(k_params)

    out = mlp_forward(x, params)
    out = jax.block_until_ready(out)

    ref = mlp_reference(x, params)
    assert out.shape == (2, 1)
    assert jnp.allclose(out, ref, atol=1e-5, rtol=1e-5)

    print("KERNEL_OK")
</pallas_src>

<mosaic_0001>
module attributes {stable_mosaic.version = 11 : i64} {
  func.func @_fused_mlp_kernel(%arg0: i32, %arg1: memref<2x2560xf32, #tpu.memory_space<vmem>>, %arg2: memref<2560x1048xf32, #tpu.memory_space<vmem>>, %arg3: memref<1x1048xf32, #tpu.memory_space<vmem>>, %arg4: memref<1048x256xf32, #tpu.memory_space<vmem>>, %arg5: memref<1x256xf32, #tpu.memory_space<vmem>>, %arg6: memref<256x128xf32, #tpu.memory_space<vmem>>, %arg7: memref<1x128xf32, #tpu.memory_space<vmem>>, %arg8: memref<128x1xf32, #tpu.memory_space<vmem>>, %arg9: memref<1x1xf32, #tpu.memory_space<vmem>>, %arg10: memref<2x1xf32, #tpu.memory_space<vmem>>, %arg11: memref<2x1048xf32, #tpu.memory_space<vmem>>) attributes {dimension_semantics = [#tpu.dimension_semantics<arbitrary>], iteration_bounds = array<i64: 2>, scalar_prefetch = 0 : i64, scratch_operands = 1 : i64, tpu.core_type = #tpu.core_type<tc>, window_params = [{transform_indices = @transform_0, window_bounds = array<i64: 2, 2560>}, {transform_indices = @transform_1, window_bounds = array<i64: 2560, 1048>}, {pipeline_mode = #tpu.pipeline_mode<synchronous>, transform_indices = @transform_2, window_bounds = array<i64: 1, 1048>}, {pipeline_mode = #tpu.pipeline_mode<synchronous>, transform_indices = @transform_3, window_bounds = array<i64: 1048, 256>}, {pipeline_mode = #tpu.pipeline_mode<synchronous>, transform_indices = @transform_4, window_bounds = array<i64: 1, 256>}, {pipeline_mode = #tpu.pipeline_mode<synchronous>, transform_indices = @transform_5, window_bounds = array<i64: 256, 128>}, {pipeline_mode = #tpu.pipeline_mode<synchronous>, transform_indices = @transform_6, window_bounds = array<i64: 1, 128>}, {pipeline_mode = #tpu.pipeline_mode<synchronous>, transform_indices = @transform_7, window_bounds = array<i64: 128, 1>}, {pipeline_mode = #tpu.pipeline_mode<synchronous>, transform_indices = @transform_8, window_bounds = array<i64: 1, 1>}, {pipeline_mode = #tpu.pipeline_mode<synchronous>, transform_indices = @transform_9, window_bounds = array<i64: 2, 1>}]} {
    %c0_i32 = arith.constant 0 : i32
    %0 = arith.cmpi eq, %arg0, %c0_i32 : i32
    %1 = arith.extui %0 : i1 to i32
    %c0_i32_0 = arith.constant 0 : i32
    %2 = arith.cmpi ne, %1, %c0_i32_0 : i32
    scf.if %2 {
      %cst_9 = arith.constant 0.000000e+00 : f32
      %12 = vector.broadcast %cst_9 : f32 to vector<2x1048xf32>
      %c0_10 = arith.constant 0 : index
      %c0_11 = arith.constant 0 : index
      %13 = vector.load %arg11[%c0_10, %c0_11] : memref<2x1048xf32, #tpu.memory_space<vmem>>, vector<2x1048xf32>
      tpu.vector_store %arg11[%c0_10, %c0_11], %12 {strides = array<i32>} : memref<2x1048xf32, #tpu.memory_space<vmem>>, vector<2x1048xf32>,
    } else {
    }
    %c0 = arith.constant 0 : index
    %c0_1 = arith.constant 0 : index
    %3 = vector.load %arg11[%c0, %c0_1] : memref<2x1048xf32, #tpu.memory_space<vmem>>, vector<2x1048xf32>
    %c0_2 = arith.constant 0 : index
    %c0_3 = arith.constant 0 : index
    %4 = vector.load %arg1[%c0_2, %c0_3] : memref<2x2560xf32, #tpu.memory_space<vmem>>, vector<2x2560xf32>
    %c0_4 = arith.constant 0 : index
    %c0_5 = arith.constant 0 : index
    %5 = vector.load %arg2[%c0_4, %c0_5] : memref<2560x1048xf32, #tpu.memory_space<vmem>>, vector<2560x1048xf32>
    %cst = arith.constant dense<0.000000e+00> : vector<2x1048xf32>
    %6 = tpu.matmul %4, %5, %cst {dimension_numbers = #tpu.dot_dimension_numbers<[1], [0], [0], [1], [0, 0, 1, 1], [], []>} : vector<2x2560xf32>, vector<2560x1048xf32>, vector<2x1048xf32> -> vector<2x1048xf32>
    %7 = arith.addf %3, %6 : vector<2x1048xf32>
    %c0_6 = arith.constant 0 : index
    %c0_7 = arith.constant 0 : index
    %8 = vector.load %arg11[%c0_6, %c0_7] : memref<2x1048xf32, #tpu.memory_space<vmem>>, vector<2x1048xf32>
    tpu.vector_store %arg11[%c0_6, %c0_7], %7 {strides = array<i32>} : memref<2x1048xf32, #tpu.memory_space<vmem>>, vector<2x1048xf32>,
    %c1_i32 = arith.constant 1 : i32
    %9 = arith.cmpi eq, %arg0, %c1_i32 : i32
    %10 = arith.extui %9 : i1 to i32
    %c0_i32_8 = arith.constant 0 : i32
    %11 = arith.cmpi ne, %10, %c0_i32_8 : i32
    scf.if %11 {
      %c0_9 = arith.constant 0 : index
      %c0_10 = arith.constant 0 : index
      %12 = vector.load %arg11[%c0_9, %c0_10] : memref<2x1048xf32, #tpu.memory_space<vmem>>, vector<2x1048xf32>
      %c0_11 = arith.constant 0 : index
      %c0_12 = arith.constant 0 : index
      %13 = vector.load %arg3[%c0_11, %c0_12] : memref<1x1048xf32, #tpu.memory_space<vmem>>, vector<1x1048xf32>
      %14 = vector.broadcast %13 : vector<1x1048xf32> to vector<2x1048xf32>
      %15 = arith.addf %12, %14 : vector<2x1048xf32>
      %16 = arith.negf %15 : vector<2x1048xf32>
      %17 = math.exp %16 : vector<2x1048xf32>
      %cst_13 = arith.constant 1.000000e+00 : f32
      %18 = vector.broadcast %cst_13 : f32 to vector<2x1048xf32>
      %19 = arith.addf %18, %17 : vector<2x1048xf32>
      %20 = arith.divf %18, %19 : vector<2x1048xf32>
      %c0_14 = arith.constant 0 : index
      %c0_15 = arith.constant 0 : index
      %21 = vector.load %arg4[%c0_14, %c0_15] : memref<1048x256xf32, #tpu.memory_space<vmem>>, vector<1048x256xf32>
      %cst_16 = arith.constant dense<0.000000e+00> : vector<2x256xf32>
      %22 = tpu.matmul %20, %21, %cst_16 {dimension_numbers = #tpu.dot_dimension_numbers<[1], [0], [0], [1], [0, 0, 1, 1], [], []>} : vector<2x1048xf32>, vector<1048x256xf32>, vector<2x256xf32> -> vector<2x256xf32>
      %c0_17 = arith.constant 0 : index
      %c0_18 = arith.constant 0 : index
      %23 = vector.load %arg5[%c0_17, %c0_18] : memref<1x256xf32, #tpu.memory_space<vmem>>, vector<1x256xf32>
      %24 = vector.broadcast %23 : vector<1x256xf32> to vector<2x256xf32>
      %25 = arith.addf %22, %24 : vector<2x256xf32>
      %26 = arith.negf %25 : vector<2x256xf32>
      %27 = math.exp %26 : vector<2x256xf32>
      %cst_19 = arith.constant 1.000000e+00 : f32
      %28 = vector.broadcast %cst_19 : f32 to vector<2x256xf32>
      %29 = arith.addf %28, %27 : vector<2x256xf32>
      %30 = arith.divf %28, %29 : vector<2x256xf32>
      %c0_20 = arith.constant 0 : index
      %c0_21 = arith.constant 0 : index
      %31 = vector.load %arg6[%c0_20, %c0_21] : memref<256x128xf32, #tpu.memory_space<vmem>>, vector<256x128xf32>
      %cst_22 = arith.constant dense<0.000000e+00> : vector<2x128xf32>
      %32 = tpu.matmul %30, %31, %cst_22 {dimension_numbers = #tpu.dot_dimension_numbers<[1], [0], [0], [1], [0, 0, 1, 1], [], []>} : vector<2x256xf32>, vector<256x128xf32>, vector<2x128xf32> -> vector<2x128xf32>
      %c0_23 = arith.constant 0 : index
      %c0_24 = arith.constant 0 : index
      %33 = vector.load %arg7[%c0_23, %c0_24] : memref<1x128xf32, #tpu.memory_space<vmem>>, vector<1x128xf32>
      %34 = vector.broadcast %33 : vector<1x128xf32> to vector<2x128xf32>
      %35 = arith.addf %32, %34 : vector<2x128xf32>
      %36 = arith.negf %35 : vector<2x128xf32>
      %37 = math.exp %36 : vector<2x128xf32>
      %cst_25 = arith.constant 1.000000e+00 : f32
      %38 = vector.broadcast %cst_25 : f32 to vector<2x128xf32>
      %39 = arith.addf %38, %37 : vector<2x128xf32>
      %40 = arith.divf %38, %39 : vector<2x128xf32>
      %c0_26 = arith.constant 0 : index
      %c0_27 = arith.constant 0 : index
      %41 = vector.load %arg8[%c0_26, %c0_27] : memref<128x1xf32, #tpu.memory_space<vmem>>, vector<128x1xf32>
      %cst_28 = arith.constant dense<0.000000e+00> : vector<2x1xf32>
      %42 = tpu.matmul %40, %41, %cst_28 {dimension_numbers = #tpu.dot_dimension_numbers<[1], [0], [0], [1], [0, 0, 1, 1], [], []>} : vector<2x128xf32>, vector<128x1xf32>, vector<2x1xf32> -> vector<2x1xf32>
      %c0_29 = arith.constant 0 : index
      %c0_30 = arith.constant 0 : index
      %43 = vector.load %arg9[%c0_29, %c0_30] : memref<1x1xf32, #tpu.memory_space<vmem>>, vector<1x1xf32>
      %44 = vector.broadcast %43 : vector<1x1xf32> to vector<2x1xf32>
      %45 = arith.addf %42, %44 : vector<2x1xf32>
      %46 = arith.negf %45 : vector<2x1xf32>
      %47 = math.exp %46 : vector<2x1xf32>
      %cst_31 = arith.constant 1.000000e+00 : f32
      %48 = vector.broadcast %cst_31 : f32 to vector<2x1xf32>
      %49 = arith.addf %48, %47 : vector<2x1xf32>
      %50 = arith.divf %48, %49 : vector<2x1xf32>
      %c0_32 = arith.constant 0 : index
      %c0_33 = arith.constant 0 : index
      %51 = vector.load %arg10[%c0_32, %c0_33] : memref<2x1xf32, #tpu.memory_space<vmem>>, vector<2x1xf32>
      tpu.vector_store %arg10[%c0_32, %c0_33], %50 {strides = array<i32>} : memref<2x1xf32, #tpu.memory_space<vmem>>, vector<2x1xf32>,
    } else {
    }
    return
  }
  func.func @transform_0(%arg0: i32) -> (i32, i32) {
    %c0_i32 = arith.constant 0 : i32
    %c0_i32_0 = arith.constant 0 : i32
    return %c0_i32, %arg0 : i32, i32
  }
  func.func @transform_1(%arg0: i32) -> (i32, i32) {
    %c0_i32 = arith.constant 0 : i32
    %c0_i32_0 = arith.constant 0 : i32
    return %arg0, %c0_i32 : i32, i32
  }
  func.func @transform_2(%arg0: i32) -> (i32, i32) {
    %c0_i32 = arith.constant 0 : i32
    %c0_i32_0 = arith.constant 0 : i32
    %c0_i32_1 = arith.constant 0 : i32
    return %c0_i32, %c0_i32_0 : i32, i32
  }
  func.func @transform_3(%arg0: i32) -> (i32, i32) {
    %c0_i32 = arith.constant 0 : i32
    %c0_i32_0 = arith.constant 0 : i32
    %c0_i32_1 = arith.constant 0 : i32
    return %c0_i32, %c0_i32_0 : i32, i32
  }
  func.func @transform_4(%arg0: i32) -> (i32, i32) {
    %c0_i32 = arith.constant 0 : i32
    %c0_i32_0 = arith.constant 0 : i32
    %c0_i32_1 = arith.constant 0 : i32
    return %c0_i32, %c0_i32_0 : i32, i32
  }
  func.func @transform_5(%arg0: i32) -> (i32, i32) {
    %c0_i32 = arith.constant 0 : i32
    %c0_i32_0 = arith.constant 0 : i32
    %c0_i32_1 = arith.constant 0 : i32
    return %c0_i32, %c0_i32_0 : i32, i32
  }
  func.func @transform_6(%arg0: i32) -> (i32, i32) {
    %c0_i32 = arith.constant 0 : i32
    %c0_i32_0 = arith.constant 0 : i32
    %c0_i32_1 = arith.constant 0 : i32
    return %c0_i32, %c0_i32_0 : i32, i32
  }
  func.func @transform_7(%arg0: i32) -> (i32, i32) {
    %c0_i32 = arith.constant 0 : i32
    %c0_i32_0 = arith.constant 0 : i32
    %c0_i32_1 = arith.constant 0 : i32
    return %c0_i32, %c0_i32_0 : i32, i32
  }
  func.func @transform_8(%arg0: i32) -> (i32, i32) {
    %c0_i32 = arith.constant 0 : i32
    %c0_i32_0 = arith.constant 0 : i32
    %c0_i32_1 = arith.constant 0 : i32
    return %c0_i32, %c0_i32_0 : i32, i32
  }
  func.func @transform_9(%arg0: i32) -> (i32, i32) {
    %c0_i32 = arith.constant 0 : i32
    %c0_i32_0 = arith.constant 0 : i32
    %c0_i32_1 = arith.constant 0 : i32
    return %c0_i32, %c0_i32_0 : i32, i32
  }
}

</mosaic_0001>

<bundles_post_ra>
// kernel: mlp_forward.1
= control target key start
LH: loop header
LB: loop body
LE: loop exit
PB: predicated region body
PF: predicated region fallthrough
CT: control target
= control target key end

     0   :  { %s8096_s11 = smov 0   ;;  %s12417_s0 = inlined_call_operand.vmem [shape: f32[2,5120], index: 0, kind: input, shape index: {}]   ;;  %s12418_s1 = inlined_call_operand.vmem [shape: f32[5120,1048], index: 1, kind: input, shape index: {}]   ;;  %s12419_s2 = inlined_call_operand.vmem [shape: f32[1,1048], index: 2, kind: input, shape index: {}]   ;;  %s12420_s3 = inlined_call_operand.vmem [shape: f32[1048,256], index: 3, kind: input, shape index: {}]   ;;  %s12421_s4 = inlined_call_operand.vmem [shape: f32[1,256], index: 4, kind: input, shape index: {}]   ;;  %s12422_s5 = inlined_call_operand.vmem [shape: f32[256,128], index: 5, kind: input, shape index: {}]   ;;  %s12423_s6 = inlined_call_operand.vmem [shape: f32[1,128], index: 6, kind: input, shape index: {}]   ;;  %s12424_s7 = inlined_call_operand.vmem [shape: f32[128,1], index: 7, kind: input, shape index: {}]   ;;  %s12425_s8 = inlined_call_operand.<no memory space> [shape: f32[1,1], index: 8, kind: input, shape index: {}]   ;;  %s12426_s9 = inlined_call_operand.vmem [shape: f32[2,1], index: 9, kind: output, shape index: {}]  }
   0x1   :  { %v14_v0 = vstv %s12425_s8 }
   0x2   :  { %15 = vst [vmem:[#allocation3] sm:$0x1] %v14_v0 }
   0x3 LB: > { %s8102_s12 = sadd.s32 4294967295, %s8040_s11   ;;  %p7913_p0 = scmp.ge.s32.totalorder %s8040_s11, 1  ;;  %s8040_s11 = sphi %s8096_s11, %s21_s11  }
   0x4   : > { %p297_p1 = scmp.lt.s32.totalorder %s8040_s11, 3 }
   0x6   : > { %p298_p2 = pnand %p7913_p0, %p297_p1 }
   0x8   : > { %301 = sbr.rel (%p298_p2) target bundleno = 2336 (0x920), region = 56 }
   0xd   : > { %s334_s8 = smul.u32 20, %s8102_s12  ;;  %p7916_p5 = scmp.ne.s32.totalorder %s8102_s12, 0 }
   0xe   : > { %s340_s13 = smul.u32 320, %s8102_s12 }
   0xf   : > { %p335_p3 = scmp.lt.s32.totalorder %s334_s8, 39 }
  0x10   : > { %p341_p4 = scmp.lt.s32.totalorder %s340_s13, 639 }
  0x11   : > { %s12476_s8 = smov (!%p335_p3, %s334_s8), 39  ;;  %350 = sbr.rel (%p7916_p5) target bundleno = 26 (0x1a), region = 60 }
  0x12   : > { %s12478_s13 = smov (!%p341_p4, %s340_s13), 639  ;;  %s7914_s14 = sshll.u32 %s12476_s8, 1 }
  0x13   : > { %s8111_s17 = scalar_lea.vmem %s12417_s0, %s7914_s14  ;;  %s7929_s18 = smul.u32 72, %s12478_s13 }
  0x15   : > { %s8116_s21 = scalar_lea.vmem %s12418_s1, %s7929_s18 }
  0x16   : > { %vm353_vm0 = vcmask 189440   ;;  %v8042_v1 = vmov 0.0  }
  0x17   : > { %351 = vst [vmem:[#allocation2] sm:$0xff] %v8042_v1 }
  0x18   : > { %352 = vst [vmem:[#allocation2 + $0x8] sm:$0xff] %v8042_v1 }
  0x19   : > { %354 = vst.msk [vmem:[#allocation2 + $0x10] sm:$0x3] %vm353_vm0, %v8042_v1 }
  0x1a PF: > { %v498_v2 = vld [vmem:[%s8116_s21 + $0x438] sm:$0xff]  ;;  %v489_v4 = vld [vmem:[%s8116_s21 + $0x3f0] sm:$0xff]  ;;  %v480_v8 = vld [vmem:[%s8116_s21 + $0x3a8] sm:$0xff]  ;;  %vm6908_vm1 = vcmask 1041408   ;;  %vm6910_vm2 = vcmask 1045508   ;;  %vm6912_vm3 = vcmask 1043456  }
  0x1b   : > { %v786_v3 = vld [vmem:[%s8116_s21 + $0xd38] sm:$0xff]  ;;  %3294 = vmatpush.msra.mxu0 %v498_v2  ;;  %v777_v6 = vld [vmem:[%s8116_s21 + $0xcf0] sm:$0xff]  ;;  %v768_v10 = vld [vmem:[%s8116_s21 + $0xca8] sm:$0xff]  ;;  %vm6924_vm4 = vcmask 189440   ;;  %p7917_p6 = scmp.ne.s32.totalorder %s8102_s12, 1 }
  0x1c   : > { %3334 = vmatpush.msra.mxu2 %v786_v3  ;;  %v642_v5 = vld [vmem:[%s8116_s21 + $0x8b8] sm:$0xff]  ;;  %v633_v9 = vld [vmem:[%s8116_s21 + $0x870] sm:$0xff]  ;;  %v624_v12 = vld [vmem:[%s8116_s21 + $0x828] sm:$0xff] }
  0x1d   : > { %v930_v7 = vld [vmem:[%s8116_s21 + $0x11b8] sm:$0xff]  ;;  %3314 = vmatpush.msra.mxu1 %v642_v5  ;;  %3295 = vmatpush.msra.mxu0 %v489_v4  ;;  %v921_v11 = vld [vmem:[%s8116_s21 + $0x1170] sm:$0xff]  ;;  %v471_v13 = vld [vmem:[%s8116_s21 + $0x360] sm:$0xff] }
  0x1e   : > { %3354 = vmatpush.msra.mxu3 %v930_v7  ;;  %3335 = vmatpush.msra.mxu2 %v777_v6  ;;  %v759_v14 = vld [vmem:[%s8116_s21 + $0xc60] sm:$0xff]  ;;  %v912_v15 = vld [vmem:[%s8116_s21 + $0x1128] sm:$0xff]  ;;  %v462_v18 = vld [vmem:[%s8116_s21 + $0x318] sm:$0xff] }
  0x1f   : > { %3315 = vmatpush.msra.mxu1 %v633_v9  ;;  %3296 = vmatpush.msra.mxu0 %v480_v8  ;;  %v615_v16 = vld [vmem:[%s8116_s21 + $0x7e0] sm:$0xff]  ;;  %v750_v19 = vld [vmem:[%s8116_s21 + $0xc18] sm:$0xff]  ;;  %v453_v22 = vld [vmem:[%s8116_s21 + $0x2d0] sm:$0xff] }
  0x20   : > { %3355 = vmatpush.msra.mxu3 %v921_v11  ;;  %3336 = vmatpush.msra.mxu2 %v768_v10  ;;  %v903_v17 = vld [vmem:[%s8116_s21 + $0x10e0] sm:$0xff]  ;;  %v606_v20 = vld [vmem:[%s8116_s21 + $0x798] sm:$0xff]  ;;  %v741_v23 = vld [vmem:[%s8116_s21 + $0xbd0] sm:$0xff] }
  0x21   : > { %3316 = vmatpush.msra.mxu1 %v624_v12  ;;  %3297 = vmatpush.msra.mxu0 %v471_v13  ;;  %v894_v21 = vld [vmem:[%s8116_s21 + $0x1098] sm:$0xff]  ;;  %v597_v24 = vld [vmem:[%s8116_s21 + $0x750] sm:$0xff]  ;;  %v444_v26 = vld [vmem:[%s8116_s21 + $0x288] sm:$0xff] }
  0x22   : > { %3356 = vmatpush.msra.mxu3 %v912_v15  ;;  %3337 = vmatpush.msra.mxu2 %v759_v14  ;;  %v885_v25 = vld [vmem:[%s8116_s21 + $0x1050] sm:$0xff]  ;;  %v732_v27 = vld [vmem:[%s8116_s21 + $0xb88] sm:$0xff]  ;;  %v435_v30 = vld [vmem:[%s8116_s21 + $0x240] sm:$0xff] }
  0x23   : > { %3317 = vmatpush.msra.mxu1 %v615_v16  ;;  %3298 = vmatpush.msra.mxu0 %v462_v18  ;;  %v588_v28 = vld [vmem:[%s8116_s21 + $0x708] sm:$0xff]  ;;  %v723_v31 = vld [vmem:[%s8116_s21 + $0xb40] sm:$0xff]  ;;  %v426_v34 = vld [vmem:[%s8116_s21 + $0x1f8] sm:$0xff] }
  0x24   : > { %3357 = vmatpush.msra.mxu3 %v903_v17  ;;  %3338 = vmatpush.msra.mxu2 %v750_v19  ;;  %v876_v29 = vld [vmem:[%s8116_s21 + $0x1008] sm:$0xff]  ;;  %v579_v32 = vld [vmem:[%s8116_s21 + $0x6c0] sm:$0xff]  ;;  %v714_v35 = vld [vmem:[%s8116_s21 + $0xaf8] sm:$0xff] }
  0x25   : > { %3318 = vmatpush.msra.mxu1 %v606_v20  ;;  %3299 = vmatpush.msra.mxu0 %v453_v22  ;;  %v867_v33 = vld [vmem:[%s8116_s21 + $0xfc0] sm:$0xff]  ;;  %v570_v36 = vld [vmem:[%s8116_s21 + $0x678] sm:$0xff]  ;;  %v417_v38 = vld [vmem:[%s8116_s21 + $0x1b0] sm:$0xff] }
  0x26   : > { %3358 = vmatpush.msra.mxu3 %v894_v21  ;;  %3339 = vmatpush.msra.mxu2 %v741_v23  ;;  %v858_v37 = vld [vmem:[%s8116_s21 + $0xf78] sm:$0xff]  ;;  %v705_v39 = vld [vmem:[%s8116_s21 + $0xab0] sm:$0xff]  ;;  %v408_v42 = vld [vmem:[%s8116_s21 + $0x168] sm:$0xff] }
  0x27   : > { %3319 = vmatpush.msra.mxu1 %v597_v24  ;;  %3300 = vmatpush.msra.mxu0 %v444_v26  ;;  %v561_v40 = vld [vmem:[%s8116_s21 + $0x630] sm:$0xff]  ;;  %v696_v43 = vld [vmem:[%s8116_s21 + $0xa68] sm:$0xff]  ;;  %v399_v46 = vld [vmem:[%s8116_s21 + $0x120] sm:$0xff] }
  0x28   : > { %3359 = vmatpush.msra.mxu3 %v885_v25  ;;  %3340 = vmatpush.msra.mxu2 %v732_v27  ;;  %v849_v41 = vld [vmem:[%s8116_s21 + $0xf30] sm:$0xff]  ;;  %v552_v44 = vld [vmem:[%s8116_s21 + $0x5e8] sm:$0xff]  ;;  %v687_v47 = vld [vmem:[%s8116_s21 + $0xa20] sm:$0xff] }
  0x29   : > { %3320 = vmatpush.msra.mxu1 %v588_v28  ;;  %3301 = vmatpush.msra.mxu0 %v435_v30  ;;  %v840_v45 = vld [vmem:[%s8116_s21 + $0xee8] sm:$0xff]  ;;  %v543_v48 = vld [vmem:[%s8116_s21 + $0x5a0] sm:$0xff]  ;;  %v390_v50 = vld [vmem:[%s8116_s21 + $0xd8] sm:$0xff] }
  0x2a   : > { %3360 = vmatpush.msra.mxu3 %v876_v29  ;;  %3341 = vmatpush.msra.mxu2 %v723_v31  ;;  %v831_v49 = vld [vmem:[%s8116_s21 + $0xea0] sm:$0xff]  ;;  %v678_v51 = vld [vmem:[%s8116_s21 + $0x9d8] sm:$0xff]  ;;  %v381_v54 = vld [vmem:[%s8116_s21 + $0x90] sm:$0xff] }
  0x2b   : > { %3321 = vmatpush.msra.mxu1 %v579_v32  ;;  %3302 = vmatpush.msra.mxu0 %v426_v34  ;;  %v534_v52 = vld [vmem:[%s8116_s21 + $0x558] sm:$0xff]  ;;  %v669_v55 = vld [vmem:[%s8116_s21 + $0x990] sm:$0xff]  ;;  %v372_v58 = vld [vmem:[%s8116_s21 + $0x48] sm:$0xff] }
  0x2c   : > { %3361 = vmatpush.msra.mxu3 %v867_v33  ;;  %3342 = vmatpush.msra.mxu2 %v714_v35  ;;  %v822_v53 = vld [vmem:[%s8116_s21 + $0xe58] sm:$0xff]  ;;  %v525_v56 = vld [vmem:[%s8116_s21 + $0x510] sm:$0xff]  ;;  %v660_v59 = vld [vmem:[%s8116_s21 + $0x948] sm:$0xff] }
  0x2d   : > { %3322 = vmatpush.msra.mxu1 %v570_v36  ;;  %3303 = vmatpush.msra.mxu0 %v417_v38  ;;  %v813_v57 = vld [vmem:[%s8116_s21 + $0xe10] sm:$0xff]  ;;  %v516_v60 = vld [vmem:[%s8116_s21 + $0x4c8] sm:$0xff]  ;;  %v363_v62 = vld [vmem:[%s8116_s21] sm:$0xff] }
  0x2e   : > { %3362 = vmatpush.msra.mxu3 %v858_v37  ;;  %3343 = vmatpush.msra.mxu2 %v705_v39  ;;  %v804_v61 = vld [vmem:[%s8116_s21 + $0xdc8] sm:$0xff]  ;;  %v651_v63 = vld [vmem:[%s8116_s21 + $0x900] sm:$0xff]  ;;  %v1074_v0 = vld [vmem:[%s8116_s21 + $0x1638] sm:$0xff] }
  0x2f   : > { %3323 = vmatpush.msra.mxu1 %v561_v40  ;;  %3304 = vmatpush.msra.mxu0 %v408_v42  ;;  %v1362_v1 = vld [vmem:[%s8116_s21 + $0x1f38] sm:$0xff]  ;;  %v507_v2 = vld [vmem:[%s8116_s21 + $0x480] sm:$0xff]  ;;  %v1065_v4 = vld [vmem:[%s8116_s21 + $0x15f0] sm:$0xff] }
  0x30   : > { %3363 = vmatpush.msra.mxu3 %v849_v41  ;;  %3344 = vmatpush.msra.mxu2 %v696_v43  ;;  %v795_v3 = vld [vmem:[%s8116_s21 + $0xd80] sm:$0xff]  ;;  %v1218_v5 = vld [vmem:[%s8116_s21 + $0x1ab8] sm:$0xff]  ;;  %v1353_v6 = vld [vmem:[%s8116_s21 + $0x1ef0] sm:$0xff] }
  0x31   : > { %3324 = vmatpush.msra.mxu1 %v552_v44  ;;  %3305 = vmatpush.msra.mxu0 %v399_v46  ;;  %v1506_v7 = vld [vmem:[%s8116_s21 + $0x23b8] sm:$0xff]  ;;  %v1056_v8 = vld [vmem:[%s8116_s21 + $0x15a8] sm:$0xff]  ;;  %v1209_v9 = vld [vmem:[%s8116_s21 + $0x1a70] sm:$0xff] }
  0x32   : > { %3364 = vmatpush.msra.mxu3 %v840_v45  ;;  %3345 = vmatpush.msra.mxu2 %v687_v47  ;;  %v1344_v10 = vld [vmem:[%s8116_s21 + $0x1ea8] sm:$0xff]  ;;  %v1497_v11 = vld [vmem:[%s8116_s21 + $0x2370] sm:$0xff]  ;;  %v1047_v12 = vld [vmem:[%s8116_s21 + $0x1560] sm:$0xff] }
  0x33   : > { %3325 = vmatpush.msra.mxu1 %v543_v48  ;;  %3306 = vmatpush.msra.mxu0 %v390_v50  ;;  %v1200_v13 = vld [vmem:[%s8116_s21 + $0x1a28] sm:$0xff]  ;;  %v1335_v14 = vld [vmem:[%s8116_s21 + $0x1e60] sm:$0xff]  ;;  %v1038_v16 = vld [vmem:[%s8116_s21 + $0x1518] sm:$0xff] }
  0x34   : > { %3365 = vmatpush.msra.mxu3 %v831_v49  ;;  %3346 = vmatpush.msra.mxu2 %v678_v51  ;;  %v1488_v15 = vld [vmem:[%s8116_s21 + $0x2328] sm:$0xff]  ;;  %v1191_v17 = vld [vmem:[%s8116_s21 + $0x19e0] sm:$0xff]  ;;  %v1326_v18 = vld [vmem:[%s8116_s21 + $0x1e18] sm:$0xff] }
  0x35   : > { %3326 = vmatpush.msra.mxu1 %v534_v52  ;;  %3307 = vmatpush.msra.mxu0 %v381_v54  ;;  %v1479_v19 = vld [vmem:[%s8116_s21 + $0x22e0] sm:$0xff]  ;;  %v1029_v20 = vld [vmem:[%s8116_s21 + $0x14d0] sm:$0xff]  ;;  %v1182_v21 = vld [vmem:[%s8116_s21 + $0x1998] sm:$0xff] }
  0x36   : > { %3366 = vmatpush.msra.mxu3 %v822_v53  ;;  %3347 = vmatpush.msra.mxu2 %v669_v55  ;;  %v1317_v22 = vld [vmem:[%s8116_s21 + $0x1dd0] sm:$0xff]  ;;  %v1470_v23 = vld [vmem:[%s8116_s21 + $0x2298] sm:$0xff]  ;;  %v358_v24 = vld [vmem:[%s8111_s17] sm:$0xff] }
  0x37   : > { %3327 = vmatpush.msra.mxu1 %v525_v56  ;;  %3308 = vmatpush.msra.mxu0 %v372_v58  ;;  %v1020_v25 = vld [vmem:[%s8116_s21 + $0x1488] sm:$0xff]  ;;  %v1173_v26 = vld [vmem:[%s8116_s21 + $0x1950] sm:$0xff]  ;;  %3248 = vst [vmem:[#allocation1] ss:$4 sm:$0xff] %v358_v24  ;;  %v1011_v29 = vld [vmem:[%s8116_s21 + $0x1440] sm:$0xff] }
  0x38   : > { %3367 = vmatpush.msra.mxu3 %v813_v57  ;;  %3348 = vmatpush.msra.mxu2 %v660_v59  ;;  %v1308_v27 = vld [vmem:[%s8116_s21 + $0x1d88] sm:$0xff]  ;;  %v1461_v28 = vld [vmem:[%s8116_s21 + $0x2250] sm:$0xff]  ;;  %v1299_v31 = vld [vmem:[%s8116_s21 + $0x1d40] sm:$0xff] }
  0x39   : > { %3328 = vmatpush.msra.mxu1 %v516_v60  ;;  %3309 = vmatpush.msra.mxu0 %v363_v62  ;;  %v1164_v30 = vld [vmem:[%s8116_s21 + $0x1908] sm:$0xff]  ;;  %v1002_v33 = vld [vmem:[%s8116_s21 + $0x13f8] sm:$0xff]  ;;  %v1155_v34 = vld [vmem:[%s8116_s21 + $0x18c0] sm:$0xff] }
  0x3a   : > { %3368 = vmatpush.msra.mxu3 %v804_v61  ;;  %3349 = vmatpush.msra.mxu2 %v651_v63  ;;  %v1452_v32 = vld [vmem:[%s8116_s21 + $0x2208] sm:$0xff]  ;;  %v1290_v35 = vld [vmem:[%s8116_s21 + $0x1cf8] sm:$0xff]  ;;  %v1443_v36 = vld [vmem:[%s8116_s21 + $0x21c0] sm:$0xff] }
  0x3b   : > { %3374 = vmatpush.msrb.mxu0 %v1074_v0  ;;  %3329 = vmatpush.msra.mxu1 %v507_v2  ;;  %v359_v37 = vld [vmem:[%s8111_s17 + $0x8] sm:$0xff]  ;;  %v993_v38 = vld [vmem:[%s8116_s21 + $0x13b0] sm:$0xff]  ;;  %v1146_v39 = vld [vmem:[%s8116_s21 + $0x1878] sm:$0xff] }
  0x3c   : > { %3414 = vmatpush.msrb.mxu2 %v1362_v1  ;;  %3369 = vmatpush.msra.mxu3 %v795_v3  ;;  %3250 = vst [vmem:[#allocation1 + $0x20] ss:$4 sm:$0xff] %v359_v37  ;;  %v1281_v40 = vld [vmem:[%s8116_s21 + $0x1cb0] sm:$0xff]  ;;  %v1434_v41 = vld [vmem:[%s8116_s21 + $0x2178] sm:$0xff]  ;;  %v984_v42 = vld [vmem:[%s8116_s21 + $0x1368] sm:$0xff] }
  0x3d   : > { %3375 = vmatpush.msrb.mxu0 %v1065_v4  ;;  %3394 = vmatpush.msrb.mxu1 %v1218_v5  ;;  %v1137_v43 = vld [vmem:[%s8116_s21 + $0x1830] sm:$0xff]  ;;  %v1272_v44 = vld [vmem:[%s8116_s21 + $0x1c68] sm:$0xff]  ;;  %v975_v46 = vld [vmem:[%s8116_s21 + $0x1320] sm:$0xff] }
  0x3e   : > { %3415 = vmatpush.msrb.mxu2 %v1353_v6  ;;  %3434 = vmatpush.msrb.mxu3 %v1506_v7  ;;  %v1425_v45 = vld [vmem:[%s8116_s21 + $0x2130] sm:$0xff]  ;;  %v1128_v47 = vld [vmem:[%s8116_s21 + $0x17e8] sm:$0xff]  ;;  %v1263_v48 = vld [vmem:[%s8116_s21 + $0x1c20] sm:$0xff] }
  0x3f   : > { %3376 = vmatpush.msrb.mxu0 %v1056_v8  ;;  %3395 = vmatpush.msrb.mxu1 %v1209_v9  ;;  %v1416_v49 = vld [vmem:[%s8116_s21 + $0x20e8] sm:$0xff]  ;;  %v966_v50 = vld [vmem:[%s8116_s21 + $0x12d8] sm:$0xff]  ;;  %v1119_v51 = vld [vmem:[%s8116_s21 + $0x17a0] sm:$0xff] }
  0x40   : > { %3416 = vmatpush.msrb.mxu2 %v1344_v10  ;;  %3435 = vmatpush.msrb.mxu3 %v1497_v11  ;;  %v1254_v52 = vld [vmem:[%s8116_s21 + $0x1bd8] sm:$0xff]  ;;  %v1407_v53 = vld [vmem:[%s8116_s21 + $0x20a0] sm:$0xff]  ;;  %v957_v54 = vld [vmem:[%s8116_s21 + $0x1290] sm:$0xff] }
  0x41   : > { %3377 = vmatpush.msrb.mxu0 %v1047_v12  ;;  %3396 = vmatpush.msrb.mxu1 %v1200_v13  ;;  %v1110_v55 = vld [vmem:[%s8116_s21 + $0x1758] sm:$0xff]  ;;  %v1245_v61 = vld [vmem:[%s8116_s21 + $0x1b90] sm:$0xff]  ;;  %v948_v63 = vld [vmem:[%s8116_s21 + $0x1248] sm:$0xff] }
  0x42   : > { %3417 = vmatpush.msrb.mxu2 %v1335_v14  ;;  %3436 = vmatpush.msrb.mxu3 %v1488_v15  ;;  %v361_v56 = vld [vmem:[%s8111_s17 + $0x18] sm:$0xff]  ;;  %v1101_v0 = vld [vmem:[%s8116_s21 + $0x1710] sm:$0xff]  ;;  %v1236_v1 = vld [vmem:[%s8116_s21 + $0x1b48] sm:$0xff] }
  0x43   : > { %3378 = vmatpush.msrb.mxu0 %v1038_v16  ;;  %3397 = vmatpush.msrb.mxu1 %v1191_v17  ;;  %v8238_v57 = vld.sshfl [vmem:[#allocation1 + $0x30] sm:$0xff pattern:$0x73625140]  ;;  %v8240_v58 = vld.sshfl [vmem:[#allocation1 + $0x20] sm:$0xff pattern:$0x73625140] }
  0x44   : > { %3418 = vmatpush.msrb.mxu2 %v1326_v18  ;;  %3437 = vmatpush.msrb.mxu3 %v1479_v19  ;;  %v8242_v59 = vld.sshfl [vmem:[#allocation1 + $0x38] sm:$0xff pattern:$0x73625140]  ;;  %v8244_v60 = vld.sshfl [vmem:[#allocation1 + $0x28] sm:$0xff pattern:$0x73625140] }
  0x45   : > { %3379 = vmatpush.msrb.mxu0 %v1029_v20  ;;  %3398 = vmatpush.msrb.mxu1 %v1182_v21  ;;  %v1398_v62 = vld [vmem:[%s8116_s21 + $0x2058] sm:$0xff]  ;;  %3260 = vst [vmem:[#allocation1 + $0x20] ss:$4 sm:$0xff] %v361_v56  ;;  %v1389_v2 = vld [vmem:[%s8116_s21 + $0x2010] sm:$0xff]  ;;  %v939_v4 = vld [vmem:[%s8116_s21 + $0x1200] sm:$0xff] }
  0x46   : > { %3419 = vmatpush.msrb.mxu2 %v1317_v22  ;;  %3438 = vmatpush.msrb.mxu3 %v1470_v23  ;;  %v8252_v3 = vld.sshfl [vmem:[#allocation1 + $0x10] sm:$0xff pattern:$0x73625140]  ;;  %v1092_v5 = vld [vmem:[%s8116_s21 + $0x16c8] sm:$0xff]  ;;  %v1227_v6 = vld [vmem:[%s8116_s21 + $0x1b00] sm:$0xff] }
  0x47   : > { %3380 = vmatpush.msrb.mxu0 %v1020_v25  ;;  %3399 = vmatpush.msrb.mxu1 %v1173_v26  ;;  %12435 = vst [vmem:[#allocation4_spill] sm:$0xff] %v8252_v3  ;;  %v1380_v7 = vld [vmem:[%s8116_s21 + $0x1fc8] sm:$0xff]  ;;  %v8258_v8 = vld.sshfl [vmem:[#allocation1] sm:$0xff pattern:$0x73625140]  ;;  %v1650_v10 = vld [vmem:[%s8116_s21 + $0x2838] sm:$0xff] }
  0x48   : > { %3420 = vmatpush.msrb.mxu2 %v1308_v27  ;;  %3439 = vmatpush.msrb.mxu3 %v1461_v28  ;;  %12436 = vst [vmem:[#allocation5_spill] sm:$0xff] %v8258_v8  ;;  %v8261_v9 = vld.sshfl [vmem:[#allocation1 + $0x18] sm:$0xff pattern:$0x73625140]  ;;  %v1083_v12 = vld [vmem:[%s8116_s21 + $0x1680] sm:$0xff]  ;;  %v1641_v15 = vld [vmem:[%s8116_s21 + $0x27f0] sm:$0xff] }
  0x49   : > { %3381 = vmatpush.msrb.mxu0 %v1011_v29  ;;  %3400 = vmatpush.msrb.mxu1 %v1164_v30  ;;  %12437 = vst [vmem:[#allocation6_spill] sm:$0xff] %v8261_v9  ;;  %v1938_v11 = vld [vmem:[%s8116_s21 + $0x3138] sm:$0xff]  ;;  %v1371_v13 = vld [vmem:[%s8116_s21 + $0x1f80] sm:$0xff]  ;;  %v8268_v14 = vld.sshfl [vmem:[#allocation1 + $0x8] sm:$0xff pattern:$0x73625140] }
  0x4a   : > { %3421 = vmatpush.msrb.mxu2 %v1299_v31  ;;  %3440 = vmatpush.msrb.mxu3 %v1452_v32  ;;  %12438 = vst [vmem:[#allocation7_spill] sm:$0xff] %v8268_v14  ;;  %v1794_v16 = vld [vmem:[%s8116_s21 + $0x2cb8] sm:$0xff]  ;;  %v1929_v17 = vld [vmem:[%s8116_s21 + $0x30f0] sm:$0xff]  ;;  %v1632_v19 = vld [vmem:[%s8116_s21 + $0x27a8] sm:$0xff] }
  0x4b   : > { %3382 = vmatpush.msrb.mxu0 %v1002_v33  ;;  %3401 = vmatpush.msrb.mxu1 %v1155_v34  ;;  %v2082_v18 = vld [vmem:[%s8116_s21 + $0x35b8] sm:$0xff]  ;;  %v1785_v20 = vld [vmem:[%s8116_s21 + $0x2c70] sm:$0xff]  ;;  %v1920_v21 = vld [vmem:[%s8116_s21 + $0x30a8] sm:$0xff] }
  0x4c   : > { %3422 = vmatpush.msrb.mxu2 %v1290_v35  ;;  %3441 = vmatpush.msrb.mxu3 %v1443_v36  ;;  %v2073_v22 = vld [vmem:[%s8116_s21 + $0x3570] sm:$0xff]  ;;  %v1623_v24 = vld [vmem:[%s8116_s21 + $0x2760] sm:$0xff]  ;;  %v1776_v25 = vld [vmem:[%s8116_s21 + $0x2c28] sm:$0xff] }
  0x4d   : > { %3383 = vmatpush.msrb.mxu0 %v993_v38  ;;  %3402 = vmatpush.msrb.mxu1 %v1146_v39  ;;  %v360_v23 = vld [vmem:[%s8111_s17 + $0x10] sm:$0xff]  ;;  %v1911_v26 = vld [vmem:[%s8116_s21 + $0x3060] sm:$0xff]  ;;  %v2064_v27 = vld [vmem:[%s8116_s21 + $0x3528] sm:$0xff] }
  0x4e   : > { %3423 = vmatpush.msrb.mxu2 %v1281_v40  ;;  %3442 = vmatpush.msrb.mxu3 %v1434_v41  ;;  %3259 = vst [vmem:[#allocation1] ss:$4 sm:$0xff] %v360_v23  ;;  %v1614_v28 = vld [vmem:[%s8116_s21 + $0x2718] sm:$0xff]  ;;  %v1767_v29 = vld [vmem:[%s8116_s21 + $0x2be0] sm:$0xff]  ;;  %v1605_v32 = vld [vmem:[%s8116_s21 + $0x26d0] sm:$0xff] }
  0x4f   : > { %3384 = vmatpush.msrb.mxu0 %v984_v42  ;;  %3403 = vmatpush.msrb.mxu1 %v1137_v43  ;;  %v1902_v30 = vld [vmem:[%s8116_s21 + $0x3018] sm:$0xff]  ;;  %v2055_v31 = vld [vmem:[%s8116_s21 + $0x34e0] sm:$0xff]  ;;  %v1893_v34 = vld [vmem:[%s8116_s21 + $0x2fd0] sm:$0xff] }
  0x50   : > { %3424 = vmatpush.msrb.mxu2 %v1272_v44  ;;  %3443 = vmatpush.msrb.mxu3 %v1425_v45  ;;  %v1758_v33 = vld [vmem:[%s8116_s21 + $0x2b98] sm:$0xff]  ;;  %v1596_v36 = vld [vmem:[%s8116_s21 + $0x2688] sm:$0xff]  ;;  %v1749_v37 = vld [vmem:[%s8116_s21 + $0x2b50] sm:$0xff] }
  0x51   : > { %3385 = vmatpush.msrb.mxu0 %v975_v46  ;;  %3404 = vmatpush.msrb.mxu1 %v1128_v47  ;;  %v2046_v35 = vld [vmem:[%s8116_s21 + $0x3498] sm:$0xff]  ;;  %v362_v38 = vld [vmem:[%s8111_s17 + $0x20] sm:$0xff]  ;;  %v1884_v43 = vld [vmem:[%s8116_s21 + $0x2f88] sm:$0xff] }
  0x52   : > { %3425 = vmatpush.msrb.mxu2 %v1263_v48  ;;  %3444 = vmatpush.msrb.mxu3 %v1416_v49  ;;  %v2037_v44 = vld [vmem:[%s8116_s21 + $0x3450] sm:$0xff]  ;;  %v1587_v45 = vld [vmem:[%s8116_s21 + $0x2640] sm:$0xff]  ;;  %v1740_v46 = vld [vmem:[%s8116_s21 + $0x2b08] sm:$0xff] }
  0x53   : > { %3386 = vmatpush.msrb.mxu0 %v966_v50  ;;  %3405 = vmatpush.msrb.mxu1 %v1119_v51  ;;  %v1875_v47 = vld [vmem:[%s8116_s21 + $0x2f40] sm:$0xff]  ;;  %v2028_v48 = vld [vmem:[%s8116_s21 + $0x3408] sm:$0xff]  ;;  %v1578_v49 = vld [vmem:[%s8116_s21 + $0x25f8] sm:$0xff] }
  0x54   : > { %3426 = vmatpush.msrb.mxu2 %v1254_v52  ;;  %3445 = vmatpush.msrb.mxu3 %v1407_v53  ;;  %v1731_v50 = vld [vmem:[%s8116_s21 + $0x2ac0] sm:$0xff]  ;;  %v1866_v51 = vld [vmem:[%s8116_s21 + $0x2ef8] sm:$0xff]  ;;  %v1569_v53 = vld [vmem:[%s8116_s21 + $0x25b0] sm:$0xff] }
  0x55   : > { %3387 = vmatpush.msrb.mxu0 %v957_v54  ;;  %3406 = vmatpush.msrb.mxu1 %v1110_v55  ;;  %v8299_v39 = vld.sshfl [vmem:[#allocation1] sm:$0xff pattern:$0x73625140]  ;;  %v8301_v40 = vld.sshfl [vmem:[#allocation1 + $0x10] sm:$0xff pattern:$0x73625140] }
  0x56   : > { %3427 = vmatpush.msrb.mxu2 %v1245_v61  ;;  %3446 = vmatpush.msrb.mxu3 %v1398_v62  ;;  %v8304_v41 = vld.sshfl [vmem:[#allocation1 + $0x8] sm:$0xff pattern:$0x73625140]  ;;  %v8306_v42 = vld.sshfl [vmem:[#allocation1 + $0x18] sm:$0xff pattern:$0x73625140] }
  0x57   : > { %3388 = vmatpush.msrb.mxu0 %v948_v63  ;;  %3407 = vmatpush.msrb.mxu1 %v1101_v0  ;;  %3269 = vst [vmem:[#allocation1] ss:$4 sm:$0xff] %v362_v38  ;;  %v2019_v52 = vld [vmem:[%s8116_s21 + $0x33c0] sm:$0xff]  ;;  %v1722_v54 = vld [vmem:[%s8116_s21 + $0x2a78] sm:$0xff]  ;;  %v1857_v55 = vld [vmem:[%s8116_s21 + $0x2eb0] sm:$0xff] }
  0x58   : > { %3428 = vmatpush.msrb.mxu2 %v1236_v1  ;;  %3447 = vmatpush.msrb.mxu3 %v1389_v2  ;;  %v2010_v56 = vld [vmem:[%s8116_s21 + $0x3378] sm:$0xff]  ;;  %v1560_v61 = vld [vmem:[%s8116_s21 + $0x2568] sm:$0xff]  ;;  %v1713_v62 = vld [vmem:[%s8116_s21 + $0x2a30] sm:$0xff] }
  0x59   : > { %3350 = vmatmul.f32.vlgmr.msra.gmra.mxu2 %v8252_v3  ;;  %3389 = vmatpush.msrb.mxu0 %v939_v4  ;;  %v1848_v63 = vld [vmem:[%s8116_s21 + $0x2e68] sm:$0xff]  ;;  %v2001_v0 = vld [vmem:[%s8116_s21 + $0x3330] sm:$0xff]  ;;  %v1551_v1 = vld [vmem:[%s8116_s21 + $0x2520] sm:$0xff] }
  0x5a   : > { %3408 = vmatpush.msrb.mxu1 %v1092_v5  ;;  %3429 = vmatpush.msrb.mxu2 %v1227_v6  ;;  %v1704_v2 = vld [vmem:[%s8116_s21 + $0x29e8] sm:$0xff]  ;;  %v1839_v4 = vld [vmem:[%s8116_s21 + $0x2e20] sm:$0xff]  ;;  %v1542_v6 = vld [vmem:[%s8116_s21 + $0x24d8] sm:$0xff] }
  0x5b   : > { %3448 = vmatpush.msrb.mxu3 %v1380_v7  ;;  %3310 = vmatmul.f32.vlgmr.msra.gmra.mxu0 %v8258_v8  ;;  %v1992_v5 = vld [vmem:[%s8116_s21 + $0x32e8] sm:$0xff]  ;;  %v1695_v7 = vld [vmem:[%s8116_s21 + $0x29a0] sm:$0xff] }
  0x5c   : > { %3370 = vmatmul.f32.vlgmr.msra.gmra.mxu3 %v8261_v9  ;;  %3454 = vmatpush.msra.mxu0 %v1650_v10  ;;  %v1830_v10 = vld [vmem:[%s8116_s21 + $0x2dd8] sm:$0xff]  ;;  %v1803_v23 = vld [vmem:[%s8116_s21 + $0x2d00] sm:$0xff]  ;;  %v2352_v38 = vld [vmem:[%s8116_s21 + $0x3e28] sm:$0xff] }
  0x5d   : > { %3494 = vmatpush.msra.mxu2 %v1938_v11  ;;  %3409 = vmatpush.msrb.mxu1 %v1083_v12  ;;  %v1983_v11 = vld [vmem:[%s8116_s21 + $0x32a0] sm:$0xff]  ;;  %v1533_v12 = vld [vmem:[%s8116_s21 + $0x2490] sm:$0xff] }
  0x5e   : > { %3449 = vmatpush.msrb.mxu3 %v1371_v13  ;;  %3330 = vmatmul.f32.vlgmr.msra.gmra.mxu1 %v8268_v14  ;;  %v1686_v13 = vld [vmem:[%s8116_s21 + $0x2958] sm:$0xff] }
  0x5f   : > { %3455 = vmatpush.msra.mxu0 %v1641_v15  ;;  %3474 = vmatpush.msra.mxu1 %v1794_v16  ;;  %v1821_v15 = vld [vmem:[%s8116_s21 + $0x2d90] sm:$0xff]  ;;  %v1974_v16 = vld [vmem:[%s8116_s21 + $0x3258] sm:$0xff] }
  0x60   : > { %3495 = vmatpush.msra.mxu2 %v1929_v17  ;;  %3514 = vmatpush.msra.mxu3 %v2082_v18  ;;  %v1524_v17 = vld [vmem:[%s8116_s21 + $0x2448] sm:$0xff]  ;;  %v1677_v18 = vld [vmem:[%s8116_s21 + $0x2910] sm:$0xff] }
  0x61   : > { %3456 = vmatpush.msra.mxu0 %v1632_v19  ;;  %3475 = vmatpush.msra.mxu1 %v1785_v20  ;;  %v1812_v19 = vld [vmem:[%s8116_s21 + $0x2d48] sm:$0xff]  ;;  %v1965_v20 = vld [vmem:[%s8116_s21 + $0x3210] sm:$0xff] }
  0x62   : > { %3496 = vmatpush.msra.mxu2 %v1920_v21  ;;  %3515 = vmatpush.msra.mxu3 %v2073_v22  ;;  %v1515_v21 = vld [vmem:[%s8116_s21 + $0x2400] sm:$0xff]  ;;  %v1668_v22 = vld [vmem:[%s8116_s21 + $0x28c8] sm:$0xff] }
  0x63   : > { %3430 = vmatmul.f32.vlgmr.msrb.gmra.mxu2 %v8238_v57  ;;  %3457 = vmatpush.msra.mxu0 %v1623_v24  ;;  %v1956_v24 = vld [vmem:[%s8116_s21 + $0x31c8] sm:$0xff] }
  0x64   : > { %3476 = vmatpush.msra.mxu1 %v1776_v25  ;;  %3497 = vmatpush.msra.mxu2 %v1911_v26  ;;  %v2226_v25 = vld [vmem:[%s8116_s21 + $0x3a38] sm:$0xff] }
  0x65   : > { %3516 = vmatpush.msra.mxu3 %v2064_v27  ;;  %3390 = vmatmul.f32.vlgmr.msrb.gmra.mxu0 %v8240_v58  ;;  %v2514_v26 = vld [vmem:[%s8116_s21 + $0x4338] sm:$0xff]  ;;  %v1659_v27 = vld [vmem:[%s8116_s21 + $0x2880] sm:$0xff] }
  0x66   : > { %3450 = vmatmul.f32.vlgmr.msrb.gmra.mxu3 %v8242_v59  ;;  %3458 = vmatpush.msra.mxu0 %v1614_v28  ;;  %v1947_v28 = vld [vmem:[%s8116_s21 + $0x3180] sm:$0xff] }
  0x67   : > { %3477 = vmatpush.msra.mxu1 %v1767_v29  ;;  %3498 = vmatpush.msra.mxu2 %v1902_v30  ;;  %v2217_v29 = vld [vmem:[%s8116_s21 + $0x39f0] sm:$0xff]  ;;  %v2370_v30 = vld [vmem:[%s8116_s21 + $0x3eb8] sm:$0xff] }
  0x68   : > { %3517 = vmatpush.msra.mxu3 %v2055_v31  ;;  %3410 = vmatmul.f32.vlgmr.msrb.gmra.mxu1 %v8244_v60  ;;  %v2505_v31 = vld [vmem:[%s8116_s21 + $0x42f0] sm:$0xff] }
  0x69   : > { %3459 = vmatpush.msra.mxu0 %v1605_v32  ;;  %3478 = vmatpush.msra.mxu1 %v1758_v33  ;;  %v2658_v32 = vld [vmem:[%s8116_s21 + $0x47b8] sm:$0xff]  ;;  %v2208_v33 = vld [vmem:[%s8116_s21 + $0x39a8] sm:$0xff] }
  0x6a   : > { %3499 = vmatpush.msra.mxu2 %v1893_v34  ;;  %3518 = vmatpush.msra.mxu3 %v2046_v35  ;;  %v2361_v34 = vld [vmem:[%s8116_s21 + $0x3e70] sm:$0xff]  ;;  %v2496_v35 = vld [vmem:[%s8116_s21 + $0x42a8] sm:$0xff] }
  0x6b   : > { %3460 = vmatpush.msra.mxu0 %v1596_v36  ;;  %3479 = vmatpush.msra.mxu1 %v1749_v37  ;;  %v2649_v36 = vld [vmem:[%s8116_s21 + $0x4770] sm:$0xff]  ;;  %v2199_v37 = vld [vmem:[%s8116_s21 + $0x3960] sm:$0xff] }
  0x6c   : > { %3500 = vmatpush.msra.mxu2 %v1884_v43  ;;  %3519 = vmatpush.msra.mxu3 %v2037_v44  ;;  %v2487_v43 = vld [vmem:[%s8116_s21 + $0x4260] sm:$0xff]  ;;  %v2640_v44 = vld [vmem:[%s8116_s21 + $0x4728] sm:$0xff] }
  0x6d   : > { %3461 = vmatpush.msra.mxu0 %v1587_v45  ;;  %3480 = vmatpush.msra.mxu1 %v1740_v46  ;;  %v2190_v45 = vld [vmem:[%s8116_s21 + $0x3918] sm:$0xff]  ;;  %v2343_v46 = vld [vmem:[%s8116_s21 + $0x3de0] sm:$0xff] }
  0x6e   : > { %3501 = vmatpush.msra.mxu2 %v1875_v47  ;;  %3520 = vmatpush.msra.mxu3 %v2028_v48  ;;  %v2478_v47 = vld [vmem:[%s8116_s21 + $0x4218] sm:$0xff]  ;;  %v2631_v48 = vld [vmem:[%s8116_s21 + $0x46e0] sm:$0xff] }
  0x6f   : > { %3462 = vmatpush.msra.mxu0 %v1578_v49  ;;  %3481 = vmatpush.msra.mxu1 %v1731_v50  ;;  %v2181_v49 = vld [vmem:[%s8116_s21 + $0x38d0] sm:$0xff]  ;;  %v2334_v50 = vld [vmem:[%s8116_s21 + $0x3d98] sm:$0xff] }
  0x70   : > { %3502 = vmatpush.msra.mxu2 %v1866_v51  ;;  %3521 = vmatpush.msra.mxu3 %v2019_v52  ;;  %v2469_v51 = vld [vmem:[%s8116_s21 + $0x41d0] sm:$0xff]  ;;  %v2622_v52 = vld [vmem:[%s8116_s21 + $0x4698] sm:$0xff] }
  0x71   : > { %3463 = vmatpush.msra.mxu0 %v1569_v53  ;;  %3482 = vmatpush.msra.mxu1 %v1722_v54  ;;  %v2172_v53 = vld [vmem:[%s8116_s21 + $0x3888] sm:$0xff]  ;;  %v2325_v54 = vld [vmem:[%s8116_s21 + $0x3d50] sm:$0xff] }
  0x72   : > { %3503 = vmatpush.msra.mxu2 %v1857_v55  ;;  %3522 = vmatpush.msra.mxu3 %v2010_v56  ;;  %v2460_v55 = vld [vmem:[%s8116_s21 + $0x4188] sm:$0xff]  ;;  %v2613_v56 = vld [vmem:[%s8116_s21 + $0x4650] sm:$0xff] }
  0x73   : > { %3464 = vmatpush.msra.mxu0 %v1560_v61  ;;  %3483 = vmatpush.msra.mxu1 %v1713_v62  ;;  %v2163_v61 = vld [vmem:[%s8116_s21 + $0x3840] sm:$0xff]  ;;  %v2316_v62 = vld [vmem:[%s8116_s21 + $0x3d08] sm:$0xff] }
  0x74   : > { %3504 = vmatpush.msra.mxu2 %v1848_v63  ;;  %3523 = vmatpush.msra.mxu3 %v2001_v0  ;;  %v2451_v63 = vld [vmem:[%s8116_s21 + $0x4140] sm:$0xff]  ;;  %v2604_v0 = vld [vmem:[%s8116_s21 + $0x4608] sm:$0xff] }
  0x75   : > { %3465 = vmatpush.msra.mxu0 %v1551_v1  ;;  %3484 = vmatpush.msra.mxu1 %v1704_v2  ;;  %v2154_v1 = vld [vmem:[%s8116_s21 + $0x37f8] sm:$0xff]  ;;  %v2307_v2 = vld [vmem:[%s8116_s21 + $0x3cc0] sm:$0xff] }
  0x76   : > { %3505 = vmatpush.msra.mxu2 %v1839_v4  ;;  %3524 = vmatpush.msra.mxu3 %v1992_v5  ;;  %v2442_v4 = vld [vmem:[%s8116_s21 + $0x40f8] sm:$0xff]  ;;  %v2595_v5 = vld [vmem:[%s8116_s21 + $0x45c0] sm:$0xff] }
  0x77   : > { %3466 = vmatpush.msra.mxu0 %v1542_v6  ;;  %3485 = vmatpush.msra.mxu1 %v1695_v7  ;;  %v2145_v6 = vld [vmem:[%s8116_s21 + $0x37b0] sm:$0xff]  ;;  %v2298_v7 = vld [vmem:[%s8116_s21 + $0x3c78] sm:$0xff] }
  0x78   : > { %3506 = vmatpush.msra.mxu2 %v1830_v10  ;;  %3525 = vmatpush.msra.mxu3 %v1983_v11  ;;  %v2433_v10 = vld [vmem:[%s8116_s21 + $0x40b0] sm:$0xff]  ;;  %v2586_v11 = vld [vmem:[%s8116_s21 + $0x4578] sm:$0xff] }
  0x79   : > { %3467 = vmatpush.msra.mxu0 %v1533_v12  ;;  %3486 = vmatpush.msra.mxu1 %v1686_v13  ;;  %v2136_v12 = vld [vmem:[%s8116_s21 + $0x3768] sm:$0xff]  ;;  %v2289_v13 = vld [vmem:[%s8116_s21 + $0x3c30] sm:$0xff] }
  0x7a   : > { %3507 = vmatpush.msra.mxu2 %v1821_v15  ;;  %3526 = vmatpush.msra.mxu3 %v1974_v16  ;;  %v2424_v15 = vld [vmem:[%s8116_s21 + $0x4068] sm:$0xff]  ;;  %v2577_v16 = vld [vmem:[%s8116_s21 + $0x4530] sm:$0xff] }
  0x7b   : > { %3468 = vmatpush.msra.mxu0 %v1524_v17  ;;  %3487 = vmatpush.msra.mxu1 %v1677_v18  ;;  %v2127_v17 = vld [vmem:[%s8116_s21 + $0x3720] sm:$0xff]  ;;  %v2280_v18 = vld [vmem:[%s8116_s21 + $0x3be8] sm:$0xff] }
  0x7c   : > { %3508 = vmatpush.msra.mxu2 %v1812_v19  ;;  %3527 = vmatpush.msra.mxu3 %v1965_v20  ;;  %v2415_v19 = vld [vmem:[%s8116_s21 + $0x4020] sm:$0xff]  ;;  %v2568_v20 = vld [vmem:[%s8116_s21 + $0x44e8] sm:$0xff] }
  0x7d   : > { %3469 = vmatpush.msra.mxu0 %v1515_v21  ;;  %3488 = vmatpush.msra.mxu1 %v1668_v22  ;;  %v2118_v21 = vld [vmem:[%s8116_s21 + $0x36d8] sm:$0xff]  ;;  %v2271_v22 = vld [vmem:[%s8116_s21 + $0x3ba0] sm:$0xff] }
  0x7e   : > { %3509 = vmatpush.msra.mxu2 %v1803_v23  ;;  %3528 = vmatpush.msra.mxu3 %v1956_v24  ;;  %v2406_v23 = vld [vmem:[%s8116_s21 + $0x3fd8] sm:$0xff]  ;;  %v2559_v24 = vld [vmem:[%s8116_s21 + $0x44a0] sm:$0xff] }
  0x7f   : > { %3470 = vmatmul.f32.vlgmr.msra.gmra.mxu0 %v8299_v39  ;;  %3510 = vmatmul.f32.vlgmr.msra.gmra.mxu2 %v8301_v40 }
  0x80   : > { %3534 = vmatpush.msrb.mxu0 %v2226_v25  ;;  %3574 = vmatpush.msrb.mxu2 %v2514_v26  ;;  %v2109_v25 = vld [vmem:[%s8116_s21 + $0x3690] sm:$0xff]  ;;  %v2262_v26 = vld [vmem:[%s8116_s21 + $0x3b58] sm:$0xff] }
  0x81   : > { %3489 = vmatpush.msra.mxu1 %v1659_v27  ;;  %3529 = vmatpush.msra.mxu3 %v1947_v28  ;;  %v2397_v27 = vld [vmem:[%s8116_s21 + $0x3f90] sm:$0xff]  ;;  %v2550_v28 = vld [vmem:[%s8116_s21 + $0x4458] sm:$0xff] }
  0x82   : > { %3490 = vmatmul.f32.vlgmr.msra.gmra.mxu1 %v8304_v41  ;;  %3530 = vmatmul.f32.vlgmr.msra.gmra.mxu3 %v8306_v42 }
  0x83   : > { %3535 = vmatpush.msrb.mxu0 %v2217_v29  ;;  %3554 = vmatpush.msrb.mxu1 %v2370_v30  ;;  %v2100_v29 = vld [vmem:[%s8116_s21 + $0x3648] sm:$0xff]  ;;  %v2253_v30 = vld [vmem:[%s8116_s21 + $0x3b10] sm:$0xff] }
  0x84   : > { %3575 = vmatpush.msrb.mxu2 %v2505_v31  ;;  %3594 = vmatpush.msrb.mxu3 %v2658_v32  ;;  %v2388_v31 = vld [vmem:[%s8116_s21 + $0x3f48] sm:$0xff]  ;;  %v2541_v32 = vld [vmem:[%s8116_s21 + $0x4410] sm:$0xff] }
  0x85   : > { %3536 = vmatpush.msrb.mxu0 %v2208_v33  ;;  %3555 = vmatpush.msrb.mxu1 %v2361_v34  ;;  %v2091_v33 = vld [vmem:[%s8116_s21 + $0x3600] sm:$0xff]  ;;  %v2244_v34 = vld [vmem:[%s8116_s21 + $0x3ac8] sm:$0xff] }
  0x86   : > { %3576 = vmatpush.msrb.mxu2 %v2496_v35  ;;  %3595 = vmatpush.msrb.mxu3 %v2649_v36  ;;  %v2379_v35 = vld [vmem:[%s8116_s21 + $0x3f00] sm:$0xff]  ;;  %v2532_v36 = vld [vmem:[%s8116_s21 + $0x43c8] sm:$0xff] }
  0x87   : > { %3537 = vmatpush.msrb.mxu0 %v2199_v37  ;;  %3556 = vmatpush.msrb.mxu1 %v2352_v38  ;;  %v3265_v37 = vld.sshfl [vmem:[#allocation1 + $0x20] sm:$0xff pattern:$0x73625140]  ;;  %v3267_v38 = vld.sshfl [vmem:[#allocation1 + $0x30] sm:$0xff pattern:$0x73625140] }
  0x88   : > { %3577 = vmatpush.msrb.mxu2 %v2487_v43  ;;  %3596 = vmatpush.msrb.mxu3 %v2640_v44  ;;  %v2802_v43 = vld [vmem:[%s8116_s21 + $0x4c38] sm:$0xff] }
  0x89   : > { %3538 = vmatpush.msrb.mxu0 %v2190_v45  ;;  %3557 = vmatpush.msrb.mxu1 %v2343_v46  ;;  %v3090_v44 = vld [vmem:[%s8116_s21 + $0x5538] sm:$0xff]  ;;  %v2235_v45 = vld [vmem:[%s8116_s21 + $0x3a80] sm:$0xff] }
  0x8a   : > { %3578 = vmatpush.msrb.mxu2 %v2478_v47  ;;  %3597 = vmatpush.msrb.mxu3 %v2631_v48  ;;  %v2523_v46 = vld [vmem:[%s8116_s21 + $0x4380] sm:$0xff]  ;;  %v3266_v47 = vld.sshfl [vmem:[#allocation1 + $0x28] sm:$0xff pattern:$0x73625140] }
  0x8b   : > { %3539 = vmatpush.msrb.mxu0 %v2181_v49  ;;  %3558 = vmatpush.msrb.mxu1 %v2334_v50  ;;  %v3268_v48 = vld.sshfl [vmem:[#allocation1 + $0x38] sm:$0xff pattern:$0x73625140]  ;;  %v2793_v49 = vld [vmem:[%s8116_s21 + $0x4bf0] sm:$0xff] }
  0x8c   : > { %3579 = vmatpush.msrb.mxu2 %v2469_v51  ;;  %3598 = vmatpush.msrb.mxu3 %v2622_v52  ;;  %v2946_v50 = vld [vmem:[%s8116_s21 + $0x50b8] sm:$0xff]  ;;  %v3081_v51 = vld [vmem:[%s8116_s21 + $0x54f0] sm:$0xff] }
  0x8d   : > { %3540 = vmatpush.msrb.mxu0 %v2172_v53  ;;  %3559 = vmatpush.msrb.mxu1 %v2325_v54  ;;  %v3234_v52 = vld [vmem:[%s8116_s21 + $0x59b8] sm:$0xff]  ;;  %v2784_v53 = vld [vmem:[%s8116_s21 + $0x4ba8] sm:$0xff]  ;;  %v2937_v54 = vld [vmem:[%s8116_s21 + $0x5070] sm:$0xff] }
  0x8e   : > { %3580 = vmatpush.msrb.mxu2 %v2460_v55  ;;  %3599 = vmatpush.msrb.mxu3 %v2613_v56  ;;  %v3072_v55 = vld [vmem:[%s8116_s21 + $0x54a8] sm:$0xff]  ;;  %v3225_v56 = vld [vmem:[%s8116_s21 + $0x5970] sm:$0xff] }
  0x8f   : > { %3541 = vmatpush.msrb.mxu0 %v2163_v61  ;;  %3560 = vmatpush.msrb.mxu1 %v2316_v62  ;;  %v2775_v61 = vld [vmem:[%s8116_s21 + $0x4b60] sm:$0xff]  ;;  %v2928_v62 = vld [vmem:[%s8116_s21 + $0x5028] sm:$0xff] }
  0x90   : > { %3581 = vmatpush.msrb.mxu2 %v2451_v63  ;;  %3600 = vmatpush.msrb.mxu3 %v2604_v0  ;;  %v3063_v63 = vld [vmem:[%s8116_s21 + $0x5460] sm:$0xff]  ;;  %v3216_v0 = vld [vmem:[%s8116_s21 + $0x5928] sm:$0xff] }
  0x91   : > { %3542 = vmatpush.msrb.mxu0 %v2154_v1  ;;  %3561 = vmatpush.msrb.mxu1 %v2307_v2  ;;  %v2766_v1 = vld [vmem:[%s8116_s21 + $0x4b18] sm:$0xff]  ;;  %v2919_v2 = vld [vmem:[%s8116_s21 + $0x4fe0] sm:$0xff] }
  0x92   : > { %3582 = vmatpush.msrb.mxu2 %v2442_v4  ;;  %3601 = vmatpush.msrb.mxu3 %v2595_v5  ;;  %v3054_v4 = vld [vmem:[%s8116_s21 + $0x5418] sm:$0xff]  ;;  %v3207_v5 = vld [vmem:[%s8116_s21 + $0x58e0] sm:$0xff] }
  0x93   : > { %3543 = vmatpush.msrb.mxu0 %v2145_v6  ;;  %3562 = vmatpush.msrb.mxu1 %v2298_v7  ;;  %v2757_v6 = vld [vmem:[%s8116_s21 + $0x4ad0] sm:$0xff]  ;;  %v2910_v7 = vld [vmem:[%s8116_s21 + $0x4f98] sm:$0xff] }
  0x94   : > { %3583 = vmatpush.msrb.mxu2 %v2433_v10  ;;  %3602 = vmatpush.msrb.mxu3 %v2586_v11  ;;  %v3045_v10 = vld [vmem:[%s8116_s21 + $0x53d0] sm:$0xff]  ;;  %v3198_v11 = vld [vmem:[%s8116_s21 + $0x5898] sm:$0xff] }
  0x95   : > { %3544 = vmatpush.msrb.mxu0 %v2136_v12  ;;  %3563 = vmatpush.msrb.mxu1 %v2289_v13  ;;  %v2748_v12 = vld [vmem:[%s8116_s21 + $0x4a88] sm:$0xff]  ;;  %v2901_v13 = vld [vmem:[%s8116_s21 + $0x4f50] sm:$0xff] }
  0x96   : > { %3584 = vmatpush.msrb.mxu2 %v2424_v15  ;;  %3603 = vmatpush.msrb.mxu3 %v2577_v16  ;;  %v3036_v15 = vld [vmem:[%s8116_s21 + $0x5388] sm:$0xff]  ;;  %v3189_v16 = vld [vmem:[%s8116_s21 + $0x5850] sm:$0xff] }
  0x97   : > { %3545 = vmatpush.msrb.mxu0 %v2127_v17  ;;  %3564 = vmatpush.msrb.mxu1 %v2280_v18  ;;  %v2739_v17 = vld [vmem:[%s8116_s21 + $0x4a40] sm:$0xff]  ;;  %v2892_v18 = vld [vmem:[%s8116_s21 + $0x4f08] sm:$0xff] }
  0x98   : > { %3585 = vmatpush.msrb.mxu2 %v2415_v19  ;;  %3604 = vmatpush.msrb.mxu3 %v2568_v20  ;;  %v3027_v19 = vld [vmem:[%s8116_s21 + $0x5340] sm:$0xff]  ;;  %v3180_v20 = vld [vmem:[%s8116_s21 + $0x5808] sm:$0xff] }
  0x99   : > { %3546 = vmatpush.msrb.mxu0 %v2118_v21  ;;  %3565 = vmatpush.msrb.mxu1 %v2271_v22  ;;  %v2730_v21 = vld [vmem:[%s8116_s21 + $0x49f8] sm:$0xff]  ;;  %v2883_v22 = vld [vmem:[%s8116_s21 + $0x4ec0] sm:$0xff] }
  0x9a   : > { %3586 = vmatpush.msrb.mxu2 %v2406_v23  ;;  %3605 = vmatpush.msrb.mxu3 %v2559_v24  ;;  %v3018_v23 = vld [vmem:[%s8116_s21 + $0x52f8] sm:$0xff]  ;;  %v3171_v24 = vld [vmem:[%s8116_s21 + $0x57c0] sm:$0xff] }
  0x9b   : > { %3547 = vmatpush.msrb.mxu0 %v2109_v25  ;;  %3566 = vmatpush.msrb.mxu1 %v2262_v26  ;;  %v2721_v25 = vld [vmem:[%s8116_s21 + $0x49b0] sm:$0xff]  ;;  %v2874_v26 = vld [vmem:[%s8116_s21 + $0x4e78] sm:$0xff] }
  0x9c   : > { %3587 = vmatpush.msrb.mxu2 %v2397_v27  ;;  %3606 = vmatpush.msrb.mxu3 %v2550_v28  ;;  %v3009_v27 = vld [vmem:[%s8116_s21 + $0x52b0] sm:$0xff]  ;;  %v3162_v28 = vld [vmem:[%s8116_s21 + $0x5778] sm:$0xff] }
  0x9d   : > { %3548 = vmatpush.msrb.mxu0 %v2100_v29  ;;  %3567 = vmatpush.msrb.mxu1 %v2253_v30  ;;  %v2712_v29 = vld [vmem:[%s8116_s21 + $0x4968] sm:$0xff]  ;;  %v2865_v30 = vld [vmem:[%s8116_s21 + $0x4e30] sm:$0xff] }
  0x9e   : > { %3588 = vmatpush.msrb.mxu2 %v2388_v31  ;;  %3607 = vmatpush.msrb.mxu3 %v2541_v32  ;;  %v3000_v31 = vld [vmem:[%s8116_s21 + $0x5268] sm:$0xff]  ;;  %v3153_v32 = vld [vmem:[%s8116_s21 + $0x5730] sm:$0xff] }
  0x9f   : > { %3549 = vmatpush.msrb.mxu0 %v2091_v33  ;;  %3568 = vmatpush.msrb.mxu1 %v2244_v34  ;;  %v2703_v33 = vld [vmem:[%s8116_s21 + $0x4920] sm:$0xff]  ;;  %v2856_v34 = vld [vmem:[%s8116_s21 + $0x4de8] sm:$0xff] }
  0xa0   : > { %3589 = vmatpush.msrb.mxu2 %v2379_v35  ;;  %3608 = vmatpush.msrb.mxu3 %v2532_v36  ;;  %v2991_v35 = vld [vmem:[%s8116_s21 + $0x5220] sm:$0xff]  ;;  %v3144_v36 = vld [vmem:[%s8116_s21 + $0x56e8] sm:$0xff] }
  0xa1   : > { %3550 = vmatmul.f32.vlgmr.msrb.gmra.mxu0 %v3265_v37  ;;  %3590 = vmatmul.f32.vlgmr.msrb.gmra.mxu2 %v3267_v38  ;;  %v2694_v37 = vld [vmem:[%s8116_s21 + $0x48d8] sm:$0xff]  ;;  %v2847_v38 = vld [vmem:[%s8116_s21 + $0x4da0] sm:$0xff] }
  0xa2   : > { %3614 = vmatpush.msra.mxu0 %v2802_v43  ;;  %3654 = vmatpush.msra.mxu2 %v3090_v44  ;;  %v2982_v43 = vld [vmem:[%s8116_s21 + $0x51d8] sm:$0xff]  ;;  %v3135_v44 = vld [vmem:[%s8116_s21 + $0x56a0] sm:$0xff] }
  0xa3   : > { %3569 = vmatpush.msrb.mxu1 %v2235_v45  ;;  %3609 = vmatpush.msrb.mxu3 %v2523_v46  ;;  %v2685_v45 = vld [vmem:[%s8116_s21 + $0x4890] sm:$0xff]  ;;  %v2838_v46 = vld [vmem:[%s8116_s21 + $0x4d58] sm:$0xff] }
  0xa4   : > { %3570 = vmatmul.f32.vlgmr.msrb.gmra.mxu1 %v3266_v47  ;;  %3610 = vmatmul.f32.vlgmr.msrb.gmra.mxu3 %v3268_v48  ;;  %v2973_v47 = vld [vmem:[%s8116_s21 + $0x5190] sm:$0xff]  ;;  %v3126_v48 = vld [vmem:[%s8116_s21 + $0x5658] sm:$0xff] }
  0xa5   : > { %3615 = vmatpush.msra.mxu0 %v2793_v49  ;;  %3634 = vmatpush.msra.mxu1 %v2946_v50  ;;  %v2676_v49 = vld [vmem:[%s8116_s21 + $0x4848] sm:$0xff]  ;;  %v2829_v50 = vld [vmem:[%s8116_s21 + $0x4d10] sm:$0xff] }
  0xa6   : > { %3655 = vmatpush.msra.mxu2 %v3081_v51  ;;  %3674 = vmatpush.msra.mxu3 %v3234_v52  ;;  %v2964_v51 = vld [vmem:[%s8116_s21 + $0x5148] sm:$0xff]  ;;  %v3117_v52 = vld [vmem:[%s8116_s21 + $0x5610] sm:$0xff] }
  0xa7   : > { %3616 = vmatpush.msra.mxu0 %v2784_v53  ;;  %3635 = vmatpush.msra.mxu1 %v2937_v54  ;;  %v2667_v53 = vld [vmem:[%s8116_s21 + $0x4800] sm:$0xff]  ;;  %v2820_v54 = vld [vmem:[%s8116_s21 + $0x4cc8] sm:$0xff] }
  0xa8   : > { %3656 = vmatpush.msra.mxu2 %v3072_v55  ;;  %3675 = vmatpush.msra.mxu3 %v3225_v56  ;;  %v2955_v55 = vld [vmem:[%s8116_s21 + $0x5100] sm:$0xff]  ;;  %v3108_v56 = vld [vmem:[%s8116_s21 + $0x55c8] sm:$0xff] }
  0xa9   : > { %3617 = vmatpush.msra.mxu0 %v2775_v61  ;;  %3636 = vmatpush.msra.mxu1 %v2928_v62  ;;  %v3270_v61 = vld.sshfl [vmem:[#allocation1] sm:$0xff pattern:$0x73625140]  ;;  %v3272_v62 = vld.sshfl [vmem:[#allocation1 + $0x10] sm:$0xff pattern:$0x73625140] }
  0xaa   : > { %3657 = vmatpush.msra.mxu2 %v3063_v63  ;;  %3676 = vmatpush.msra.mxu3 %v3216_v0  ;;  %v499_v63 = vld [vmem:[%s8116_s21 + $0x440] sm:$0xff] }
  0xab   : > { %3618 = vmatpush.msra.mxu0 %v2766_v1  ;;  %3637 = vmatpush.msra.mxu1 %v2919_v2  ;;  %v787_v0 = vld [vmem:[%s8116_s21 + $0xd40] sm:$0xff] }
  0xac   : > { %3658 = vmatpush.msra.mxu2 %v3054_v4  ;;  %3677 = vmatpush.msra.mxu3 %v3207_v5  ;;  %v2811_v1 = vld [vmem:[%s8116_s21 + $0x4c80] sm:$0xff]  ;;  %v3271_v4 = vld.sshfl [vmem:[#allocation1 + $0x8] sm:$0xff pattern:$0x73625140] }
  0xad   : > { %3619 = vmatpush.msra.mxu0 %v2757_v6  ;;  %3638 = vmatpush.msra.mxu1 %v2910_v7  ;;  %v3099_v2 = vld [vmem:[%s8116_s21 + $0x5580] sm:$0xff]  ;;  %v3273_v5 = vld.sshfl [vmem:[#allocation1 + $0x18] sm:$0xff pattern:$0x73625140] }
  0xae   : > { %3659 = vmatpush.msra.mxu2 %v3045_v10  ;;  %3678 = vmatpush.msra.mxu3 %v3198_v11  ;;  %v490_v6 = vld [vmem:[%s8116_s21 + $0x3f8] sm:$0xff]  ;;  %v643_v7 = vld [vmem:[%s8116_s21 + $0x8c0] sm:$0xff] }
  0xaf   : > { %3620 = vmatpush.msra.mxu0 %v2748_v12  ;;  %3639 = vmatpush.msra.mxu1 %v2901_v13  ;;  %v778_v10 = vld [vmem:[%s8116_s21 + $0xcf8] sm:$0xff]  ;;  %v931_v11 = vld [vmem:[%s8116_s21 + $0x11c0] sm:$0xff]  ;;  %v481_v12 = vld [vmem:[%s8116_s21 + $0x3b0] sm:$0xff] }
  0xb0   : > { %3660 = vmatpush.msra.mxu2 %v3036_v15  ;;  %3679 = vmatpush.msra.mxu3 %v3189_v16  ;;  %v634_v13 = vld [vmem:[%s8116_s21 + $0x878] sm:$0xff]  ;;  %v769_v15 = vld [vmem:[%s8116_s21 + $0xcb0] sm:$0xff] }
  0xb1   : > { %3621 = vmatpush.msra.mxu0 %v2739_v17  ;;  %3640 = vmatpush.msra.mxu1 %v2892_v18  ;;  %v922_v16 = vld [vmem:[%s8116_s21 + $0x1178] sm:$0xff]  ;;  %v472_v17 = vld [vmem:[%s8116_s21 + $0x368] sm:$0xff]  ;;  %v625_v18 = vld [vmem:[%s8116_s21 + $0x830] sm:$0xff] }
  0xb2   : > { %3661 = vmatpush.msra.mxu2 %v3027_v19  ;;  %3680 = vmatpush.msra.mxu3 %v3180_v20  ;;  %v760_v19 = vld [vmem:[%s8116_s21 + $0xc68] sm:$0xff]  ;;  %v913_v20 = vld [vmem:[%s8116_s21 + $0x1130] sm:$0xff] }
  0xb3   : > { %3622 = vmatpush.msra.mxu0 %v2730_v21  ;;  %3641 = vmatpush.msra.mxu1 %v2883_v22  ;;  %v463_v21 = vld [vmem:[%s8116_s21 + $0x320] sm:$0xff]  ;;  %v616_v22 = vld [vmem:[%s8116_s21 + $0x7e8] sm:$0xff] }
  0xb4   : > { %3662 = vmatpush.msra.mxu2 %v3018_v23  ;;  %3681 = vmatpush.msra.mxu3 %v3171_v24  ;;  %v751_v23 = vld [vmem:[%s8116_s21 + $0xc20] sm:$0xff]  ;;  %v904_v24 = vld [vmem:[%s8116_s21 + $0x10e8] sm:$0xff] }
  0xb5   : > { %3623 = vmatpush.msra.mxu0 %v2721_v25  ;;  %3642 = vmatpush.msra.mxu1 %v2874_v26  ;;  %v454_v25 = vld [vmem:[%s8116_s21 + $0x2d8] sm:$0xff]  ;;  %v607_v26 = vld [vmem:[%s8116_s21 + $0x7a0] sm:$0xff] }
  0xb6   : > { %3663 = vmatpush.msra.mxu2 %v3009_v27  ;;  %3682 = vmatpush.msra.mxu3 %v3162_v28  ;;  %v742_v27 = vld [vmem:[%s8116_s21 + $0xbd8] sm:$0xff]  ;;  %v895_v28 = vld [vmem:[%s8116_s21 + $0x10a0] sm:$0xff] }
  0xb7   : > { %3624 = vmatpush.msra.mxu0 %v2712_v29  ;;  %3643 = vmatpush.msra.mxu1 %v2865_v30  ;;  %v445_v29 = vld [vmem:[%s8116_s21 + $0x290] sm:$0xff]  ;;  %v598_v30 = vld [vmem:[%s8116_s21 + $0x758] sm:$0xff] }
  0xb8   : > { %3664 = vmatpush.msra.mxu2 %v3000_v31  ;;  %3683 = vmatpush.msra.mxu3 %v3153_v32  ;;  %v733_v31 = vld [vmem:[%s8116_s21 + $0xb90] sm:$0xff]  ;;  %v886_v32 = vld [vmem:[%s8116_s21 + $0x1058] sm:$0xff] }
  0xb9   : > { %3625 = vmatpush.msra.mxu0 %v2703_v33  ;;  %3644 = vmatpush.msra.mxu1 %v2856_v34  ;;  %v436_v33 = vld [vmem:[%s8116_s21 + $0x248] sm:$0xff]  ;;  %v589_v34 = vld [vmem:[%s8116_s21 + $0x710] sm:$0xff] }
  0xba   : > { %3665 = vmatpush.msra.mxu2 %v2991_v35  ;;  %3684 = vmatpush.msra.mxu3 %v3144_v36  ;;  %v724_v35 = vld [vmem:[%s8116_s21 + $0xb48] sm:$0xff]  ;;  %v877_v36 = vld [vmem:[%s8116_s21 + $0x1010] sm:$0xff] }
  0xbb   : > { %3626 = vmatpush.msra.mxu0 %v2694_v37  ;;  %3645 = vmatpush.msra.mxu1 %v2847_v38  ;;  %v427_v37 = vld [vmem:[%s8116_s21 + $0x200] sm:$0xff]  ;;  %v580_v38 = vld [vmem:[%s8116_s21 + $0x6c8] sm:$0xff] }
  0xbc   : > { %3666 = vmatpush.msra.mxu2 %v2982_v43  ;;  %3685 = vmatpush.msra.mxu3 %v3135_v44  ;;  %v715_v43 = vld [vmem:[%s8116_s21 + $0xb00] sm:$0xff]  ;;  %v868_v44 = vld [vmem:[%s8116_s21 + $0xfc8] sm:$0xff] }
  0xbd   : > { %3627 = vmatpush.msra.mxu0 %v2685_v45  ;;  %3646 = vmatpush.msra.mxu1 %v2838_v46  ;;  %v418_v45 = vld [vmem:[%s8116_s21 + $0x1b8] sm:$0xff]  ;;  %v571_v46 = vld [vmem:[%s8116_s21 + $0x680] sm:$0xff] }
  0xbe   : > { %3667 = vmatpush.msra.mxu2 %v2973_v47  ;;  %3686 = vmatpush.msra.mxu3 %v3126_v48  ;;  %v706_v47 = vld [vmem:[%s8116_s21 + $0xab8] sm:$0xff]  ;;  %v859_v48 = vld [vmem:[%s8116_s21 + $0xf80] sm:$0xff] }
  0xbf   : > { %3628 = vmatpush.msra.mxu0 %v2676_v49  ;;  %3647 = vmatpush.msra.mxu1 %v2829_v50  ;;  %v409_v49 = vld [vmem:[%s8116_s21 + $0x170] sm:$0xff]  ;;  %v562_v50 = vld [vmem:[%s8116_s21 + $0x638] sm:$0xff] }
  0xc0   : > { %3668 = vmatpush.msra.mxu2 %v2964_v51  ;;  %3687 = vmatpush.msra.mxu3 %v3117_v52  ;;  %v697_v51 = vld [vmem:[%s8116_s21 + $0xa70] sm:$0xff]  ;;  %v850_v52 = vld [vmem:[%s8116_s21 + $0xf38] sm:$0xff] }
  0xc1   : > { %3629 = vmatpush.msra.mxu0 %v2667_v53  ;;  %3648 = vmatpush.msra.mxu1 %v2820_v54  ;;  %v400_v53 = vld [vmem:[%s8116_s21 + $0x128] sm:$0xff]  ;;  %v553_v54 = vld [vmem:[%s8116_s21 + $0x5f0] sm:$0xff] }
  0xc2   : > { %3669 = vmatpush.msra.mxu2 %v2955_v55  ;;  %3688 = vmatpush.msra.mxu3 %v3108_v56  ;;  %v688_v55 = vld [vmem:[%s8116_s21 + $0xa28] sm:$0xff]  ;;  %v841_v56 = vld [vmem:[%s8116_s21 + $0xef0] sm:$0xff] }
  0xc3   : > { %3630 = vmatmul.f32.vlgmr.msra.gmra.mxu0 %v3270_v61  ;;  %3670 = vmatmul.f32.vlgmr.msra.gmra.mxu2 %v3272_v62  ;;  %v391_v61 = vld [vmem:[%s8116_s21 + $0xe0] sm:$0xff]  ;;  %v544_v62 = vld [vmem:[%s8116_s21 + $0x5a8] sm:$0xff] }
  0xc4   : > { %3694 = vmatpush.msrb.mxu0 %v499_v63  ;;  %3734 = vmatpush.msrb.mxu2 %v787_v0  ;;  %v679_v63 = vld [vmem:[%s8116_s21 + $0x9e0] sm:$0xff]  ;;  %v832_v0 = vld [vmem:[%s8116_s21 + $0xea8] sm:$0xff] }
  0xc5   : > { %3649 = vmatpush.msra.mxu1 %v2811_v1  ;;  %3689 = vmatpush.msra.mxu3 %v3099_v2  ;;  %v382_v1 = vld [vmem:[%s8116_s21 + $0x98] sm:$0xff]  ;;  %v535_v2 = vld [vmem:[%s8116_s21 + $0x560] sm:$0xff] }
  0xc6   : > { %3650 = vmatmul.f32.vlgmr.msra.gmra.mxu1 %v3271_v4  ;;  %3690 = vmatmul.f32.vlgmr.msra.gmra.mxu3 %v3273_v5  ;;  %v670_v4 = vld [vmem:[%s8116_s21 + $0x998] sm:$0xff]  ;;  %v823_v5 = vld [vmem:[%s8116_s21 + $0xe60] sm:$0xff] }
  0xc7   : > { %3695 = vmatpush.msrb.mxu0 %v490_v6  ;;  %3714 = vmatpush.msrb.mxu1 %v643_v7  ;;  %v373_v6 = vld [vmem:[%s8116_s21 + $0x50] sm:$0xff]  ;;  %v526_v7 = vld [vmem:[%s8116_s21 + $0x518] sm:$0xff] }
  0xc8   : > { %3735 = vmatpush.msrb.mxu2 %v778_v10  ;;  %3754 = vmatpush.msrb.mxu3 %v931_v11  ;;  %v661_v10 = vld [vmem:[%s8116_s21 + $0x950] sm:$0xff]  ;;  %v814_v11 = vld [vmem:[%s8116_s21 + $0xe18] sm:$0xff] }
  0xc9   : > { %3696 = vmatpush.msrb.mxu0 %v481_v12  ;;  %3715 = vmatpush.msrb.mxu1 %v634_v13  ;;  %v364_v12 = vld [vmem:[%s8116_s21 + $0x8] sm:$0xff]  ;;  %v517_v13 = vld [vmem:[%s8116_s21 + $0x4d0] sm:$0xff] }
  0xca   : > { %3736 = vmatpush.msrb.mxu2 %v769_v15  ;;  %3755 = vmatpush.msrb.mxu3 %v922_v16  ;;  %v652_v15 = vld [vmem:[%s8116_s21 + $0x908] sm:$0xff]  ;;  %v805_v16 = vld [vmem:[%s8116_s21 + $0xdd0] sm:$0xff] }
  0xcb   : > { %3697 = vmatpush.msrb.mxu0 %v472_v17  ;;  %3716 = vmatpush.msrb.mxu1 %v625_v18  ;;  %v1075_v17 = vld [vmem:[%s8116_s21 + $0x1640] sm:$0xff] }
  0xcc   : > { %3737 = vmatpush.msrb.mxu2 %v760_v19  ;;  %3756 = vmatpush.msrb.mxu3 %v913_v20  ;;  %v1363_v18 = vld [vmem:[%s8116_s21 + $0x1f40] sm:$0xff]  ;;  %v508_v19 = vld [vmem:[%s8116_s21 + $0x488] sm:$0xff] }
  0xcd   : > { %3698 = vmatpush.msrb.mxu0 %v463_v21  ;;  %3717 = vmatpush.msrb.mxu1 %v616_v22  ;;  %v796_v20 = vld [vmem:[%s8116_s21 + $0xd88] sm:$0xff]  ;;  %v1066_v21 = vld [vmem:[%s8116_s21 + $0x15f8] sm:$0xff]  ;;  %v1219_v22 = vld [vmem:[%s8116_s21 + $0x1ac0] sm:$0xff] }
  0xce   : > { %3738 = vmatpush.msrb.mxu2 %v751_v23  ;;  %3757 = vmatpush.msrb.mxu3 %v904_v24  ;;  %v1354_v23 = vld [vmem:[%s8116_s21 + $0x1ef8] sm:$0xff]  ;;  %v1507_v24 = vld [vmem:[%s8116_s21 + $0x23c0] sm:$0xff] }
  0xcf   : > { %3699 = vmatpush.msrb.mxu0 %v454_v25  ;;  %3718 = vmatpush.msrb.mxu1 %v607_v26  ;;  %v1057_v25 = vld [vmem:[%s8116_s21 + $0x15b0] sm:$0xff]  ;;  %v1210_v26 = vld [vmem:[%s8116_s21 + $0x1a78] sm:$0xff] }
  0xd0   : > { %3739 = vmatpush.msrb.mxu2 %v742_v27  ;;  %3758 = vmatpush.msrb.mxu3 %v895_v28  ;;  %v1345_v27 = vld [vmem:[%s8116_s21 + $0x1eb0] sm:$0xff]  ;;  %v1498_v28 = vld [vmem:[%s8116_s21 + $0x2378] sm:$0xff] }
  0xd1   : > { %3700 = vmatpush.msrb.mxu0 %v445_v29  ;;  %3719 = vmatpush.msrb.mxu1 %v598_v30  ;;  %v1048_v29 = vld [vmem:[%s8116_s21 + $0x1568] sm:$0xff]  ;;  %v1201_v30 = vld [vmem:[%s8116_s21 + $0x1a30] sm:$0xff] }
  0xd2   : > { %3740 = vmatpush.msrb.mxu2 %v733_v31  ;;  %3759 = vmatpush.msrb.mxu3 %v886_v32  ;;  %v1336_v31 = vld [vmem:[%s8116_s21 + $0x1e68] sm:$0xff]  ;;  %v1489_v32 = vld [vmem:[%s8116_s21 + $0x2330] sm:$0xff] }
  0xd3   : > { %3701 = vmatpush.msrb.mxu0 %v436_v33  ;;  %3720 = vmatpush.msrb.mxu1 %v589_v34  ;;  %v1039_v33 = vld [vmem:[%s8116_s21 + $0x1520] sm:$0xff]  ;;  %v1192_v34 = vld [vmem:[%s8116_s21 + $0x19e8] sm:$0xff] }
  0xd4   : > { %3741 = vmatpush.msrb.mxu2 %v724_v35  ;;  %3760 = vmatpush.msrb.mxu3 %v877_v36  ;;  %v1327_v35 = vld [vmem:[%s8116_s21 + $0x1e20] sm:$0xff]  ;;  %v1480_v36 = vld [vmem:[%s8116_s21 + $0x22e8] sm:$0xff] }
  0xd5   : > { %3702 = vmatpush.msrb.mxu0 %v427_v37  ;;  %3721 = vmatpush.msrb.mxu1 %v580_v38  ;;  %v1030_v37 = vld [vmem:[%s8116_s21 + $0x14d8] sm:$0xff]  ;;  %v1183_v38 = vld [vmem:[%s8116_s21 + $0x19a0] sm:$0xff] }
  0xd6   : > { %3742 = vmatpush.msrb.mxu2 %v715_v43  ;;  %3761 = vmatpush.msrb.mxu3 %v868_v44  ;;  %v1318_v43 = vld [vmem:[%s8116_s21 + $0x1dd8] sm:$0xff]  ;;  %v1471_v44 = vld [vmem:[%s8116_s21 + $0x22a0] sm:$0xff] }
  0xd7   : > { %3703 = vmatpush.msrb.mxu0 %v418_v45  ;;  %3722 = vmatpush.msrb.mxu1 %v571_v46  ;;  %v1021_v45 = vld [vmem:[%s8116_s21 + $0x1490] sm:$0xff]  ;;  %v1174_v46 = vld [vmem:[%s8116_s21 + $0x1958] sm:$0xff] }
  0xd8   : > { %3743 = vmatpush.msrb.mxu2 %v706_v47  ;;  %3762 = vmatpush.msrb.mxu3 %v859_v48  ;;  %v1309_v47 = vld [vmem:[%s8116_s21 + $0x1d90] sm:$0xff]  ;;  %v1462_v48 = vld [vmem:[%s8116_s21 + $0x2258] sm:$0xff] }
  0xd9   : > { %3704 = vmatpush.msrb.mxu0 %v409_v49  ;;  %3723 = vmatpush.msrb.mxu1 %v562_v50  ;;  %v1012_v49 = vld [vmem:[%s8116_s21 + $0x1448] sm:$0xff]  ;;  %v1165_v50 = vld [vmem:[%s8116_s21 + $0x1910] sm:$0xff] }
  0xda   : > { %3744 = vmatpush.msrb.mxu2 %v697_v51  ;;  %3763 = vmatpush.msrb.mxu3 %v850_v52  ;;  %v1300_v51 = vld [vmem:[%s8116_s21 + $0x1d48] sm:$0xff]  ;;  %v1453_v52 = vld [vmem:[%s8116_s21 + $0x2210] sm:$0xff] }
  0xdb   : > { %3705 = vmatpush.msrb.mxu0 %v400_v53  ;;  %3724 = vmatpush.msrb.mxu1 %v553_v54  ;;  %v1003_v53 = vld [vmem:[%s8116_s21 + $0x1400] sm:$0xff]  ;;  %v1156_v54 = vld [vmem:[%s8116_s21 + $0x18c8] sm:$0xff] }
  0xdc   : > { %3745 = vmatpush.msrb.mxu2 %v688_v55  ;;  %3764 = vmatpush.msrb.mxu3 %v841_v56  ;;  %v1291_v55 = vld [vmem:[%s8116_s21 + $0x1d00] sm:$0xff]  ;;  %v1444_v56 = vld [vmem:[%s8116_s21 + $0x21c8] sm:$0xff] }
  0xdd   : > { %3706 = vmatpush.msrb.mxu0 %v391_v61  ;;  %3725 = vmatpush.msrb.mxu1 %v544_v62  ;;  %v994_v61 = vld [vmem:[%s8116_s21 + $0x13b8] sm:$0xff]  ;;  %v1147_v62 = vld [vmem:[%s8116_s21 + $0x1880] sm:$0xff] }
  0xde   : > { %3746 = vmatpush.msrb.mxu2 %v679_v63  ;;  %3765 = vmatpush.msrb.mxu3 %v832_v0  ;;  %v1282_v63 = vld [vmem:[%s8116_s21 + $0x1cb8] sm:$0xff]  ;;  %v1435_v0 = vld [vmem:[%s8116_s21 + $0x2180] sm:$0xff] }
  0xdf   : > { %3707 = vmatpush.msrb.mxu0 %v382_v1  ;;  %3726 = vmatpush.msrb.mxu1 %v535_v2  ;;  %v985_v1 = vld [vmem:[%s8116_s21 + $0x1370] sm:$0xff]  ;;  %v1138_v2 = vld [vmem:[%s8116_s21 + $0x1838] sm:$0xff] }
  0xe0   : > { %3747 = vmatpush.msrb.mxu2 %v670_v4  ;;  %3766 = vmatpush.msrb.mxu3 %v823_v5  ;;  %v1273_v4 = vld [vmem:[%s8116_s21 + $0x1c70] sm:$0xff]  ;;  %v1426_v5 = vld [vmem:[%s8116_s21 + $0x2138] sm:$0xff] }
  0xe1   : > { %3708 = vmatpush.msrb.mxu0 %v373_v6  ;;  %3727 = vmatpush.msrb.mxu1 %v526_v7  ;;  %v976_v6 = vld [vmem:[%s8116_s21 + $0x1328] sm:$0xff]  ;;  %v1129_v7 = vld [vmem:[%s8116_s21 + $0x17f0] sm:$0xff] }
  0xe2   : > { %3748 = vmatpush.msrb.mxu2 %v661_v10  ;;  %3767 = vmatpush.msrb.mxu3 %v814_v11  ;;  %v1264_v10 = vld [vmem:[%s8116_s21 + $0x1c28] sm:$0xff]  ;;  %v1417_v11 = vld [vmem:[%s8116_s21 + $0x20f0] sm:$0xff] }
  0xe3   : > { %3709 = vmatpush.msrb.mxu0 %v364_v12  ;;  %3728 = vmatpush.msrb.mxu1 %v517_v13  ;;  %v967_v12 = vld [vmem:[%s8116_s21 + $0x12e0] sm:$0xff]  ;;  %v1120_v13 = vld [vmem:[%s8116_s21 + $0x17a8] sm:$0xff] }
  0xe4   : > { %3749 = vmatpush.msrb.mxu2 %v652_v15  ;;  %3768 = vmatpush.msrb.mxu3 %v805_v16  ;;  %v1255_v15 = vld [vmem:[%s8116_s21 + $0x1be0] sm:$0xff]  ;;  %v1408_v16 = vld [vmem:[%s8116_s21 + $0x20a8] sm:$0xff] }
  0xe5   : > { %3774 = vmatpush.msra.mxu0 %v1075_v17  ;;  %3729 = vmatpush.msrb.mxu1 %v508_v19  ;;  %v958_v17 = vld [vmem:[%s8116_s21 + $0x1298] sm:$0xff] }
  0xe6   : > { %3814 = vmatpush.msra.mxu2 %v1363_v18  ;;  %3769 = vmatpush.msrb.mxu3 %v796_v20  ;;  %v1111_v18 = vld [vmem:[%s8116_s21 + $0x1760] sm:$0xff]  ;;  %v1246_v19 = vld [vmem:[%s8116_s21 + $0x1b98] sm:$0xff] }
  0xe7   : > { %3775 = vmatpush.msra.mxu0 %v1066_v21  ;;  %3794 = vmatpush.msra.mxu1 %v1219_v22  ;;  %v1399_v20 = vld [vmem:[%s8116_s21 + $0x2060] sm:$0xff]  ;;  %v949_v21 = vld [vmem:[%s8116_s21 + $0x1250] sm:$0xff]  ;;  %v1102_v22 = vld [vmem:[%s8116_s21 + $0x1718] sm:$0xff] }
  0xe8   : > { %3815 = vmatpush.msra.mxu2 %v1354_v23  ;;  %3834 = vmatpush.msra.mxu3 %v1507_v24  ;;  %v1237_v23 = vld [vmem:[%s8116_s21 + $0x1b50] sm:$0xff]  ;;  %v1390_v24 = vld [vmem:[%s8116_s21 + $0x2018] sm:$0xff] }
  0xe9   : > { %3776 = vmatpush.msra.mxu0 %v1057_v25  ;;  %3795 = vmatpush.msra.mxu1 %v1210_v26  ;;  %v940_v25 = vld [vmem:[%s8116_s21 + $0x1208] sm:$0xff]  ;;  %v1093_v26 = vld [vmem:[%s8116_s21 + $0x16d0] sm:$0xff] }
  0xea   : > { %3816 = vmatpush.msra.mxu2 %v1345_v27  ;;  %3835 = vmatpush.msra.mxu3 %v1498_v28  ;;  %v1228_v27 = vld [vmem:[%s8116_s21 + $0x1b08] sm:$0xff]  ;;  %v1381_v28 = vld [vmem:[%s8116_s21 + $0x1fd0] sm:$0xff] }
  0xeb   : > { %3777 = vmatpush.msra.mxu0 %v1048_v29  ;;  %3796 = vmatpush.msra.mxu1 %v1201_v30  ;;  %v1651_v29 = vld [vmem:[%s8116_s21 + $0x2840] sm:$0xff] }
  0xec   : > { %3817 = vmatpush.msra.mxu2 %v1336_v31  ;;  %3836 = vmatpush.msra.mxu3 %v1489_v32  ;;  %v1939_v30 = vld [vmem:[%s8116_s21 + $0x3140] sm:$0xff]  ;;  %v1084_v31 = vld [vmem:[%s8116_s21 + $0x1688] sm:$0xff] }
  0xed   : > { %3778 = vmatpush.msra.mxu0 %v1039_v33  ;;  %3797 = vmatpush.msra.mxu1 %v1192_v34  ;;  %v1372_v32 = vld [vmem:[%s8116_s21 + $0x1f88] sm:$0xff]  ;;  %v1642_v33 = vld [vmem:[%s8116_s21 + $0x27f8] sm:$0xff]  ;;  %v1795_v34 = vld [vmem:[%s8116_s21 + $0x2cc0] sm:$0xff] }
  0xee   : > { %3818 = vmatpush.msra.mxu2 %v1327_v35  ;;  %3837 = vmatpush.msra.mxu3 %v1480_v36  ;;  %v1930_v35 = vld [vmem:[%s8116_s21 + $0x30f8] sm:$0xff]  ;;  %v2083_v36 = vld [vmem:[%s8116_s21 + $0x35c0] sm:$0xff] }
  0xef   : > { %3779 = vmatpush.msra.mxu0 %v1030_v37  ;;  %3798 = vmatpush.msra.mxu1 %v1183_v38  ;;  %v1633_v37 = vld [vmem:[%s8116_s21 + $0x27b0] sm:$0xff]  ;;  %v1786_v38 = vld [vmem:[%s8116_s21 + $0x2c78] sm:$0xff] }
  0xf0   : > { %3819 = vmatpush.msra.mxu2 %v1318_v43  ;;  %3838 = vmatpush.msra.mxu3 %v1471_v44  ;;  %v1921_v43 = vld [vmem:[%s8116_s21 + $0x30b0] sm:$0xff]  ;;  %v2074_v44 = vld [vmem:[%s8116_s21 + $0x3578] sm:$0xff] }
  0xf1   : > { %3780 = vmatpush.msra.mxu0 %v1021_v45  ;;  %3799 = vmatpush.msra.mxu1 %v1174_v46  ;;  %v1624_v45 = vld [vmem:[%s8116_s21 + $0x2768] sm:$0xff]  ;;  %v1777_v46 = vld [vmem:[%s8116_s21 + $0x2c30] sm:$0xff] }
  0xf2   : > { %3820 = vmatpush.msra.mxu2 %v1309_v47  ;;  %3839 = vmatpush.msra.mxu3 %v1462_v48  ;;  %v1912_v47 = vld [vmem:[%s8116_s21 + $0x3068] sm:$0xff]  ;;  %v2065_v48 = vld [vmem:[%s8116_s21 + $0x3530] sm:$0xff] }
  0xf3   : > { %3781 = vmatpush.msra.mxu0 %v1012_v49  ;;  %3800 = vmatpush.msra.mxu1 %v1165_v50  ;;  %v1615_v49 = vld [vmem:[%s8116_s21 + $0x2720] sm:$0xff]  ;;  %v1768_v50 = vld [vmem:[%s8116_s21 + $0x2be8] sm:$0xff] }
  0xf4   : > { %3821 = vmatpush.msra.mxu2 %v1300_v51  ;;  %3840 = vmatpush.msra.mxu3 %v1453_v52  ;;  %v1903_v51 = vld [vmem:[%s8116_s21 + $0x3020] sm:$0xff]  ;;  %v2056_v52 = vld [vmem:[%s8116_s21 + $0x34e8] sm:$0xff] }
  0xf5   : > { %3782 = vmatpush.msra.mxu0 %v1003_v53  ;;  %3801 = vmatpush.msra.mxu1 %v1156_v54  ;;  %v1606_v53 = vld [vmem:[%s8116_s21 + $0x26d8] sm:$0xff]  ;;  %v1759_v54 = vld [vmem:[%s8116_s21 + $0x2ba0] sm:$0xff] }
  0xf6   : > { %3822 = vmatpush.msra.mxu2 %v1291_v55  ;;  %3841 = vmatpush.msra.mxu3 %v1444_v56  ;;  %v1894_v55 = vld [vmem:[%s8116_s21 + $0x2fd8] sm:$0xff]  ;;  %v2047_v56 = vld [vmem:[%s8116_s21 + $0x34a0] sm:$0xff] }
  0xf7   : > { %3783 = vmatpush.msra.mxu0 %v994_v61  ;;  %3802 = vmatpush.msra.mxu1 %v1147_v62  ;;  %v1597_v61 = vld [vmem:[%s8116_s21 + $0x2690] sm:$0xff]  ;;  %v1750_v62 = vld [vmem:[%s8116_s21 + $0x2b58] sm:$0xff] }
  0xf8   : > { %3823 = vmatpush.msra.mxu2 %v1282_v63  ;;  %3842 = vmatpush.msra.mxu3 %v1435_v0  ;;  %v1885_v63 = vld [vmem:[%s8116_s21 + $0x2f90] sm:$0xff]  ;;  %v2038_v0 = vld [vmem:[%s8116_s21 + $0x3458] sm:$0xff] }
  0xf9   : > { %3784 = vmatpush.msra.mxu0 %v985_v1  ;;  %3803 = vmatpush.msra.mxu1 %v1138_v2  ;;  %v1588_v1 = vld [vmem:[%s8116_s21 + $0x2648] sm:$0xff]  ;;  %v1741_v2 = vld [vmem:[%s8116_s21 + $0x2b10] sm:$0xff] }
  0xfa   : > { %3824 = vmatpush.msra.mxu2 %v1273_v4  ;;  %3843 = vmatpush.msra.mxu3 %v1426_v5  ;;  %v1876_v4 = vld [vmem:[%s8116_s21 + $0x2f48] sm:$0xff]  ;;  %v2029_v5 = vld [vmem:[%s8116_s21 + $0x3410] sm:$0xff] }
  0xfb   : > { %3785 = vmatpush.msra.mxu0 %v976_v6  ;;  %3804 = vmatpush.msra.mxu1 %v1129_v7  ;;  %v1579_v6 = vld [vmem:[%s8116_s21 + $0x2600] sm:$0xff]  ;;  %v1732_v7 = vld [vmem:[%s8116_s21 + $0x2ac8] sm:$0xff] }
  0xfc   : > { %3825 = vmatpush.msra.mxu2 %v1264_v10  ;;  %3844 = vmatpush.msra.mxu3 %v1417_v11  ;;  %v1867_v10 = vld [vmem:[%s8116_s21 + $0x2f00] sm:$0xff]  ;;  %v2020_v11 = vld [vmem:[%s8116_s21 + $0x33c8] sm:$0xff] }
  0xfd   : > { %3786 = vmatpush.msra.mxu0 %v967_v12  ;;  %3805 = vmatpush.msra.mxu1 %v1120_v13  ;;  %v1570_v12 = vld [vmem:[%s8116_s21 + $0x25b8] sm:$0xff]  ;;  %v1723_v13 = vld [vmem:[%s8116_s21 + $0x2a80] sm:$0xff] }
  0xfe   : > { %3826 = vmatpush.msra.mxu2 %v1255_v15  ;;  %3845 = vmatpush.msra.mxu3 %v1408_v16  ;;  %v1858_v15 = vld [vmem:[%s8116_s21 + $0x2eb8] sm:$0xff]  ;;  %v2011_v16 = vld [vmem:[%s8116_s21 + $0x3380] sm:$0xff] }
  0xff   : > { %3787 = vmatpush.msra.mxu0 %v958_v17  ;;  %3806 = vmatpush.msra.mxu1 %v1111_v18  ;;  %v1561_v17 = vld [vmem:[%s8116_s21 + $0x2570] sm:$0xff]  ;;  %v1714_v18 = vld [vmem:[%s8116_s21 + $0x2a38] sm:$0xff] }
 0x100   : > { %3827 = vmatpush.msra.mxu2 %v1246_v19  ;;  %3846 = vmatpush.msra.mxu3 %v1399_v20  ;;  %v1849_v19 = vld [vmem:[%s8116_s21 + $0x2e70] sm:$0xff]  ;;  %v2002_v20 = vld [vmem:[%s8116_s21 + $0x3338] sm:$0xff] }
 0x101   : > { %3788 = vmatpush.msra.mxu0 %v949_v21  ;;  %3807 = vmatpush.msra.mxu1 %v1102_v22  ;;  %v1552_v21 = vld [vmem:[%s8116_s21 + $0x2528] sm:$0xff]  ;;  %v1705_v22 = vld [vmem:[%s8116_s21 + $0x29f0] sm:$0xff] }
 0x102   : > { %3828 = vmatpush.msra.mxu2 %v1237_v23  ;;  %3847 = vmatpush.msra.mxu3 %v1390_v24  ;;  %v1840_v23 = vld [vmem:[%s8116_s21 + $0x2e28] sm:$0xff]  ;;  %v1993_v24 = vld [vmem:[%s8116_s21 + $0x32f0] sm:$0xff] }
 0x103   : > { %3750 = vmatmul.f32.vlgmr.msrb.gmra.mxu2 %v8252_v3  ;;  %3789 = vmatpush.msra.mxu0 %v940_v25  ;;  %v1543_v25 = vld [vmem:[%s8116_s21 + $0x24e0] sm:$0xff] }
 0x104   : > { %3808 = vmatpush.msra.mxu1 %v1093_v26  ;;  %3829 = vmatpush.msra.mxu2 %v1228_v27  ;;  %v1696_v26 = vld [vmem:[%s8116_s21 + $0x29a8] sm:$0xff]  ;;  %v1831_v27 = vld [vmem:[%s8116_s21 + $0x2de0] sm:$0xff] }
 0x105   : > { %3848 = vmatpush.msra.mxu3 %v1381_v28  ;;  %3710 = vmatmul.f32.vlgmr.msrb.gmra.mxu0 %v8258_v8  ;;  %v1984_v28 = vld [vmem:[%s8116_s21 + $0x32a8] sm:$0xff] }
 0x106   : > { %3770 = vmatmul.f32.vlgmr.msrb.gmra.mxu3 %v8261_v9  ;;  %3854 = vmatpush.msrb.mxu0 %v1651_v29  ;;  %v1534_v29 = vld [vmem:[%s8116_s21 + $0x2498] sm:$0xff] }
 0x107   : > { %3894 = vmatpush.msrb.mxu2 %v1939_v30  ;;  %3809 = vmatpush.msra.mxu1 %v1084_v31  ;;  %v1687_v30 = vld [vmem:[%s8116_s21 + $0x2960] sm:$0xff]  ;;  %v1822_v31 = vld [vmem:[%s8116_s21 + $0x2d98] sm:$0xff] }
 0x108   : > { %3849 = vmatpush.msra.mxu3 %v1372_v32  ;;  %3730 = vmatmul.f32.vlgmr.msrb.gmra.mxu1 %v8268_v14  ;;  %v1975_v32 = vld [vmem:[%s8116_s21 + $0x3260] sm:$0xff] }
 0x109   : > { %3855 = vmatpush.msrb.mxu0 %v1642_v33  ;;  %3874 = vmatpush.msrb.mxu1 %v1795_v34  ;;  %v1525_v33 = vld [vmem:[%s8116_s21 + $0x2450] sm:$0xff]  ;;  %v1678_v34 = vld [vmem:[%s8116_s21 + $0x2918] sm:$0xff] }
 0x10a   : > { %3895 = vmatpush.msrb.mxu2 %v1930_v35  ;;  %3914 = vmatpush.msrb.mxu3 %v2083_v36  ;;  %v1813_v35 = vld [vmem:[%s8116_s21 + $0x2d50] sm:$0xff]  ;;  %v1966_v36 = vld [vmem:[%s8116_s21 + $0x3218] sm:$0xff] }
 0x10b   : > { %3856 = vmatpush.msrb.mxu0 %v1633_v37  ;;  %3875 = vmatpush.msrb.mxu1 %v1786_v38  ;;  %v1516_v37 = vld [vmem:[%s8116_s21 + $0x2408] sm:$0xff]  ;;  %v1669_v38 = vld [vmem:[%s8116_s21 + $0x28d0] sm:$0xff] }
 0x10c   : > { %3896 = vmatpush.msrb.mxu2 %v1921_v43  ;;  %3915 = vmatpush.msrb.mxu3 %v2074_v44  ;;  %v1804_v43 = vld [vmem:[%s8116_s21 + $0x2d08] sm:$0xff]  ;;  %v1957_v44 = vld [vmem:[%s8116_s21 + $0x31d0] sm:$0xff] }
 0x10d   : > { %3830 = vmatmul.f32.vlgmr.msra.gmra.mxu2 %v8238_v57  ;;  %3857 = vmatpush.msrb.mxu0 %v1624_v45  ;;  %v2227_v45 = vld [vmem:[%s8116_s21 + $0x3a40] sm:$0xff] }
 0x10e   : > { %3876 = vmatpush.msrb.mxu1 %v1777_v46  ;;  %3897 = vmatpush.msrb.mxu2 %v1912_v47  ;;  %v2515_v46 = vld [vmem:[%s8116_s21 + $0x4340] sm:$0xff]  ;;  %v1660_v47 = vld [vmem:[%s8116_s21 + $0x2888] sm:$0xff] }
 0x10f   : > { %3916 = vmatpush.msrb.mxu3 %v2065_v48  ;;  %3790 = vmatmul.f32.vlgmr.msra.gmra.mxu0 %v8240_v58  ;;  %v1948_v48 = vld [vmem:[%s8116_s21 + $0x3188] sm:$0xff] }
 0x110   : > { %3850 = vmatmul.f32.vlgmr.msra.gmra.mxu3 %v8242_v59  ;;  %3858 = vmatpush.msrb.mxu0 %v1615_v49  ;;  %v2218_v49 = vld [vmem:[%s8116_s21 + $0x39f8] sm:$0xff] }
 0x111   : > { %3877 = vmatpush.msrb.mxu1 %v1768_v50  ;;  %3898 = vmatpush.msrb.mxu2 %v1903_v51  ;;  %v2371_v50 = vld [vmem:[%s8116_s21 + $0x3ec0] sm:$0xff]  ;;  %v2506_v51 = vld [vmem:[%s8116_s21 + $0x42f8] sm:$0xff] }
 0x112   : > { %3917 = vmatpush.msrb.mxu3 %v2056_v52  ;;  %3810 = vmatmul.f32.vlgmr.msra.gmra.mxu1 %v8244_v60  ;;  %v2659_v52 = vld [vmem:[%s8116_s21 + $0x47c0] sm:$0xff] }
 0x113   : > { %3859 = vmatpush.msrb.mxu0 %v1606_v53  ;;  %3878 = vmatpush.msrb.mxu1 %v1759_v54  ;;  %v2209_v53 = vld [vmem:[%s8116_s21 + $0x39b0] sm:$0xff]  ;;  %v2362_v54 = vld [vmem:[%s8116_s21 + $0x3e78] sm:$0xff] }
 0x114   : > { %3899 = vmatpush.msrb.mxu2 %v1894_v55  ;;  %3918 = vmatpush.msrb.mxu3 %v2047_v56  ;;  %v2497_v55 = vld [vmem:[%s8116_s21 + $0x42b0] sm:$0xff]  ;;  %v2650_v56 = vld [vmem:[%s8116_s21 + $0x4778] sm:$0xff] }
 0x115   : > { %3860 = vmatpush.msrb.mxu0 %v1597_v61  ;;  %3879 = vmatpush.msrb.mxu1 %v1750_v62  ;;  %v2200_v61 = vld [vmem:[%s8116_s21 + $0x3968] sm:$0xff]  ;;  %v2353_v62 = vld [vmem:[%s8116_s21 + $0x3e30] sm:$0xff] }
 0x116   : > { %3900 = vmatpush.msrb.mxu2 %v1885_v63  ;;  %3919 = vmatpush.msrb.mxu3 %v2038_v0  ;;  %v2488_v63 = vld [vmem:[%s8116_s21 + $0x4268] sm:$0xff]  ;;  %v2641_v0 = vld [vmem:[%s8116_s21 + $0x4730] sm:$0xff] }
 0x117   : > { %3861 = vmatpush.msrb.mxu0 %v1588_v1  ;;  %3880 = vmatpush.msrb.mxu1 %v1741_v2  ;;  %v2191_v1 = vld [vmem:[%s8116_s21 + $0x3920] sm:$0xff]  ;;  %v2344_v2 = vld [vmem:[%s8116_s21 + $0x3de8] sm:$0xff] }
 0x118   : > { %3901 = vmatpush.msrb.mxu2 %v1876_v4  ;;  %3920 = vmatpush.msrb.mxu3 %v2029_v5  ;;  %v2479_v4 = vld [vmem:[%s8116_s21 + $0x4220] sm:$0xff]  ;;  %v2632_v5 = vld [vmem:[%s8116_s21 + $0x46e8] sm:$0xff] }
 0x119   : > { %3862 = vmatpush.msrb.mxu0 %v1579_v6  ;;  %3881 = vmatpush.msrb.mxu1 %v1732_v7  ;;  %v2182_v6 = vld [vmem:[%s8116_s21 + $0x38d8] sm:$0xff]  ;;  %v2335_v7 = vld [vmem:[%s8116_s21 + $0x3da0] sm:$0xff] }
 0x11a   : > { %3902 = vmatpush.msrb.mxu2 %v1867_v10  ;;  %3921 = vmatpush.msrb.mxu3 %v2020_v11  ;;  %v2470_v10 = vld [vmem:[%s8116_s21 + $0x41d8] sm:$0xff]  ;;  %v2623_v11 = vld [vmem:[%s8116_s21 + $0x46a0] sm:$0xff] }
 0x11b   : > { %3863 = vmatpush.msrb.mxu0 %v1570_v12  ;;  %3882 = vmatpush.msrb.mxu1 %v1723_v13  ;;  %v2173_v12 = vld [vmem:[%s8116_s21 + $0x3890] sm:$0xff]  ;;  %v2326_v13 = vld [vmem:[%s8116_s21 + $0x3d58] sm:$0xff] }
 0x11c   : > { %3903 = vmatpush.msrb.mxu2 %v1858_v15  ;;  %3922 = vmatpush.msrb.mxu3 %v2011_v16  ;;  %v2461_v15 = vld [vmem:[%s8116_s21 + $0x4190] sm:$0xff]  ;;  %v2614_v16 = vld [vmem:[%s8116_s21 + $0x4658] sm:$0xff] }
 0x11d   : > { %3864 = vmatpush.msrb.mxu0 %v1561_v17  ;;  %3883 = vmatpush.msrb.mxu1 %v1714_v18  ;;  %v2164_v17 = vld [vmem:[%s8116_s21 + $0x3848] sm:$0xff]  ;;  %v2317_v18 = vld [vmem:[%s8116_s21 + $0x3d10] sm:$0xff] }
 0x11e   : > { %3904 = vmatpush.msrb.mxu2 %v1849_v19  ;;  %3923 = vmatpush.msrb.mxu3 %v2002_v20  ;;  %v2452_v19 = vld [vmem:[%s8116_s21 + $0x4148] sm:$0xff]  ;;  %v2605_v20 = vld [vmem:[%s8116_s21 + $0x4610] sm:$0xff] }
 0x11f   : > { %3865 = vmatpush.msrb.mxu0 %v1552_v21  ;;  %3884 = vmatpush.msrb.mxu1 %v1705_v22  ;;  %v2155_v21 = vld [vmem:[%s8116_s21 + $0x3800] sm:$0xff]  ;;  %v2308_v22 = vld [vmem:[%s8116_s21 + $0x3cc8] sm:$0xff] }
 0x120   : > { %3905 = vmatpush.msrb.mxu2 %v1840_v23  ;;  %3924 = vmatpush.msrb.mxu3 %v1993_v24  ;;  %v2443_v23 = vld [vmem:[%s8116_s21 + $0x4100] sm:$0xff]  ;;  %v2596_v24 = vld [vmem:[%s8116_s21 + $0x45c8] sm:$0xff] }
 0x121   : > { %3866 = vmatpush.msrb.mxu0 %v1543_v25  ;;  %3885 = vmatpush.msrb.mxu1 %v1696_v26  ;;  %v2146_v25 = vld [vmem:[%s8116_s21 + $0x37b8] sm:$0xff]  ;;  %v2299_v26 = vld [vmem:[%s8116_s21 + $0x3c80] sm:$0xff] }
 0x122   : > { %3906 = vmatpush.msrb.mxu2 %v1831_v27  ;;  %3925 = vmatpush.msrb.mxu3 %v1984_v28  ;;  %v2434_v27 = vld [vmem:[%s8116_s21 + $0x40b8] sm:$0xff]  ;;  %v2587_v28 = vld [vmem:[%s8116_s21 + $0x4580] sm:$0xff] }
 0x123   : > { %3867 = vmatpush.msrb.mxu0 %v1534_v29  ;;  %3886 = vmatpush.msrb.mxu1 %v1687_v30  ;;  %v2137_v29 = vld [vmem:[%s8116_s21 + $0x3770] sm:$0xff]  ;;  %v2290_v30 = vld [vmem:[%s8116_s21 + $0x3c38] sm:$0xff] }
 0x124   : > { %3907 = vmatpush.msrb.mxu2 %v1822_v31  ;;  %3926 = vmatpush.msrb.mxu3 %v1975_v32  ;;  %v2425_v31 = vld [vmem:[%s8116_s21 + $0x4070] sm:$0xff]  ;;  %v2578_v32 = vld [vmem:[%s8116_s21 + $0x4538] sm:$0xff] }
 0x125   : > { %3868 = vmatpush.msrb.mxu0 %v1525_v33  ;;  %3887 = vmatpush.msrb.mxu1 %v1678_v34  ;;  %v2128_v33 = vld [vmem:[%s8116_s21 + $0x3728] sm:$0xff]  ;;  %v2281_v34 = vld [vmem:[%s8116_s21 + $0x3bf0] sm:$0xff] }
 0x126   : > { %3908 = vmatpush.msrb.mxu2 %v1813_v35  ;;  %3927 = vmatpush.msrb.mxu3 %v1966_v36  ;;  %v2416_v35 = vld [vmem:[%s8116_s21 + $0x4028] sm:$0xff]  ;;  %v2569_v36 = vld [vmem:[%s8116_s21 + $0x44f0] sm:$0xff] }
 0x127   : > { %3869 = vmatpush.msrb.mxu0 %v1516_v37  ;;  %3888 = vmatpush.msrb.mxu1 %v1669_v38  ;;  %v2119_v37 = vld [vmem:[%s8116_s21 + $0x36e0] sm:$0xff]  ;;  %v2272_v38 = vld [vmem:[%s8116_s21 + $0x3ba8] sm:$0xff] }
 0x128   : > { %3909 = vmatpush.msrb.mxu2 %v1804_v43  ;;  %3928 = vmatpush.msrb.mxu3 %v1957_v44  ;;  %v2407_v43 = vld [vmem:[%s8116_s21 + $0x3fe0] sm:$0xff]  ;;  %v2560_v44 = vld [vmem:[%s8116_s21 + $0x44a8] sm:$0xff] }
 0x129   : > { %3870 = vmatmul.f32.vlgmr.msrb.gmra.mxu0 %v8299_v39  ;;  %3910 = vmatmul.f32.vlgmr.msrb.gmra.mxu2 %v8301_v40 }
 0x12a   : > { %3934 = vmatpush.msra.mxu0 %v2227_v45  ;;  %3974 = vmatpush.msra.mxu2 %v2515_v46  ;;  %v2110_v45 = vld [vmem:[%s8116_s21 + $0x3698] sm:$0xff]  ;;  %v2263_v46 = vld [vmem:[%s8116_s21 + $0x3b60] sm:$0xff] }
 0x12b   : > { %3889 = vmatpush.msrb.mxu1 %v1660_v47  ;;  %3929 = vmatpush.msrb.mxu3 %v1948_v48  ;;  %v2398_v47 = vld [vmem:[%s8116_s21 + $0x3f98] sm:$0xff]  ;;  %v2551_v48 = vld [vmem:[%s8116_s21 + $0x4460] sm:$0xff] }
 0x12c   : > { %3890 = vmatmul.f32.vlgmr.msrb.gmra.mxu1 %v8304_v41  ;;  %3930 = vmatmul.f32.vlgmr.msrb.gmra.mxu3 %v8306_v42 }
 0x12d   : > { %3935 = vmatpush.msra.mxu0 %v2218_v49  ;;  %3954 = vmatpush.msra.mxu1 %v2371_v50  ;;  %v2101_v49 = vld [vmem:[%s8116_s21 + $0x3650] sm:$0xff]  ;;  %v2254_v50 = vld [vmem:[%s8116_s21 + $0x3b18] sm:$0xff] }
 0x12e   : > { %3975 = vmatpush.msra.mxu2 %v2506_v51  ;;  %3994 = vmatpush.msra.mxu3 %v2659_v52  ;;  %v2389_v51 = vld [vmem:[%s8116_s21 + $0x3f50] sm:$0xff]  ;;  %v2542_v52 = vld [vmem:[%s8116_s21 + $0x4418] sm:$0xff] }
 0x12f   : > { %3936 = vmatpush.msra.mxu0 %v2209_v53  ;;  %3955 = vmatpush.msra.mxu1 %v2362_v54  ;;  %v2092_v53 = vld [vmem:[%s8116_s21 + $0x3608] sm:$0xff]  ;;  %v2245_v54 = vld [vmem:[%s8116_s21 + $0x3ad0] sm:$0xff] }
 0x130   : > { %3976 = vmatpush.msra.mxu2 %v2497_v55  ;;  %3995 = vmatpush.msra.mxu3 %v2650_v56  ;;  %v2380_v55 = vld [vmem:[%s8116_s21 + $0x3f08] sm:$0xff]  ;;  %v2533_v56 = vld [vmem:[%s8116_s21 + $0x43d0] sm:$0xff] }
 0x131   : > { %3937 = vmatpush.msra.mxu0 %v2200_v61  ;;  %3956 = vmatpush.msra.mxu1 %v2353_v62  ;;  %v2803_v61 = vld [vmem:[%s8116_s21 + $0x4c40] sm:$0xff] }
 0x132   : > { %3977 = vmatpush.msra.mxu2 %v2488_v63  ;;  %3996 = vmatpush.msra.mxu3 %v2641_v0  ;;  %v3091_v62 = vld [vmem:[%s8116_s21 + $0x5540] sm:$0xff]  ;;  %v2236_v63 = vld [vmem:[%s8116_s21 + $0x3a88] sm:$0xff] }
 0x133   : > { %3938 = vmatpush.msra.mxu0 %v2191_v1  ;;  %3957 = vmatpush.msra.mxu1 %v2344_v2  ;;  %v2524_v0 = vld [vmem:[%s8116_s21 + $0x4388] sm:$0xff]  ;;  %v7939_v1 = vld.sshfl [vmem:[#allocation1 + $0x20] sm:$0xff pattern:$0x73625140] }
 0x134   : > { %3978 = vmatpush.msra.mxu2 %v2479_v4  ;;  %3997 = vmatpush.msra.mxu3 %v2632_v5  ;;  %v7940_v2 = vld.sshfl [vmem:[#allocation1 + $0x30] sm:$0xff pattern:$0x73625140]  ;;  %v2794_v4 = vld [vmem:[%s8116_s21 + $0x4bf8] sm:$0xff]  ;;  %v2947_v5 = vld [vmem:[%s8116_s21 + $0x50c0] sm:$0xff] }
 0x135   : > { %3939 = vmatpush.msra.mxu0 %v2182_v6  ;;  %3958 = vmatpush.msra.mxu1 %v2335_v7  ;;  %v3082_v6 = vld [vmem:[%s8116_s21 + $0x54f8] sm:$0xff]  ;;  %v3235_v7 = vld [vmem:[%s8116_s21 + $0x59c0] sm:$0xff] }
 0x136   : > { %3979 = vmatpush.msra.mxu2 %v2470_v10  ;;  %3998 = vmatpush.msra.mxu3 %v2623_v11  ;;  %v7941_v10 = vld.sshfl [vmem:[#allocation1 + $0x28] sm:$0xff pattern:$0x73625140]  ;;  %v7942_v11 = vld.sshfl [vmem:[#allocation1 + $0x38] sm:$0xff pattern:$0x73625140] }
 0x137   : > { %3940 = vmatpush.msra.mxu0 %v2173_v12  ;;  %3959 = vmatpush.msra.mxu1 %v2326_v13  ;;  %v2785_v12 = vld [vmem:[%s8116_s21 + $0x4bb0] sm:$0xff]  ;;  %v2938_v13 = vld [vmem:[%s8116_s21 + $0x5078] sm:$0xff] }
 0x138   : > { %3980 = vmatpush.msra.mxu2 %v2461_v15  ;;  %3999 = vmatpush.msra.mxu3 %v2614_v16  ;;  %v3073_v15 = vld [vmem:[%s8116_s21 + $0x54b0] sm:$0xff]  ;;  %v3226_v16 = vld [vmem:[%s8116_s21 + $0x5978] sm:$0xff] }
 0x139   : > { %3941 = vmatpush.msra.mxu0 %v2164_v17  ;;  %3960 = vmatpush.msra.mxu1 %v2317_v18  ;;  %v2776_v17 = vld [vmem:[%s8116_s21 + $0x4b68] sm:$0xff]  ;;  %v2929_v18 = vld [vmem:[%s8116_s21 + $0x5030] sm:$0xff] }
 0x13a   : > { %3981 = vmatpush.msra.mxu2 %v2452_v19  ;;  %4000 = vmatpush.msra.mxu3 %v2605_v20  ;;  %v3064_v19 = vld [vmem:[%s8116_s21 + $0x5468] sm:$0xff]  ;;  %v3217_v20 = vld [vmem:[%s8116_s21 + $0x5930] sm:$0xff] }
 0x13b   : > { %3942 = vmatpush.msra.mxu0 %v2155_v21  ;;  %3961 = vmatpush.msra.mxu1 %v2308_v22  ;;  %v2767_v21 = vld [vmem:[%s8116_s21 + $0x4b20] sm:$0xff]  ;;  %v2920_v22 = vld [vmem:[%s8116_s21 + $0x4fe8] sm:$0xff] }
 0x13c   : > { %3982 = vmatpush.msra.mxu2 %v2443_v23  ;;  %4001 = vmatpush.msra.mxu3 %v2596_v24  ;;  %v3055_v23 = vld [vmem:[%s8116_s21 + $0x5420] sm:$0xff]  ;;  %v3208_v24 = vld [vmem:[%s8116_s21 + $0x58e8] sm:$0xff] }
 0x13d   : > { %3943 = vmatpush.msra.mxu0 %v2146_v25  ;;  %3962 = vmatpush.msra.mxu1 %v2299_v26  ;;  %v2758_v25 = vld [vmem:[%s8116_s21 + $0x4ad8] sm:$0xff]  ;;  %v2911_v26 = vld [vmem:[%s8116_s21 + $0x4fa0] sm:$0xff] }
 0x13e   : > { %3983 = vmatpush.msra.mxu2 %v2434_v27  ;;  %4002 = vmatpush.msra.mxu3 %v2587_v28  ;;  %v3046_v27 = vld [vmem:[%s8116_s21 + $0x53d8] sm:$0xff]  ;;  %v3199_v28 = vld [vmem:[%s8116_s21 + $0x58a0] sm:$0xff] }
 0x13f   : > { %3944 = vmatpush.msra.mxu0 %v2137_v29  ;;  %3963 = vmatpush.msra.mxu1 %v2290_v30  ;;  %v2749_v29 = vld [vmem:[%s8116_s21 + $0x4a90] sm:$0xff]  ;;  %v2902_v30 = vld [vmem:[%s8116_s21 + $0x4f58] sm:$0xff] }
 0x140   : > { %3984 = vmatpush.msra.mxu2 %v2425_v31  ;;  %4003 = vmatpush.msra.mxu3 %v2578_v32  ;;  %v3037_v31 = vld [vmem:[%s8116_s21 + $0x5390] sm:$0xff]  ;;  %v3190_v32 = vld [vmem:[%s8116_s21 + $0x5858] sm:$0xff] }
 0x141   : > { %3945 = vmatpush.msra.mxu0 %v2128_v33  ;;  %3964 = vmatpush.msra.mxu1 %v2281_v34  ;;  %v2740_v33 = vld [vmem:[%s8116_s21 + $0x4a48] sm:$0xff]  ;;  %v2893_v34 = vld [vmem:[%s8116_s21 + $0x4f10] sm:$0xff] }
 0x142   : > { %3985 = vmatpush.msra.mxu2 %v2416_v35  ;;  %4004 = vmatpush.msra.mxu3 %v2569_v36  ;;  %v3028_v35 = vld [vmem:[%s8116_s21 + $0x5348] sm:$0xff]  ;;  %v3181_v36 = vld [vmem:[%s8116_s21 + $0x5810] sm:$0xff] }
 0x143   : > { %3946 = vmatpush.msra.mxu0 %v2119_v37  ;;  %3965 = vmatpush.msra.mxu1 %v2272_v38  ;;  %v2731_v37 = vld [vmem:[%s8116_s21 + $0x4a00] sm:$0xff]  ;;  %v2884_v38 = vld [vmem:[%s8116_s21 + $0x4ec8] sm:$0xff] }
 0x144   : > { %3986 = vmatpush.msra.mxu2 %v2407_v43  ;;  %4005 = vmatpush.msra.mxu3 %v2560_v44  ;;  %v3019_v43 = vld [vmem:[%s8116_s21 + $0x5300] sm:$0xff]  ;;  %v3172_v44 = vld [vmem:[%s8116_s21 + $0x57c8] sm:$0xff] }
 0x145   : > { %3947 = vmatpush.msra.mxu0 %v2110_v45  ;;  %3966 = vmatpush.msra.mxu1 %v2263_v46  ;;  %v2722_v45 = vld [vmem:[%s8116_s21 + $0x49b8] sm:$0xff]  ;;  %v2875_v46 = vld [vmem:[%s8116_s21 + $0x4e80] sm:$0xff] }
 0x146   : > { %3987 = vmatpush.msra.mxu2 %v2398_v47  ;;  %4006 = vmatpush.msra.mxu3 %v2551_v48  ;;  %v3010_v47 = vld [vmem:[%s8116_s21 + $0x52b8] sm:$0xff]  ;;  %v3163_v48 = vld [vmem:[%s8116_s21 + $0x5780] sm:$0xff] }
 0x147   : > { %3948 = vmatpush.msra.mxu0 %v2101_v49  ;;  %3967 = vmatpush.msra.mxu1 %v2254_v50  ;;  %v2713_v49 = vld [vmem:[%s8116_s21 + $0x4970] sm:$0xff]  ;;  %v2866_v50 = vld [vmem:[%s8116_s21 + $0x4e38] sm:$0xff] }
 0x148   : > { %3988 = vmatpush.msra.mxu2 %v2389_v51  ;;  %4007 = vmatpush.msra.mxu3 %v2542_v52  ;;  %v3001_v51 = vld [vmem:[%s8116_s21 + $0x5270] sm:$0xff]  ;;  %v3154_v52 = vld [vmem:[%s8116_s21 + $0x5738] sm:$0xff] }
 0x149   : > { %3949 = vmatpush.msra.mxu0 %v2092_v53  ;;  %3968 = vmatpush.msra.mxu1 %v2245_v54  ;;  %v2704_v53 = vld [vmem:[%s8116_s21 + $0x4928] sm:$0xff]  ;;  %v2857_v54 = vld [vmem:[%s8116_s21 + $0x4df0] sm:$0xff] }
 0x14a   : > { %3989 = vmatpush.msra.mxu2 %v2380_v55  ;;  %4008 = vmatpush.msra.mxu3 %v2533_v56  ;;  %v2992_v55 = vld [vmem:[%s8116_s21 + $0x5228] sm:$0xff]  ;;  %v3145_v56 = vld [vmem:[%s8116_s21 + $0x56f0] sm:$0xff] }
 0x14b   : > { %3950 = vmatmul.f32.vlgmr.msra.gmra.mxu0 %v7939_v1  ;;  %3990 = vmatmul.f32.vlgmr.msra.gmra.mxu2 %v7940_v2  ;;  %v2686_v1 = vld [vmem:[%s8116_s21 + $0x4898] sm:$0xff]  ;;  %v2839_v2 = vld [vmem:[%s8116_s21 + $0x4d60] sm:$0xff] }
 0x14c   : > { %4014 = vmatpush.msrb.mxu0 %v2803_v61  ;;  %4054 = vmatpush.msrb.mxu2 %v3091_v62  ;;  %v2695_v61 = vld [vmem:[%s8116_s21 + $0x48e0] sm:$0xff]  ;;  %v2848_v62 = vld [vmem:[%s8116_s21 + $0x4da8] sm:$0xff] }
 0x14d   : > { %3969 = vmatpush.msra.mxu1 %v2236_v63  ;;  %4009 = vmatpush.msra.mxu3 %v2524_v0  ;;  %v2983_v63 = vld [vmem:[%s8116_s21 + $0x51e0] sm:$0xff]  ;;  %v3136_v0 = vld [vmem:[%s8116_s21 + $0x56a8] sm:$0xff] }
 0x14e   : > { %3970 = vmatmul.f32.vlgmr.msra.gmra.mxu1 %v7941_v10  ;;  %4010 = vmatmul.f32.vlgmr.msra.gmra.mxu3 %v7942_v11  ;;  %v2965_v10 = vld [vmem:[%s8116_s21 + $0x5150] sm:$0xff]  ;;  %v3118_v11 = vld [vmem:[%s8116_s21 + $0x5618] sm:$0xff] }
 0x14f   : > { %4015 = vmatpush.msrb.mxu0 %v2794_v4  ;;  %4034 = vmatpush.msrb.mxu1 %v2947_v5  ;;  %v2974_v4 = vld [vmem:[%s8116_s21 + $0x5198] sm:$0xff]  ;;  %v3127_v5 = vld [vmem:[%s8116_s21 + $0x5660] sm:$0xff] }
 0x150   : > { %4055 = vmatpush.msrb.mxu2 %v3082_v6  ;;  %4074 = vmatpush.msrb.mxu3 %v3235_v7  ;;  %v2677_v6 = vld [vmem:[%s8116_s21 + $0x4850] sm:$0xff]  ;;  %v2830_v7 = vld [vmem:[%s8116_s21 + $0x4d18] sm:$0xff] }
 0x151   : > { %4016 = vmatpush.msrb.mxu0 %v2785_v12  ;;  %4035 = vmatpush.msrb.mxu1 %v2938_v13  ;;  %v2668_v12 = vld [vmem:[%s8116_s21 + $0x4808] sm:$0xff]  ;;  %v2821_v13 = vld [vmem:[%s8116_s21 + $0x4cd0] sm:$0xff] }
 0x152   : > { %4056 = vmatpush.msrb.mxu2 %v3073_v15  ;;  %4075 = vmatpush.msrb.mxu3 %v3226_v16  ;;  %v2956_v15 = vld [vmem:[%s8116_s21 + $0x5108] sm:$0xff]  ;;  %v3109_v16 = vld [vmem:[%s8116_s21 + $0x55d0] sm:$0xff] }
 0x153   : > { %4017 = vmatpush.msrb.mxu0 %v2776_v17  ;;  %4036 = vmatpush.msrb.mxu1 %v2929_v18  ;;  %v500_v17 = vld [vmem:[%s8116_s21 + $0x448] sm:$0xff] }
 0x154   : > { %4057 = vmatpush.msrb.mxu2 %v3064_v19  ;;  %4076 = vmatpush.msrb.mxu3 %v3217_v20  ;;  %v788_v18 = vld [vmem:[%s8116_s21 + $0xd48] sm:$0xff] }
 0x155   : > { %4018 = vmatpush.msrb.mxu0 %v2767_v21  ;;  %4037 = vmatpush.msrb.mxu1 %v2920_v22  ;;  %v2812_v19 = vld [vmem:[%s8116_s21 + $0x4c88] sm:$0xff]  ;;  %v7943_v21 = vld.sshfl [vmem:[#allocation1] sm:$0xff pattern:$0x73625140] }
 0x156   : > { %4058 = vmatpush.msrb.mxu2 %v3055_v23  ;;  %4077 = vmatpush.msrb.mxu3 %v3208_v24  ;;  %v3100_v20 = vld [vmem:[%s8116_s21 + $0x5588] sm:$0xff]  ;;  %v7944_v22 = vld.sshfl [vmem:[#allocation1 + $0x10] sm:$0xff pattern:$0x73625140]  ;;  %v491_v23 = vld [vmem:[%s8116_s21 + $0x400] sm:$0xff] }
 0x157   : > { %4019 = vmatpush.msrb.mxu0 %v2758_v25  ;;  %4038 = vmatpush.msrb.mxu1 %v2911_v26  ;;  %v644_v24 = vld [vmem:[%s8116_s21 + $0x8c8] sm:$0xff]  ;;  %v779_v25 = vld [vmem:[%s8116_s21 + $0xd00] sm:$0xff] }
 0x158   : > { %4059 = vmatpush.msrb.mxu2 %v3046_v27  ;;  %4078 = vmatpush.msrb.mxu3 %v3199_v28  ;;  %v932_v26 = vld [vmem:[%s8116_s21 + $0x11c8] sm:$0xff]  ;;  %v7946_v28 = vld.sshfl [vmem:[#allocation1 + $0x18] sm:$0xff pattern:$0x73625140] }
 0x159   : > { %4020 = vmatpush.msrb.mxu0 %v2749_v29  ;;  %4039 = vmatpush.msrb.mxu1 %v2902_v30  ;;  %v7945_v27 = vld.sshfl [vmem:[#allocation1 + $0x8] sm:$0xff pattern:$0x73625140]  ;;  %v482_v29 = vld [vmem:[%s8116_s21 + $0x3b8] sm:$0xff]  ;;  %v635_v30 = vld [vmem:[%s8116_s21 + $0x880] sm:$0xff] }
 0x15a   : > { %4060 = vmatpush.msrb.mxu2 %v3037_v31  ;;  %4079 = vmatpush.msrb.mxu3 %v3190_v32  ;;  %v770_v31 = vld [vmem:[%s8116_s21 + $0xcb8] sm:$0xff]  ;;  %v923_v32 = vld [vmem:[%s8116_s21 + $0x1180] sm:$0xff] }
 0x15b   : > { %4021 = vmatpush.msrb.mxu0 %v2740_v33  ;;  %4040 = vmatpush.msrb.mxu1 %v2893_v34  ;;  %v473_v33 = vld [vmem:[%s8116_s21 + $0x370] sm:$0xff]  ;;  %v626_v34 = vld [vmem:[%s8116_s21 + $0x838] sm:$0xff] }
 0x15c   : > { %4061 = vmatpush.msrb.mxu2 %v3028_v35  ;;  %4080 = vmatpush.msrb.mxu3 %v3181_v36  ;;  %v761_v35 = vld [vmem:[%s8116_s21 + $0xc70] sm:$0xff]  ;;  %v914_v36 = vld [vmem:[%s8116_s21 + $0x1138] sm:$0xff] }
 0x15d   : > { %4022 = vmatpush.msrb.mxu0 %v2731_v37  ;;  %4041 = vmatpush.msrb.mxu1 %v2884_v38  ;;  %v464_v37 = vld [vmem:[%s8116_s21 + $0x328] sm:$0xff]  ;;  %v617_v38 = vld [vmem:[%s8116_s21 + $0x7f0] sm:$0xff] }
 0x15e   : > { %4062 = vmatpush.msrb.mxu2 %v3019_v43  ;;  %4081 = vmatpush.msrb.mxu3 %v3172_v44  ;;  %v752_v43 = vld [vmem:[%s8116_s21 + $0xc28] sm:$0xff]  ;;  %v905_v44 = vld [vmem:[%s8116_s21 + $0x10f0] sm:$0xff] }
 0x15f   : > { %4023 = vmatpush.msrb.mxu0 %v2722_v45  ;;  %4042 = vmatpush.msrb.mxu1 %v2875_v46  ;;  %v455_v45 = vld [vmem:[%s8116_s21 + $0x2e0] sm:$0xff]  ;;  %v608_v46 = vld [vmem:[%s8116_s21 + $0x7a8] sm:$0xff] }
 0x160   : > { %4063 = vmatpush.msrb.mxu2 %v3010_v47  ;;  %4082 = vmatpush.msrb.mxu3 %v3163_v48  ;;  %v743_v47 = vld [vmem:[%s8116_s21 + $0xbe0] sm:$0xff]  ;;  %v896_v48 = vld [vmem:[%s8116_s21 + $0x10a8] sm:$0xff] }
 0x161   : > { %4024 = vmatpush.msrb.mxu0 %v2713_v49  ;;  %4043 = vmatpush.msrb.mxu1 %v2866_v50  ;;  %v446_v49 = vld [vmem:[%s8116_s21 + $0x298] sm:$0xff]  ;;  %v599_v50 = vld [vmem:[%s8116_s21 + $0x760] sm:$0xff] }
 0x162   : > { %4064 = vmatpush.msrb.mxu2 %v3001_v51  ;;  %4083 = vmatpush.msrb.mxu3 %v3154_v52  ;;  %v734_v51 = vld [vmem:[%s8116_s21 + $0xb98] sm:$0xff]  ;;  %v887_v52 = vld [vmem:[%s8116_s21 + $0x1060] sm:$0xff] }
 0x163   : > { %4025 = vmatpush.msrb.mxu0 %v2704_v53  ;;  %4044 = vmatpush.msrb.mxu1 %v2857_v54  ;;  %v437_v53 = vld [vmem:[%s8116_s21 + $0x250] sm:$0xff]  ;;  %v590_v54 = vld [vmem:[%s8116_s21 + $0x718] sm:$0xff] }
 0x164   : > { %4065 = vmatpush.msrb.mxu2 %v2992_v55  ;;  %4084 = vmatpush.msrb.mxu3 %v3145_v56  ;;  %v725_v55 = vld [vmem:[%s8116_s21 + $0xb50] sm:$0xff]  ;;  %v878_v56 = vld [vmem:[%s8116_s21 + $0x1018] sm:$0xff] }
 0x165   : > { %4026 = vmatpush.msrb.mxu0 %v2695_v61  ;;  %4045 = vmatpush.msrb.mxu1 %v2848_v62  ;;  %v428_v61 = vld [vmem:[%s8116_s21 + $0x208] sm:$0xff]  ;;  %v581_v62 = vld [vmem:[%s8116_s21 + $0x6d0] sm:$0xff] }
 0x166   : > { %4066 = vmatpush.msrb.mxu2 %v2983_v63  ;;  %4085 = vmatpush.msrb.mxu3 %v3136_v0  ;;  %v716_v63 = vld [vmem:[%s8116_s21 + $0xb08] sm:$0xff]  ;;  %v869_v0 = vld [vmem:[%s8116_s21 + $0xfd0] sm:$0xff] }
 0x167   : > { %4027 = vmatpush.msrb.mxu0 %v2686_v1  ;;  %4046 = vmatpush.msrb.mxu1 %v2839_v2  ;;  %v419_v1 = vld [vmem:[%s8116_s21 + $0x1c0] sm:$0xff]  ;;  %v572_v2 = vld [vmem:[%s8116_s21 + $0x688] sm:$0xff] }
 0x168   : > { %4067 = vmatpush.msrb.mxu2 %v2974_v4  ;;  %4086 = vmatpush.msrb.mxu3 %v3127_v5  ;;  %v707_v4 = vld [vmem:[%s8116_s21 + $0xac0] sm:$0xff]  ;;  %v860_v5 = vld [vmem:[%s8116_s21 + $0xf88] sm:$0xff] }
 0x169   : > { %4028 = vmatpush.msrb.mxu0 %v2677_v6  ;;  %4047 = vmatpush.msrb.mxu1 %v2830_v7  ;;  %v410_v6 = vld [vmem:[%s8116_s21 + $0x178] sm:$0xff]  ;;  %v563_v7 = vld [vmem:[%s8116_s21 + $0x640] sm:$0xff] }
 0x16a   : > { %4068 = vmatpush.msrb.mxu2 %v2965_v10  ;;  %4087 = vmatpush.msrb.mxu3 %v3118_v11  ;;  %v698_v10 = vld [vmem:[%s8116_s21 + $0xa78] sm:$0xff]  ;;  %v851_v11 = vld [vmem:[%s8116_s21 + $0xf40] sm:$0xff] }
 0x16b   : > { %4029 = vmatpush.msrb.mxu0 %v2668_v12  ;;  %4048 = vmatpush.msrb.mxu1 %v2821_v13  ;;  %v401_v12 = vld [vmem:[%s8116_s21 + $0x130] sm:$0xff]  ;;  %v554_v13 = vld [vmem:[%s8116_s21 + $0x5f8] sm:$0xff] }
 0x16c   : > { %4069 = vmatpush.msrb.mxu2 %v2956_v15  ;;  %4088 = vmatpush.msrb.mxu3 %v3109_v16  ;;  %v689_v15 = vld [vmem:[%s8116_s21 + $0xa30] sm:$0xff]  ;;  %v842_v16 = vld [vmem:[%s8116_s21 + $0xef8] sm:$0xff] }
 0x16d   : > { %4030 = vmatmul.f32.vlgmr.msrb.gmra.mxu0 %v7943_v21  ;;  %4070 = vmatmul.f32.vlgmr.msrb.gmra.mxu2 %v7944_v22  ;;  %v383_v21 = vld [vmem:[%s8116_s21 + $0xa0] sm:$0xff]  ;;  %v536_v22 = vld [vmem:[%s8116_s21 + $0x568] sm:$0xff] }
 0x16e   : > { %4094 = vmatpush.msra.mxu0 %v500_v17  ;;  %4134 = vmatpush.msra.mxu2 %v788_v18  ;;  %v392_v17 = vld [vmem:[%s8116_s21 + $0xe8] sm:$0xff]  ;;  %v545_v18 = vld [vmem:[%s8116_s21 + $0x5b0] sm:$0xff] }
 0x16f   : > { %4049 = vmatpush.msrb.mxu1 %v2812_v19  ;;  %4089 = vmatpush.msrb.mxu3 %v3100_v20  ;;  %v680_v19 = vld [vmem:[%s8116_s21 + $0x9e8] sm:$0xff]  ;;  %v833_v20 = vld [vmem:[%s8116_s21 + $0xeb0] sm:$0xff] }
 0x170   : > { %4050 = vmatmul.f32.vlgmr.msrb.gmra.mxu1 %v7945_v27  ;;  %4090 = vmatmul.f32.vlgmr.msrb.gmra.mxu3 %v7946_v28  ;;  %v662_v27 = vld [vmem:[%s8116_s21 + $0x958] sm:$0xff]  ;;  %v815_v28 = vld [vmem:[%s8116_s21 + $0xe20] sm:$0xff] }
 0x171   : > { %4095 = vmatpush.msra.mxu0 %v491_v23  ;;  %4114 = vmatpush.msra.mxu1 %v644_v24  ;;  %v671_v23 = vld [vmem:[%s8116_s21 + $0x9a0] sm:$0xff]  ;;  %v824_v24 = vld [vmem:[%s8116_s21 + $0xe68] sm:$0xff] }
 0x172   : > { %4135 = vmatpush.msra.mxu2 %v779_v25  ;;  %4154 = vmatpush.msra.mxu3 %v932_v26  ;;  %v374_v25 = vld [vmem:[%s8116_s21 + $0x58] sm:$0xff]  ;;  %v527_v26 = vld [vmem:[%s8116_s21 + $0x520] sm:$0xff] }
 0x173   : > { %4096 = vmatpush.msra.mxu0 %v482_v29  ;;  %4115 = vmatpush.msra.mxu1 %v635_v30  ;;  %v365_v29 = vld [vmem:[%s8116_s21 + $0x10] sm:$0xff]  ;;  %v518_v30 = vld [vmem:[%s8116_s21 + $0x4d8] sm:$0xff] }
 0x174   : > { %4136 = vmatpush.msra.mxu2 %v770_v31  ;;  %4155 = vmatpush.msra.mxu3 %v923_v32  ;;  %v653_v31 = vld [vmem:[%s8116_s21 + $0x910] sm:$0xff]  ;;  %v806_v32 = vld [vmem:[%s8116_s21 + $0xdd8] sm:$0xff] }
 0x175   : > { %4097 = vmatpush.msra.mxu0 %v473_v33  ;;  %4116 = vmatpush.msra.mxu1 %v626_v34  ;;  %v1076_v33 = vld [vmem:[%s8116_s21 + $0x1648] sm:$0xff] }
 0x176   : > { %4137 = vmatpush.msra.mxu2 %v761_v35  ;;  %4156 = vmatpush.msra.mxu3 %v914_v36  ;;  %v1364_v34 = vld [vmem:[%s8116_s21 + $0x1f48] sm:$0xff]  ;;  %v509_v35 = vld [vmem:[%s8116_s21 + $0x490] sm:$0xff] }
 0x177   : > { %4098 = vmatpush.msra.mxu0 %v464_v37  ;;  %4117 = vmatpush.msra.mxu1 %v617_v38  ;;  %v797_v36 = vld [vmem:[%s8116_s21 + $0xd90] sm:$0xff]  ;;  %v1067_v37 = vld [vmem:[%s8116_s21 + $0x1600] sm:$0xff]  ;;  %v1220_v38 = vld [vmem:[%s8116_s21 + $0x1ac8] sm:$0xff] }
 0x178   : > { %4138 = vmatpush.msra.mxu2 %v752_v43  ;;  %4157 = vmatpush.msra.mxu3 %v905_v44  ;;  %v1355_v43 = vld [vmem:[%s8116_s21 + $0x1f00] sm:$0xff]  ;;  %v1508_v44 = vld [vmem:[%s8116_s21 + $0x23c8] sm:$0xff] }
 0x179   : > { %4099 = vmatpush.msra.mxu0 %v455_v45  ;;  %4118 = vmatpush.msra.mxu1 %v608_v46  ;;  %v1058_v45 = vld [vmem:[%s8116_s21 + $0x15b8] sm:$0xff]  ;;  %v1211_v46 = vld [vmem:[%s8116_s21 + $0x1a80] sm:$0xff] }
 0x17a   : > { %4139 = vmatpush.msra.mxu2 %v743_v47  ;;  %4158 = vmatpush.msra.mxu3 %v896_v48  ;;  %v1346_v47 = vld [vmem:[%s8116_s21 + $0x1eb8] sm:$0xff]  ;;  %v1499_v48 = vld [vmem:[%s8116_s21 + $0x2380] sm:$0xff] }
 0x17b   : > { %4100 = vmatpush.msra.mxu0 %v446_v49  ;;  %4119 = vmatpush.msra.mxu1 %v599_v50  ;;  %v1049_v49 = vld [vmem:[%s8116_s21 + $0x1570] sm:$0xff]  ;;  %v1202_v50 = vld [vmem:[%s8116_s21 + $0x1a38] sm:$0xff] }
 0x17c   : > { %4140 = vmatpush.msra.mxu2 %v734_v51  ;;  %4159 = vmatpush.msra.mxu3 %v887_v52  ;;  %v1337_v51 = vld [vmem:[%s8116_s21 + $0x1e70] sm:$0xff]  ;;  %v1490_v52 = vld [vmem:[%s8116_s21 + $0x2338] sm:$0xff] }
 0x17d   : > { %4101 = vmatpush.msra.mxu0 %v437_v53  ;;  %4120 = vmatpush.msra.mxu1 %v590_v54  ;;  %v1040_v53 = vld [vmem:[%s8116_s21 + $0x1528] sm:$0xff]  ;;  %v1193_v54 = vld [vmem:[%s8116_s21 + $0x19f0] sm:$0xff] }
 0x17e   : > { %4141 = vmatpush.msra.mxu2 %v725_v55  ;;  %4160 = vmatpush.msra.mxu3 %v878_v56  ;;  %v1328_v55 = vld [vmem:[%s8116_s21 + $0x1e28] sm:$0xff]  ;;  %v1481_v56 = vld [vmem:[%s8116_s21 + $0x22f0] sm:$0xff] }
 0x17f   : > { %4102 = vmatpush.msra.mxu0 %v428_v61  ;;  %4121 = vmatpush.msra.mxu1 %v581_v62  ;;  %v1031_v61 = vld [vmem:[%s8116_s21 + $0x14e0] sm:$0xff]  ;;  %v1184_v62 = vld [vmem:[%s8116_s21 + $0x19a8] sm:$0xff] }
 0x180   : > { %4142 = vmatpush.msra.mxu2 %v716_v63  ;;  %4161 = vmatpush.msra.mxu3 %v869_v0  ;;  %v1319_v63 = vld [vmem:[%s8116_s21 + $0x1de0] sm:$0xff]  ;;  %v1472_v0 = vld [vmem:[%s8116_s21 + $0x22a8] sm:$0xff] }
 0x181   : > { %4103 = vmatpush.msra.mxu0 %v419_v1  ;;  %4122 = vmatpush.msra.mxu1 %v572_v2  ;;  %v1022_v1 = vld [vmem:[%s8116_s21 + $0x1498] sm:$0xff]  ;;  %v1175_v2 = vld [vmem:[%s8116_s21 + $0x1960] sm:$0xff] }
 0x182   : > { %4143 = vmatpush.msra.mxu2 %v707_v4  ;;  %4162 = vmatpush.msra.mxu3 %v860_v5  ;;  %v1310_v4 = vld [vmem:[%s8116_s21 + $0x1d98] sm:$0xff]  ;;  %v1463_v5 = vld [vmem:[%s8116_s21 + $0x2260] sm:$0xff] }
 0x183   : > { %4104 = vmatpush.msra.mxu0 %v410_v6  ;;  %4123 = vmatpush.msra.mxu1 %v563_v7  ;;  %v1013_v6 = vld [vmem:[%s8116_s21 + $0x1450] sm:$0xff]  ;;  %v1166_v7 = vld [vmem:[%s8116_s21 + $0x1918] sm:$0xff] }
 0x184   : > { %4144 = vmatpush.msra.mxu2 %v698_v10  ;;  %4163 = vmatpush.msra.mxu3 %v851_v11  ;;  %v1301_v10 = vld [vmem:[%s8116_s21 + $0x1d50] sm:$0xff]  ;;  %v1454_v11 = vld [vmem:[%s8116_s21 + $0x2218] sm:$0xff] }
 0x185   : > { %4105 = vmatpush.msra.mxu0 %v401_v12  ;;  %4124 = vmatpush.msra.mxu1 %v554_v13  ;;  %v1004_v12 = vld [vmem:[%s8116_s21 + $0x1408] sm:$0xff]  ;;  %v1157_v13 = vld [vmem:[%s8116_s21 + $0x18d0] sm:$0xff] }
 0x186   : > { %4145 = vmatpush.msra.mxu2 %v689_v15  ;;  %4164 = vmatpush.msra.mxu3 %v842_v16  ;;  %v1292_v15 = vld [vmem:[%s8116_s21 + $0x1d08] sm:$0xff]  ;;  %v1445_v16 = vld [vmem:[%s8116_s21 + $0x21d0] sm:$0xff] }
 0x187   : > { %4106 = vmatpush.msra.mxu0 %v392_v17  ;;  %4125 = vmatpush.msra.mxu1 %v545_v18  ;;  %v995_v17 = vld [vmem:[%s8116_s21 + $0x13c0] sm:$0xff]  ;;  %v1148_v18 = vld [vmem:[%s8116_s21 + $0x1888] sm:$0xff] }
 0x188   : > { %4146 = vmatpush.msra.mxu2 %v680_v19  ;;  %4165 = vmatpush.msra.mxu3 %v833_v20  ;;  %v1283_v19 = vld [vmem:[%s8116_s21 + $0x1cc0] sm:$0xff]  ;;  %v1436_v20 = vld [vmem:[%s8116_s21 + $0x2188] sm:$0xff] }
 0x189   : > { %4107 = vmatpush.msra.mxu0 %v383_v21  ;;  %4126 = vmatpush.msra.mxu1 %v536_v22  ;;  %v986_v21 = vld [vmem:[%s8116_s21 + $0x1378] sm:$0xff]  ;;  %v1139_v22 = vld [vmem:[%s8116_s21 + $0x1840] sm:$0xff] }
 0x18a   : > { %4147 = vmatpush.msra.mxu2 %v671_v23  ;;  %4166 = vmatpush.msra.mxu3 %v824_v24  ;;  %v1274_v23 = vld [vmem:[%s8116_s21 + $0x1c78] sm:$0xff]  ;;  %v1427_v24 = vld [vmem:[%s8116_s21 + $0x2140] sm:$0xff] }
 0x18b   : > { %4108 = vmatpush.msra.mxu0 %v374_v25  ;;  %4127 = vmatpush.msra.mxu1 %v527_v26  ;;  %v977_v25 = vld [vmem:[%s8116_s21 + $0x1330] sm:$0xff]  ;;  %v1130_v26 = vld [vmem:[%s8116_s21 + $0x17f8] sm:$0xff] }
 0x18c   : > { %4148 = vmatpush.msra.mxu2 %v662_v27  ;;  %4167 = vmatpush.msra.mxu3 %v815_v28  ;;  %v1265_v27 = vld [vmem:[%s8116_s21 + $0x1c30] sm:$0xff]  ;;  %v1418_v28 = vld [vmem:[%s8116_s21 + $0x20f8] sm:$0xff] }
 0x18d   : > { %4109 = vmatpush.msra.mxu0 %v365_v29  ;;  %4128 = vmatpush.msra.mxu1 %v518_v30  ;;  %v968_v29 = vld [vmem:[%s8116_s21 + $0x12e8] sm:$0xff]  ;;  %v1121_v30 = vld [vmem:[%s8116_s21 + $0x17b0] sm:$0xff] }
 0x18e   : > { %4149 = vmatpush.msra.mxu2 %v653_v31  ;;  %4168 = vmatpush.msra.mxu3 %v806_v32  ;;  %v1256_v31 = vld [vmem:[%s8116_s21 + $0x1be8] sm:$0xff]  ;;  %v1409_v32 = vld [vmem:[%s8116_s21 + $0x20b0] sm:$0xff] }
 0x18f   : > { %4174 = vmatpush.msrb.mxu0 %v1076_v33  ;;  %4129 = vmatpush.msra.mxu1 %v509_v35  ;;  %v959_v33 = vld [vmem:[%s8116_s21 + $0x12a0] sm:$0xff] }
 0x190   : > { %4214 = vmatpush.msrb.mxu2 %v1364_v34  ;;  %4169 = vmatpush.msra.mxu3 %v797_v36  ;;  %v1112_v34 = vld [vmem:[%s8116_s21 + $0x1768] sm:$0xff]  ;;  %v1247_v35 = vld [vmem:[%s8116_s21 + $0x1ba0] sm:$0xff] }
 0x191   : > { %4175 = vmatpush.msrb.mxu0 %v1067_v37  ;;  %4194 = vmatpush.msrb.mxu1 %v1220_v38  ;;  %v1400_v36 = vld [vmem:[%s8116_s21 + $0x2068] sm:$0xff]  ;;  %v950_v37 = vld [vmem:[%s8116_s21 + $0x1258] sm:$0xff]  ;;  %v1103_v38 = vld [vmem:[%s8116_s21 + $0x1720] sm:$0xff] }
 0x192   : > { %4215 = vmatpush.msrb.mxu2 %v1355_v43  ;;  %4234 = vmatpush.msrb.mxu3 %v1508_v44  ;;  %v1238_v43 = vld [vmem:[%s8116_s21 + $0x1b58] sm:$0xff]  ;;  %v1391_v44 = vld [vmem:[%s8116_s21 + $0x2020] sm:$0xff] }
 0x193   : > { %4176 = vmatpush.msrb.mxu0 %v1058_v45  ;;  %4195 = vmatpush.msrb.mxu1 %v1211_v46  ;;  %v941_v45 = vld [vmem:[%s8116_s21 + $0x1210] sm:$0xff]  ;;  %v1094_v46 = vld [vmem:[%s8116_s21 + $0x16d8] sm:$0xff] }
 0x194   : > { %4216 = vmatpush.msrb.mxu2 %v1346_v47  ;;  %4235 = vmatpush.msrb.mxu3 %v1499_v48  ;;  %v1229_v47 = vld [vmem:[%s8116_s21 + $0x1b10] sm:$0xff]  ;;  %v1382_v48 = vld [vmem:[%s8116_s21 + $0x1fd8] sm:$0xff] }
 0x195   : > { %4177 = vmatpush.msrb.mxu0 %v1049_v49  ;;  %4196 = vmatpush.msrb.mxu1 %v1202_v50  ;;  %v1652_v49 = vld [vmem:[%s8116_s21 + $0x2848] sm:$0xff] }
 0x196   : > { %4217 = vmatpush.msrb.mxu2 %v1337_v51  ;;  %4236 = vmatpush.msrb.mxu3 %v1490_v52  ;;  %v1940_v50 = vld [vmem:[%s8116_s21 + $0x3148] sm:$0xff]  ;;  %v1085_v51 = vld [vmem:[%s8116_s21 + $0x1690] sm:$0xff] }
 0x197   : > { %4178 = vmatpush.msrb.mxu0 %v1040_v53  ;;  %4197 = vmatpush.msrb.mxu1 %v1193_v54  ;;  %v1373_v52 = vld [vmem:[%s8116_s21 + $0x1f90] sm:$0xff]  ;;  %v1643_v53 = vld [vmem:[%s8116_s21 + $0x2800] sm:$0xff]  ;;  %v1796_v54 = vld [vmem:[%s8116_s21 + $0x2cc8] sm:$0xff] }
 0x198   : > { %4218 = vmatpush.msrb.mxu2 %v1328_v55  ;;  %4237 = vmatpush.msrb.mxu3 %v1481_v56  ;;  %v1931_v55 = vld [vmem:[%s8116_s21 + $0x3100] sm:$0xff]  ;;  %v2084_v56 = vld [vmem:[%s8116_s21 + $0x35c8] sm:$0xff] }
 0x199   : > { %4179 = vmatpush.msrb.mxu0 %v1031_v61  ;;  %4198 = vmatpush.msrb.mxu1 %v1184_v62  ;;  %v1634_v61 = vld [vmem:[%s8116_s21 + $0x27b8] sm:$0xff]  ;;  %v1787_v62 = vld [vmem:[%s8116_s21 + $0x2c80] sm:$0xff] }
 0x19a   : > { %4219 = vmatpush.msrb.mxu2 %v1319_v63  ;;  %4238 = vmatpush.msrb.mxu3 %v1472_v0  ;;  %v1922_v63 = vld [vmem:[%s8116_s21 + $0x30b8] sm:$0xff]  ;;  %v2075_v0 = vld [vmem:[%s8116_s21 + $0x3580] sm:$0xff] }
 0x19b   : > { %4180 = vmatpush.msrb.mxu0 %v1022_v1  ;;  %4199 = vmatpush.msrb.mxu1 %v1175_v2  ;;  %v1625_v1 = vld [vmem:[%s8116_s21 + $0x2770] sm:$0xff]  ;;  %v1778_v2 = vld [vmem:[%s8116_s21 + $0x2c38] sm:$0xff] }
 0x19c   : > { %4220 = vmatpush.msrb.mxu2 %v1310_v4  ;;  %4239 = vmatpush.msrb.mxu3 %v1463_v5  ;;  %v1913_v4 = vld [vmem:[%s8116_s21 + $0x3070] sm:$0xff]  ;;  %v2066_v5 = vld [vmem:[%s8116_s21 + $0x3538] sm:$0xff] }
 0x19d   : > { %4181 = vmatpush.msrb.mxu0 %v1013_v6  ;;  %4200 = vmatpush.msrb.mxu1 %v1166_v7  ;;  %v1616_v6 = vld [vmem:[%s8116_s21 + $0x2728] sm:$0xff]  ;;  %v1769_v7 = vld [vmem:[%s8116_s21 + $0x2bf0] sm:$0xff] }
 0x19e   : > { %4221 = vmatpush.msrb.mxu2 %v1301_v10  ;;  %4240 = vmatpush.msrb.mxu3 %v1454_v11  ;;  %v1904_v10 = vld [vmem:[%s8116_s21 + $0x3028] sm:$0xff]  ;;  %v2057_v11 = vld [vmem:[%s8116_s21 + $0x34f0] sm:$0xff] }
 0x19f   : > { %4182 = vmatpush.msrb.mxu0 %v1004_v12  ;;  %4201 = vmatpush.msrb.mxu1 %v1157_v13  ;;  %v1607_v12 = vld [vmem:[%s8116_s21 + $0x26e0] sm:$0xff]  ;;  %v1760_v13 = vld [vmem:[%s8116_s21 + $0x2ba8] sm:$0xff] }
 0x1a0   : > { %4222 = vmatpush.msrb.mxu2 %v1292_v15  ;;  %4241 = vmatpush.msrb.mxu3 %v1445_v16  ;;  %v1895_v15 = vld [vmem:[%s8116_s21 + $0x2fe0] sm:$0xff]  ;;  %v2048_v16 = vld [vmem:[%s8116_s21 + $0x34a8] sm:$0xff] }
 0x1a1   : > { %4183 = vmatpush.msrb.mxu0 %v995_v17  ;;  %4202 = vmatpush.msrb.mxu1 %v1148_v18  ;;  %v1598_v17 = vld [vmem:[%s8116_s21 + $0x2698] sm:$0xff]  ;;  %v1751_v18 = vld [vmem:[%s8116_s21 + $0x2b60] sm:$0xff] }
 0x1a2   : > { %4223 = vmatpush.msrb.mxu2 %v1283_v19  ;;  %4242 = vmatpush.msrb.mxu3 %v1436_v20  ;;  %v1886_v19 = vld [vmem:[%s8116_s21 + $0x2f98] sm:$0xff]  ;;  %v2039_v20 = vld [vmem:[%s8116_s21 + $0x3460] sm:$0xff] }
 0x1a3   : > { %4184 = vmatpush.msrb.mxu0 %v986_v21  ;;  %4203 = vmatpush.msrb.mxu1 %v1139_v22  ;;  %v1589_v21 = vld [vmem:[%s8116_s21 + $0x2650] sm:$0xff]  ;;  %v1742_v22 = vld [vmem:[%s8116_s21 + $0x2b18] sm:$0xff] }
 0x1a4   : > { %4224 = vmatpush.msrb.mxu2 %v1274_v23  ;;  %4243 = vmatpush.msrb.mxu3 %v1427_v24  ;;  %v1877_v23 = vld [vmem:[%s8116_s21 + $0x2f50] sm:$0xff]  ;;  %v2030_v24 = vld [vmem:[%s8116_s21 + $0x3418] sm:$0xff] }
 0x1a5   : > { %4185 = vmatpush.msrb.mxu0 %v977_v25  ;;  %4204 = vmatpush.msrb.mxu1 %v1130_v26  ;;  %v1580_v25 = vld [vmem:[%s8116_s21 + $0x2608] sm:$0xff]  ;;  %v1733_v26 = vld [vmem:[%s8116_s21 + $0x2ad0] sm:$0xff] }
 0x1a6   : > { %4225 = vmatpush.msrb.mxu2 %v1265_v27  ;;  %4244 = vmatpush.msrb.mxu3 %v1418_v28  ;;  %v1868_v27 = vld [vmem:[%s8116_s21 + $0x2f08] sm:$0xff]  ;;  %v2021_v28 = vld [vmem:[%s8116_s21 + $0x33d0] sm:$0xff] }
 0x1a7   : > { %4186 = vmatpush.msrb.mxu0 %v968_v29  ;;  %4205 = vmatpush.msrb.mxu1 %v1121_v30  ;;  %v1571_v29 = vld [vmem:[%s8116_s21 + $0x25c0] sm:$0xff]  ;;  %v1724_v30 = vld [vmem:[%s8116_s21 + $0x2a88] sm:$0xff] }
 0x1a8   : > { %4226 = vmatpush.msrb.mxu2 %v1256_v31  ;;  %4245 = vmatpush.msrb.mxu3 %v1409_v32  ;;  %v1859_v31 = vld [vmem:[%s8116_s21 + $0x2ec0] sm:$0xff]  ;;  %v2012_v32 = vld [vmem:[%s8116_s21 + $0x3388] sm:$0xff] }
 0x1a9   : > { %4187 = vmatpush.msrb.mxu0 %v959_v33  ;;  %4206 = vmatpush.msrb.mxu1 %v1112_v34  ;;  %v1562_v33 = vld [vmem:[%s8116_s21 + $0x2578] sm:$0xff]  ;;  %v1715_v34 = vld [vmem:[%s8116_s21 + $0x2a40] sm:$0xff] }
 0x1aa   : > { %4227 = vmatpush.msrb.mxu2 %v1247_v35  ;;  %4246 = vmatpush.msrb.mxu3 %v1400_v36  ;;  %v1850_v35 = vld [vmem:[%s8116_s21 + $0x2e78] sm:$0xff]  ;;  %v2003_v36 = vld [vmem:[%s8116_s21 + $0x3340] sm:$0xff] }
 0x1ab   : > { %4188 = vmatpush.msrb.mxu0 %v950_v37  ;;  %4207 = vmatpush.msrb.mxu1 %v1103_v38  ;;  %v1553_v37 = vld [vmem:[%s8116_s21 + $0x2530] sm:$0xff]  ;;  %v1706_v38 = vld [vmem:[%s8116_s21 + $0x29f8] sm:$0xff] }
 0x1ac   : > { %4228 = vmatpush.msrb.mxu2 %v1238_v43  ;;  %4247 = vmatpush.msrb.mxu3 %v1391_v44  ;;  %v1841_v43 = vld [vmem:[%s8116_s21 + $0x2e30] sm:$0xff]  ;;  %v1994_v44 = vld [vmem:[%s8116_s21 + $0x32f8] sm:$0xff] }
 0x1ad   : > { %4150 = vmatmul.f32.vlgmr.msra.gmra.mxu2 %v8252_v3  ;;  %4189 = vmatpush.msrb.mxu0 %v941_v45  ;;  %v1544_v45 = vld [vmem:[%s8116_s21 + $0x24e8] sm:$0xff] }
 0x1ae   : > { %4208 = vmatpush.msrb.mxu1 %v1094_v46  ;;  %4229 = vmatpush.msrb.mxu2 %v1229_v47  ;;  %v1697_v46 = vld [vmem:[%s8116_s21 + $0x29b0] sm:$0xff]  ;;  %v1832_v47 = vld [vmem:[%s8116_s21 + $0x2de8] sm:$0xff] }
 0x1af   : > { %4248 = vmatpush.msrb.mxu3 %v1382_v48  ;;  %4110 = vmatmul.f32.vlgmr.msra.gmra.mxu0 %v8258_v8  ;;  %v1985_v48 = vld [vmem:[%s8116_s21 + $0x32b0] sm:$0xff] }
 0x1b0   : > { %4170 = vmatmul.f32.vlgmr.msra.gmra.mxu3 %v8261_v9  ;;  %4254 = vmatpush.msra.mxu0 %v1652_v49  ;;  %v1535_v49 = vld [vmem:[%s8116_s21 + $0x24a0] sm:$0xff] }
 0x1b1   : > { %4294 = vmatpush.msra.mxu2 %v1940_v50  ;;  %4209 = vmatpush.msrb.mxu1 %v1085_v51  ;;  %v1688_v50 = vld [vmem:[%s8116_s21 + $0x2968] sm:$0xff]  ;;  %v1823_v51 = vld [vmem:[%s8116_s21 + $0x2da0] sm:$0xff] }
 0x1b2   : > { %4249 = vmatpush.msrb.mxu3 %v1373_v52  ;;  %4130 = vmatmul.f32.vlgmr.msra.gmra.mxu1 %v8268_v14  ;;  %v1976_v52 = vld [vmem:[%s8116_s21 + $0x3268] sm:$0xff] }
 0x1b3   : > { %4255 = vmatpush.msra.mxu0 %v1643_v53  ;;  %4274 = vmatpush.msra.mxu1 %v1796_v54  ;;  %v1526_v53 = vld [vmem:[%s8116_s21 + $0x2458] sm:$0xff]  ;;  %v1679_v54 = vld [vmem:[%s8116_s21 + $0x2920] sm:$0xff] }
 0x1b4   : > { %4295 = vmatpush.msra.mxu2 %v1931_v55  ;;  %4314 = vmatpush.msra.mxu3 %v2084_v56  ;;  %v1814_v55 = vld [vmem:[%s8116_s21 + $0x2d58] sm:$0xff]  ;;  %v1967_v56 = vld [vmem:[%s8116_s21 + $0x3220] sm:$0xff] }
 0x1b5   : > { %4256 = vmatpush.msra.mxu0 %v1634_v61  ;;  %4275 = vmatpush.msra.mxu1 %v1787_v62  ;;  %v1517_v61 = vld [vmem:[%s8116_s21 + $0x2410] sm:$0xff]  ;;  %v1670_v62 = vld [vmem:[%s8116_s21 + $0x28d8] sm:$0xff] }
 0x1b6   : > { %4296 = vmatpush.msra.mxu2 %v1922_v63  ;;  %4315 = vmatpush.msra.mxu3 %v2075_v0  ;;  %v1805_v63 = vld [vmem:[%s8116_s21 + $0x2d10] sm:$0xff]  ;;  %v1958_v0 = vld [vmem:[%s8116_s21 + $0x31d8] sm:$0xff] }
 0x1b7   : > { %4230 = vmatmul.f32.vlgmr.msrb.gmra.mxu2 %v8238_v57  ;;  %4257 = vmatpush.msra.mxu0 %v1625_v1  ;;  %v2228_v1 = vld [vmem:[%s8116_s21 + $0x3a48] sm:$0xff] }
 0x1b8   : > { %4276 = vmatpush.msra.mxu1 %v1778_v2  ;;  %4297 = vmatpush.msra.mxu2 %v1913_v4  ;;  %v2516_v2 = vld [vmem:[%s8116_s21 + $0x4348] sm:$0xff]  ;;  %v1661_v4 = vld [vmem:[%s8116_s21 + $0x2890] sm:$0xff] }
 0x1b9   : > { %4316 = vmatpush.msra.mxu3 %v2066_v5  ;;  %4190 = vmatmul.f32.vlgmr.msrb.gmra.mxu0 %v8240_v58  ;;  %v1949_v5 = vld [vmem:[%s8116_s21 + $0x3190] sm:$0xff] }
 0x1ba   : > { %4250 = vmatmul.f32.vlgmr.msrb.gmra.mxu3 %v8242_v59  ;;  %4258 = vmatpush.msra.mxu0 %v1616_v6  ;;  %v2219_v6 = vld [vmem:[%s8116_s21 + $0x3a00] sm:$0xff] }
 0x1bb   : > { %4277 = vmatpush.msra.mxu1 %v1769_v7  ;;  %4298 = vmatpush.msra.mxu2 %v1904_v10  ;;  %v2372_v7 = vld [vmem:[%s8116_s21 + $0x3ec8] sm:$0xff]  ;;  %v2507_v10 = vld [vmem:[%s8116_s21 + $0x4300] sm:$0xff] }
 0x1bc   : > { %4317 = vmatpush.msra.mxu3 %v2057_v11  ;;  %4210 = vmatmul.f32.vlgmr.msrb.gmra.mxu1 %v8244_v60  ;;  %v2660_v11 = vld [vmem:[%s8116_s21 + $0x47c8] sm:$0xff] }
 0x1bd   : > { %4259 = vmatpush.msra.mxu0 %v1607_v12  ;;  %4278 = vmatpush.msra.mxu1 %v1760_v13  ;;  %v2210_v12 = vld [vmem:[%s8116_s21 + $0x39b8] sm:$0xff]  ;;  %v2363_v13 = vld [vmem:[%s8116_s21 + $0x3e80] sm:$0xff] }
 0x1be   : > { %4299 = vmatpush.msra.mxu2 %v1895_v15  ;;  %4318 = vmatpush.msra.mxu3 %v2048_v16  ;;  %v2498_v15 = vld [vmem:[%s8116_s21 + $0x42b8] sm:$0xff]  ;;  %v2651_v16 = vld [vmem:[%s8116_s21 + $0x4780] sm:$0xff] }
 0x1bf   : > { %4260 = vmatpush.msra.mxu0 %v1598_v17  ;;  %4279 = vmatpush.msra.mxu1 %v1751_v18  ;;  %v2201_v17 = vld [vmem:[%s8116_s21 + $0x3970] sm:$0xff]  ;;  %v2354_v18 = vld [vmem:[%s8116_s21 + $0x3e38] sm:$0xff] }
 0x1c0   : > { %4300 = vmatpush.msra.mxu2 %v1886_v19  ;;  %4319 = vmatpush.msra.mxu3 %v2039_v20  ;;  %v2489_v19 = vld [vmem:[%s8116_s21 + $0x4270] sm:$0xff]  ;;  %v2642_v20 = vld [vmem:[%s8116_s21 + $0x4738] sm:$0xff] }
 0x1c1   : > { %4261 = vmatpush.msra.mxu0 %v1589_v21  ;;  %4280 = vmatpush.msra.mxu1 %v1742_v22  ;;  %v2192_v21 = vld [vmem:[%s8116_s21 + $0x3928] sm:$0xff]  ;;  %v2345_v22 = vld [vmem:[%s8116_s21 + $0x3df0] sm:$0xff] }
 0x1c2   : > { %4301 = vmatpush.msra.mxu2 %v1877_v23  ;;  %4320 = vmatpush.msra.mxu3 %v2030_v24  ;;  %v2480_v23 = vld [vmem:[%s8116_s21 + $0x4228] sm:$0xff]  ;;  %v2633_v24 = vld [vmem:[%s8116_s21 + $0x46f0] sm:$0xff] }
 0x1c3   : > { %4262 = vmatpush.msra.mxu0 %v1580_v25  ;;  %4281 = vmatpush.msra.mxu1 %v1733_v26  ;;  %v2183_v25 = vld [vmem:[%s8116_s21 + $0x38e0] sm:$0xff]  ;;  %v2336_v26 = vld [vmem:[%s8116_s21 + $0x3da8] sm:$0xff] }
 0x1c4   : > { %4302 = vmatpush.msra.mxu2 %v1868_v27  ;;  %4321 = vmatpush.msra.mxu3 %v2021_v28  ;;  %v2471_v27 = vld [vmem:[%s8116_s21 + $0x41e0] sm:$0xff]  ;;  %v2624_v28 = vld [vmem:[%s8116_s21 + $0x46a8] sm:$0xff] }
 0x1c5   : > { %4263 = vmatpush.msra.mxu0 %v1571_v29  ;;  %4282 = vmatpush.msra.mxu1 %v1724_v30  ;;  %v2174_v29 = vld [vmem:[%s8116_s21 + $0x3898] sm:$0xff]  ;;  %v2327_v30 = vld [vmem:[%s8116_s21 + $0x3d60] sm:$0xff] }
 0x1c6   : > { %4303 = vmatpush.msra.mxu2 %v1859_v31  ;;  %4322 = vmatpush.msra.mxu3 %v2012_v32  ;;  %v2462_v31 = vld [vmem:[%s8116_s21 + $0x4198] sm:$0xff]  ;;  %v2615_v32 = vld [vmem:[%s8116_s21 + $0x4660] sm:$0xff] }
 0x1c7   : > { %4264 = vmatpush.msra.mxu0 %v1562_v33  ;;  %4283 = vmatpush.msra.mxu1 %v1715_v34  ;;  %v2165_v33 = vld [vmem:[%s8116_s21 + $0x3850] sm:$0xff]  ;;  %v2318_v34 = vld [vmem:[%s8116_s21 + $0x3d18] sm:$0xff] }
 0x1c8   : > { %4304 = vmatpush.msra.mxu2 %v1850_v35  ;;  %4323 = vmatpush.msra.mxu3 %v2003_v36  ;;  %v2453_v35 = vld [vmem:[%s8116_s21 + $0x4150] sm:$0xff]  ;;  %v2606_v36 = vld [vmem:[%s8116_s21 + $0x4618] sm:$0xff] }
 0x1c9   : > { %4265 = vmatpush.msra.mxu0 %v1553_v37  ;;  %4284 = vmatpush.msra.mxu1 %v1706_v38  ;;  %v2156_v37 = vld [vmem:[%s8116_s21 + $0x3808] sm:$0xff]  ;;  %v2309_v38 = vld [vmem:[%s8116_s21 + $0x3cd0] sm:$0xff] }
 0x1ca   : > { %4305 = vmatpush.msra.mxu2 %v1841_v43  ;;  %4324 = vmatpush.msra.mxu3 %v1994_v44  ;;  %v2444_v43 = vld [vmem:[%s8116_s21 + $0x4108] sm:$0xff]  ;;  %v2597_v44 = vld [vmem:[%s8116_s21 + $0x45d0] sm:$0xff] }
 0x1cb   : > { %4266 = vmatpush.msra.mxu0 %v1544_v45  ;;  %4285 = vmatpush.msra.mxu1 %v1697_v46  ;;  %v2147_v45 = vld [vmem:[%s8116_s21 + $0x37c0] sm:$0xff]  ;;  %v2300_v46 = vld [vmem:[%s8116_s21 + $0x3c88] sm:$0xff] }
 0x1cc   : > { %4306 = vmatpush.msra.mxu2 %v1832_v47  ;;  %4325 = vmatpush.msra.mxu3 %v1985_v48  ;;  %v2435_v47 = vld [vmem:[%s8116_s21 + $0x40c0] sm:$0xff]  ;;  %v2588_v48 = vld [vmem:[%s8116_s21 + $0x4588] sm:$0xff] }
 0x1cd   : > { %4267 = vmatpush.msra.mxu0 %v1535_v49  ;;  %4286 = vmatpush.msra.mxu1 %v1688_v50  ;;  %v2138_v49 = vld [vmem:[%s8116_s21 + $0x3778] sm:$0xff]  ;;  %v2291_v50 = vld [vmem:[%s8116_s21 + $0x3c40] sm:$0xff] }
 0x1ce   : > { %4307 = vmatpush.msra.mxu2 %v1823_v51  ;;  %4326 = vmatpush.msra.mxu3 %v1976_v52  ;;  %v2426_v51 = vld [vmem:[%s8116_s21 + $0x4078] sm:$0xff]  ;;  %v2579_v52 = vld [vmem:[%s8116_s21 + $0x4540] sm:$0xff] }
 0x1cf   : > { %4268 = vmatpush.msra.mxu0 %v1526_v53  ;;  %4287 = vmatpush.msra.mxu1 %v1679_v54  ;;  %v2129_v53 = vld [vmem:[%s8116_s21 + $0x3730] sm:$0xff]  ;;  %v2282_v54 = vld [vmem:[%s8116_s21 + $0x3bf8] sm:$0xff] }
 0x1d0   : > { %4308 = vmatpush.msra.mxu2 %v1814_v55  ;;  %4327 = vmatpush.msra.mxu3 %v1967_v56  ;;  %v2417_v55 = vld [vmem:[%s8116_s21 + $0x4030] sm:$0xff]  ;;  %v2570_v56 = vld [vmem:[%s8116_s21 + $0x44f8] sm:$0xff] }
 0x1d1   : > { %4269 = vmatpush.msra.mxu0 %v1517_v61  ;;  %4288 = vmatpush.msra.mxu1 %v1670_v62  ;;  %v2120_v61 = vld [vmem:[%s8116_s21 + $0x36e8] sm:$0xff]  ;;  %v2273_v62 = vld [vmem:[%s8116_s21 + $0x3bb0] sm:$0xff] }
 0x1d2   : > { %4309 = vmatpush.msra.mxu2 %v1805_v63  ;;  %4328 = vmatpush.msra.mxu3 %v1958_v0  ;;  %v2408_v63 = vld [vmem:[%s8116_s21 + $0x3fe8] sm:$0xff]  ;;  %v2561_v0 = vld [vmem:[%s8116_s21 + $0x44b0] sm:$0xff] }
 0x1d3   : > { %4270 = vmatmul.f32.vlgmr.msra.gmra.mxu0 %v8299_v39  ;;  %4310 = vmatmul.f32.vlgmr.msra.gmra.mxu2 %v8301_v40 }
 0x1d4   : > { %4334 = vmatpush.msrb.mxu0 %v2228_v1  ;;  %4374 = vmatpush.msrb.mxu2 %v2516_v2  ;;  %v2111_v1 = vld [vmem:[%s8116_s21 + $0x36a0] sm:$0xff]  ;;  %v2264_v2 = vld [vmem:[%s8116_s21 + $0x3b68] sm:$0xff] }
 0x1d5   : > { %4289 = vmatpush.msra.mxu1 %v1661_v4  ;;  %4329 = vmatpush.msra.mxu3 %v1949_v5  ;;  %v2399_v4 = vld [vmem:[%s8116_s21 + $0x3fa0] sm:$0xff]  ;;  %v2552_v5 = vld [vmem:[%s8116_s21 + $0x4468] sm:$0xff] }
 0x1d6   : > { %4290 = vmatmul.f32.vlgmr.msra.gmra.mxu1 %v8304_v41  ;;  %4330 = vmatmul.f32.vlgmr.msra.gmra.mxu3 %v8306_v42 }
 0x1d7   : > { %4335 = vmatpush.msrb.mxu0 %v2219_v6  ;;  %4354 = vmatpush.msrb.mxu1 %v2372_v7  ;;  %v2102_v6 = vld [vmem:[%s8116_s21 + $0x3658] sm:$0xff]  ;;  %v2255_v7 = vld [vmem:[%s8116_s21 + $0x3b20] sm:$0xff] }
 0x1d8   : > { %4375 = vmatpush.msrb.mxu2 %v2507_v10  ;;  %4394 = vmatpush.msrb.mxu3 %v2660_v11  ;;  %v2390_v10 = vld [vmem:[%s8116_s21 + $0x3f58] sm:$0xff]  ;;  %v2543_v11 = vld [vmem:[%s8116_s21 + $0x4420] sm:$0xff] }
 0x1d9   : > { %4336 = vmatpush.msrb.mxu0 %v2210_v12  ;;  %4355 = vmatpush.msrb.mxu1 %v2363_v13  ;;  %v2093_v12 = vld [vmem:[%s8116_s21 + $0x3610] sm:$0xff]  ;;  %v2246_v13 = vld [vmem:[%s8116_s21 + $0x3ad8] sm:$0xff] }
 0x1da   : > { %4376 = vmatpush.msrb.mxu2 %v2498_v15  ;;  %4395 = vmatpush.msrb.mxu3 %v2651_v16  ;;  %v2381_v15 = vld [vmem:[%s8116_s21 + $0x3f10] sm:$0xff]  ;;  %v2534_v16 = vld [vmem:[%s8116_s21 + $0x43d8] sm:$0xff] }
 0x1db   : > { %4337 = vmatpush.msrb.mxu0 %v2201_v17  ;;  %4356 = vmatpush.msrb.mxu1 %v2354_v18  ;;  %v2804_v17 = vld [vmem:[%s8116_s21 + $0x4c48] sm:$0xff] }
 0x1dc   : > { %4377 = vmatpush.msrb.mxu2 %v2489_v19  ;;  %4396 = vmatpush.msrb.mxu3 %v2642_v20  ;;  %v3092_v18 = vld [vmem:[%s8116_s21 + $0x5548] sm:$0xff]  ;;  %v2237_v19 = vld [vmem:[%s8116_s21 + $0x3a90] sm:$0xff] }
 0x1dd   : > { %4338 = vmatpush.msrb.mxu0 %v2192_v21  ;;  %4357 = vmatpush.msrb.mxu1 %v2345_v22  ;;  %v2525_v20 = vld [vmem:[%s8116_s21 + $0x4390] sm:$0xff]  ;;  %v7947_v21 = vld.sshfl [vmem:[#allocation1 + $0x20] sm:$0xff pattern:$0x73625140] }
 0x1de   : > { %4378 = vmatpush.msrb.mxu2 %v2480_v23  ;;  %4397 = vmatpush.msrb.mxu3 %v2633_v24  ;;  %v7948_v22 = vld.sshfl [vmem:[#allocation1 + $0x30] sm:$0xff pattern:$0x73625140]  ;;  %v2795_v23 = vld [vmem:[%s8116_s21 + $0x4c00] sm:$0xff]  ;;  %v2948_v24 = vld [vmem:[%s8116_s21 + $0x50c8] sm:$0xff] }
 0x1df   : > { %4339 = vmatpush.msrb.mxu0 %v2183_v25  ;;  %4358 = vmatpush.msrb.mxu1 %v2336_v26  ;;  %v3083_v25 = vld [vmem:[%s8116_s21 + $0x5500] sm:$0xff]  ;;  %v3236_v26 = vld [vmem:[%s8116_s21 + $0x59c8] sm:$0xff] }
 0x1e0   : > { %4379 = vmatpush.msrb.mxu2 %v2471_v27  ;;  %4398 = vmatpush.msrb.mxu3 %v2624_v28  ;;  %v7949_v27 = vld.sshfl [vmem:[#allocation1 + $0x28] sm:$0xff pattern:$0x73625140]  ;;  %v7950_v28 = vld.sshfl [vmem:[#allocation1 + $0x38] sm:$0xff pattern:$0x73625140] }
 0x1e1   : > { %4340 = vmatpush.msrb.mxu0 %v2174_v29  ;;  %4359 = vmatpush.msrb.mxu1 %v2327_v30  ;;  %v2786_v29 = vld [vmem:[%s8116_s21 + $0x4bb8] sm:$0xff]  ;;  %v2939_v30 = vld [vmem:[%s8116_s21 + $0x5080] sm:$0xff] }
 0x1e2   : > { %4380 = vmatpush.msrb.mxu2 %v2462_v31  ;;  %4399 = vmatpush.msrb.mxu3 %v2615_v32  ;;  %v3074_v31 = vld [vmem:[%s8116_s21 + $0x54b8] sm:$0xff]  ;;  %v3227_v32 = vld [vmem:[%s8116_s21 + $0x5980] sm:$0xff] }
 0x1e3   : > { %4341 = vmatpush.msrb.mxu0 %v2165_v33  ;;  %4360 = vmatpush.msrb.mxu1 %v2318_v34  ;;  %v2777_v33 = vld [vmem:[%s8116_s21 + $0x4b70] sm:$0xff]  ;;  %v2930_v34 = vld [vmem:[%s8116_s21 + $0x5038] sm:$0xff] }
 0x1e4   : > { %4381 = vmatpush.msrb.mxu2 %v2453_v35  ;;  %4400 = vmatpush.msrb.mxu3 %v2606_v36  ;;  %v3065_v35 = vld [vmem:[%s8116_s21 + $0x5470] sm:$0xff]  ;;  %v3218_v36 = vld [vmem:[%s8116_s21 + $0x5938] sm:$0xff] }
 0x1e5   : > { %4342 = vmatpush.msrb.mxu0 %v2156_v37  ;;  %4361 = vmatpush.msrb.mxu1 %v2309_v38  ;;  %v2768_v37 = vld [vmem:[%s8116_s21 + $0x4b28] sm:$0xff]  ;;  %v2921_v38 = vld [vmem:[%s8116_s21 + $0x4ff0] sm:$0xff] }
 0x1e6   : > { %4382 = vmatpush.msrb.mxu2 %v2444_v43  ;;  %4401 = vmatpush.msrb.mxu3 %v2597_v44  ;;  %v3056_v43 = vld [vmem:[%s8116_s21 + $0x5428] sm:$0xff]  ;;  %v3209_v44 = vld [vmem:[%s8116_s21 + $0x58f0] sm:$0xff] }
 0x1e7   : > { %4343 = vmatpush.msrb.mxu0 %v2147_v45  ;;  %4362 = vmatpush.msrb.mxu1 %v2300_v46  ;;  %v2759_v45 = vld [vmem:[%s8116_s21 + $0x4ae0] sm:$0xff]  ;;  %v2912_v46 = vld [vmem:[%s8116_s21 + $0x4fa8] sm:$0xff] }
 0x1e8   : > { %4383 = vmatpush.msrb.mxu2 %v2435_v47  ;;  %4402 = vmatpush.msrb.mxu3 %v2588_v48  ;;  %v3047_v47 = vld [vmem:[%s8116_s21 + $0x53e0] sm:$0xff]  ;;  %v3200_v48 = vld [vmem:[%s8116_s21 + $0x58a8] sm:$0xff] }
 0x1e9   : > { %4344 = vmatpush.msrb.mxu0 %v2138_v49  ;;  %4363 = vmatpush.msrb.mxu1 %v2291_v50  ;;  %v2750_v49 = vld [vmem:[%s8116_s21 + $0x4a98] sm:$0xff]  ;;  %v2903_v50 = vld [vmem:[%s8116_s21 + $0x4f60] sm:$0xff] }
 0x1ea   : > { %4384 = vmatpush.msrb.mxu2 %v2426_v51  ;;  %4403 = vmatpush.msrb.mxu3 %v2579_v52  ;;  %v3038_v51 = vld [vmem:[%s8116_s21 + $0x5398] sm:$0xff]  ;;  %v3191_v52 = vld [vmem:[%s8116_s21 + $0x5860] sm:$0xff] }
 0x1eb   : > { %4345 = vmatpush.msrb.mxu0 %v2129_v53  ;;  %4364 = vmatpush.msrb.mxu1 %v2282_v54  ;;  %v2741_v53 = vld [vmem:[%s8116_s21 + $0x4a50] sm:$0xff]  ;;  %v2894_v54 = vld [vmem:[%s8116_s21 + $0x4f18] sm:$0xff] }
 0x1ec   : > { %4385 = vmatpush.msrb.mxu2 %v2417_v55  ;;  %4404 = vmatpush.msrb.mxu3 %v2570_v56  ;;  %v3029_v55 = vld [vmem:[%s8116_s21 + $0x5350] sm:$0xff]  ;;  %v3182_v56 = vld [vmem:[%s8116_s21 + $0x5818] sm:$0xff] }
 0x1ed   : > { %4346 = vmatpush.msrb.mxu0 %v2120_v61  ;;  %4365 = vmatpush.msrb.mxu1 %v2273_v62  ;;  %v2732_v61 = vld [vmem:[%s8116_s21 + $0x4a08] sm:$0xff]  ;;  %v2885_v62 = vld [vmem:[%s8116_s21 + $0x4ed0] sm:$0xff] }
 0x1ee   : > { %4386 = vmatpush.msrb.mxu2 %v2408_v63  ;;  %4405 = vmatpush.msrb.mxu3 %v2561_v0  ;;  %v3020_v63 = vld [vmem:[%s8116_s21 + $0x5308] sm:$0xff]  ;;  %v3173_v0 = vld [vmem:[%s8116_s21 + $0x57d0] sm:$0xff] }
 0x1ef   : > { %4347 = vmatpush.msrb.mxu0 %v2111_v1  ;;  %4366 = vmatpush.msrb.mxu1 %v2264_v2  ;;  %v2723_v1 = vld [vmem:[%s8116_s21 + $0x49c0] sm:$0xff]  ;;  %v2876_v2 = vld [vmem:[%s8116_s21 + $0x4e88] sm:$0xff] }
 0x1f0   : > { %4387 = vmatpush.msrb.mxu2 %v2399_v4  ;;  %4406 = vmatpush.msrb.mxu3 %v2552_v5  ;;  %v3011_v4 = vld [vmem:[%s8116_s21 + $0x52c0] sm:$0xff]  ;;  %v3164_v5 = vld [vmem:[%s8116_s21 + $0x5788] sm:$0xff] }
 0x1f1   : > { %4348 = vmatpush.msrb.mxu0 %v2102_v6  ;;  %4367 = vmatpush.msrb.mxu1 %v2255_v7  ;;  %v2714_v6 = vld [vmem:[%s8116_s21 + $0x4978] sm:$0xff]  ;;  %v2867_v7 = vld [vmem:[%s8116_s21 + $0x4e40] sm:$0xff] }
 0x1f2   : > { %4388 = vmatpush.msrb.mxu2 %v2390_v10  ;;  %4407 = vmatpush.msrb.mxu3 %v2543_v11  ;;  %v3002_v10 = vld [vmem:[%s8116_s21 + $0x5278] sm:$0xff]  ;;  %v3155_v11 = vld [vmem:[%s8116_s21 + $0x5740] sm:$0xff] }
 0x1f3   : > { %4349 = vmatpush.msrb.mxu0 %v2093_v12  ;;  %4368 = vmatpush.msrb.mxu1 %v2246_v13  ;;  %v2705_v12 = vld [vmem:[%s8116_s21 + $0x4930] sm:$0xff]  ;;  %v2858_v13 = vld [vmem:[%s8116_s21 + $0x4df8] sm:$0xff] }
 0x1f4   : > { %4389 = vmatpush.msrb.mxu2 %v2381_v15  ;;  %4408 = vmatpush.msrb.mxu3 %v2534_v16  ;;  %v2993_v15 = vld [vmem:[%s8116_s21 + $0x5230] sm:$0xff]  ;;  %v3146_v16 = vld [vmem:[%s8116_s21 + $0x56f8] sm:$0xff] }
 0x1f5   : > { %4350 = vmatmul.f32.vlgmr.msrb.gmra.mxu0 %v7947_v21  ;;  %4390 = vmatmul.f32.vlgmr.msrb.gmra.mxu2 %v7948_v22  ;;  %v2687_v21 = vld [vmem:[%s8116_s21 + $0x48a0] sm:$0xff]  ;;  %v2840_v22 = vld [vmem:[%s8116_s21 + $0x4d68] sm:$0xff] }
 0x1f6   : > { %4414 = vmatpush.msra.mxu0 %v2804_v17  ;;  %4454 = vmatpush.msra.mxu2 %v3092_v18  ;;  %v2696_v17 = vld [vmem:[%s8116_s21 + $0x48e8] sm:$0xff]  ;;  %v2849_v18 = vld [vmem:[%s8116_s21 + $0x4db0] sm:$0xff] }
 0x1f7   : > { %4369 = vmatpush.msrb.mxu1 %v2237_v19  ;;  %4409 = vmatpush.msrb.mxu3 %v2525_v20  ;;  %v2984_v19 = vld [vmem:[%s8116_s21 + $0x51e8] sm:$0xff]  ;;  %v3137_v20 = vld [vmem:[%s8116_s21 + $0x56b0] sm:$0xff] }
 0x1f8   : > { %4370 = vmatmul.f32.vlgmr.msrb.gmra.mxu1 %v7949_v27  ;;  %4410 = vmatmul.f32.vlgmr.msrb.gmra.mxu3 %v7950_v28  ;;  %v2966_v27 = vld [vmem:[%s8116_s21 + $0x5158] sm:$0xff]  ;;  %v3119_v28 = vld [vmem:[%s8116_s21 + $0x5620] sm:$0xff] }
 0x1f9   : > { %4415 = vmatpush.msra.mxu0 %v2795_v23  ;;  %4434 = vmatpush.msra.mxu1 %v2948_v24  ;;  %v2975_v23 = vld [vmem:[%s8116_s21 + $0x51a0] sm:$0xff]  ;;  %v3128_v24 = vld [vmem:[%s8116_s21 + $0x5668] sm:$0xff] }
 0x1fa   : > { %4455 = vmatpush.msra.mxu2 %v3083_v25  ;;  %4474 = vmatpush.msra.mxu3 %v3236_v26  ;;  %v2678_v25 = vld [vmem:[%s8116_s21 + $0x4858] sm:$0xff]  ;;  %v2831_v26 = vld [vmem:[%s8116_s21 + $0x4d20] sm:$0xff] }
 0x1fb   : > { %4416 = vmatpush.msra.mxu0 %v2786_v29  ;;  %4435 = vmatpush.msra.mxu1 %v2939_v30  ;;  %v2669_v29 = vld [vmem:[%s8116_s21 + $0x4810] sm:$0xff]  ;;  %v2822_v30 = vld [vmem:[%s8116_s21 + $0x4cd8] sm:$0xff] }
 0x1fc   : > { %4456 = vmatpush.msra.mxu2 %v3074_v31  ;;  %4475 = vmatpush.msra.mxu3 %v3227_v32  ;;  %v2957_v31 = vld [vmem:[%s8116_s21 + $0x5110] sm:$0xff]  ;;  %v3110_v32 = vld [vmem:[%s8116_s21 + $0x55d8] sm:$0xff] }
 0x1fd   : > { %4417 = vmatpush.msra.mxu0 %v2777_v33  ;;  %4436 = vmatpush.msra.mxu1 %v2930_v34  ;;  %v501_v33 = vld [vmem:[%s8116_s21 + $0x450] sm:$0xff] }
 0x1fe   : > { %4457 = vmatpush.msra.mxu2 %v3065_v35  ;;  %4476 = vmatpush.msra.mxu3 %v3218_v36  ;;  %v789_v34 = vld [vmem:[%s8116_s21 + $0xd50] sm:$0xff] }
 0x1ff   : > { %4418 = vmatpush.msra.mxu0 %v2768_v37  ;;  %4437 = vmatpush.msra.mxu1 %v2921_v38  ;;  %v2813_v35 = vld [vmem:[%s8116_s21 + $0x4c90] sm:$0xff]  ;;  %v7951_v37 = vld.sshfl [vmem:[#allocation1] sm:$0xff pattern:$0x73625140] }
 0x200   : > { %4458 = vmatpush.msra.mxu2 %v3056_v43  ;;  %4477 = vmatpush.msra.mxu3 %v3209_v44  ;;  %v3101_v36 = vld [vmem:[%s8116_s21 + $0x5590] sm:$0xff]  ;;  %v492_v43 = vld [vmem:[%s8116_s21 + $0x408] sm:$0xff] }
 0x201   : > { %4419 = vmatpush.msra.mxu0 %v2759_v45  ;;  %4438 = vmatpush.msra.mxu1 %v2912_v46  ;;  %v7952_v38 = vld.sshfl [vmem:[#allocation1 + $0x10] sm:$0xff pattern:$0x73625140]  ;;  %v780_v45 = vld [vmem:[%s8116_s21 + $0xd08] sm:$0xff] }
 0x202   : > { %4459 = vmatpush.msra.mxu2 %v3047_v47  ;;  %4478 = vmatpush.msra.mxu3 %v3200_v48  ;;  %v645_v44 = vld [vmem:[%s8116_s21 + $0x8d0] sm:$0xff]  ;;  %v7953_v47 = vld.sshfl [vmem:[#allocation1 + $0x8] sm:$0xff pattern:$0x73625140] }
 0x203   : > { %4420 = vmatpush.msra.mxu0 %v2750_v49  ;;  %4439 = vmatpush.msra.mxu1 %v2903_v50  ;;  %v933_v46 = vld [vmem:[%s8116_s21 + $0x11d0] sm:$0xff]  ;;  %v7954_v48 = vld.sshfl [vmem:[#allocation1 + $0x18] sm:$0xff pattern:$0x73625140]  ;;  %v483_v49 = vld [vmem:[%s8116_s21 + $0x3c0] sm:$0xff] }
 0x204   : > { %4460 = vmatpush.msra.mxu2 %v3038_v51  ;;  %4479 = vmatpush.msra.mxu3 %v3191_v52  ;;  %v636_v50 = vld [vmem:[%s8116_s21 + $0x888] sm:$0xff]  ;;  %v771_v51 = vld [vmem:[%s8116_s21 + $0xcc0] sm:$0xff] }
 0x205   : > { %4421 = vmatpush.msra.mxu0 %v2741_v53  ;;  %4440 = vmatpush.msra.mxu1 %v2894_v54  ;;  %v924_v52 = vld [vmem:[%s8116_s21 + $0x1188] sm:$0xff]  ;;  %v474_v53 = vld [vmem:[%s8116_s21 + $0x378] sm:$0xff]  ;;  %v627_v54 = vld [vmem:[%s8116_s21 + $0x840] sm:$0xff] }
 0x206   : > { %4461 = vmatpush.msra.mxu2 %v3029_v55  ;;  %4480 = vmatpush.msra.mxu3 %v3182_v56  ;;  %v762_v55 = vld [vmem:[%s8116_s21 + $0xc78] sm:$0xff]  ;;  %v915_v56 = vld [vmem:[%s8116_s21 + $0x1140] sm:$0xff] }
 0x207   : > { %4422 = vmatpush.msra.mxu0 %v2732_v61  ;;  %4441 = vmatpush.msra.mxu1 %v2885_v62  ;;  %v465_v61 = vld [vmem:[%s8116_s21 + $0x330] sm:$0xff]  ;;  %v618_v62 = vld [vmem:[%s8116_s21 + $0x7f8] sm:$0xff] }
 0x208   : > { %4462 = vmatpush.msra.mxu2 %v3020_v63  ;;  %4481 = vmatpush.msra.mxu3 %v3173_v0  ;;  %v753_v63 = vld [vmem:[%s8116_s21 + $0xc30] sm:$0xff]  ;;  %v906_v0 = vld [vmem:[%s8116_s21 + $0x10f8] sm:$0xff] }
 0x209   : > { %4423 = vmatpush.msra.mxu0 %v2723_v1  ;;  %4442 = vmatpush.msra.mxu1 %v2876_v2  ;;  %v456_v1 = vld [vmem:[%s8116_s21 + $0x2e8] sm:$0xff]  ;;  %v609_v2 = vld [vmem:[%s8116_s21 + $0x7b0] sm:$0xff] }
 0x20a   : > { %4463 = vmatpush.msra.mxu2 %v3011_v4  ;;  %4482 = vmatpush.msra.mxu3 %v3164_v5  ;;  %v744_v4 = vld [vmem:[%s8116_s21 + $0xbe8] sm:$0xff]  ;;  %v897_v5 = vld [vmem:[%s8116_s21 + $0x10b0] sm:$0xff] }
 0x20b   : > { %4424 = vmatpush.msra.mxu0 %v2714_v6  ;;  %4443 = vmatpush.msra.mxu1 %v2867_v7  ;;  %v447_v6 = vld [vmem:[%s8116_s21 + $0x2a0] sm:$0xff]  ;;  %v600_v7 = vld [vmem:[%s8116_s21 + $0x768] sm:$0xff] }
 0x20c   : > { %4464 = vmatpush.msra.mxu2 %v3002_v10  ;;  %4483 = vmatpush.msra.mxu3 %v3155_v11  ;;  %v735_v10 = vld [vmem:[%s8116_s21 + $0xba0] sm:$0xff]  ;;  %v888_v11 = vld [vmem:[%s8116_s21 + $0x1068] sm:$0xff] }
 0x20d   : > { %4425 = vmatpush.msra.mxu0 %v2705_v12  ;;  %4444 = vmatpush.msra.mxu1 %v2858_v13  ;;  %v438_v12 = vld [vmem:[%s8116_s21 + $0x258] sm:$0xff]  ;;  %v591_v13 = vld [vmem:[%s8116_s21 + $0x720] sm:$0xff] }
 0x20e   : > { %4465 = vmatpush.msra.mxu2 %v2993_v15  ;;  %4484 = vmatpush.msra.mxu3 %v3146_v16  ;;  %v726_v15 = vld [vmem:[%s8116_s21 + $0xb58] sm:$0xff]  ;;  %v879_v16 = vld [vmem:[%s8116_s21 + $0x1020] sm:$0xff] }
 0x20f   : > { %4426 = vmatpush.msra.mxu0 %v2696_v17  ;;  %4445 = vmatpush.msra.mxu1 %v2849_v18  ;;  %v429_v17 = vld [vmem:[%s8116_s21 + $0x210] sm:$0xff]  ;;  %v582_v18 = vld [vmem:[%s8116_s21 + $0x6d8] sm:$0xff] }
 0x210   : > { %4466 = vmatpush.msra.mxu2 %v2984_v19  ;;  %4485 = vmatpush.msra.mxu3 %v3137_v20  ;;  %v717_v19 = vld [vmem:[%s8116_s21 + $0xb10] sm:$0xff]  ;;  %v870_v20 = vld [vmem:[%s8116_s21 + $0xfd8] sm:$0xff] }
 0x211   : > { %4427 = vmatpush.msra.mxu0 %v2687_v21  ;;  %4446 = vmatpush.msra.mxu1 %v2840_v22  ;;  %v420_v21 = vld [vmem:[%s8116_s21 + $0x1c8] sm:$0xff]  ;;  %v573_v22 = vld [vmem:[%s8116_s21 + $0x690] sm:$0xff] }
 0x212   : > { %4467 = vmatpush.msra.mxu2 %v2975_v23  ;;  %4486 = vmatpush.msra.mxu3 %v3128_v24  ;;  %v708_v23 = vld [vmem:[%s8116_s21 + $0xac8] sm:$0xff]  ;;  %v861_v24 = vld [vmem:[%s8116_s21 + $0xf90] sm:$0xff] }
 0x213   : > { %4428 = vmatpush.msra.mxu0 %v2678_v25  ;;  %4447 = vmatpush.msra.mxu1 %v2831_v26  ;;  %v411_v25 = vld [vmem:[%s8116_s21 + $0x180] sm:$0xff]  ;;  %v564_v26 = vld [vmem:[%s8116_s21 + $0x648] sm:$0xff] }
 0x214   : > { %4468 = vmatpush.msra.mxu2 %v2966_v27  ;;  %4487 = vmatpush.msra.mxu3 %v3119_v28  ;;  %v699_v27 = vld [vmem:[%s8116_s21 + $0xa80] sm:$0xff]  ;;  %v852_v28 = vld [vmem:[%s8116_s21 + $0xf48] sm:$0xff] }
 0x215   : > { %4429 = vmatpush.msra.mxu0 %v2669_v29  ;;  %4448 = vmatpush.msra.mxu1 %v2822_v30  ;;  %v402_v29 = vld [vmem:[%s8116_s21 + $0x138] sm:$0xff]  ;;  %v555_v30 = vld [vmem:[%s8116_s21 + $0x600] sm:$0xff] }
 0x216   : > { %4469 = vmatpush.msra.mxu2 %v2957_v31  ;;  %4488 = vmatpush.msra.mxu3 %v3110_v32  ;;  %v690_v31 = vld [vmem:[%s8116_s21 + $0xa38] sm:$0xff]  ;;  %v843_v32 = vld [vmem:[%s8116_s21 + $0xf00] sm:$0xff] }
 0x217   : > { %4430 = vmatmul.f32.vlgmr.msra.gmra.mxu0 %v7951_v37  ;;  %4470 = vmatmul.f32.vlgmr.msra.gmra.mxu2 %v7952_v38  ;;  %v384_v37 = vld [vmem:[%s8116_s21 + $0xa8] sm:$0xff]  ;;  %v537_v38 = vld [vmem:[%s8116_s21 + $0x570] sm:$0xff] }
 0x218   : > { %4494 = vmatpush.msrb.mxu0 %v501_v33  ;;  %4534 = vmatpush.msrb.mxu2 %v789_v34  ;;  %v393_v33 = vld [vmem:[%s8116_s21 + $0xf0] sm:$0xff]  ;;  %v546_v34 = vld [vmem:[%s8116_s21 + $0x5b8] sm:$0xff] }
 0x219   : > { %4449 = vmatpush.msra.mxu1 %v2813_v35  ;;  %4489 = vmatpush.msra.mxu3 %v3101_v36  ;;  %v681_v35 = vld [vmem:[%s8116_s21 + $0x9f0] sm:$0xff]  ;;  %v834_v36 = vld [vmem:[%s8116_s21 + $0xeb8] sm:$0xff] }
 0x21a   : > { %4450 = vmatmul.f32.vlgmr.msra.gmra.mxu1 %v7953_v47  ;;  %4490 = vmatmul.f32.vlgmr.msra.gmra.mxu3 %v7954_v48  ;;  %v663_v47 = vld [vmem:[%s8116_s21 + $0x960] sm:$0xff]  ;;  %v816_v48 = vld [vmem:[%s8116_s21 + $0xe28] sm:$0xff] }
 0x21b   : > { %4495 = vmatpush.msrb.mxu0 %v492_v43  ;;  %4514 = vmatpush.msrb.mxu1 %v645_v44  ;;  %v672_v43 = vld [vmem:[%s8116_s21 + $0x9a8] sm:$0xff]  ;;  %v825_v44 = vld [vmem:[%s8116_s21 + $0xe70] sm:$0xff] }
 0x21c   : > { %4535 = vmatpush.msrb.mxu2 %v780_v45  ;;  %4554 = vmatpush.msrb.mxu3 %v933_v46  ;;  %v375_v45 = vld [vmem:[%s8116_s21 + $0x60] sm:$0xff]  ;;  %v528_v46 = vld [vmem:[%s8116_s21 + $0x528] sm:$0xff] }
 0x21d   : > { %4496 = vmatpush.msrb.mxu0 %v483_v49  ;;  %4515 = vmatpush.msrb.mxu1 %v636_v50  ;;  %v366_v49 = vld [vmem:[%s8116_s21 + $0x18] sm:$0xff]  ;;  %v519_v50 = vld [vmem:[%s8116_s21 + $0x4e0] sm:$0xff] }
 0x21e   : > { %4536 = vmatpush.msrb.mxu2 %v771_v51  ;;  %4555 = vmatpush.msrb.mxu3 %v924_v52  ;;  %v654_v51 = vld [vmem:[%s8116_s21 + $0x918] sm:$0xff]  ;;  %v807_v52 = vld [vmem:[%s8116_s21 + $0xde0] sm:$0xff] }
 0x21f   : > { %4497 = vmatpush.msrb.mxu0 %v474_v53  ;;  %4516 = vmatpush.msrb.mxu1 %v627_v54  ;;  %v1077_v53 = vld [vmem:[%s8116_s21 + $0x1650] sm:$0xff] }
 0x220   : > { %4537 = vmatpush.msrb.mxu2 %v762_v55  ;;  %4556 = vmatpush.msrb.mxu3 %v915_v56  ;;  %v1365_v54 = vld [vmem:[%s8116_s21 + $0x1f50] sm:$0xff]  ;;  %v510_v55 = vld [vmem:[%s8116_s21 + $0x498] sm:$0xff] }
 0x221   : > { %4498 = vmatpush.msrb.mxu0 %v465_v61  ;;  %4517 = vmatpush.msrb.mxu1 %v618_v62  ;;  %v798_v56 = vld [vmem:[%s8116_s21 + $0xd98] sm:$0xff]  ;;  %v1068_v61 = vld [vmem:[%s8116_s21 + $0x1608] sm:$0xff]  ;;  %v1221_v62 = vld [vmem:[%s8116_s21 + $0x1ad0] sm:$0xff] }
 0x222   : > { %4538 = vmatpush.msrb.mxu2 %v753_v63  ;;  %4557 = vmatpush.msrb.mxu3 %v906_v0  ;;  %v1356_v63 = vld [vmem:[%s8116_s21 + $0x1f08] sm:$0xff]  ;;  %v1509_v0 = vld [vmem:[%s8116_s21 + $0x23d0] sm:$0xff] }
 0x223   : > { %4499 = vmatpush.msrb.mxu0 %v456_v1  ;;  %4518 = vmatpush.msrb.mxu1 %v609_v2  ;;  %v1059_v1 = vld [vmem:[%s8116_s21 + $0x15c0] sm:$0xff]  ;;  %v1212_v2 = vld [vmem:[%s8116_s21 + $0x1a88] sm:$0xff] }
 0x224   : > { %4539 = vmatpush.msrb.mxu2 %v744_v4  ;;  %4558 = vmatpush.msrb.mxu3 %v897_v5  ;;  %v1347_v4 = vld [vmem:[%s8116_s21 + $0x1ec0] sm:$0xff]  ;;  %v1500_v5 = vld [vmem:[%s8116_s21 + $0x2388] sm:$0xff] }
 0x225   : > { %4500 = vmatpush.msrb.mxu0 %v447_v6  ;;  %4519 = vmatpush.msrb.mxu1 %v600_v7  ;;  %v1050_v6 = vld [vmem:[%s8116_s21 + $0x1578] sm:$0xff]  ;;  %v1203_v7 = vld [vmem:[%s8116_s21 + $0x1a40] sm:$0xff] }
 0x226   : > { %4540 = vmatpush.msrb.mxu2 %v735_v10  ;;  %4559 = vmatpush.msrb.mxu3 %v888_v11  ;;  %v1338_v10 = vld [vmem:[%s8116_s21 + $0x1e78] sm:$0xff]  ;;  %v1491_v11 = vld [vmem:[%s8116_s21 + $0x2340] sm:$0xff] }
 0x227   : > { %4501 = vmatpush.msrb.mxu0 %v438_v12  ;;  %4520 = vmatpush.msrb.mxu1 %v591_v13  ;;  %v1041_v12 = vld [vmem:[%s8116_s21 + $0x1530] sm:$0xff]  ;;  %v1194_v13 = vld [vmem:[%s8116_s21 + $0x19f8] sm:$0xff] }
 0x228   : > { %4541 = vmatpush.msrb.mxu2 %v726_v15  ;;  %4560 = vmatpush.msrb.mxu3 %v879_v16  ;;  %v1329_v15 = vld [vmem:[%s8116_s21 + $0x1e30] sm:$0xff]  ;;  %v1482_v16 = vld [vmem:[%s8116_s21 + $0x22f8] sm:$0xff] }
 0x229   : > { %4502 = vmatpush.msrb.mxu0 %v429_v17  ;;  %4521 = vmatpush.msrb.mxu1 %v582_v18  ;;  %v1032_v17 = vld [vmem:[%s8116_s21 + $0x14e8] sm:$0xff]  ;;  %v1185_v18 = vld [vmem:[%s8116_s21 + $0x19b0] sm:$0xff] }
 0x22a   : > { %4542 = vmatpush.msrb.mxu2 %v717_v19  ;;  %4561 = vmatpush.msrb.mxu3 %v870_v20  ;;  %v1320_v19 = vld [vmem:[%s8116_s21 + $0x1de8] sm:$0xff]  ;;  %v1473_v20 = vld [vmem:[%s8116_s21 + $0x22b0] sm:$0xff] }
 0x22b   : > { %4503 = vmatpush.msrb.mxu0 %v420_v21  ;;  %4522 = vmatpush.msrb.mxu1 %v573_v22  ;;  %v1023_v21 = vld [vmem:[%s8116_s21 + $0x14a0] sm:$0xff]  ;;  %v1176_v22 = vld [vmem:[%s8116_s21 + $0x1968] sm:$0xff] }
 0x22c   : > { %4543 = vmatpush.msrb.mxu2 %v708_v23  ;;  %4562 = vmatpush.msrb.mxu3 %v861_v24  ;;  %v1311_v23 = vld [vmem:[%s8116_s21 + $0x1da0] sm:$0xff]  ;;  %v1464_v24 = vld [vmem:[%s8116_s21 + $0x2268] sm:$0xff] }
 0x22d   : > { %4504 = vmatpush.msrb.mxu0 %v411_v25  ;;  %4523 = vmatpush.msrb.mxu1 %v564_v26  ;;  %v1014_v25 = vld [vmem:[%s8116_s21 + $0x1458] sm:$0xff]  ;;  %v1167_v26 = vld [vmem:[%s8116_s21 + $0x1920] sm:$0xff] }
 0x22e   : > { %4544 = vmatpush.msrb.mxu2 %v699_v27  ;;  %4563 = vmatpush.msrb.mxu3 %v852_v28  ;;  %v1302_v27 = vld [vmem:[%s8116_s21 + $0x1d58] sm:$0xff]  ;;  %v1455_v28 = vld [vmem:[%s8116_s21 + $0x2220] sm:$0xff] }
 0x22f   : > { %4505 = vmatpush.msrb.mxu0 %v402_v29  ;;  %4524 = vmatpush.msrb.mxu1 %v555_v30  ;;  %v1005_v29 = vld [vmem:[%s8116_s21 + $0x1410] sm:$0xff]  ;;  %v1158_v30 = vld [vmem:[%s8116_s21 + $0x18d8] sm:$0xff] }
 0x230   : > { %4545 = vmatpush.msrb.mxu2 %v690_v31  ;;  %4564 = vmatpush.msrb.mxu3 %v843_v32  ;;  %v1293_v31 = vld [vmem:[%s8116_s21 + $0x1d10] sm:$0xff]  ;;  %v1446_v32 = vld [vmem:[%s8116_s21 + $0x21d8] sm:$0xff] }
 0x231   : > { %4506 = vmatpush.msrb.mxu0 %v393_v33  ;;  %4525 = vmatpush.msrb.mxu1 %v546_v34  ;;  %v996_v33 = vld [vmem:[%s8116_s21 + $0x13c8] sm:$0xff]  ;;  %v1149_v34 = vld [vmem:[%s8116_s21 + $0x1890] sm:$0xff] }
 0x232   : > { %4546 = vmatpush.msrb.mxu2 %v681_v35  ;;  %4565 = vmatpush.msrb.mxu3 %v834_v36  ;;  %v1284_v35 = vld [vmem:[%s8116_s21 + $0x1cc8] sm:$0xff]  ;;  %v1437_v36 = vld [vmem:[%s8116_s21 + $0x2190] sm:$0xff] }
 0x233   : > { %4507 = vmatpush.msrb.mxu0 %v384_v37  ;;  %4526 = vmatpush.msrb.mxu1 %v537_v38  ;;  %v987_v37 = vld [vmem:[%s8116_s21 + $0x1380] sm:$0xff]  ;;  %v1140_v38 = vld [vmem:[%s8116_s21 + $0x1848] sm:$0xff] }
 0x234   : > { %4547 = vmatpush.msrb.mxu2 %v672_v43  ;;  %4566 = vmatpush.msrb.mxu3 %v825_v44  ;;  %v1275_v43 = vld [vmem:[%s8116_s21 + $0x1c80] sm:$0xff]  ;;  %v1428_v44 = vld [vmem:[%s8116_s21 + $0x2148] sm:$0xff] }
 0x235   : > { %4508 = vmatpush.msrb.mxu0 %v375_v45  ;;  %4527 = vmatpush.msrb.mxu1 %v528_v46  ;;  %v978_v45 = vld [vmem:[%s8116_s21 + $0x1338] sm:$0xff]  ;;  %v1131_v46 = vld [vmem:[%s8116_s21 + $0x1800] sm:$0xff] }
 0x236   : > { %4548 = vmatpush.msrb.mxu2 %v663_v47  ;;  %4567 = vmatpush.msrb.mxu3 %v816_v48  ;;  %v1266_v47 = vld [vmem:[%s8116_s21 + $0x1c38] sm:$0xff]  ;;  %v1419_v48 = vld [vmem:[%s8116_s21 + $0x2100] sm:$0xff] }
 0x237   : > { %4509 = vmatpush.msrb.mxu0 %v366_v49  ;;  %4528 = vmatpush.msrb.mxu1 %v519_v50  ;;  %v969_v49 = vld [vmem:[%s8116_s21 + $0x12f0] sm:$0xff]  ;;  %v1122_v50 = vld [vmem:[%s8116_s21 + $0x17b8] sm:$0xff] }
 0x238   : > { %4549 = vmatpush.msrb.mxu2 %v654_v51  ;;  %4568 = vmatpush.msrb.mxu3 %v807_v52  ;;  %v1257_v51 = vld [vmem:[%s8116_s21 + $0x1bf0] sm:$0xff]  ;;  %v1410_v52 = vld [vmem:[%s8116_s21 + $0x20b8] sm:$0xff] }
 0x239   : > { %4574 = vmatpush.msra.mxu0 %v1077_v53  ;;  %4529 = vmatpush.msrb.mxu1 %v510_v55  ;;  %v960_v53 = vld [vmem:[%s8116_s21 + $0x12a8] sm:$0xff] }
 0x23a   : > { %4614 = vmatpush.msra.mxu2 %v1365_v54  ;;  %4569 = vmatpush.msrb.mxu3 %v798_v56  ;;  %v1113_v54 = vld [vmem:[%s8116_s21 + $0x1770] sm:$0xff]  ;;  %v1248_v55 = vld [vmem:[%s8116_s21 + $0x1ba8] sm:$0xff] }
 0x23b   : > { %4575 = vmatpush.msra.mxu0 %v1068_v61  ;;  %4594 = vmatpush.msra.mxu1 %v1221_v62  ;;  %v1401_v56 = vld [vmem:[%s8116_s21 + $0x2070] sm:$0xff]  ;;  %v951_v61 = vld [vmem:[%s8116_s21 + $0x1260] sm:$0xff]  ;;  %v1104_v62 = vld [vmem:[%s8116_s21 + $0x1728] sm:$0xff] }
 0x23c   : > { %4615 = vmatpush.msra.mxu2 %v1356_v63  ;;  %4634 = vmatpush.msra.mxu3 %v1509_v0  ;;  %v1239_v63 = vld [vmem:[%s8116_s21 + $0x1b60] sm:$0xff]  ;;  %v1392_v0 = vld [vmem:[%s8116_s21 + $0x2028] sm:$0xff] }
 0x23d   : > { %4576 = vmatpush.msra.mxu0 %v1059_v1  ;;  %4595 = vmatpush.msra.mxu1 %v1212_v2  ;;  %v942_v1 = vld [vmem:[%s8116_s21 + $0x1218] sm:$0xff]  ;;  %v1095_v2 = vld [vmem:[%s8116_s21 + $0x16e0] sm:$0xff] }
 0x23e   : > { %4616 = vmatpush.msra.mxu2 %v1347_v4  ;;  %4635 = vmatpush.msra.mxu3 %v1500_v5  ;;  %v1230_v4 = vld [vmem:[%s8116_s21 + $0x1b18] sm:$0xff]  ;;  %v1383_v5 = vld [vmem:[%s8116_s21 + $0x1fe0] sm:$0xff] }
 0x23f   : > { %4577 = vmatpush.msra.mxu0 %v1050_v6  ;;  %4596 = vmatpush.msra.mxu1 %v1203_v7  ;;  %v1653_v6 = vld [vmem:[%s8116_s21 + $0x2850] sm:$0xff] }
 0x240   : > { %4617 = vmatpush.msra.mxu2 %v1338_v10  ;;  %4636 = vmatpush.msra.mxu3 %v1491_v11  ;;  %v1941_v7 = vld [vmem:[%s8116_s21 + $0x3150] sm:$0xff]  ;;  %v1086_v10 = vld [vmem:[%s8116_s21 + $0x1698] sm:$0xff] }
 0x241   : > { %4578 = vmatpush.msra.mxu0 %v1041_v12  ;;  %4597 = vmatpush.msra.mxu1 %v1194_v13  ;;  %v1374_v11 = vld [vmem:[%s8116_s21 + $0x1f98] sm:$0xff]  ;;  %v1644_v12 = vld [vmem:[%s8116_s21 + $0x2808] sm:$0xff]  ;;  %v1797_v13 = vld [vmem:[%s8116_s21 + $0x2cd0] sm:$0xff] }
 0x242   : > { %4618 = vmatpush.msra.mxu2 %v1329_v15  ;;  %4637 = vmatpush.msra.mxu3 %v1482_v16  ;;  %v1932_v15 = vld [vmem:[%s8116_s21 + $0x3108] sm:$0xff]  ;;  %v2085_v16 = vld [vmem:[%s8116_s21 + $0x35d0] sm:$0xff] }
 0x243   : > { %4579 = vmatpush.msra.mxu0 %v1032_v17  ;;  %4598 = vmatpush.msra.mxu1 %v1185_v18  ;;  %v1635_v17 = vld [vmem:[%s8116_s21 + $0x27c0] sm:$0xff]  ;;  %v1788_v18 = vld [vmem:[%s8116_s21 + $0x2c88] sm:$0xff] }
 0x244   : > { %4619 = vmatpush.msra.mxu2 %v1320_v19  ;;  %4638 = vmatpush.msra.mxu3 %v1473_v20  ;;  %v1923_v19 = vld [vmem:[%s8116_s21 + $0x30c0] sm:$0xff]  ;;  %v2076_v20 = vld [vmem:[%s8116_s21 + $0x3588] sm:$0xff] }
 0x245   : > { %4580 = vmatpush.msra.mxu0 %v1023_v21  ;;  %4599 = vmatpush.msra.mxu1 %v1176_v22  ;;  %v1626_v21 = vld [vmem:[%s8116_s21 + $0x2778] sm:$0xff]  ;;  %v1779_v22 = vld [vmem:[%s8116_s21 + $0x2c40] sm:$0xff] }
 0x246   : > { %4620 = vmatpush.msra.mxu2 %v1311_v23  ;;  %4639 = vmatpush.msra.mxu3 %v1464_v24  ;;  %v1914_v23 = vld [vmem:[%s8116_s21 + $0x3078] sm:$0xff]  ;;  %v2067_v24 = vld [vmem:[%s8116_s21 + $0x3540] sm:$0xff] }
 0x247   : > { %4581 = vmatpush.msra.mxu0 %v1014_v25  ;;  %4600 = vmatpush.msra.mxu1 %v1167_v26  ;;  %v1617_v25 = vld [vmem:[%s8116_s21 + $0x2730] sm:$0xff]  ;;  %v1770_v26 = vld [vmem:[%s8116_s21 + $0x2bf8] sm:$0xff] }
 0x248   : > { %4621 = vmatpush.msra.mxu2 %v1302_v27  ;;  %4640 = vmatpush.msra.mxu3 %v1455_v28  ;;  %v1905_v27 = vld [vmem:[%s8116_s21 + $0x3030] sm:$0xff]  ;;  %v2058_v28 = vld [vmem:[%s8116_s21 + $0x34f8] sm:$0xff] }
 0x249   : > { %4582 = vmatpush.msra.mxu0 %v1005_v29  ;;  %4601 = vmatpush.msra.mxu1 %v1158_v30  ;;  %v1608_v29 = vld [vmem:[%s8116_s21 + $0x26e8] sm:$0xff]  ;;  %v1761_v30 = vld [vmem:[%s8116_s21 + $0x2bb0] sm:$0xff] }
 0x24a   : > { %4622 = vmatpush.msra.mxu2 %v1293_v31  ;;  %4641 = vmatpush.msra.mxu3 %v1446_v32  ;;  %v1896_v31 = vld [vmem:[%s8116_s21 + $0x2fe8] sm:$0xff]  ;;  %v2049_v32 = vld [vmem:[%s8116_s21 + $0x34b0] sm:$0xff] }
 0x24b   : > { %4583 = vmatpush.msra.mxu0 %v996_v33  ;;  %4602 = vmatpush.msra.mxu1 %v1149_v34  ;;  %v1599_v33 = vld [vmem:[%s8116_s21 + $0x26a0] sm:$0xff]  ;;  %v1752_v34 = vld [vmem:[%s8116_s21 + $0x2b68] sm:$0xff] }
 0x24c   : > { %4623 = vmatpush.msra.mxu2 %v1284_v35  ;;  %4642 = vmatpush.msra.mxu3 %v1437_v36  ;;  %v1887_v35 = vld [vmem:[%s8116_s21 + $0x2fa0] sm:$0xff]  ;;  %v2040_v36 = vld [vmem:[%s8116_s21 + $0x3468] sm:$0xff] }
 0x24d   : > { %4584 = vmatpush.msra.mxu0 %v987_v37  ;;  %4603 = vmatpush.msra.mxu1 %v1140_v38  ;;  %v1590_v37 = vld [vmem:[%s8116_s21 + $0x2658] sm:$0xff]  ;;  %v1743_v38 = vld [vmem:[%s8116_s21 + $0x2b20] sm:$0xff] }
 0x24e   : > { %4624 = vmatpush.msra.mxu2 %v1275_v43  ;;  %4643 = vmatpush.msra.mxu3 %v1428_v44  ;;  %v1878_v43 = vld [vmem:[%s8116_s21 + $0x2f58] sm:$0xff]  ;;  %v2031_v44 = vld [vmem:[%s8116_s21 + $0x3420] sm:$0xff] }
 0x24f   : > { %4585 = vmatpush.msra.mxu0 %v978_v45  ;;  %4604 = vmatpush.msra.mxu1 %v1131_v46  ;;  %v1581_v45 = vld [vmem:[%s8116_s21 + $0x2610] sm:$0xff]  ;;  %v1734_v46 = vld [vmem:[%s8116_s21 + $0x2ad8] sm:$0xff] }
 0x250   : > { %4625 = vmatpush.msra.mxu2 %v1266_v47  ;;  %4644 = vmatpush.msra.mxu3 %v1419_v48  ;;  %v1869_v47 = vld [vmem:[%s8116_s21 + $0x2f10] sm:$0xff]  ;;  %v2022_v48 = vld [vmem:[%s8116_s21 + $0x33d8] sm:$0xff] }
 0x251   : > { %4586 = vmatpush.msra.mxu0 %v969_v49  ;;  %4605 = vmatpush.msra.mxu1 %v1122_v50  ;;  %v1572_v49 = vld [vmem:[%s8116_s21 + $0x25c8] sm:$0xff]  ;;  %v1725_v50 = vld [vmem:[%s8116_s21 + $0x2a90] sm:$0xff] }
 0x252   : > { %4626 = vmatpush.msra.mxu2 %v1257_v51  ;;  %4645 = vmatpush.msra.mxu3 %v1410_v52  ;;  %v1860_v51 = vld [vmem:[%s8116_s21 + $0x2ec8] sm:$0xff]  ;;  %v2013_v52 = vld [vmem:[%s8116_s21 + $0x3390] sm:$0xff] }
 0x253   : > { %4587 = vmatpush.msra.mxu0 %v960_v53  ;;  %4606 = vmatpush.msra.mxu1 %v1113_v54  ;;  %v1563_v53 = vld [vmem:[%s8116_s21 + $0x2580] sm:$0xff]  ;;  %v1716_v54 = vld [vmem:[%s8116_s21 + $0x2a48] sm:$0xff] }
 0x254   : > { %4627 = vmatpush.msra.mxu2 %v1248_v55  ;;  %4646 = vmatpush.msra.mxu3 %v1401_v56  ;;  %v1851_v55 = vld [vmem:[%s8116_s21 + $0x2e80] sm:$0xff]  ;;  %v2004_v56 = vld [vmem:[%s8116_s21 + $0x3348] sm:$0xff] }
 0x255   : > { %4588 = vmatpush.msra.mxu0 %v951_v61  ;;  %4607 = vmatpush.msra.mxu1 %v1104_v62  ;;  %v1554_v61 = vld [vmem:[%s8116_s21 + $0x2538] sm:$0xff]  ;;  %v1707_v62 = vld [vmem:[%s8116_s21 + $0x2a00] sm:$0xff] }
 0x256   : > { %4628 = vmatpush.msra.mxu2 %v1239_v63  ;;  %4647 = vmatpush.msra.mxu3 %v1392_v0  ;;  %v1842_v63 = vld [vmem:[%s8116_s21 + $0x2e38] sm:$0xff]  ;;  %v1995_v0 = vld [vmem:[%s8116_s21 + $0x3300] sm:$0xff] }
 0x257   : > { %4550 = vmatmul.f32.vlgmr.msrb.gmra.mxu2 %v8252_v3  ;;  %4589 = vmatpush.msra.mxu0 %v942_v1  ;;  %v1545_v1 = vld [vmem:[%s8116_s21 + $0x24f0] sm:$0xff] }
 0x258   : > { %4608 = vmatpush.msra.mxu1 %v1095_v2  ;;  %4629 = vmatpush.msra.mxu2 %v1230_v4  ;;  %v1698_v2 = vld [vmem:[%s8116_s21 + $0x29b8] sm:$0xff]  ;;  %v1833_v4 = vld [vmem:[%s8116_s21 + $0x2df0] sm:$0xff] }
 0x259   : > { %4648 = vmatpush.msra.mxu3 %v1383_v5  ;;  %4510 = vmatmul.f32.vlgmr.msrb.gmra.mxu0 %v8258_v8  ;;  %v1986_v5 = vld [vmem:[%s8116_s21 + $0x32b8] sm:$0xff] }
 0x25a   : > { %4570 = vmatmul.f32.vlgmr.msrb.gmra.mxu3 %v8261_v9  ;;  %4654 = vmatpush.msrb.mxu0 %v1653_v6  ;;  %v1536_v6 = vld [vmem:[%s8116_s21 + $0x24a8] sm:$0xff] }
 0x25b   : > { %4694 = vmatpush.msrb.mxu2 %v1941_v7  ;;  %4609 = vmatpush.msra.mxu1 %v1086_v10  ;;  %v1689_v7 = vld [vmem:[%s8116_s21 + $0x2970] sm:$0xff]  ;;  %v1824_v10 = vld [vmem:[%s8116_s21 + $0x2da8] sm:$0xff] }
 0x25c   : > { %4649 = vmatpush.msra.mxu3 %v1374_v11  ;;  %4530 = vmatmul.f32.vlgmr.msrb.gmra.mxu1 %v8268_v14  ;;  %v1977_v11 = vld [vmem:[%s8116_s21 + $0x3270] sm:$0xff] }
 0x25d   : > { %4655 = vmatpush.msrb.mxu0 %v1644_v12  ;;  %4674 = vmatpush.msrb.mxu1 %v1797_v13  ;;  %v1527_v12 = vld [vmem:[%s8116_s21 + $0x2460] sm:$0xff]  ;;  %v1680_v13 = vld [vmem:[%s8116_s21 + $0x2928] sm:$0xff] }
 0x25e   : > { %4695 = vmatpush.msrb.mxu2 %v1932_v15  ;;  %4714 = vmatpush.msrb.mxu3 %v2085_v16  ;;  %v1815_v15 = vld [vmem:[%s8116_s21 + $0x2d60] sm:$0xff]  ;;  %v1968_v16 = vld [vmem:[%s8116_s21 + $0x3228] sm:$0xff] }
 0x25f   : > { %4656 = vmatpush.msrb.mxu0 %v1635_v17  ;;  %4675 = vmatpush.msrb.mxu1 %v1788_v18  ;;  %v1518_v17 = vld [vmem:[%s8116_s21 + $0x2418] sm:$0xff]  ;;  %v1671_v18 = vld [vmem:[%s8116_s21 + $0x28e0] sm:$0xff] }
 0x260   : > { %4696 = vmatpush.msrb.mxu2 %v1923_v19  ;;  %4715 = vmatpush.msrb.mxu3 %v2076_v20  ;;  %v1806_v19 = vld [vmem:[%s8116_s21 + $0x2d18] sm:$0xff]  ;;  %v1959_v20 = vld [vmem:[%s8116_s21 + $0x31e0] sm:$0xff] }
 0x261   : > { %4630 = vmatmul.f32.vlgmr.msra.gmra.mxu2 %v8238_v57  ;;  %4657 = vmatpush.msrb.mxu0 %v1626_v21  ;;  %v2229_v21 = vld [vmem:[%s8116_s21 + $0x3a50] sm:$0xff] }
 0x262   : > { %4676 = vmatpush.msrb.mxu1 %v1779_v22  ;;  %4697 = vmatpush.msrb.mxu2 %v1914_v23  ;;  %v2517_v22 = vld [vmem:[%s8116_s21 + $0x4350] sm:$0xff]  ;;  %v1662_v23 = vld [vmem:[%s8116_s21 + $0x2898] sm:$0xff] }
 0x263   : > { %4716 = vmatpush.msrb.mxu3 %v2067_v24  ;;  %4590 = vmatmul.f32.vlgmr.msra.gmra.mxu0 %v8240_v58  ;;  %v1950_v24 = vld [vmem:[%s8116_s21 + $0x3198] sm:$0xff] }
 0x264   : > { %4650 = vmatmul.f32.vlgmr.msra.gmra.mxu3 %v8242_v59  ;;  %4658 = vmatpush.msrb.mxu0 %v1617_v25  ;;  %v2220_v25 = vld [vmem:[%s8116_s21 + $0x3a08] sm:$0xff] }
 0x265   : > { %4677 = vmatpush.msrb.mxu1 %v1770_v26  ;;  %4698 = vmatpush.msrb.mxu2 %v1905_v27  ;;  %v2373_v26 = vld [vmem:[%s8116_s21 + $0x3ed0] sm:$0xff]  ;;  %v2508_v27 = vld [vmem:[%s8116_s21 + $0x4308] sm:$0xff] }
 0x266   : > { %4717 = vmatpush.msrb.mxu3 %v2058_v28  ;;  %4610 = vmatmul.f32.vlgmr.msra.gmra.mxu1 %v8244_v60  ;;  %v2661_v28 = vld [vmem:[%s8116_s21 + $0x47d0] sm:$0xff] }
 0x267   : > { %4659 = vmatpush.msrb.mxu0 %v1608_v29  ;;  %4678 = vmatpush.msrb.mxu1 %v1761_v30  ;;  %v2211_v29 = vld [vmem:[%s8116_s21 + $0x39c0] sm:$0xff]  ;;  %v2364_v30 = vld [vmem:[%s8116_s21 + $0x3e88] sm:$0xff] }
 0x268   : > { %4699 = vmatpush.msrb.mxu2 %v1896_v31  ;;  %4718 = vmatpush.msrb.mxu3 %v2049_v32  ;;  %v2499_v31 = vld [vmem:[%s8116_s21 + $0x42c0] sm:$0xff]  ;;  %v2652_v32 = vld [vmem:[%s8116_s21 + $0x4788] sm:$0xff] }
 0x269   : > { %4660 = vmatpush.msrb.mxu0 %v1599_v33  ;;  %4679 = vmatpush.msrb.mxu1 %v1752_v34  ;;  %v2202_v33 = vld [vmem:[%s8116_s21 + $0x3978] sm:$0xff]  ;;  %v2355_v34 = vld [vmem:[%s8116_s21 + $0x3e40] sm:$0xff] }
 0x26a   : > { %4700 = vmatpush.msrb.mxu2 %v1887_v35  ;;  %4719 = vmatpush.msrb.mxu3 %v2040_v36  ;;  %v2490_v35 = vld [vmem:[%s8116_s21 + $0x4278] sm:$0xff]  ;;  %v2643_v36 = vld [vmem:[%s8116_s21 + $0x4740] sm:$0xff] }
 0x26b   : > { %4661 = vmatpush.msrb.mxu0 %v1590_v37  ;;  %4680 = vmatpush.msrb.mxu1 %v1743_v38  ;;  %v2193_v37 = vld [vmem:[%s8116_s21 + $0x3930] sm:$0xff]  ;;  %v2346_v38 = vld [vmem:[%s8116_s21 + $0x3df8] sm:$0xff] }
 0x26c   : > { %4701 = vmatpush.msrb.mxu2 %v1878_v43  ;;  %4720 = vmatpush.msrb.mxu3 %v2031_v44  ;;  %v2481_v43 = vld [vmem:[%s8116_s21 + $0x4230] sm:$0xff]  ;;  %v2634_v44 = vld [vmem:[%s8116_s21 + $0x46f8] sm:$0xff] }
 0x26d   : > { %4662 = vmatpush.msrb.mxu0 %v1581_v45  ;;  %4681 = vmatpush.msrb.mxu1 %v1734_v46  ;;  %v2184_v45 = vld [vmem:[%s8116_s21 + $0x38e8] sm:$0xff]  ;;  %v2337_v46 = vld [vmem:[%s8116_s21 + $0x3db0] sm:$0xff] }
 0x26e   : > { %4702 = vmatpush.msrb.mxu2 %v1869_v47  ;;  %4721 = vmatpush.msrb.mxu3 %v2022_v48  ;;  %v2472_v47 = vld [vmem:[%s8116_s21 + $0x41e8] sm:$0xff]  ;;  %v2625_v48 = vld [vmem:[%s8116_s21 + $0x46b0] sm:$0xff] }
 0x26f   : > { %4663 = vmatpush.msrb.mxu0 %v1572_v49  ;;  %4682 = vmatpush.msrb.mxu1 %v1725_v50  ;;  %v2175_v49 = vld [vmem:[%s8116_s21 + $0x38a0] sm:$0xff]  ;;  %v2328_v50 = vld [vmem:[%s8116_s21 + $0x3d68] sm:$0xff] }
 0x270   : > { %4703 = vmatpush.msrb.mxu2 %v1860_v51  ;;  %4722 = vmatpush.msrb.mxu3 %v2013_v52  ;;  %v2463_v51 = vld [vmem:[%s8116_s21 + $0x41a0] sm:$0xff]  ;;  %v2616_v52 = vld [vmem:[%s8116_s21 + $0x4668] sm:$0xff] }
 0x271   : > { %4664 = vmatpush.msrb.mxu0 %v1563_v53  ;;  %4683 = vmatpush.msrb.mxu1 %v1716_v54  ;;  %v2166_v53 = vld [vmem:[%s8116_s21 + $0x3858] sm:$0xff]  ;;  %v2319_v54 = vld [vmem:[%s8116_s21 + $0x3d20] sm:$0xff] }
 0x272   : > { %4704 = vmatpush.msrb.mxu2 %v1851_v55  ;;  %4723 = vmatpush.msrb.mxu3 %v2004_v56  ;;  %v2454_v55 = vld [vmem:[%s8116_s21 + $0x4158] sm:$0xff]  ;;  %v2607_v56 = vld [vmem:[%s8116_s21 + $0x4620] sm:$0xff] }
 0x273   : > { %4665 = vmatpush.msrb.mxu0 %v1554_v61  ;;  %4684 = vmatpush.msrb.mxu1 %v1707_v62  ;;  %v9378_v61 = vpop.f32.mrf.mxu1  ;;  %v2157_v62 = vld [vmem:[%s8116_s21 + $0x3810] sm:$0xff] }
 0x274   : > { %4705 = vmatpush.msrb.mxu2 %v1842_v63  ;;  %4724 = vmatpush.msrb.mxu3 %v1995_v0  ;;  %v2310_v63 = vld [vmem:[%s8116_s21 + $0x3cd8] sm:$0xff]  ;;  %v2445_v0 = vld [vmem:[%s8116_s21 + $0x4110] sm:$0xff] }
 0x275   : > { %4666 = vmatpush.msrb.mxu0 %v1545_v1  ;;  %4685 = vmatpush.msrb.mxu1 %v1698_v2  ;;  %v2598_v1 = vld [vmem:[%s8116_s21 + $0x45d8] sm:$0xff]  ;;  %v9384_v2 = vpop.f32.mrf.mxu0 }
 0x276   : > { %4706 = vmatpush.msrb.mxu2 %v1833_v4  ;;  %4725 = vmatpush.msrb.mxu3 %v1986_v5  ;;  %v2148_v4 = vld [vmem:[%s8116_s21 + $0x37c8] sm:$0xff]  ;;  %v2301_v5 = vld [vmem:[%s8116_s21 + $0x3c90] sm:$0xff] }
 0x277   : > { %4667 = vmatpush.msrb.mxu0 %v1536_v6  ;;  %4686 = vmatpush.msrb.mxu1 %v1689_v7  ;;  %v2436_v6 = vld [vmem:[%s8116_s21 + $0x40c8] sm:$0xff]  ;;  %v2589_v7 = vld [vmem:[%s8116_s21 + $0x4590] sm:$0xff] }
 0x278   : > { %4707 = vmatpush.msrb.mxu2 %v1824_v10  ;;  %4726 = vmatpush.msrb.mxu3 %v1977_v11  ;;  %v9390_v10 = vpop.f32.mrf.mxu2  ;;  %v2139_v11 = vld [vmem:[%s8116_s21 + $0x3780] sm:$0xff] }
 0x279   : > { %4668 = vmatpush.msrb.mxu0 %v1527_v12  ;;  %4687 = vmatpush.msrb.mxu1 %v1680_v13  ;;  %v2292_v12 = vld [vmem:[%s8116_s21 + $0x3c48] sm:$0xff]  ;;  %v2427_v13 = vld [vmem:[%s8116_s21 + $0x4080] sm:$0xff] }
 0x27a   : > { %4708 = vmatpush.msrb.mxu2 %v1815_v15  ;;  %4727 = vmatpush.msrb.mxu3 %v1968_v16  ;;  %v2580_v15 = vld [vmem:[%s8116_s21 + $0x4548] sm:$0xff]  ;;  %v2130_v16 = vld [vmem:[%s8116_s21 + $0x3738] sm:$0xff] }
 0x27b   : > { %4669 = vmatpush.msrb.mxu0 %v1518_v17  ;;  %4688 = vmatpush.msrb.mxu1 %v1671_v18  ;;  %v2283_v17 = vld [vmem:[%s8116_s21 + $0x3c00] sm:$0xff]  ;;  %v2418_v18 = vld [vmem:[%s8116_s21 + $0x4038] sm:$0xff] }
 0x27c   : > { %4709 = vmatpush.msrb.mxu2 %v1806_v19  ;;  %4728 = vmatpush.msrb.mxu3 %v1959_v20  ;;  %v2571_v19 = vld [vmem:[%s8116_s21 + $0x4500] sm:$0xff]  ;;  %v9400_v20 = vpop.f32.mrf.mxu3 }
 0x27d   : > { %4670 = vmatmul.f32.vlgmr.msrb.gmra.mxu0 %v8299_v39  ;;  %4710 = vmatmul.f32.vlgmr.msrb.gmra.mxu2 %v8301_v40 }
 0x27e   : > { %4734 = vmatpush.msra.mxu0 %v2229_v21  ;;  %4774 = vmatpush.msra.mxu2 %v2517_v22  ;;  %v2121_v21 = vld [vmem:[%s8116_s21 + $0x36f0] sm:$0xff]  ;;  %v2274_v22 = vld [vmem:[%s8116_s21 + $0x3bb8] sm:$0xff] }
 0x27f   : > { %4689 = vmatpush.msrb.mxu1 %v1662_v23  ;;  %4729 = vmatpush.msrb.mxu3 %v1950_v24  ;;  %v2409_v23 = vld [vmem:[%s8116_s21 + $0x3ff0] sm:$0xff]  ;;  %v2562_v24 = vld [vmem:[%s8116_s21 + $0x44b8] sm:$0xff] }
 0x280   : > { %4690 = vmatmul.f32.vlgmr.msrb.gmra.mxu1 %v8304_v41  ;;  %4730 = vmatmul.f32.vlgmr.msrb.gmra.mxu3 %v8306_v42 }
 0x281   : > { %4735 = vmatpush.msra.mxu0 %v2220_v25  ;;  %4754 = vmatpush.msra.mxu1 %v2373_v26  ;;  %v9406_v25 = vpop.f32.mrf.mxu1  ;;  %v2112_v26 = vld [vmem:[%s8116_s21 + $0x36a8] sm:$0xff] }
 0x282   : > { %4775 = vmatpush.msra.mxu2 %v2508_v27  ;;  %4794 = vmatpush.msra.mxu3 %v2661_v28  ;;  %v2265_v27 = vld [vmem:[%s8116_s21 + $0x3b70] sm:$0xff]  ;;  %v2400_v28 = vld [vmem:[%s8116_s21 + $0x3fa8] sm:$0xff] }
 0x283   : > { %4736 = vmatpush.msra.mxu0 %v2211_v29  ;;  %4755 = vmatpush.msra.mxu1 %v2364_v30  ;;  %v2553_v29 = vld [vmem:[%s8116_s21 + $0x4470] sm:$0xff]  ;;  %v9412_v30 = vpop.f32.mrf.mxu0 }
 0x284   : > { %4776 = vmatpush.msra.mxu2 %v2499_v31  ;;  %4795 = vmatpush.msra.mxu3 %v2652_v32  ;;  %v2103_v31 = vld [vmem:[%s8116_s21 + $0x3660] sm:$0xff]  ;;  %v2256_v32 = vld [vmem:[%s8116_s21 + $0x3b28] sm:$0xff] }
 0x285   : > { %4737 = vmatpush.msra.mxu0 %v2202_v33  ;;  %4756 = vmatpush.msra.mxu1 %v2355_v34  ;;  %v2391_v33 = vld [vmem:[%s8116_s21 + $0x3f60] sm:$0xff]  ;;  %v2544_v34 = vld [vmem:[%s8116_s21 + $0x4428] sm:$0xff] }
 0x286   : > { %4777 = vmatpush.msra.mxu2 %v2490_v35  ;;  %4796 = vmatpush.msra.mxu3 %v2643_v36  ;;  %v9418_v35 = vpop.f32.mrf.mxu2  ;;  %v2094_v36 = vld [vmem:[%s8116_s21 + $0x3618] sm:$0xff] }
 0x287   : > { %4738 = vmatpush.msra.mxu0 %v2193_v37  ;;  %4757 = vmatpush.msra.mxu1 %v2346_v38  ;;  %v2247_v37 = vld [vmem:[%s8116_s21 + $0x3ae0] sm:$0xff]  ;;  %v2382_v38 = vld [vmem:[%s8116_s21 + $0x3f18] sm:$0xff] }
 0x288   : > { %4778 = vmatpush.msra.mxu2 %v2481_v43  ;;  %4797 = vmatpush.msra.mxu3 %v2634_v44  ;;  %v2535_v43 = vld [vmem:[%s8116_s21 + $0x43e0] sm:$0xff]  ;;  %v2805_v44 = vld [vmem:[%s8116_s21 + $0x4c50] sm:$0xff] }
 0x289   : > { %4739 = vmatpush.msra.mxu0 %v2184_v45  ;;  %4758 = vmatpush.msra.mxu1 %v2337_v46  ;;  %v3093_v45 = vld [vmem:[%s8116_s21 + $0x5550] sm:$0xff]  ;;  %v9426_v46 = vpop.f32.mrf.mxu3 }
 0x28a   : > { %4779 = vmatpush.msra.mxu2 %v2472_v47  ;;  %4798 = vmatpush.msra.mxu3 %v2625_v48  ;;  %v9428_v47 = vpop.f32.mrf.mxu1  ;;  %v2238_v48 = vld [vmem:[%s8116_s21 + $0x3a98] sm:$0xff] }
 0x28b   : > { %4740 = vmatpush.msra.mxu0 %v2175_v49  ;;  %4759 = vmatpush.msra.mxu1 %v2328_v50  ;;  %v2526_v49 = vld [vmem:[%s8116_s21 + $0x4398] sm:$0xff]  ;;  %v7955_v50 = vld.sshfl [vmem:[#allocation1 + $0x20] sm:$0xff pattern:$0x73625140] }
 0x28c   : > { %4780 = vmatpush.msra.mxu2 %v2463_v51  ;;  %4799 = vmatpush.msra.mxu3 %v2616_v52  ;;  %v7956_v51 = vld.sshfl [vmem:[#allocation1 + $0x30] sm:$0xff pattern:$0x73625140]  ;;  %v9432_v52 = vpop.f32.mrf.mxu0 }
 0x28d   : > { %4741 = vmatpush.msra.mxu0 %v2166_v53  ;;  %4760 = vmatpush.msra.mxu1 %v2319_v54  ;;  %v2796_v53 = vld [vmem:[%s8116_s21 + $0x4c08] sm:$0xff]  ;;  %v2949_v54 = vld [vmem:[%s8116_s21 + $0x50d0] sm:$0xff] }
 0x28e   : > { %4781 = vmatpush.msra.mxu2 %v2454_v55  ;;  %4800 = vmatpush.msra.mxu3 %v2607_v56  ;;  %v3084_v55 = vld [vmem:[%s8116_s21 + $0x5508] sm:$0xff]  ;;  %v3237_v56 = vld [vmem:[%s8116_s21 + $0x59d0] sm:$0xff] }
 0x28f   : > { %4742 = vmatpush.msra.mxu0 %v2157_v62  ;;  %4761 = vmatpush.msra.mxu1 %v2310_v63  ;;  %v9438_v62 = vpop.f32.mrf.mxu2  ;;  %v7957_v63 = vld.sshfl [vmem:[#allocation1 + $0x28] sm:$0xff pattern:$0x73625140] }
 0x290   : > { %4782 = vmatpush.msra.mxu2 %v2445_v0  ;;  %4801 = vmatpush.msra.mxu3 %v2598_v1  ;;  %v7958_v0 = vld.sshfl [vmem:[#allocation1 + $0x38] sm:$0xff pattern:$0x73625140]  ;;  %v2787_v1 = vld [vmem:[%s8116_s21 + $0x4bc0] sm:$0xff] }
 0x291   : > { %4743 = vmatpush.msra.mxu0 %v2148_v4  ;;  %4762 = vmatpush.msra.mxu1 %v2301_v5  ;;  %v2940_v4 = vld [vmem:[%s8116_s21 + $0x5088] sm:$0xff]  ;;  %v3075_v5 = vld [vmem:[%s8116_s21 + $0x54c0] sm:$0xff] }
 0x292   : > { %4783 = vmatpush.msra.mxu2 %v2436_v6  ;;  %4802 = vmatpush.msra.mxu3 %v2589_v7  ;;  %v3228_v6 = vld [vmem:[%s8116_s21 + $0x5988] sm:$0xff]  ;;  %v2778_v7 = vld [vmem:[%s8116_s21 + $0x4b78] sm:$0xff] }
 0x293   : > { %4744 = vmatpush.msra.mxu0 %v2139_v11  ;;  %4763 = vmatpush.msra.mxu1 %v2292_v12  ;;  %v2931_v11 = vld [vmem:[%s8116_s21 + $0x5040] sm:$0xff]  ;;  %v3066_v12 = vld [vmem:[%s8116_s21 + $0x5478] sm:$0xff] }
 0x294   : > { %4784 = vmatpush.msra.mxu2 %v2427_v13  ;;  %4803 = vmatpush.msra.mxu3 %v2580_v15  ;;  %v3219_v13 = vld [vmem:[%s8116_s21 + $0x5940] sm:$0xff]  ;;  %v9448_v15 = vpop.f32.mrf.mxu3 }
 0x295   : > { %4745 = vmatpush.msra.mxu0 %v2130_v16  ;;  %4764 = vmatpush.msra.mxu1 %v2283_v17  ;;  %v9450_v16 = vpop.f32.mrf.mxu1  ;;  %v2769_v17 = vld [vmem:[%s8116_s21 + $0x4b30] sm:$0xff] }
 0x296   : > { %4785 = vmatpush.msra.mxu2 %v2418_v18  ;;  %4804 = vmatpush.msra.mxu3 %v2571_v19  ;;  %12439 = vst [vmem:[#allocation8_spill] sm:$0xff] %v9450_v16  ;;  %v2922_v18 = vld [vmem:[%s8116_s21 + $0x4ff8] sm:$0xff]  ;;  %v3057_v19 = vld [vmem:[%s8116_s21 + $0x5430] sm:$0xff] }
 0x297   : > { %4746 = vmatpush.msra.mxu0 %v2121_v21  ;;  %4765 = vmatpush.msra.mxu1 %v2274_v22  ;;  %v3210_v21 = vld [vmem:[%s8116_s21 + $0x58f8] sm:$0xff]  ;;  %v9456_v22 = vpop.f32.mrf.mxu0 }
 0x298   : > { %4786 = vmatpush.msra.mxu2 %v2409_v23  ;;  %4805 = vmatpush.msra.mxu3 %v2562_v24  ;;  %12440 = vst [vmem:[#allocation9_spill] sm:$0xff] %v9456_v22  ;;  %v2760_v23 = vld [vmem:[%s8116_s21 + $0x4ae8] sm:$0xff]  ;;  %v2913_v24 = vld [vmem:[%s8116_s21 + $0x4fb0] sm:$0xff]  ;;  %v1258_v16 = vld [vmem:[%s8116_s21 + $0x1bf8] sm:$0xff] }
 0x299   : > { %4747 = vmatpush.msra.mxu0 %v2112_v26  ;;  %4766 = vmatpush.msra.mxu1 %v2265_v27  ;;  %v3048_v26 = vld [vmem:[%s8116_s21 + $0x53e8] sm:$0xff]  ;;  %v3201_v27 = vld [vmem:[%s8116_s21 + $0x58b0] sm:$0xff] }
 0x29a   : > { %4787 = vmatpush.msra.mxu2 %v2400_v28  ;;  %4806 = vmatpush.msra.mxu3 %v2553_v29  ;;  %v9462_v28 = vpop.f32.mrf.mxu2  ;;  %v2751_v29 = vld [vmem:[%s8116_s21 + $0x4aa0] sm:$0xff] }
 0x29b   : > { %4748 = vmatpush.msra.mxu0 %v2103_v31  ;;  %4767 = vmatpush.msra.mxu1 %v2256_v32  ;;  %12441 = vst [vmem:[#allocation10_spill] sm:$0xff] %v9462_v28  ;;  %v2904_v31 = vld [vmem:[%s8116_s21 + $0x4f68] sm:$0xff]  ;;  %v3039_v32 = vld [vmem:[%s8116_s21 + $0x53a0] sm:$0xff]  ;;  %v1141_v28 = vld [vmem:[%s8116_s21 + $0x1850] sm:$0xff] }
 0x29c   : > { %4788 = vmatpush.msra.mxu2 %v2391_v33  ;;  %4807 = vmatpush.msra.mxu3 %v2544_v34  ;;  %v3192_v33 = vld [vmem:[%s8116_s21 + $0x5868] sm:$0xff]  ;;  %v2742_v34 = vld [vmem:[%s8116_s21 + $0x4a58] sm:$0xff] }
 0x29d   : > { %4749 = vmatpush.msra.mxu0 %v2094_v36  ;;  %4768 = vmatpush.msra.mxu1 %v2247_v37  ;;  %v2895_v36 = vld [vmem:[%s8116_s21 + $0x4f20] sm:$0xff]  ;;  %v3030_v37 = vld [vmem:[%s8116_s21 + $0x5358] sm:$0xff] }
 0x29e   : > { %4789 = vmatpush.msra.mxu2 %v2382_v38  ;;  %4808 = vmatpush.msra.mxu3 %v2535_v43  ;;  %v3183_v38 = vld [vmem:[%s8116_s21 + $0x5820] sm:$0xff]  ;;  %v9472_v43 = vpop.f32.mrf.mxu3 }
 0x29f   : > { %4750 = vmatmul.f32.vlgmr.msra.gmra.mxu0 %v7955_v50  ;;  %4790 = vmatmul.f32.vlgmr.msra.gmra.mxu2 %v7956_v51  ;;  %12442 = vst [vmem:[#allocation11_spill] sm:$0xff] %v9472_v43  ;;  %v3174_v50 = vld [vmem:[%s8116_s21 + $0x57d8] sm:$0xff]  ;;  %v9480_v51 = vpop.f32.mrf.mxu0 }
 0x2a0   : > { %4814 = vmatpush.msrb.mxu0 %v2805_v44  ;;  %4854 = vmatpush.msrb.mxu2 %v3093_v45  ;;  %v9474_v44 = vpop.f32.mrf.mxu1  ;;  %v2733_v45 = vld [vmem:[%s8116_s21 + $0x4a10] sm:$0xff]  ;;  %12444 = vst [vmem:[#allocation13_spill] sm:$0xff] %v9480_v51  ;;  %v1294_v43 = vld [vmem:[%s8116_s21 + $0x1d18] sm:$0xff] }
 0x2a1   : > { %4769 = vmatpush.msra.mxu1 %v2238_v48  ;;  %4809 = vmatpush.msra.mxu3 %v2526_v49  ;;  %12443 = vst [vmem:[#allocation12_spill] sm:$0xff] %v9474_v44  ;;  %v2886_v48 = vld [vmem:[%s8116_s21 + $0x4ed8] sm:$0xff]  ;;  %v3021_v49 = vld [vmem:[%s8116_s21 + $0x5310] sm:$0xff] }
 0x2a2   : > { %4770 = vmatmul.f32.vlgmr.msra.gmra.mxu1 %v7957_v63  ;;  %4810 = vmatmul.f32.vlgmr.msra.gmra.mxu3 %v7958_v0  ;;  %v9486_v63 = vpop.f32.mrf.mxu2  ;;  %v2715_v0 = vld [vmem:[%s8116_s21 + $0x4980] sm:$0xff]  ;;  %v1177_v51 = vld [vmem:[%s8116_s21 + $0x1970] sm:$0xff] }
 0x2a3   : > { %4815 = vmatpush.msrb.mxu0 %v2796_v53  ;;  %4834 = vmatpush.msrb.mxu1 %v2949_v54  ;;  %v2724_v53 = vld [vmem:[%s8116_s21 + $0x49c8] sm:$0xff]  ;;  %v2877_v54 = vld [vmem:[%s8116_s21 + $0x4e90] sm:$0xff]  ;;  %12445 = vst [vmem:[#allocation14_spill] sm:$0xff] %v9486_v63  ;;  %v1222_v63 = vld [vmem:[%s8116_s21 + $0x1ad8] sm:$0xff] }
 0x2a4   : > { %4855 = vmatpush.msrb.mxu2 %v3084_v55  ;;  %4874 = vmatpush.msrb.mxu3 %v3237_v56  ;;  %v3012_v55 = vld [vmem:[%s8116_s21 + $0x52c8] sm:$0xff]  ;;  %v3165_v56 = vld [vmem:[%s8116_s21 + $0x5790] sm:$0xff] }
 0x2a5   : > { %4816 = vmatpush.msrb.mxu0 %v2787_v1  ;;  %4835 = vmatpush.msrb.mxu1 %v2940_v4  ;;  %v2868_v1 = vld [vmem:[%s8116_s21 + $0x4e48] sm:$0xff]  ;;  %v3003_v4 = vld [vmem:[%s8116_s21 + $0x5280] sm:$0xff] }
 0x2a6   : > { %4856 = vmatpush.msrb.mxu2 %v3075_v5  ;;  %4875 = vmatpush.msrb.mxu3 %v3228_v6  ;;  %v3156_v5 = vld [vmem:[%s8116_s21 + $0x5748] sm:$0xff]  ;;  %v2706_v6 = vld [vmem:[%s8116_s21 + $0x4938] sm:$0xff] }
 0x2a7   : > { %4817 = vmatpush.msrb.mxu0 %v2778_v7  ;;  %4836 = vmatpush.msrb.mxu1 %v2931_v11  ;;  %v2859_v7 = vld [vmem:[%s8116_s21 + $0x4e00] sm:$0xff]  ;;  %v2994_v11 = vld [vmem:[%s8116_s21 + $0x5238] sm:$0xff] }
 0x2a8   : > { %4857 = vmatpush.msrb.mxu2 %v3066_v12  ;;  %4876 = vmatpush.msrb.mxu3 %v3219_v13  ;;  %v3147_v12 = vld [vmem:[%s8116_s21 + $0x5700] sm:$0xff]  ;;  %v9496_v13 = vpop.f32.mrf.mxu3 }
 0x2a9   : > { %4818 = vmatpush.msrb.mxu0 %v2769_v17  ;;  %4837 = vmatpush.msrb.mxu1 %v2922_v18  ;;  %12446 = vst [vmem:[#allocation15_spill] sm:$0xff] %v9496_v13  ;;  %v9498_v17 = vpop.f32.mrf.mxu1  ;;  %v2697_v18 = vld [vmem:[%s8116_s21 + $0x48f0] sm:$0xff] }
 0x2aa   : > { %4858 = vmatpush.msrb.mxu2 %v3057_v19  ;;  %4877 = vmatpush.msrb.mxu3 %v3210_v21  ;;  %v2850_v19 = vld [vmem:[%s8116_s21 + $0x4db8] sm:$0xff]  ;;  %v2985_v21 = vld [vmem:[%s8116_s21 + $0x51f0] sm:$0xff] }
 0x2ab   : > { %4819 = vmatpush.msrb.mxu0 %v2760_v23  ;;  %4838 = vmatpush.msrb.mxu1 %v2913_v24  ;;  %v3138_v23 = vld [vmem:[%s8116_s21 + $0x56b8] sm:$0xff]  ;;  %v9504_v24 = vpop.f32.mrf.mxu0  ;;  %v1069_v13 = vld [vmem:[%s8116_s21 + $0x1610] sm:$0xff] }
 0x2ac   : > { %4859 = vmatpush.msrb.mxu2 %v3048_v26  ;;  %4878 = vmatpush.msrb.mxu3 %v3201_v27  ;;  %v2688_v26 = vld [vmem:[%s8116_s21 + $0x48a8] sm:$0xff]  ;;  %v2841_v27 = vld [vmem:[%s8116_s21 + $0x4d70] sm:$0xff] }
 0x2ad   : > { %4820 = vmatpush.msrb.mxu0 %v2751_v29  ;;  %4839 = vmatpush.msrb.mxu1 %v2904_v31  ;;  %v2976_v29 = vld [vmem:[%s8116_s21 + $0x51a8] sm:$0xff]  ;;  %v3129_v31 = vld [vmem:[%s8116_s21 + $0x5670] sm:$0xff] }
 0x2ae   : > { %4860 = vmatpush.msrb.mxu2 %v3039_v32  ;;  %4879 = vmatpush.msrb.mxu3 %v3192_v33  ;;  %v9510_v32 = vpop.f32.mrf.mxu2  ;;  %v2679_v33 = vld [vmem:[%s8116_s21 + $0x4860] sm:$0xff] }
 0x2af   : > { %4821 = vmatpush.msrb.mxu0 %v2742_v34  ;;  %4840 = vmatpush.msrb.mxu1 %v2895_v36  ;;  %v2832_v34 = vld [vmem:[%s8116_s21 + $0x4d28] sm:$0xff]  ;;  %v2967_v36 = vld [vmem:[%s8116_s21 + $0x5160] sm:$0xff] }
 0x2b0   : > { %4861 = vmatpush.msrb.mxu2 %v3030_v37  ;;  %4880 = vmatpush.msrb.mxu3 %v3183_v38  ;;  %v3120_v37 = vld [vmem:[%s8116_s21 + $0x5628] sm:$0xff]  ;;  %v2670_v38 = vld [vmem:[%s8116_s21 + $0x4818] sm:$0xff] }
 0x2b1   : > { %4822 = vmatpush.msrb.mxu0 %v2733_v45  ;;  %4841 = vmatpush.msrb.mxu1 %v2886_v48  ;;  %v2823_v45 = vld [vmem:[%s8116_s21 + $0x4ce0] sm:$0xff]  ;;  %v2958_v48 = vld [vmem:[%s8116_s21 + $0x5118] sm:$0xff] }
 0x2b2   : > { %4862 = vmatpush.msrb.mxu2 %v3021_v49  ;;  %4881 = vmatpush.msrb.mxu3 %v3174_v50  ;;  %v3111_v49 = vld [vmem:[%s8116_s21 + $0x55e0] sm:$0xff]  ;;  %v9520_v50 = vpop.f32.mrf.mxu3 }
 0x2b3   : > { %4823 = vmatpush.msrb.mxu0 %v2724_v53  ;;  %4842 = vmatpush.msrb.mxu1 %v2877_v54  ;;  %v502_v53 = vld [vmem:[%s8116_s21 + $0x458] sm:$0xff] }
 0x2b4   : > { %4863 = vmatpush.msrb.mxu2 %v3012_v55  ;;  %4882 = vmatpush.msrb.mxu3 %v3165_v56  ;;  %v790_v54 = vld [vmem:[%s8116_s21 + $0xd58] sm:$0xff]  ;;  %v9524_v55 = vpop.f32.mrf.mxu1 }
 0x2b5   : > { %4824 = vmatpush.msrb.mxu0 %v2715_v0  ;;  %4843 = vmatpush.msrb.mxu1 %v2868_v1  ;;  %v2814_v56 = vld [vmem:[%s8116_s21 + $0x4c98] sm:$0xff]  ;;  %v7959_v1 = vld.sshfl [vmem:[#allocation1] sm:$0xff pattern:$0x73625140] }
 0x2b6   : > { %4864 = vmatpush.msrb.mxu2 %v3003_v4  ;;  %4883 = vmatpush.msrb.mxu3 %v3156_v5  ;;  %v3102_v0 = vld [vmem:[%s8116_s21 + $0x5598] sm:$0xff]  ;;  %v7960_v4 = vld.sshfl [vmem:[#allocation1 + $0x10] sm:$0xff pattern:$0x73625140]  ;;  %v9528_v5 = vpop.f32.mrf.mxu0 }
 0x2b7   : > { %4825 = vmatpush.msrb.mxu0 %v2706_v6  ;;  %4844 = vmatpush.msrb.mxu1 %v2859_v7  ;;  %v493_v6 = vld [vmem:[%s8116_s21 + $0x410] sm:$0xff]  ;;  %v646_v7 = vld [vmem:[%s8116_s21 + $0x8d8] sm:$0xff] }
 0x2b8   : > { %4865 = vmatpush.msrb.mxu2 %v2994_v11  ;;  %4884 = vmatpush.msrb.mxu3 %v3147_v12  ;;  %v781_v11 = vld [vmem:[%s8116_s21 + $0xd10] sm:$0xff]  ;;  %v934_v12 = vld [vmem:[%s8116_s21 + $0x11d8] sm:$0xff] }
 0x2b9   : > { %4826 = vmatpush.msrb.mxu0 %v2697_v18  ;;  %4845 = vmatpush.msrb.mxu1 %v2850_v19  ;;  %v9534_v18 = vpop.f32.mrf.mxu2  ;;  %v7961_v19 = vld.sshfl [vmem:[#allocation1 + $0x8] sm:$0xff pattern:$0x73625140] }
 0x2ba   : > { %4866 = vmatpush.msrb.mxu2 %v2985_v21  ;;  %4885 = vmatpush.msrb.mxu3 %v3138_v23  ;;  %v7962_v21 = vld.sshfl [vmem:[#allocation1 + $0x18] sm:$0xff pattern:$0x73625140]  ;;  %v484_v23 = vld [vmem:[%s8116_s21 + $0x3c8] sm:$0xff] }
 0x2bb   : > { %4827 = vmatpush.msrb.mxu0 %v2688_v26  ;;  %4846 = vmatpush.msrb.mxu1 %v2841_v27  ;;  %v637_v26 = vld [vmem:[%s8116_s21 + $0x890] sm:$0xff]  ;;  %v772_v27 = vld [vmem:[%s8116_s21 + $0xcc8] sm:$0xff] }
 0x2bc   : > { %4867 = vmatpush.msrb.mxu2 %v2976_v29  ;;  %4886 = vmatpush.msrb.mxu3 %v3129_v31  ;;  %v925_v29 = vld [vmem:[%s8116_s21 + $0x1190] sm:$0xff]  ;;  %v475_v31 = vld [vmem:[%s8116_s21 + $0x380] sm:$0xff] }
 0x2bd   : > { %4828 = vmatpush.msrb.mxu0 %v2679_v33  ;;  %4847 = vmatpush.msrb.mxu1 %v2832_v34  ;;  %v628_v33 = vld [vmem:[%s8116_s21 + $0x848] sm:$0xff]  ;;  %v763_v34 = vld [vmem:[%s8116_s21 + $0xc80] sm:$0xff] }
 0x2be   : > { %4868 = vmatpush.msrb.mxu2 %v2967_v36  ;;  %4887 = vmatpush.msrb.mxu3 %v3120_v37  ;;  %v916_v36 = vld [vmem:[%s8116_s21 + $0x1148] sm:$0xff]  ;;  %v9544_v37 = vpop.f32.mrf.mxu3 }
 0x2bf   : > { %4829 = vmatpush.msrb.mxu0 %v2670_v38  ;;  %4848 = vmatpush.msrb.mxu1 %v2823_v45  ;;  %v9546_v38 = vpop.f32.mrf.mxu1  ;;  %v466_v45 = vld [vmem:[%s8116_s21 + $0x338] sm:$0xff] }
 0x2c0   : > { %4869 = vmatpush.msrb.mxu2 %v2958_v48  ;;  %4888 = vmatpush.msrb.mxu3 %v3111_v49  ;;  %v619_v48 = vld [vmem:[%s8116_s21 + $0x800] sm:$0xff]  ;;  %v754_v49 = vld [vmem:[%s8116_s21 + $0xc38] sm:$0xff] }
 0x2c1   : > { %4830 = vmatmul.f32.vlgmr.msrb.gmra.mxu0 %v7959_v1  ;;  %4870 = vmatmul.f32.vlgmr.msrb.gmra.mxu2 %v7960_v4  ;;  %v745_v1 = vld [vmem:[%s8116_s21 + $0xbf0] sm:$0xff]  ;;  %v898_v4 = vld [vmem:[%s8116_s21 + $0x10b8] sm:$0xff] }
 0x2c2   : > { %4894 = vmatpush.msra.mxu0 %v502_v53  ;;  %4934 = vmatpush.msra.mxu2 %v790_v54  ;;  %v907_v53 = vld [vmem:[%s8116_s21 + $0x1100] sm:$0xff]  ;;  %v9552_v54 = vpop.f32.mrf.mxu0 }
 0x2c3   : > { %4849 = vmatpush.msrb.mxu1 %v2814_v56  ;;  %4889 = vmatpush.msrb.mxu3 %v3102_v0  ;;  %v457_v56 = vld [vmem:[%s8116_s21 + $0x2f0] sm:$0xff]  ;;  %v610_v0 = vld [vmem:[%s8116_s21 + $0x7b8] sm:$0xff] }
 0x2c4   : > { %4850 = vmatmul.f32.vlgmr.msrb.gmra.mxu1 %v7961_v19  ;;  %4890 = vmatmul.f32.vlgmr.msrb.gmra.mxu3 %v7962_v21  ;;  %v889_v19 = vld [vmem:[%s8116_s21 + $0x1070] sm:$0xff]  ;;  %v439_v21 = vld [vmem:[%s8116_s21 + $0x260] sm:$0xff] }
 0x2c5   : > { %4895 = vmatpush.msra.mxu0 %v493_v6  ;;  %4914 = vmatpush.msra.mxu1 %v646_v7  ;;  %v9558_v6 = vpop.f32.mrf.mxu2  ;;  %v448_v7 = vld [vmem:[%s8116_s21 + $0x2a8] sm:$0xff] }
 0x2c6   : > { %4935 = vmatpush.msra.mxu2 %v781_v11  ;;  %4954 = vmatpush.msra.mxu3 %v934_v12  ;;  %v601_v11 = vld [vmem:[%s8116_s21 + $0x770] sm:$0xff]  ;;  %v736_v12 = vld [vmem:[%s8116_s21 + $0xba8] sm:$0xff] }
 0x2c7   : > { %4896 = vmatpush.msra.mxu0 %v484_v23  ;;  %4915 = vmatpush.msra.mxu1 %v637_v26  ;;  %v592_v23 = vld [vmem:[%s8116_s21 + $0x728] sm:$0xff]  ;;  %v727_v26 = vld [vmem:[%s8116_s21 + $0xb60] sm:$0xff] }
 0x2c8   : > { %4936 = vmatpush.msra.mxu2 %v772_v27  ;;  %4955 = vmatpush.msra.mxu3 %v925_v29  ;;  %v880_v27 = vld [vmem:[%s8116_s21 + $0x1028] sm:$0xff]  ;;  %v9568_v29 = vpop.f32.mrf.mxu3 }
 0x2c9   : > { %4897 = vmatpush.msra.mxu0 %v475_v31  ;;  %4916 = vmatpush.msra.mxu1 %v628_v33  ;;  %v9570_v31 = vpop.f32.mrf.mxu1  ;;  %v430_v33 = vld [vmem:[%s8116_s21 + $0x218] sm:$0xff] }
 0x2ca   : > { %4937 = vmatpush.msra.mxu2 %v763_v34  ;;  %4956 = vmatpush.msra.mxu3 %v916_v36  ;;  %v583_v34 = vld [vmem:[%s8116_s21 + $0x6e0] sm:$0xff]  ;;  %v718_v36 = vld [vmem:[%s8116_s21 + $0xb18] sm:$0xff] }
 0x2cb   : > { %4898 = vmatpush.msra.mxu0 %v466_v45  ;;  %4917 = vmatpush.msra.mxu1 %v619_v48  ;;  %v871_v45 = vld [vmem:[%s8116_s21 + $0xfe0] sm:$0xff]  ;;  %v9576_v48 = vpop.f32.mrf.mxu0 }
 0x2cc   : > { %4938 = vmatpush.msra.mxu2 %v754_v49  ;;  %4957 = vmatpush.msra.mxu3 %v907_v53  ;;  %v421_v49 = vld [vmem:[%s8116_s21 + $0x1d0] sm:$0xff]  ;;  %v574_v53 = vld [vmem:[%s8116_s21 + $0x698] sm:$0xff] }
 0x2cd   : > { %4899 = vmatpush.msra.mxu0 %v457_v56  ;;  %4918 = vmatpush.msra.mxu1 %v610_v0  ;;  %v709_v56 = vld [vmem:[%s8116_s21 + $0xad0] sm:$0xff]  ;;  %v862_v0 = vld [vmem:[%s8116_s21 + $0xf98] sm:$0xff] }
 0x2ce   : > { %4939 = vmatpush.msra.mxu2 %v745_v1  ;;  %4958 = vmatpush.msra.mxu3 %v898_v4  ;;  %v9582_v1 = vpop.f32.mrf.mxu2  ;;  %v412_v4 = vld [vmem:[%s8116_s21 + $0x188] sm:$0xff] }
 0x2cf   : > { %4900 = vmatpush.msra.mxu0 %v448_v7  ;;  %4919 = vmatpush.msra.mxu1 %v601_v11  ;;  %12447 = vst [vmem:[#allocation16_spill] sm:$0xff] %v9582_v1  ;;  %v565_v7 = vld [vmem:[%s8116_s21 + $0x650] sm:$0xff]  ;;  %v700_v11 = vld [vmem:[%s8116_s21 + $0xa88] sm:$0xff] }
 0x2d0   : > { %4940 = vmatpush.msra.mxu2 %v736_v12  ;;  %4959 = vmatpush.msra.mxu3 %v889_v19  ;;  %v853_v12 = vld [vmem:[%s8116_s21 + $0xf50] sm:$0xff]  ;;  %v403_v19 = vld [vmem:[%s8116_s21 + $0x140] sm:$0xff]  ;;  %v952_v1 = vld [vmem:[%s8116_s21 + $0x1268] sm:$0xff] }
 0x2d1   : > { %4901 = vmatpush.msra.mxu0 %v439_v21  ;;  %4920 = vmatpush.msra.mxu1 %v592_v23  ;;  %v556_v21 = vld [vmem:[%s8116_s21 + $0x608] sm:$0xff]  ;;  %v691_v23 = vld [vmem:[%s8116_s21 + $0xa40] sm:$0xff] }
 0x2d2   : > { %4941 = vmatpush.msra.mxu2 %v727_v26  ;;  %4960 = vmatpush.msra.mxu3 %v880_v27  ;;  %v844_v26 = vld [vmem:[%s8116_s21 + $0xf08] sm:$0xff]  ;;  %v9592_v27 = vpop.f32.mrf.mxu3 }
 0x2d3   : > { %4902 = vmatpush.msra.mxu0 %v430_v33  ;;  %4921 = vmatpush.msra.mxu1 %v583_v34  ;;  %12448 = vst [vmem:[#allocation17_spill] sm:$0xff] %v9592_v27  ;;  %v9594_v33 = vpop.f32.mrf.mxu1  ;;  %v394_v34 = vld [vmem:[%s8116_s21 + $0xf8] sm:$0xff]  ;;  %v1132_v27 = vld [vmem:[%s8116_s21 + $0x1808] sm:$0xff] }
 0x2d4   : > { %4942 = vmatpush.msra.mxu2 %v718_v36  ;;  %4961 = vmatpush.msra.mxu3 %v871_v45  ;;  %12449 = vst [vmem:[#allocation18_spill] sm:$0xff] %v9594_v33  ;;  %v547_v36 = vld [vmem:[%s8116_s21 + $0x5c0] sm:$0xff]  ;;  %v682_v45 = vld [vmem:[%s8116_s21 + $0x9f8] sm:$0xff]  ;;  %v1168_v33 = vld [vmem:[%s8116_s21 + $0x1928] sm:$0xff] }
 0x2d5   : > { %4903 = vmatpush.msra.mxu0 %v421_v49  ;;  %4922 = vmatpush.msra.mxu1 %v574_v53  ;;  %v835_v49 = vld [vmem:[%s8116_s21 + $0xec0] sm:$0xff]  ;;  %v9600_v53 = vpop.f32.mrf.mxu0 }
 0x2d6   : > { %4943 = vmatpush.msra.mxu2 %v709_v56  ;;  %4962 = vmatpush.msra.mxu3 %v862_v0  ;;  %12450 = vst [vmem:[#allocation19_spill] sm:$0xff] %v9600_v53  ;;  %v385_v56 = vld [vmem:[%s8116_s21 + $0xb0] sm:$0xff]  ;;  %v538_v0 = vld [vmem:[%s8116_s21 + $0x578] sm:$0xff]  ;;  %v988_v53 = vld [vmem:[%s8116_s21 + $0x1388] sm:$0xff] }
 0x2d7   : > { %4904 = vmatpush.msra.mxu0 %v412_v4  ;;  %4923 = vmatpush.msra.mxu1 %v565_v7  ;;  %v673_v4 = vld [vmem:[%s8116_s21 + $0x9b0] sm:$0xff]  ;;  %v826_v7 = vld [vmem:[%s8116_s21 + $0xe78] sm:$0xff] }
 0x2d8   : > { %4944 = vmatpush.msra.mxu2 %v700_v11  ;;  %4963 = vmatpush.msra.mxu3 %v853_v12  ;;  %v9606_v11 = vpop.f32.mrf.mxu2  ;;  %v376_v12 = vld [vmem:[%s8116_s21 + $0x68] sm:$0xff] }
 0x2d9   : > { %4905 = vmatpush.msra.mxu0 %v403_v19  ;;  %4924 = vmatpush.msra.mxu1 %v556_v21  ;;  %12451 = vst [vmem:[#allocation20_spill] sm:$0xff] %v9606_v11  ;;  %v529_v19 = vld [vmem:[%s8116_s21 + $0x530] sm:$0xff]  ;;  %v664_v21 = vld [vmem:[%s8116_s21 + $0x968] sm:$0xff]  ;;  %v1186_v11 = vld [vmem:[%s8116_s21 + $0x19b8] sm:$0xff] }
 0x2da   : > { %4945 = vmatpush.msra.mxu2 %v691_v23  ;;  %4964 = vmatpush.msra.mxu3 %v844_v26  ;;  %v817_v23 = vld [vmem:[%s8116_s21 + $0xe30] sm:$0xff]  ;;  %v367_v26 = vld [vmem:[%s8116_s21 + $0x20] sm:$0xff] }
 0x2db   : > { %4906 = vmatpush.msra.mxu0 %v394_v34  ;;  %4925 = vmatpush.msra.mxu1 %v547_v36  ;;  %v520_v34 = vld [vmem:[%s8116_s21 + $0x4e8] sm:$0xff]  ;;  %v655_v36 = vld [vmem:[%s8116_s21 + $0x920] sm:$0xff] }
 0x2dc   : > { %4946 = vmatpush.msra.mxu2 %v682_v45  ;;  %4965 = vmatpush.msra.mxu3 %v835_v49  ;;  %v808_v45 = vld [vmem:[%s8116_s21 + $0xde8] sm:$0xff]  ;;  %v9616_v49 = vpop.f32.mrf.mxu3 }
 0x2dd   : > { %4907 = vmatpush.msra.mxu0 %v385_v56  ;;  %4926 = vmatpush.msra.mxu1 %v538_v0  ;;  %12452 = vst [vmem:[#allocation21_spill] sm:$0xff] %v9616_v49  ;;  %v9618_v56 = vpop.f32.mrf.mxu1  ;;  %v1078_v0 = vld [vmem:[%s8116_s21 + $0x1658] sm:$0xff]  ;;  %v1213_v49 = vld [vmem:[%s8116_s21 + $0x1a90] sm:$0xff] }
 0x2de   : > { %4947 = vmatpush.msra.mxu2 %v673_v4  ;;  %4966 = vmatpush.msra.mxu3 %v826_v7  ;;  %v1366_v4 = vld [vmem:[%s8116_s21 + $0x1f58] sm:$0xff]  ;;  %v511_v7 = vld [vmem:[%s8116_s21 + $0x4a0] sm:$0xff] }
 0x2df   : > { %4908 = vmatpush.msra.mxu0 %v376_v12  ;;  %4927 = vmatpush.msra.mxu1 %v529_v19  ;;  %v799_v12 = vld [vmem:[%s8116_s21 + $0xda0] sm:$0xff]  ;;  %v9624_v19 = vpop.f32.mrf.mxu0 }
 0x2e0   : > { %4948 = vmatpush.msra.mxu2 %v664_v21  ;;  %4967 = vmatpush.msra.mxu3 %v817_v23  ;;  %v1357_v21 = vld [vmem:[%s8116_s21 + $0x1f10] sm:$0xff]  ;;  %v1510_v23 = vld [vmem:[%s8116_s21 + $0x23d8] sm:$0xff] }
 0x2e1   : > { %4909 = vmatpush.msra.mxu0 %v367_v26  ;;  %4928 = vmatpush.msra.mxu1 %v520_v34  ;;  %v9630_v26 = vpop.f32.mrf.mxu2  ;;  %v1060_v34 = vld [vmem:[%s8116_s21 + $0x15c8] sm:$0xff] }
 0x2e2   : > { %4949 = vmatpush.msra.mxu2 %v655_v36  ;;  %4968 = vmatpush.msra.mxu3 %v808_v45  ;;  %v1348_v36 = vld [vmem:[%s8116_s21 + $0x1ec8] sm:$0xff]  ;;  %v1501_v45 = vld [vmem:[%s8116_s21 + $0x2390] sm:$0xff] }
 0x2e3   : > { %4974 = vmatpush.msrb.mxu0 %v1078_v0  ;;  %4929 = vmatpush.msra.mxu1 %v511_v7  ;;  %v1051_v0 = vld [vmem:[%s8116_s21 + $0x1580] sm:$0xff] }
 0x2e4   : > { %5014 = vmatpush.msrb.mxu2 %v1366_v4  ;;  %4969 = vmatpush.msra.mxu3 %v799_v12  ;;  %v1204_v4 = vld [vmem:[%s8116_s21 + $0x1a48] sm:$0xff]  ;;  %v1339_v7 = vld [vmem:[%s8116_s21 + $0x1e80] sm:$0xff]  ;;  %v9640_v44 = vpop.f32.mrf.mxu3 }
 0x2e5   : > { %4975 = vmatpush.msrb.mxu0 %v1069_v13  ;;  %4994 = vmatpush.msrb.mxu1 %v1222_v63  ;;  %v1492_v12 = vld [vmem:[%s8116_s21 + $0x2348] sm:$0xff]  ;;  %v1042_v63 = vld [vmem:[%s8116_s21 + $0x1538] sm:$0xff]  ;;  %v1195_v13 = vld [vmem:[%s8116_s21 + $0x1a00] sm:$0xff] }
 0x2e6   : > { %5015 = vmatpush.msrb.mxu2 %v1357_v21  ;;  %5034 = vmatpush.msrb.mxu3 %v1510_v23  ;;  %v1330_v21 = vld [vmem:[%s8116_s21 + $0x1e38] sm:$0xff]  ;;  %v1483_v23 = vld [vmem:[%s8116_s21 + $0x2300] sm:$0xff] }
 0x2e7   : > { %4976 = vmatpush.msrb.mxu0 %v1060_v34  ;;  %4995 = vmatpush.msrb.mxu1 %v1213_v49  ;;  %v9646_v34 = vpop.f32.mrf.mxu1  ;;  %v1033_v49 = vld [vmem:[%s8116_s21 + $0x14f0] sm:$0xff] }
 0x2e8   : > { %5016 = vmatpush.msrb.mxu2 %v1348_v36  ;;  %5035 = vmatpush.msrb.mxu3 %v1501_v45  ;;  %v1321_v36 = vld [vmem:[%s8116_s21 + $0x1df0] sm:$0xff]  ;;  %v1474_v45 = vld [vmem:[%s8116_s21 + $0x22b8] sm:$0xff] }
 0x2e9   : > { %4977 = vmatpush.msrb.mxu0 %v1051_v0  ;;  %4996 = vmatpush.msrb.mxu1 %v1204_v4  ;;  %v9652_v0 = vpop.f32.mrf.mxu0  ;;  %v1024_v4 = vld [vmem:[%s8116_s21 + $0x14a8] sm:$0xff] }
 0x2ea   : > { %5017 = vmatpush.msrb.mxu2 %v1339_v7  ;;  %5036 = vmatpush.msrb.mxu3 %v1492_v12  ;;  %v1312_v7 = vld [vmem:[%s8116_s21 + $0x1da8] sm:$0xff]  ;;  %v1465_v12 = vld [vmem:[%s8116_s21 + $0x2270] sm:$0xff] }
 0x2eb   : > { %4978 = vmatpush.msrb.mxu0 %v1042_v63  ;;  %4997 = vmatpush.msrb.mxu1 %v1195_v13  ;;  %v9658_v63 = vpop.f32.mrf.mxu2  ;;  %v1015_v13 = vld [vmem:[%s8116_s21 + $0x1460] sm:$0xff] }
 0x2ec   : > { %5018 = vmatpush.msrb.mxu2 %v1330_v21  ;;  %5037 = vmatpush.msrb.mxu3 %v1483_v23  ;;  %v1303_v21 = vld [vmem:[%s8116_s21 + $0x1d60] sm:$0xff]  ;;  %v1456_v23 = vld [vmem:[%s8116_s21 + $0x2228] sm:$0xff] }
 0x2ed   : > { %4979 = vmatpush.msrb.mxu0 %v1033_v49  ;;  %4998 = vmatpush.msrb.mxu1 %v1186_v11  ;;  %v1006_v11 = vld [vmem:[%s8116_s21 + $0x1418] sm:$0xff]  ;;  %v1159_v49 = vld [vmem:[%s8116_s21 + $0x18e0] sm:$0xff] }
 0x2ee   : > { %5019 = vmatpush.msrb.mxu2 %v1321_v36  ;;  %5038 = vmatpush.msrb.mxu3 %v1474_v45  ;;  %v1447_v36 = vld [vmem:[%s8116_s21 + $0x21e0] sm:$0xff]  ;;  %v9668_v45 = vpop.f32.mrf.mxu3 }
 0x2ef   : > { %4980 = vmatpush.msrb.mxu0 %v1024_v4  ;;  %4999 = vmatpush.msrb.mxu1 %v1177_v51  ;;  %v9670_v4 = vpop.f32.mrf.mxu1  ;;  %v997_v51 = vld [vmem:[%s8116_s21 + $0x13d0] sm:$0xff] }
 0x2f0   : > { %5020 = vmatpush.msrb.mxu2 %v1312_v7  ;;  %5039 = vmatpush.msrb.mxu3 %v1465_v12  ;;  %v1150_v7 = vld [vmem:[%s8116_s21 + $0x1898] sm:$0xff]  ;;  %v1285_v12 = vld [vmem:[%s8116_s21 + $0x1cd0] sm:$0xff] }
 0x2f1   : > { %4981 = vmatpush.msrb.mxu0 %v1015_v13  ;;  %5000 = vmatpush.msrb.mxu1 %v1168_v33  ;;  %v1438_v33 = vld [vmem:[%s8116_s21 + $0x2198] sm:$0xff]  ;;  %v9676_v13 = vpop.f32.mrf.mxu0 }
 0x2f2   : > { %5021 = vmatpush.msrb.mxu2 %v1303_v21  ;;  %5040 = vmatpush.msrb.mxu3 %v1456_v23  ;;  %v1276_v21 = vld [vmem:[%s8116_s21 + $0x1c88] sm:$0xff]  ;;  %v1429_v23 = vld [vmem:[%s8116_s21 + $0x2150] sm:$0xff] }
 0x2f3   : > { %4982 = vmatpush.msrb.mxu0 %v1006_v11  ;;  %5001 = vmatpush.msrb.mxu1 %v1159_v49  ;;  %v9682_v11 = vpop.f32.mrf.mxu2  ;;  %v979_v49 = vld [vmem:[%s8116_s21 + $0x1340] sm:$0xff] }
 0x2f4   : > { %5022 = vmatpush.msrb.mxu2 %v1294_v43  ;;  %5041 = vmatpush.msrb.mxu3 %v1447_v36  ;;  %v1267_v43 = vld [vmem:[%s8116_s21 + $0x1c40] sm:$0xff]  ;;  %v1420_v36 = vld [vmem:[%s8116_s21 + $0x2108] sm:$0xff] }
 0x2f5   : > { %4983 = vmatpush.msrb.mxu0 %v997_v51  ;;  %5002 = vmatpush.msrb.mxu1 %v1150_v7  ;;  %v970_v51 = vld [vmem:[%s8116_s21 + $0x12f8] sm:$0xff]  ;;  %v1123_v7 = vld [vmem:[%s8116_s21 + $0x17c0] sm:$0xff] }
 0x2f6   : > { %5023 = vmatpush.msrb.mxu2 %v1285_v12  ;;  %5042 = vmatpush.msrb.mxu3 %v1438_v33  ;;  %v1411_v12 = vld [vmem:[%s8116_s21 + $0x20c0] sm:$0xff]  ;;  %v9692_v33 = vpop.f32.mrf.mxu3 }
 0x2f7   : > { %4984 = vmatpush.msrb.mxu0 %v988_v53  ;;  %5003 = vmatpush.msrb.mxu1 %v1141_v28  ;;  %v9694_v53 = vpop.f32.mrf.mxu1  ;;  %v961_v28 = vld [vmem:[%s8116_s21 + $0x12b0] sm:$0xff] }
 0x2f8   : > { %5024 = vmatpush.msrb.mxu2 %v1276_v21  ;;  %5043 = vmatpush.msrb.mxu3 %v1429_v23  ;;  %12453 = vst [vmem:[#allocation22_spill] sm:$0xff] %v9694_v53  ;;  %v1114_v21 = vld [vmem:[%s8116_s21 + $0x1778] sm:$0xff]  ;;  %v1249_v23 = vld [vmem:[%s8116_s21 + $0x1bb0] sm:$0xff] }
 0x2f9   : > { %4985 = vmatpush.msrb.mxu0 %v979_v49  ;;  %5004 = vmatpush.msrb.mxu1 %v1132_v27  ;;  %v1402_v49 = vld [vmem:[%s8116_s21 + $0x2078] sm:$0xff]  ;;  %v9700_v27 = vpop.f32.mrf.mxu0  ;;  %v1105_v53 = vld [vmem:[%s8116_s21 + $0x1730] sm:$0xff] }
 0x2fa   : > { %5025 = vmatpush.msrb.mxu2 %v1267_v43  ;;  %5044 = vmatpush.msrb.mxu3 %v1420_v36  ;;  %v1240_v43 = vld [vmem:[%s8116_s21 + $0x1b68] sm:$0xff]  ;;  %v1393_v36 = vld [vmem:[%s8116_s21 + $0x2030] sm:$0xff] }
 0x2fb   : > { %4986 = vmatpush.msrb.mxu0 %v970_v51  ;;  %5005 = vmatpush.msrb.mxu1 %v1123_v7  ;;  %v9706_v22 = vpop.f32.mrf.mxu2  ;;  %v943_v51 = vld [vmem:[%s8116_s21 + $0x1220] sm:$0xff]  ;;  %v1096_v7 = vld [vmem:[%s8116_s21 + $0x16e8] sm:$0xff] }
 0x2fc   : > { %5026 = vmatpush.msrb.mxu2 %v1258_v16  ;;  %5045 = vmatpush.msrb.mxu3 %v1411_v12  ;;  %v1231_v16 = vld [vmem:[%s8116_s21 + $0x1b20] sm:$0xff]  ;;  %v1384_v12 = vld [vmem:[%s8116_s21 + $0x1fe8] sm:$0xff] }
 0x2fd   : > { %4987 = vmatpush.msrb.mxu0 %v961_v28  ;;  %5006 = vmatpush.msrb.mxu1 %v1114_v21  ;;  %v1654_v28 = vld [vmem:[%s8116_s21 + $0x2858] sm:$0xff] }
 0x2fe   : > { %5027 = vmatpush.msrb.mxu2 %v1249_v23  ;;  %5046 = vmatpush.msrb.mxu3 %v1402_v49  ;;  %v9714_v21 = vpop.f32.mrf.mxu3  ;;  %v1375_v49 = vld [vmem:[%s8116_s21 + $0x1fa0] sm:$0xff] }
 0x2ff   : > { %4988 = vmatpush.msrb.mxu0 %v952_v1  ;;  %5007 = vmatpush.msrb.mxu1 %v1105_v53  ;;  %v9716_v23 = vpop.f32.mrf.mxu1  ;;  %v1942_v1 = vld [vmem:[%s8116_s21 + $0x3158] sm:$0xff]  ;;  %v1087_v53 = vld [vmem:[%s8116_s21 + $0x16a0] sm:$0xff] }
 0x300   : > { %5028 = vmatpush.msrb.mxu2 %v1240_v43  ;;  %5047 = vmatpush.msrb.mxu3 %v1393_v36  ;;  %v1645_v36 = vld [vmem:[%s8116_s21 + $0x2810] sm:$0xff] }
 0x301   : > { %4950 = vmatmul.f32.vlgmr.msra.gmra.mxu2 %v8252_v3  ;;  %4989 = vmatpush.msrb.mxu0 %v943_v51  ;;  %v9722_v43 = vpop.f32.mrf.mxu0  ;;  %v1798_v51 = vld [vmem:[%s8116_s21 + $0x2cd8] sm:$0xff]  ;;  %v1789_v3 = vld [vmem:[%s8116_s21 + $0x2c90] sm:$0xff] }
 0x302   : > { %5008 = vmatpush.msrb.mxu1 %v1096_v7  ;;  %5029 = vmatpush.msrb.mxu2 %v1231_v16  ;;  %v1933_v7 = vld [vmem:[%s8116_s21 + $0x3110] sm:$0xff]  ;;  %v2086_v16 = vld [vmem:[%s8116_s21 + $0x35d8] sm:$0xff] }
 0x303   : > { %5048 = vmatpush.msrb.mxu3 %v1384_v12  ;;  %4910 = vmatmul.f32.vlgmr.msra.gmra.mxu0 %v8258_v8  ;;  %v9729_v12 = vpop.f32.mrf.mxu2  ;;  %v1636_v8 = vld [vmem:[%s8116_s21 + $0x27c8] sm:$0xff] }
 0x304   : > { %4970 = vmatmul.f32.vlgmr.msra.gmra.mxu3 %v8261_v9  ;;  %5054 = vmatpush.msra.mxu0 %v1654_v28  ;;  %12454 = vst [vmem:[#allocation23_spill] sm:$0xff] %v9729_v12  ;;  %v1924_v28 = vld [vmem:[%s8116_s21 + $0x30c8] sm:$0xff]  ;;  %v2077_v9 = vld [vmem:[%s8116_s21 + $0x3590] sm:$0xff] }
 0x305   : > { %5094 = vmatpush.msra.mxu2 %v1942_v1  ;;  %5009 = vmatpush.msrb.mxu1 %v1087_v53  ;;  %v3732_v1 = vadd.f32 %v9498_v17, %v9504_v24  ;;  %v1627_v53 = vld [vmem:[%s8116_s21 + $0x2780] sm:$0xff]  ;;  %v2068_v17 = vld [vmem:[%s8116_s21 + $0x3548] sm:$0xff]  ;;  %v1618_v24 = vld [vmem:[%s8116_s21 + $0x2738] sm:$0xff] }
 0x306   : > { %5049 = vmatpush.msrb.mxu3 %v1375_v49  ;;  %4930 = vmatmul.f32.vlgmr.msra.gmra.mxu1 %v8268_v14  ;;  %v1780_v49 = vld [vmem:[%s8116_s21 + $0x2c48] sm:$0xff]  ;;  %v1915_v14 = vld [vmem:[%s8116_s21 + $0x3080] sm:$0xff] }
 0x307   : > { %5055 = vmatpush.msra.mxu0 %v1645_v36  ;;  %5074 = vmatpush.msra.mxu1 %v1798_v51  ;;  %v4132_v36 = vadd.f32 %v9618_v56, %v9624_v19  ;;  %v9743_v51 = vpop.f32.mrf.mxu3  ;;  %v4531_v12 = vpop.f32.mrf.mxu1  ;;  %v1771_v56 = vld [vmem:[%s8116_s21 + $0x2c00] sm:$0xff]  ;;  %v1906_v19 = vld [vmem:[%s8116_s21 + $0x3038] sm:$0xff] }
 0x308   : > { %5095 = vmatpush.msra.mxu2 %v1933_v7  ;;  %5114 = vmatpush.msra.mxu3 %v2086_v16  ;;  %v3332_v16 = vadd.f32 %v9378_v61, %v9384_v2  ;;  %v1600_v61 = vld [vmem:[%s8116_s21 + $0x26a8] sm:$0xff]  ;;  %v1753_v2 = vld [vmem:[%s8116_s21 + $0x2b70] sm:$0xff] }
 0x309   : > { %5056 = vmatpush.msra.mxu0 %v1636_v8  ;;  %5075 = vmatpush.msra.mxu1 %v1789_v3  ;;  %v3752_v3 = vadd.f32 %v9510_v32, %v3732_v1  ;;  %v4511_v8 = vpop.f32.mrf.mxu0  ;;  %v4152_v32 = vadd.f32 %v9630_v26, %v4132_v36  ;;  %v1762_v1 = vld [vmem:[%s8116_s21 + $0x2bb8] sm:$0xff]  ;;  %v1888_v36 = vld [vmem:[%s8116_s21 + $0x2fa8] sm:$0xff] }
 0x30a   : > { %5096 = vmatpush.msra.mxu2 %v1924_v28  ;;  %5115 = vmatpush.msra.mxu3 %v2077_v9  ;;  %v4532_v7 = vadd.f32 %v4531_v12, %v4511_v8  ;;  %v2059_v9 = vld [vmem:[%s8116_s21 + $0x3500] sm:$0xff]  ;;  %v1897_v12 = vld [vmem:[%s8116_s21 + $0x2ff0] sm:$0xff] }
 0x30b   : > { %5030 = vmatmul.f32.vlgmr.msrb.gmra.mxu2 %v8238_v57  ;;  %5057 = vmatpush.msra.mxu0 %v1627_v53  ;;  %v4551_v28 = vpop.f32.mrf.mxu2  ;;  %v2050_v53 = vld [vmem:[%s8116_s21 + $0x34b8] sm:$0xff]  ;;  %v4172_v8 = vadd.f32 %v9640_v44, %v4152_v32  ;;  %v1735_v44 = vld [vmem:[%s8116_s21 + $0x2ae0] sm:$0xff] }
 0x30c   : > { %5076 = vmatpush.msra.mxu1 %v1780_v49  ;;  %5097 = vmatpush.msra.mxu2 %v1915_v14  ;;  %v1609_v14 = vld [vmem:[%s8116_s21 + $0x26f0] sm:$0xff]  ;;  %v3772_v49 = vadd.f32 %v9520_v50, %v3752_v3  ;;  %v4552_v26 = vadd.f32 %v4551_v28, %v4532_v7  ;;  %v1591_v3 = vld [vmem:[%s8116_s21 + $0x2660] sm:$0xff]  ;;  %v2032_v7 = vld [vmem:[%s8116_s21 + $0x3428] sm:$0xff] }
 0x30d   : > { %5116 = vmatpush.msra.mxu3 %v2068_v17  ;;  %4990 = vmatmul.f32.vlgmr.msrb.gmra.mxu0 %v8240_v58  ;;  %v2041_v17 = vld [vmem:[%s8116_s21 + $0x3470] sm:$0xff]  ;;  %v1870_v32 = vld [vmem:[%s8116_s21 + $0x2f18] sm:$0xff]  ;;  %v2023_v28 = vld [vmem:[%s8116_s21 + $0x33e0] sm:$0xff] }
 0x30e   : > { %5050 = vmatmul.f32.vlgmr.msrb.gmra.mxu3 %v8242_v59  ;;  %5058 = vmatpush.msra.mxu0 %v1618_v24  ;;  %v3352_v24 = vadd.f32 %v9390_v10, %v3332_v16  ;;  %v1582_v10 = vld [vmem:[%s8116_s21 + $0x2618] sm:$0xff] }
 0x30f   : > { %5077 = vmatpush.msra.mxu1 %v1771_v56  ;;  %5098 = vmatpush.msra.mxu2 %v1906_v19  ;;  %v4571_v50 = vpop.f32.mrf.mxu3  ;;  %v1744_v56 = vld [vmem:[%s8116_s21 + $0x2b28] sm:$0xff]  ;;  %v1879_v19 = vld [vmem:[%s8116_s21 + $0x2f60] sm:$0xff] }
 0x310   : > { %5117 = vmatpush.msra.mxu3 %v2059_v9  ;;  %5010 = vmatmul.f32.vlgmr.msrb.gmra.mxu1 %v8244_v60  ;;  %v3792_v9 = vadd.f32 %v9528_v5, %v3772_v49  ;;  %v4572_v16 = vadd.f32 %v4571_v50, %v4552_v26  ;;  %v1573_v5 = vld [vmem:[%s8116_s21 + $0x25d0] sm:$0xff]  ;;  %v4611_v50 = vpop.f32.mrf.mxu1 }
 0x311   : > { %5059 = vmatpush.msra.mxu0 %v1609_v14  ;;  %5078 = vmatpush.msra.mxu1 %v1762_v1  ;;  %v3372_v14 = vadd.f32 %v9400_v20, %v3352_v24  ;;  %v4192_v1 = vadd.f32 %v9652_v0, %v4172_v8  ;;  %v1861_v49 = vld [vmem:[%s8116_s21 + $0x2ed0] sm:$0xff]  ;;  %v1564_v20 = vld [vmem:[%s8116_s21 + $0x2588] sm:$0xff] }
 0x312   : > { %5099 = vmatpush.msra.mxu2 %v1897_v12  ;;  %5118 = vmatpush.msra.mxu3 %v2050_v53  ;;  %v4591_v12 = vpop.f32.mrf.mxu0  ;;  %v1726_v53 = vld [vmem:[%s8116_s21 + $0x2a98] sm:$0xff]  ;;  %v1717_v0 = vld [vmem:[%s8116_s21 + $0x2a50] sm:$0xff] }
 0x313   : > { %5060 = vmatpush.msra.mxu0 %v1600_v61  ;;  %5079 = vmatpush.msra.mxu1 %v1753_v2  ;;  %v2014_v61 = vld [vmem:[%s8116_s21 + $0x3398] sm:$0xff]  ;;  %v3812_v2 = vadd.f32 %v9524_v55, %v3792_v9  ;;  %v4592_v26 = vadd.f32 %v4591_v12, %v4572_v16  ;;  %v3392_v24 = vadd.f32 %v9412_v30, %v3372_v14  ;;  %v1555_v55 = vld [vmem:[%s8116_s21 + $0x2540] sm:$0xff] }
 0x314   : > { %5100 = vmatpush.msra.mxu2 %v1888_v36  ;;  %5119 = vmatpush.msra.mxu3 %v2041_v17  ;;  %v1852_v36 = vld [vmem:[%s8116_s21 + $0x2e88] sm:$0xff]  ;;  %v2005_v17 = vld [vmem:[%s8116_s21 + $0x3350] sm:$0xff]  ;;  %v4212_v8 = vadd.f32 %v9646_v34, %v4192_v1  ;;  %v1546_v30 = vld [vmem:[%s8116_s21 + $0x24f8] sm:$0xff] }
 0x315   : > { %5061 = vmatpush.msra.mxu0 %v1591_v3  ;;  %5080 = vmatpush.msra.mxu1 %v1744_v56  ;;  %v1708_v3 = vld [vmem:[%s8116_s21 + $0x2a08] sm:$0xff]  ;;  %v1843_v56 = vld [vmem:[%s8116_s21 + $0x2e40] sm:$0xff]  ;;  %v4612_v9 = vadd.f32 %v4611_v50, %v4592_v26  ;;  %v3412_v16 = vadd.f32 %v9406_v25, %v3392_v24  ;;  %v1690_v14 = vld [vmem:[%s8116_s21 + $0x2978] sm:$0xff] }
 0x316   : > { %5101 = vmatpush.msra.mxu2 %v1879_v19  ;;  %5120 = vmatpush.msra.mxu3 %v2032_v7  ;;  %v1996_v19 = vld [vmem:[%s8116_s21 + $0x3308] sm:$0xff]  ;;  %v3832_v7 = vadd.f32 %v9534_v18, %v3812_v2  ;;  %v1699_v34 = vld [vmem:[%s8116_s21 + $0x29c0] sm:$0xff]  ;;  %v1537_v18 = vld [vmem:[%s8116_s21 + $0x24b0] sm:$0xff] }
 0x317   : > { %5062 = vmatpush.msra.mxu0 %v1582_v10  ;;  %5081 = vmatpush.msra.mxu1 %v1735_v44  ;;  %v1834_v10 = vld [vmem:[%s8116_s21 + $0x2df8] sm:$0xff]  ;;  %v1987_v44 = vld [vmem:[%s8116_s21 + $0x32c0] sm:$0xff]  ;;  %v1825_v1 = vld [vmem:[%s8116_s21 + $0x2db0] sm:$0xff]  ;;  %v3432_v2 = vadd.f32 %v9418_v35, %v3412_v16 }
 0x318   : > { %5102 = vmatpush.msra.mxu2 %v1870_v32  ;;  %5121 = vmatpush.msra.mxu3 %v2023_v28  ;;  %v4232_v32 = vadd.f32 %v9658_v63, %v4212_v8  ;;  %v4631_v28 = vpop.f32.mrf.mxu2  ;;  %v1978_v12 = vld [vmem:[%s8116_s21 + $0x3278] sm:$0xff]  ;;  %v1528_v25 = vld [vmem:[%s8116_s21 + $0x2468] sm:$0xff]  ;;  %v1519_v26 = vld [vmem:[%s8116_s21 + $0x2420] sm:$0xff] }
 0x319   : > { %5063 = vmatpush.msra.mxu0 %v1573_v5  ;;  %5082 = vmatpush.msra.mxu1 %v1726_v53  ;;  %v3852_v5 = vadd.f32 %v9544_v37, %v3832_v7  ;;  %v1681_v53 = vld [vmem:[%s8116_s21 + $0x2930] sm:$0xff]  ;;  %v4632_v63 = vadd.f32 %v4631_v28, %v4612_v9  ;;  %v4651_v37 = vpop.f32.mrf.mxu3  ;;  %v1960_v24 = vld [vmem:[%s8116_s21 + $0x31e8] sm:$0xff]  ;;  %v2518_v50 = vld [vmem:[%s8116_s21 + $0x4358] sm:$0xff] }
 0x31a   : > { %5103 = vmatpush.msra.mxu2 %v1861_v49  ;;  %5122 = vmatpush.msra.mxu3 %v2014_v61  ;;  %v1816_v49 = vld [vmem:[%s8116_s21 + $0x2d68] sm:$0xff]  ;;  %v1969_v61 = vld [vmem:[%s8116_s21 + $0x3230] sm:$0xff]  ;;  %v4671_v35 = vpop.f32.mrf.mxu0  ;;  %v2374_v9 = vld [vmem:[%s8116_s21 + $0x3ed8] sm:$0xff] }
 0x31b   : > { %5064 = vmatpush.msra.mxu0 %v1564_v20  ;;  %5083 = vmatpush.msra.mxu1 %v1717_v0  ;;  %v3872_v20 = vadd.f32 %v9552_v54, %v3852_v5  ;;  %v4252_v0 = vadd.f32 %v9668_v45, %v4232_v32  ;;  %v4652_v54 = vadd.f32 %v4651_v37, %v4632_v63  ;;  %v2230_v45 = vld [vmem:[%s8116_s21 + $0x3a58] sm:$0xff]  ;;  %v2500_v28 = vld [vmem:[%s8116_s21 + $0x42c8] sm:$0xff] }
 0x31c   : > { %5104 = vmatpush.msra.mxu2 %v1852_v36  ;;  %5123 = vmatpush.msra.mxu3 %v2005_v17  ;;  %v1672_v36 = vld [vmem:[%s8116_s21 + $0x28e8] sm:$0xff]  ;;  %v1807_v17 = vld [vmem:[%s8116_s21 + $0x2d20] sm:$0xff] }
 0x31d   : > { %5065 = vmatpush.msra.mxu0 %v1555_v55  ;;  %5084 = vmatpush.msra.mxu1 %v1708_v3  ;;  %v4272_v8 = vadd.f32 %v9676_v13, %v4252_v0  ;;  %v3452_v55 = vadd.f32 %v9426_v46, %v3432_v2  ;;  %v3892_v3 = vadd.f32 %v9546_v38, %v3872_v20  ;;  %v1951_v13 = vld [vmem:[%s8116_s21 + $0x31a0] sm:$0xff]  ;;  %v4691_v38 = vpop.f32.mrf.mxu1  ;;  %v2482_v20 = vld [vmem:[%s8116_s21 + $0x4238] sm:$0xff] }
 0x31e   : > { %5105 = vmatpush.msra.mxu2 %v1843_v56  ;;  %5124 = vmatpush.msra.mxu3 %v1996_v19  ;;  %v1663_v56 = vld [vmem:[%s8116_s21 + $0x28a0] sm:$0xff]  ;;  %v4672_v19 = vadd.f32 %v4671_v35, %v4652_v54  ;;  %v2329_v35 = vld [vmem:[%s8116_s21 + $0x3d70] sm:$0xff] }
 0x31f   : > { %5066 = vmatpush.msra.mxu0 %v1546_v30  ;;  %5085 = vmatpush.msra.mxu1 %v1699_v34  ;;  %v3472_v7 = vadd.f32 %v9432_v52, %v3452_v55  ;;  %v3912_v30 = vadd.f32 %v9558_v6, %v3892_v3  ;;  %v4292_v46 = vadd.f32 %v9670_v4, %v4272_v8  ;;  %v2221_v34 = vld [vmem:[%s8116_s21 + $0x3a10] sm:$0xff]  ;;  %v2212_v6 = vld [vmem:[%s8116_s21 + $0x39c8] sm:$0xff]  ;;  %v2347_v2 = vld [vmem:[%s8116_s21 + $0x3e00] sm:$0xff] }
 0x320   : > { %5106 = vmatpush.msra.mxu2 %v1834_v10  ;;  %5125 = vmatpush.msra.mxu3 %v1987_v44  ;;  %v2509_v10 = vld [vmem:[%s8116_s21 + $0x4310] sm:$0xff]  ;;  %v2662_v44 = vld [vmem:[%s8116_s21 + $0x47d8] sm:$0xff]  ;;  %v4711_v16 = vpop.f32.mrf.mxu2  ;;  %v4692_v32 = vadd.f32 %v4691_v38, %v4672_v19  ;;  %v2635_v0 = vld [vmem:[%s8116_s21 + $0x4700] sm:$0xff] }
 0x321   : > { %5067 = vmatpush.msra.mxu0 %v1537_v18  ;;  %5086 = vmatpush.msra.mxu1 %v1690_v14  ;;  %v4312_v52 = vadd.f32 %v9682_v11, %v4292_v46  ;;  %v2365_v4 = vld [vmem:[%s8116_s21 + $0x3e90] sm:$0xff]  ;;  %v3492_v14 = vadd.f32 %v9428_v47, %v3472_v7  ;;  %v2203_v11 = vld [vmem:[%s8116_s21 + $0x3980] sm:$0xff]  ;;  %v2608_v38 = vld [vmem:[%s8116_s21 + $0x4628] sm:$0xff] }
 0x322   : > { %5107 = vmatpush.msra.mxu2 %v1825_v1  ;;  %5126 = vmatpush.msra.mxu3 %v1978_v12  ;;  %v2653_v18 = vld [vmem:[%s8116_s21 + $0x4790] sm:$0xff]  ;;  %v3932_v1 = vadd.f32 %v9568_v29, %v3912_v30  ;;  %v2356_v12 = vld [vmem:[%s8116_s21 + $0x3e48] sm:$0xff]  ;;  %v4712_v5 = vadd.f32 %v4711_v16, %v4692_v32  ;;  %v4751_v37 = vpop.f32.mrf.mxu0  ;;  %v2167_v7 = vld [vmem:[%s8116_s21 + $0x3860] sm:$0xff] }
 0x323   : > { %5068 = vmatpush.msra.mxu0 %v1528_v25  ;;  %5087 = vmatpush.msra.mxu1 %v1681_v53  ;;  %v2491_v25 = vld [vmem:[%s8116_s21 + $0x4280] sm:$0xff]  ;;  %v2644_v53 = vld [vmem:[%s8116_s21 + $0x4748] sm:$0xff]  ;;  %v3512_v63 = vadd.f32 %v9438_v62, %v3492_v14  ;;  %v4332_v29 = vadd.f32 %v9692_v33, %v4312_v52  ;;  %v2338_v33 = vld [vmem:[%s8116_s21 + $0x3db8] sm:$0xff] }
 0x324   : > { %5108 = vmatpush.msra.mxu2 %v1816_v49  ;;  %5127 = vmatpush.msra.mxu3 %v1969_v61  ;;  %v3952_v47 = vadd.f32 %v9576_v48, %v3932_v1  ;;  %v4731_v49 = vpop.f32.mrf.mxu3  ;;  %v2194_v61 = vld [vmem:[%s8116_s21 + $0x3938] sm:$0xff]  ;;  %v2185_v48 = vld [vmem:[%s8116_s21 + $0x38f0] sm:$0xff]  ;;  %v12455_v55 = vld [vmem:[#allocation9_spill] sm:$0xff] }
 0x325   : > { %5069 = vmatpush.msra.mxu0 %v1519_v26  ;;  %5088 = vmatpush.msra.mxu1 %v1672_v36  ;;  %v4352_v62 = vadd.f32 %v9700_v27, %v4332_v29  ;;  %v4732_v26 = vadd.f32 %v4731_v49, %v4712_v5  ;;  %v2473_v36 = vld [vmem:[%s8116_s21 + $0x41f0] sm:$0xff]  ;;  %v2176_v27 = vld [vmem:[%s8116_s21 + $0x38a8] sm:$0xff]  ;;  %v4771_v19 = vpop.f32.mrf.mxu1  ;;  %v2455_v46 = vld [vmem:[%s8116_s21 + $0x4160] sm:$0xff] }
 0x326   : > { %5109 = vmatpush.msra.mxu2 %v1807_v17  ;;  %5128 = vmatpush.msra.mxu3 %v1960_v24  ;;  %v2626_v17 = vld [vmem:[%s8116_s21 + $0x46b8] sm:$0xff]  ;;  %v3532_v24 = vadd.f32 %v9448_v15, %v3512_v63  ;;  %v3972_v8 = vadd.f32 %v9570_v31, %v3952_v47  ;;  %v2320_v30 = vld [vmem:[%s8116_s21 + $0x3d28] sm:$0xff] }
 0x327   : > { %5070 = vmatmul.f32.vlgmr.msra.gmra.mxu0 %v8299_v39  ;;  %5110 = vmatmul.f32.vlgmr.msra.gmra.mxu2 %v8301_v40  ;;  %v4752_v54 = vadd.f32 %v4751_v37, %v4732_v26  ;;  %v2446_v16 = vld [vmem:[%s8116_s21 + $0x4118] sm:$0xff]  ;;  %v12460_v5 = vld [vmem:[#allocation10_spill] sm:$0xff] }
 0x328   : > { %5134 = vmatpush.msrb.mxu0 %v2230_v45  ;;  %5174 = vmatpush.msrb.mxu2 %v2518_v50  ;;  %v2464_v45 = vld [vmem:[%s8116_s21 + $0x41a8] sm:$0xff]  ;;  %v2617_v50 = vld [vmem:[%s8116_s21 + $0x4670] sm:$0xff]  ;;  %v3552_v3 = vadd.f32 %v12455_v55, %v3532_v24  ;;  %v2302_v14 = vld [vmem:[%s8116_s21 + $0x3c98] sm:$0xff] }
 0x329   : > { %5089 = vmatpush.msra.mxu1 %v1663_v56  ;;  %5129 = vmatpush.msra.mxu3 %v1951_v13  ;;  %v12456_v56 = vld [vmem:[#allocation16_spill] sm:$0xff]  ;;  %v12457_v13 = vld [vmem:[#allocation22_spill] sm:$0xff]  ;;  %v4772_v52 = vadd.f32 %v4771_v19, %v4752_v54  ;;  %v12462_v26 = vld [vmem:[#allocation11_spill] sm:$0xff] }
 0x32a   : > { %5090 = vmatmul.f32.vlgmr.msra.gmra.mxu1 %v8304_v41  ;;  %5130 = vmatmul.f32.vlgmr.msra.gmra.mxu3 %v8306_v42  ;;  %v3992_v15 = vadd.f32 %v12456_v56, %v3972_v8  ;;  %v4372_v31 = vadd.f32 %v12457_v13, %v4352_v62  ;;  %v2140_v49 = vld [vmem:[%s8116_s21 + $0x3788] sm:$0xff]  ;;  %v2131_v62 = vld [vmem:[%s8116_s21 + $0x3740] sm:$0xff]  ;;  %v2113_v13 = vld [vmem:[%s8116_s21 + $0x36b0] sm:$0xff] }
 0x32b   : > { %5135 = vmatpush.msrb.mxu0 %v2221_v34  ;;  %5154 = vmatpush.msrb.mxu1 %v2374_v9  ;;  %v4791_v9 = vpop.f32.mrf.mxu2  ;;  %v2275_v8 = vld [vmem:[%s8116_s21 + $0x3bc0] sm:$0xff]  ;;  %v2401_v19 = vld [vmem:[%s8116_s21 + $0x3fb0] sm:$0xff] }
 0x32c   : > { %5175 = vmatpush.msrb.mxu2 %v2509_v10  ;;  %5194 = vmatpush.msrb.mxu3 %v2662_v44  ;;  %v4392_v34 = vadd.f32 %v9706_v22, %v4372_v31  ;;  %v2158_v10 = vld [vmem:[%s8116_s21 + $0x3818] sm:$0xff]  ;;  %v2311_v44 = vld [vmem:[%s8116_s21 + $0x3ce0] sm:$0xff]  ;;  %v2149_v22 = vld [vmem:[%s8116_s21 + $0x37d0] sm:$0xff]  ;;  %v4792_v1 = vadd.f32 %v4791_v9, %v4772_v52  ;;  %v4811_v29 = vpop.f32.mrf.mxu3 }
 0x32d   : > { %5136 = vmatpush.msrb.mxu0 %v2212_v6  ;;  %5155 = vmatpush.msrb.mxu1 %v2365_v4  ;;  %v2599_v6 = vld [vmem:[%s8116_s21 + $0x45e0] sm:$0xff]  ;;  %v2266_v31 = vld [vmem:[%s8116_s21 + $0x3b78] sm:$0xff]  ;;  %v2392_v9 = vld [vmem:[%s8116_s21 + $0x3f68] sm:$0xff] }
 0x32e   : > { %5176 = vmatpush.msrb.mxu2 %v2500_v28  ;;  %5195 = vmatpush.msrb.mxu3 %v2653_v18  ;;  %v12458_v4 = vld [vmem:[#allocation8_spill] sm:$0xff]  ;;  %v12459_v28 = vld [vmem:[#allocation17_spill] sm:$0xff]  ;;  %v4412_v47 = vadd.f32 %v9714_v21, %v4392_v34  ;;  %v4812_v37 = vadd.f32 %v4811_v29, %v4792_v1 }
 0x32f   : > { %5137 = vmatpush.msrb.mxu0 %v2203_v11  ;;  %5156 = vmatpush.msrb.mxu1 %v2356_v12  ;;  %v3572_v32 = vadd.f32 %v12458_v4, %v3552_v3  ;;  %v4012_v18 = vadd.f32 %v12459_v28, %v3992_v15  ;;  %v2437_v11 = vld [vmem:[%s8116_s21 + $0x40d0] sm:$0xff]  ;;  %v2590_v12 = vld [vmem:[%s8116_s21 + $0x4598] sm:$0xff]  ;;  %v2284_v21 = vld [vmem:[%s8116_s21 + $0x3c08] sm:$0xff] }
 0x330   : > { %5177 = vmatpush.msrb.mxu2 %v2491_v25  ;;  %5196 = vmatpush.msrb.mxu3 %v2644_v53  ;;  %v12461_v53 = vld [vmem:[#allocation19_spill] sm:$0xff]  ;;  %v2563_v54 = vld [vmem:[%s8116_s21 + $0x44c0] sm:$0xff]  ;;  %v2104_v34 = vld [vmem:[%s8116_s21 + $0x3668] sm:$0xff] }
 0x331   : > { %5138 = vmatpush.msrb.mxu0 %v2194_v61  ;;  %5157 = vmatpush.msrb.mxu1 %v2347_v2  ;;  %v3592_v25 = vadd.f32 %v12460_v5, %v3572_v32  ;;  %v4032_v63 = vadd.f32 %v12461_v53, %v4012_v18  ;;  %v2293_v61 = vld [vmem:[%s8116_s21 + $0x3c50] sm:$0xff]  ;;  %v2428_v2 = vld [vmem:[%s8116_s21 + $0x4088] sm:$0xff]  ;;  %v12465_v3 = vld [vmem:[#allocation20_spill] sm:$0xff] }
 0x332   : > { %5178 = vmatpush.msrb.mxu2 %v2482_v20  ;;  %5197 = vmatpush.msrb.mxu3 %v2635_v0  ;;  %v2581_v20 = vld [vmem:[%s8116_s21 + $0x4550] sm:$0xff]  ;;  %v4432_v0 = vadd.f32 %v9722_v43, %v4412_v47  ;;  %v2122_v43 = vld [vmem:[%s8116_s21 + $0x36f8] sm:$0xff]  ;;  %v2095_v32 = vld [vmem:[%s8116_s21 + $0x3620] sm:$0xff] }
 0x333   : > { %5139 = vmatpush.msrb.mxu0 %v2185_v48  ;;  %5158 = vmatpush.msrb.mxu1 %v2338_v33  ;;  %v2419_v48 = vld [vmem:[%s8116_s21 + $0x4040] sm:$0xff]  ;;  %v2572_v33 = vld [vmem:[%s8116_s21 + $0x4508] sm:$0xff]  ;;  %v3094_v53 = vld [vmem:[%s8116_s21 + $0x5558] sm:$0xff] }
 0x334   : > { %5179 = vmatpush.msrb.mxu2 %v2473_v36  ;;  %5198 = vmatpush.msrb.mxu3 %v2626_v17  ;;  %v3612_v36 = vadd.f32 %v12462_v26, %v3592_v25  ;;  %v12463_v17 = vld [vmem:[#allocation18_spill] sm:$0xff]  ;;  %v4452_v15 = vadd.f32 %v9716_v23, %v4432_v0  ;;  %v12467_v52 = vld [vmem:[#allocation12_spill] sm:$0xff] }
 0x335   : > { %5140 = vmatpush.msrb.mxu0 %v2176_v27  ;;  %5159 = vmatpush.msrb.mxu1 %v2329_v35  ;;  %v4052_v24 = vadd.f32 %v12463_v17, %v4032_v63  ;;  %v2410_v35 = vld [vmem:[%s8116_s21 + $0x3ff8] sm:$0xff]  ;;  %v2257_v23 = vld [vmem:[%s8116_s21 + $0x3b30] sm:$0xff]  ;;  %v2248_v28 = vld [vmem:[%s8116_s21 + $0x3ae8] sm:$0xff] }
 0x336   : > { %5180 = vmatpush.msrb.mxu2 %v2464_v45  ;;  %5199 = vmatpush.msrb.mxu3 %v2617_v50  ;;  %v12464_v50 = vld [vmem:[#allocation13_spill] sm:$0xff]  ;;  %v2806_v25 = vld [vmem:[%s8116_s21 + $0x4c58] sm:$0xff] }
 0x337   : > { %5141 = vmatpush.msrb.mxu0 %v2167_v7  ;;  %5160 = vmatpush.msrb.mxu1 %v2320_v30  ;;  %v3632_v55 = vadd.f32 %v12464_v50, %v3612_v36  ;;  %v4072_v56 = vadd.f32 %v12465_v3, %v4052_v24  ;;  %v2554_v7 = vld [vmem:[%s8116_s21 + $0x4478] sm:$0xff]  ;;  %v2239_v29 = vld [vmem:[%s8116_s21 + $0x3aa0] sm:$0xff]  ;;  %v355_v36 = vld [vmem:[#allocation2] sm:$0xff] }
 0x338   : > { %5181 = vmatpush.msrb.mxu2 %v2455_v46  ;;  %5200 = vmatpush.msrb.mxu3 %v2608_v38  ;;  %v12466_v46 = vld [vmem:[#allocation23_spill] sm:$0xff]  ;;  %v7965_v24 = vld.sshfl [vmem:[#allocation1 + $0x28] sm:$0xff pattern:$0x73625140] }
 0x339   : > { %5142 = vmatpush.msrb.mxu0 %v2158_v10  ;;  %5161 = vmatpush.msrb.mxu1 %v2311_v44  ;;  %v4472_v38 = vadd.f32 %v12466_v46, %v4452_v15  ;;  %v2545_v10 = vld [vmem:[%s8116_s21 + $0x4430] sm:$0xff]  ;;  %v3238_v26 = vld [vmem:[%s8116_s21 + $0x59d8] sm:$0xff]  ;;  %v2932_v3 = vld [vmem:[%s8116_s21 + $0x5048] sm:$0xff] }
 0x33a   : > { %5182 = vmatpush.msrb.mxu2 %v2446_v16  ;;  %5201 = vmatpush.msrb.mxu3 %v2599_v6  ;;  %v3652_v16 = vadd.f32 %v12467_v52, %v3632_v55  ;;  %v12468_v6 = vld [vmem:[#allocation21_spill] sm:$0xff]  ;;  %v2761_v46 = vld [vmem:[%s8116_s21 + $0x4af0] sm:$0xff] }
 0x33b   : > { %5143 = vmatpush.msrb.mxu0 %v2149_v22  ;;  %5162 = vmatpush.msrb.mxu1 %v2302_v14  ;;  %v4092_v4 = vadd.f32 %v12468_v6, %v4072_v56  ;;  %v2383_v22 = vld [vmem:[%s8116_s21 + $0x3f20] sm:$0xff]  ;;  %v2536_v14 = vld [vmem:[%s8116_s21 + $0x43e8] sm:$0xff]  ;;  %v4492_v5 = vadd.f32 %v9743_v51, %v4472_v38  ;;  %v7964_v51 = vld.sshfl [vmem:[#allocation1 + $0x30] sm:$0xff pattern:$0x73625140] }
 0x33c   : > { %5183 = vmatpush.msrb.mxu2 %v2437_v11  ;;  %5202 = vmatpush.msrb.mxu3 %v2590_v12  ;;  %v12469_v11 = vld [vmem:[#allocation14_spill] sm:$0xff]  ;;  %v2779_v55 = vld [vmem:[%s8116_s21 + $0x4b80] sm:$0xff]  ;;  %v2914_v38 = vld [vmem:[%s8116_s21 + $0x4fb8] sm:$0xff] }
 0x33d   : > { %5144 = vmatpush.msrb.mxu0 %v2140_v49  ;;  %5163 = vmatpush.msrb.mxu1 %v2293_v61  ;;  %v3672_v12 = vadd.f32 %v12469_v11, %v3652_v16  ;;  %v6902_v47 = vrot.slane %v4092_v4, 6  ;;  %v2527_v49 = vld [vmem:[%s8116_s21 + $0x43a0] sm:$0xff]  ;;  %v3193_v52 = vld [vmem:[%s8116_s21 + $0x5870] sm:$0xff]  ;;  %v2896_v6 = vld [vmem:[%s8116_s21 + $0x4f28] sm:$0xff] }
 0x33e   : > { %5184 = vmatpush.msrb.mxu2 %v2428_v2  ;;  %5203 = vmatpush.msrb.mxu3 %v2581_v20  ;;  %v4831_v27 = vpop.f32.mrf.mxu0  ;;  %v7963_v2 = vld.sshfl [vmem:[#allocation1 + $0x20] sm:$0xff pattern:$0x73625140]  ;;  %v12470_v20 = vld [vmem:[#allocation15_spill] sm:$0xff] }
 0x33f   : > { %5145 = vmatpush.msrb.mxu0 %v2131_v62  ;;  %5164 = vmatpush.msrb.mxu1 %v2284_v21  ;;  %v4832_v45 = vadd.f32 %v4831_v27, %v4812_v37  ;;  %v3692_v0 = vadd.f32 %v12470_v20, %v3672_v12  ;;  %v6903_v62 = vrot.slane %v4492_v5, 4  ;;  %v2797_v21 = vld [vmem:[%s8116_s21 + $0x4c10] sm:$0xff]  ;;  %v2950_v37 = vld [vmem:[%s8116_s21 + $0x50d8] sm:$0xff]  ;;  %v3067_v15 = vld [vmem:[%s8116_s21 + $0x5480] sm:$0xff] }
 0x340   : > { %5185 = vmatpush.msrb.mxu2 %v2419_v48  ;;  %5204 = vmatpush.msrb.mxu3 %v2572_v33  ;;  %v3085_v33 = vld [vmem:[%s8116_s21 + $0x5510] sm:$0xff]  ;;  %v2743_v16 = vld [vmem:[%s8116_s21 + $0x4a60] sm:$0xff]  ;;  %v2878_v11 = vld [vmem:[%s8116_s21 + $0x4e98] sm:$0xff] }
 0x341   : > { %5146 = vmatpush.msrb.mxu0 %v2122_v43  ;;  %5165 = vmatpush.msrb.mxu1 %v2275_v8  ;;  %v4851_v30 = vpop.f32.mrf.mxu1  ;;  %v6909_v17 = vsel %vm6908_vm1, %v3692_v0, %v6902_v47  ;;  %v7966_v43 = vld.sshfl [vmem:[#allocation1 + $0x38] sm:$0xff pattern:$0x73625140]  ;;  %v2788_v8 = vld [vmem:[%s8116_s21 + $0x4bc8] sm:$0xff]  ;;  %v2941_v27 = vld [vmem:[%s8116_s21 + $0x5090] sm:$0xff] }
 0x342   : > { %5186 = vmatpush.msrb.mxu2 %v2410_v35  ;;  %5205 = vmatpush.msrb.mxu3 %v2563_v54  ;;  %v4852_v44 = vadd.f32 %v4851_v30, %v4832_v45  ;;  %v3076_v54 = vld [vmem:[%s8116_s21 + $0x54c8] sm:$0xff]  ;;  %v3229_v45 = vld [vmem:[%s8116_s21 + $0x5990] sm:$0xff]  ;;  %v3211_v30 = vld [vmem:[%s8116_s21 + $0x5900] sm:$0xff] }
 0x343   : > { %5147 = vmatpush.msrb.mxu0 %v2113_v13  ;;  %5166 = vmatpush.msrb.mxu1 %v2266_v31  ;;  %v3220_v13 = vld [vmem:[%s8116_s21 + $0x5948] sm:$0xff]  ;;  %v2770_v31 = vld [vmem:[%s8116_s21 + $0x4b38] sm:$0xff]  ;;  %v3031_v4 = vld [vmem:[%s8116_s21 + $0x5360] sm:$0xff] }
 0x344   : > { %5187 = vmatpush.msrb.mxu2 %v2401_v19  ;;  %5206 = vmatpush.msrb.mxu3 %v2554_v7  ;;  %v4871_v18 = vpop.f32.mrf.mxu2  ;;  %v2923_v19 = vld [vmem:[%s8116_s21 + $0x5000] sm:$0xff]  ;;  %v3058_v7 = vld [vmem:[%s8116_s21 + $0x5438] sm:$0xff]  ;;  %v3013_v12 = vld [vmem:[%s8116_s21 + $0x52d0] sm:$0xff] }
 0x345   : > { %5148 = vmatpush.msrb.mxu0 %v2104_v34  ;;  %5167 = vmatpush.msrb.mxu1 %v2257_v23  ;;  %v4872_v1 = vadd.f32 %v4871_v18, %v4852_v44  ;;  %v3049_v34 = vld [vmem:[%s8116_s21 + $0x53f0] sm:$0xff]  ;;  %v3202_v23 = vld [vmem:[%s8116_s21 + $0x58b8] sm:$0xff]  ;;  %v3040_v44 = vld [vmem:[%s8116_s21 + $0x53a8] sm:$0xff] }
 0x346   : > { %5188 = vmatpush.msrb.mxu2 %v2392_v9  ;;  %5207 = vmatpush.msrb.mxu3 %v2545_v10  ;;  %v2752_v9 = vld [vmem:[%s8116_s21 + $0x4aa8] sm:$0xff]  ;;  %v2905_v10 = vld [vmem:[%s8116_s21 + $0x4f70] sm:$0xff]  ;;  %v2887_v18 = vld [vmem:[%s8116_s21 + $0x4ee0] sm:$0xff] }
 0x347   : > { %5149 = vmatpush.msrb.mxu0 %v2095_v32  ;;  %5168 = vmatpush.msrb.mxu1 %v2248_v28  ;;  %v4891_v63 = vpop.f32.mrf.mxu3  ;;  %v3184_v32 = vld [vmem:[%s8116_s21 + $0x5828] sm:$0xff]  ;;  %v2734_v28 = vld [vmem:[%s8116_s21 + $0x4a18] sm:$0xff]  ;;  %v3157_v47 = vld [vmem:[%s8116_s21 + $0x5750] sm:$0xff] }
 0x348   : > { %5189 = vmatpush.msrb.mxu2 %v2383_v22  ;;  %5208 = vmatpush.msrb.mxu3 %v2536_v14  ;;  %v4892_v61 = vadd.f32 %v4891_v63, %v4872_v1  ;;  %v3022_v22 = vld [vmem:[%s8116_s21 + $0x5318] sm:$0xff]  ;;  %v3175_v14 = vld [vmem:[%s8116_s21 + $0x57e0] sm:$0xff]  ;;  %v2725_v1 = vld [vmem:[%s8116_s21 + $0x49d0] sm:$0xff] }
 0x349   : > { %5150 = vmatmul.f32.vlgmr.msrb.gmra.mxu0 %v7963_v2  ;;  %5190 = vmatmul.f32.vlgmr.msrb.gmra.mxu2 %v7964_v51  ;;  %v3166_v5 = vld [vmem:[%s8116_s21 + $0x5798] sm:$0xff]  ;;  %v3004_v63 = vld [vmem:[%s8116_s21 + $0x5288] sm:$0xff]  ;;  %v2851_v20 = vld [vmem:[%s8116_s21 + $0x4dc0] sm:$0xff] }
 0x34a   : > { %5214 = vmatpush.msra.mxu0 %v2806_v25  ;;  %5254 = vmatpush.msra.mxu2 %v3094_v53  ;;  %v6904_v48 = vrot.slane %v4892_v61, 2  ;;  %v2716_v25 = vld [vmem:[%s8116_s21 + $0x4988] sm:$0xff]  ;;  %v2869_v53 = vld [vmem:[%s8116_s21 + $0x4e50] sm:$0xff]  ;;  %v2995_v61 = vld [vmem:[%s8116_s21 + $0x5240] sm:$0xff] }
 0x34b   : > { %5169 = vmatpush.msrb.mxu1 %v2239_v29  ;;  %5209 = vmatpush.msrb.mxu3 %v2527_v49  ;;  %v2707_v29 = vld [vmem:[%s8116_s21 + $0x4940] sm:$0xff]  ;;  %v2860_v49 = vld [vmem:[%s8116_s21 + $0x4e08] sm:$0xff]  ;;  %v2698_v51 = vld [vmem:[%s8116_s21 + $0x48f8] sm:$0xff] }
 0x34c   : > { %5170 = vmatmul.f32.vlgmr.msrb.gmra.mxu1 %v7965_v24  ;;  %5210 = vmatmul.f32.vlgmr.msrb.gmra.mxu3 %v7966_v43  ;;  %v6911_v35 = vsel %vm6910_vm2, %v6903_v62, %v6904_v48  ;;  %v3148_v2 = vld [vmem:[%s8116_s21 + $0x5708] sm:$0xff]  ;;  %v2986_v0 = vld [vmem:[%s8116_s21 + $0x51f8] sm:$0xff]  ;;  %v3139_v62 = vld [vmem:[%s8116_s21 + $0x56c0] sm:$0xff] }
 0x34d   : > { %5215 = vmatpush.msra.mxu0 %v2797_v21  ;;  %5234 = vmatpush.msra.mxu1 %v2950_v37  ;;  %v6913_v50 = vsel %vm6912_vm3, %v6909_v17, %v6911_v35  ;;  %v2689_v21 = vld [vmem:[%s8116_s21 + $0x48b0] sm:$0xff]  ;;  %v2842_v37 = vld [vmem:[%s8116_s21 + $0x4d78] sm:$0xff]  ;;  %v2968_v17 = vld [vmem:[%s8116_s21 + $0x5168] sm:$0xff] }
 0x34e   : > { %5255 = vmatpush.msra.mxu2 %v3085_v33  ;;  %5274 = vmatpush.msra.mxu3 %v3238_v26  ;;  %v6919_v56 = vadd.f32 %v6913_v50, %v355_v36  ;;  %v2977_v48 = vld [vmem:[%s8116_s21 + $0x51b0] sm:$0xff]  ;;  %v3130_v33 = vld [vmem:[%s8116_s21 + $0x5678] sm:$0xff]  ;;  %v2680_v26 = vld [vmem:[%s8116_s21 + $0x4868] sm:$0xff] }
 0x34f   : > { %5216 = vmatpush.msra.mxu0 %v2788_v8  ;;  %5235 = vmatpush.msra.mxu1 %v2941_v27  ;;  %v2833_v36 = vld [vmem:[%s8116_s21 + $0x4d30] sm:$0xff]  ;;  %v2671_v43 = vld [vmem:[%s8116_s21 + $0x4820] sm:$0xff]  ;;  %v2824_v8 = vld [vmem:[%s8116_s21 + $0x4ce8] sm:$0xff] }
 0x350   : > { %5256 = vmatpush.msra.mxu2 %v3076_v54  ;;  %5275 = vmatpush.msra.mxu3 %v3229_v45  ;;  %6922 = vst [vmem:[#allocation2] sm:$0xff] %v6919_v56  ;;  %v3121_v24 = vld [vmem:[%s8116_s21 + $0x5630] sm:$0xff]  ;;  %v2959_v27 = vld [vmem:[%s8116_s21 + $0x5120] sm:$0xff]  ;;  %v3112_v35 = vld [vmem:[%s8116_s21 + $0x55e8] sm:$0xff] }
 0x351   : > { %5217 = vmatpush.msra.mxu0 %v2779_v55  ;;  %5236 = vmatpush.msra.mxu1 %v2932_v3  ;;  %v503_v54 = vld [vmem:[%s8116_s21 + $0x460] sm:$0xff]  ;;  %v7968_v56 = vld.sshfl [vmem:[#allocation1 + $0x10] sm:$0xff pattern:$0x73625140] }
 0x352   : > { %5257 = vmatpush.msra.mxu2 %v3067_v15  ;;  %5276 = vmatpush.msra.mxu3 %v3220_v13  ;;  %v791_v45 = vld [vmem:[%s8116_s21 + $0xd60] sm:$0xff]  ;;  %v494_v15 = vld [vmem:[%s8116_s21 + $0x418] sm:$0xff] }
 0x353   : > { %5218 = vmatpush.msra.mxu0 %v2770_v31  ;;  %5237 = vmatpush.msra.mxu1 %v2923_v19  ;;  %v2815_v50 = vld [vmem:[%s8116_s21 + $0x4ca0] sm:$0xff]  ;;  %v782_v31 = vld [vmem:[%s8116_s21 + $0xd18] sm:$0xff] }
 0x354   : > { %5258 = vmatpush.msra.mxu2 %v3058_v7  ;;  %5277 = vmatpush.msra.mxu3 %v3211_v30  ;;  %v3103_v55 = vld [vmem:[%s8116_s21 + $0x55a0] sm:$0xff]  ;;  %v7969_v7 = vld.sshfl [vmem:[#allocation1 + $0x8] sm:$0xff pattern:$0x73625140] }
 0x355   : > { %5219 = vmatpush.msra.mxu0 %v2761_v46  ;;  %5238 = vmatpush.msra.mxu1 %v2914_v38  ;;  %v7967_v3 = vld.sshfl [vmem:[#allocation1] sm:$0xff pattern:$0x73625140]  ;;  %v7970_v30 = vld.sshfl [vmem:[#allocation1 + $0x18] sm:$0xff pattern:$0x73625140] }
 0x356   : > { %5259 = vmatpush.msra.mxu2 %v3049_v34  ;;  %5278 = vmatpush.msra.mxu3 %v3202_v23  ;;  %v647_v13 = vld [vmem:[%s8116_s21 + $0x8e0] sm:$0xff]  ;;  %v485_v46 = vld [vmem:[%s8116_s21 + $0x3d0] sm:$0xff]  ;;  %v638_v38 = vld [vmem:[%s8116_s21 + $0x898] sm:$0xff] }
 0x357   : > { %5220 = vmatpush.msra.mxu0 %v2752_v9  ;;  %5239 = vmatpush.msra.mxu1 %v2905_v10  ;;  %v935_v19 = vld [vmem:[%s8116_s21 + $0x11e0] sm:$0xff]  ;;  %v773_v34 = vld [vmem:[%s8116_s21 + $0xcd0] sm:$0xff]  ;;  %v926_v23 = vld [vmem:[%s8116_s21 + $0x1198] sm:$0xff] }
 0x358   : > { %5260 = vmatpush.msra.mxu2 %v3040_v44  ;;  %5279 = vmatpush.msra.mxu3 %v3193_v52  ;;  %v476_v9 = vld [vmem:[%s8116_s21 + $0x388] sm:$0xff]  ;;  %v629_v10 = vld [vmem:[%s8116_s21 + $0x850] sm:$0xff] }
 0x359   : > { %5221 = vmatpush.msra.mxu0 %v2743_v16  ;;  %5240 = vmatpush.msra.mxu1 %v2896_v6  ;;  %v764_v44 = vld [vmem:[%s8116_s21 + $0xc88] sm:$0xff]  ;;  %v917_v52 = vld [vmem:[%s8116_s21 + $0x1150] sm:$0xff]  ;;  %v467_v16 = vld [vmem:[%s8116_s21 + $0x340] sm:$0xff] }
 0x35a   : > { %5261 = vmatpush.msra.mxu2 %v3031_v4  ;;  %5280 = vmatpush.msra.mxu3 %v3184_v32  ;;  %v620_v6 = vld [vmem:[%s8116_s21 + $0x808] sm:$0xff]  ;;  %v755_v4 = vld [vmem:[%s8116_s21 + $0xc40] sm:$0xff] }
 0x35b   : > { %5222 = vmatpush.msra.mxu0 %v2734_v28  ;;  %5241 = vmatpush.msra.mxu1 %v2887_v18  ;;  %v908_v32 = vld [vmem:[%s8116_s21 + $0x1108] sm:$0xff]  ;;  %v458_v28 = vld [vmem:[%s8116_s21 + $0x2f8] sm:$0xff]  ;;  %v611_v18 = vld [vmem:[%s8116_s21 + $0x7c0] sm:$0xff] }
 0x35c   : > { %5262 = vmatpush.msra.mxu2 %v3022_v22  ;;  %5281 = vmatpush.msra.mxu3 %v3175_v14  ;;  %v746_v22 = vld [vmem:[%s8116_s21 + $0xbf8] sm:$0xff]  ;;  %v899_v14 = vld [vmem:[%s8116_s21 + $0x10c0] sm:$0xff] }
 0x35d   : > { %5223 = vmatpush.msra.mxu0 %v2725_v1  ;;  %5242 = vmatpush.msra.mxu1 %v2878_v11  ;;  %v449_v1 = vld [vmem:[%s8116_s21 + $0x2b0] sm:$0xff]  ;;  %v602_v11 = vld [vmem:[%s8116_s21 + $0x778] sm:$0xff] }
 0x35e   : > { %5263 = vmatpush.msra.mxu2 %v3013_v12  ;;  %5282 = vmatpush.msra.mxu3 %v3166_v5  ;;  %v737_v12 = vld [vmem:[%s8116_s21 + $0xbb0] sm:$0xff]  ;;  %v890_v5 = vld [vmem:[%s8116_s21 + $0x1078] sm:$0xff] }
 0x35f   : > { %5224 = vmatpush.msra.mxu0 %v2716_v25  ;;  %5243 = vmatpush.msra.mxu1 %v2869_v53  ;;  %v440_v25 = vld [vmem:[%s8116_s21 + $0x268] sm:$0xff]  ;;  %v593_v53 = vld [vmem:[%s8116_s21 + $0x730] sm:$0xff] }
 0x360   : > { %5264 = vmatpush.msra.mxu2 %v3004_v63  ;;  %5283 = vmatpush.msra.mxu3 %v3157_v47  ;;  %v728_v63 = vld [vmem:[%s8116_s21 + $0xb68] sm:$0xff]  ;;  %v881_v47 = vld [vmem:[%s8116_s21 + $0x1030] sm:$0xff] }
 0x361   : > { %5225 = vmatpush.msra.mxu0 %v2707_v29  ;;  %5244 = vmatpush.msra.mxu1 %v2860_v49  ;;  %v431_v29 = vld [vmem:[%s8116_s21 + $0x220] sm:$0xff]  ;;  %v584_v49 = vld [vmem:[%s8116_s21 + $0x6e8] sm:$0xff] }
 0x362   : > { %5265 = vmatpush.msra.mxu2 %v2995_v61  ;;  %5284 = vmatpush.msra.mxu3 %v3148_v2  ;;  %v719_v61 = vld [vmem:[%s8116_s21 + $0xb20] sm:$0xff]  ;;  %v872_v2 = vld [vmem:[%s8116_s21 + $0xfe8] sm:$0xff] }
 0x363   : > { %5226 = vmatpush.msra.mxu0 %v2698_v51  ;;  %5245 = vmatpush.msra.mxu1 %v2851_v20  ;;  %v422_v51 = vld [vmem:[%s8116_s21 + $0x1d8] sm:$0xff]  ;;  %v575_v20 = vld [vmem:[%s8116_s21 + $0x6a0] sm:$0xff] }
 0x364   : > { %5266 = vmatpush.msra.mxu2 %v2986_v0  ;;  %5285 = vmatpush.msra.mxu3 %v3139_v62  ;;  %v710_v0 = vld [vmem:[%s8116_s21 + $0xad8] sm:$0xff]  ;;  %v863_v62 = vld [vmem:[%s8116_s21 + $0xfa0] sm:$0xff] }
 0x365   : > { %5227 = vmatpush.msra.mxu0 %v2689_v21  ;;  %5246 = vmatpush.msra.mxu1 %v2842_v37  ;;  %v413_v21 = vld [vmem:[%s8116_s21 + $0x190] sm:$0xff]  ;;  %v566_v37 = vld [vmem:[%s8116_s21 + $0x658] sm:$0xff] }
 0x366   : > { %5267 = vmatpush.msra.mxu2 %v2977_v48  ;;  %5286 = vmatpush.msra.mxu3 %v3130_v33  ;;  %v701_v48 = vld [vmem:[%s8116_s21 + $0xa90] sm:$0xff]  ;;  %v854_v33 = vld [vmem:[%s8116_s21 + $0xf58] sm:$0xff] }
 0x367   : > { %5228 = vmatpush.msra.mxu0 %v2680_v26  ;;  %5247 = vmatpush.msra.mxu1 %v2833_v36  ;;  %v404_v26 = vld [vmem:[%s8116_s21 + $0x148] sm:$0xff]  ;;  %v557_v36 = vld [vmem:[%s8116_s21 + $0x610] sm:$0xff] }
 0x368   : > { %5268 = vmatpush.msra.mxu2 %v2968_v17  ;;  %5287 = vmatpush.msra.mxu3 %v3121_v24  ;;  %v692_v24 = vld [vmem:[%s8116_s21 + $0xa48] sm:$0xff] }
 0x369   : > { %5229 = vmatpush.msra.mxu0 %v2671_v43  ;;  %5248 = vmatpush.msra.mxu1 %v2824_v8  ;;  %v845_v43 = vld [vmem:[%s8116_s21 + $0xf10] sm:$0xff]  ;;  %v395_v8 = vld [vmem:[%s8116_s21 + $0x100] sm:$0xff] }
 0x36a   : > { %5269 = vmatpush.msra.mxu2 %v2959_v27  ;;  %5288 = vmatpush.msra.mxu3 %v3112_v35  ;;  %v548_v27 = vld [vmem:[%s8116_s21 + $0x5c8] sm:$0xff]  ;;  %v683_v35 = vld [vmem:[%s8116_s21 + $0xa00] sm:$0xff] }
 0x36b   : > { %5230 = vmatmul.f32.vlgmr.msra.gmra.mxu0 %v7967_v3  ;;  %5270 = vmatmul.f32.vlgmr.msra.gmra.mxu2 %v7968_v56 }
 0x36c   : > { %5294 = vmatpush.msrb.mxu0 %v503_v54  ;;  %5334 = vmatpush.msrb.mxu2 %v791_v45  ;;  %v836_v54 = vld [vmem:[%s8116_s21 + $0xec8] sm:$0xff] }
 0x36d   : > { %5249 = vmatpush.msra.mxu1 %v2815_v50  ;;  %5289 = vmatpush.msra.mxu3 %v3103_v55  ;;  %v386_v50 = vld [vmem:[%s8116_s21 + $0xb8] sm:$0xff]  ;;  %v539_v55 = vld [vmem:[%s8116_s21 + $0x580] sm:$0xff] }
 0x36e   : > { %5250 = vmatmul.f32.vlgmr.msra.gmra.mxu1 %v7969_v7  ;;  %5290 = vmatmul.f32.vlgmr.msra.gmra.mxu3 %v7970_v30  ;;  %v665_v30 = vld [vmem:[%s8116_s21 + $0x970] sm:$0xff] }
 0x36f   : > { %5295 = vmatpush.msrb.mxu0 %v494_v15  ;;  %5314 = vmatpush.msrb.mxu1 %v647_v13  ;;  %v674_v15 = vld [vmem:[%s8116_s21 + $0x9b8] sm:$0xff]  ;;  %v827_v13 = vld [vmem:[%s8116_s21 + $0xe80] sm:$0xff] }
 0x370   : > { %5335 = vmatpush.msrb.mxu2 %v782_v31  ;;  %5354 = vmatpush.msrb.mxu3 %v935_v19  ;;  %v377_v31 = vld [vmem:[%s8116_s21 + $0x70] sm:$0xff]  ;;  %v530_v19 = vld [vmem:[%s8116_s21 + $0x538] sm:$0xff] }
 0x371   : > { %5296 = vmatpush.msrb.mxu0 %v485_v46  ;;  %5315 = vmatpush.msrb.mxu1 %v638_v38  ;;  %v818_v46 = vld [vmem:[%s8116_s21 + $0xe38] sm:$0xff] }
 0x372   : > { %5336 = vmatpush.msrb.mxu2 %v773_v34  ;;  %5355 = vmatpush.msrb.mxu3 %v926_v23  ;;  %v368_v34 = vld [vmem:[%s8116_s21 + $0x28] sm:$0xff]  ;;  %v521_v23 = vld [vmem:[%s8116_s21 + $0x4f0] sm:$0xff] }
 0x373   : > { %5297 = vmatpush.msrb.mxu0 %v476_v9  ;;  %5316 = vmatpush.msrb.mxu1 %v629_v10  ;;  %v656_v10 = vld [vmem:[%s8116_s21 + $0x928] sm:$0xff] }
 0x374   : > { %5337 = vmatpush.msrb.mxu2 %v764_v44  ;;  %5356 = vmatpush.msrb.mxu3 %v917_v52  ;;  %v809_v44 = vld [vmem:[%s8116_s21 + $0xdf0] sm:$0xff]  ;;  %v1079_v52 = vld [vmem:[%s8116_s21 + $0x1660] sm:$0xff] }
 0x375   : > { %5298 = vmatpush.msrb.mxu0 %v467_v16  ;;  %5317 = vmatpush.msrb.mxu1 %v620_v6  ;;  %v1367_v16 = vld [vmem:[%s8116_s21 + $0x1f60] sm:$0xff] }
 0x376   : > { %5338 = vmatpush.msrb.mxu2 %v755_v4  ;;  %5357 = vmatpush.msrb.mxu3 %v908_v32  ;;  %v512_v4 = vld [vmem:[%s8116_s21 + $0x4a8] sm:$0xff] }
 0x377   : > { %5299 = vmatpush.msrb.mxu0 %v458_v28  ;;  %5318 = vmatpush.msrb.mxu1 %v611_v18  ;;  %v800_v32 = vld [vmem:[%s8116_s21 + $0xda8] sm:$0xff]  ;;  %v1070_v18 = vld [vmem:[%s8116_s21 + $0x1618] sm:$0xff] }
 0x378   : > { %5339 = vmatpush.msrb.mxu2 %v746_v22  ;;  %5358 = vmatpush.msrb.mxu3 %v899_v14  ;;  %v1223_v22 = vld [vmem:[%s8116_s21 + $0x1ae0] sm:$0xff]  ;;  %v1358_v14 = vld [vmem:[%s8116_s21 + $0x1f18] sm:$0xff] }
 0x379   : > { %5300 = vmatpush.msrb.mxu0 %v449_v1  ;;  %5319 = vmatpush.msrb.mxu1 %v602_v11  ;;  %v1511_v1 = vld [vmem:[%s8116_s21 + $0x23e0] sm:$0xff] }
 0x37a   : > { %5340 = vmatpush.msrb.mxu2 %v737_v12  ;;  %5359 = vmatpush.msrb.mxu3 %v890_v5  ;;  %v1061_v12 = vld [vmem:[%s8116_s21 + $0x15d0] sm:$0xff]  ;;  %v1214_v5 = vld [vmem:[%s8116_s21 + $0x1a98] sm:$0xff] }
 0x37b   : > { %5301 = vmatpush.msrb.mxu0 %v440_v25  ;;  %5320 = vmatpush.msrb.mxu1 %v593_v53 }
 0x37c   : > { %5341 = vmatpush.msrb.mxu2 %v728_v63  ;;  %5360 = vmatpush.msrb.mxu3 %v881_v47  ;;  %v1349_v63 = vld [vmem:[%s8116_s21 + $0x1ed0] sm:$0xff]  ;;  %v1502_v47 = vld [vmem:[%s8116_s21 + $0x2398] sm:$0xff] }
 0x37d   : > { %5302 = vmatpush.msrb.mxu0 %v431_v29  ;;  %5321 = vmatpush.msrb.mxu1 %v584_v49  ;;  %v1052_v29 = vld [vmem:[%s8116_s21 + $0x1588] sm:$0xff]  ;;  %v1205_v49 = vld [vmem:[%s8116_s21 + $0x1a50] sm:$0xff] }
 0x37e   : > { %5342 = vmatpush.msrb.mxu2 %v719_v61  ;;  %5361 = vmatpush.msrb.mxu3 %v872_v2  ;;  %v1340_v2 = vld [vmem:[%s8116_s21 + $0x1e88] sm:$0xff] }
 0x37f   : > { %5303 = vmatpush.msrb.mxu0 %v422_v51  ;;  %5322 = vmatpush.msrb.mxu1 %v575_v20  ;;  %v1493_v51 = vld [vmem:[%s8116_s21 + $0x2350] sm:$0xff] }
 0x380   : > { %5343 = vmatpush.msrb.mxu2 %v710_v0  ;;  %5362 = vmatpush.msrb.mxu3 %v863_v62  ;;  %v4911_v17 = vpop.f32.mrf.mxu0  ;;  %v1043_v0 = vld [vmem:[%s8116_s21 + $0x1540] sm:$0xff]  ;;  %v1196_v62 = vld [vmem:[%s8116_s21 + $0x1a08] sm:$0xff] }
 0x381   : > { %5304 = vmatpush.msrb.mxu0 %v413_v21  ;;  %5323 = vmatpush.msrb.mxu1 %v566_v37  ;;  %v1331_v37 = vld [vmem:[%s8116_s21 + $0x1e40] sm:$0xff] }
 0x382   : > { %5344 = vmatpush.msrb.mxu2 %v701_v48  ;;  %5363 = vmatpush.msrb.mxu3 %v854_v33  ;;  %v1484_v48 = vld [vmem:[%s8116_s21 + $0x2308] sm:$0xff]  ;;  %v1034_v33 = vld [vmem:[%s8116_s21 + $0x14f8] sm:$0xff] }
 0x383   : > { %5305 = vmatpush.msrb.mxu0 %v404_v26  ;;  %5324 = vmatpush.msrb.mxu1 %v557_v36  ;;  %v4931_v45 = vpop.f32.mrf.mxu1  ;;  %v1187_v26 = vld [vmem:[%s8116_s21 + $0x19c0] sm:$0xff]  ;;  %v1322_v36 = vld [vmem:[%s8116_s21 + $0x1df8] sm:$0xff] }
 0x384   : > { %5345 = vmatpush.msrb.mxu2 %v692_v24  ;;  %5364 = vmatpush.msrb.mxu3 %v845_v43  ;;  %v4932_v3 = vadd.f32 %v4931_v45, %v4911_v17  ;;  %v4951_v56 = vpop.f32.mrf.mxu2  ;;  %v1475_v17 = vld [vmem:[%s8116_s21 + $0x22c0] sm:$0xff]  ;;  %v1025_v24 = vld [vmem:[%s8116_s21 + $0x14b0] sm:$0xff]  ;;  %v1178_v43 = vld [vmem:[%s8116_s21 + $0x1978] sm:$0xff] }
 0x385   : > { %5306 = vmatpush.msrb.mxu0 %v395_v8  ;;  %5325 = vmatpush.msrb.mxu1 %v548_v27  ;;  %v1313_v8 = vld [vmem:[%s8116_s21 + $0x1db0] sm:$0xff]  ;;  %v1466_v27 = vld [vmem:[%s8116_s21 + $0x2278] sm:$0xff]  ;;  %v1304_v45 = vld [vmem:[%s8116_s21 + $0x1d68] sm:$0xff] }
 0x386   : > { %5346 = vmatpush.msrb.mxu2 %v683_v35  ;;  %5365 = vmatpush.msrb.mxu3 %v836_v54  ;;  %v4952_v7 = vadd.f32 %v4951_v56, %v4932_v3  ;;  %v1016_v35 = vld [vmem:[%s8116_s21 + $0x1468] sm:$0xff]  ;;  %v1169_v54 = vld [vmem:[%s8116_s21 + $0x1930] sm:$0xff]  ;;  %v1295_v56 = vld [vmem:[%s8116_s21 + $0x1d20] sm:$0xff] }
 0x387   : > { %5307 = vmatpush.msrb.mxu0 %v386_v50  ;;  %5326 = vmatpush.msrb.mxu1 %v539_v55  ;;  %v4971_v38 = vpop.f32.mrf.mxu3  ;;  %v1457_v50 = vld [vmem:[%s8116_s21 + $0x2230] sm:$0xff]  ;;  %v1007_v55 = vld [vmem:[%s8116_s21 + $0x1420] sm:$0xff]  ;;  %v1160_v3 = vld [vmem:[%s8116_s21 + $0x18e8] sm:$0xff] }
 0x388   : > { %5347 = vmatpush.msrb.mxu2 %v674_v15  ;;  %5366 = vmatpush.msrb.mxu3 %v827_v13  ;;  %v4972_v9 = vadd.f32 %v4971_v38, %v4952_v7  ;;  %v1448_v15 = vld [vmem:[%s8116_s21 + $0x21e8] sm:$0xff]  ;;  %v998_v13 = vld [vmem:[%s8116_s21 + $0x13d8] sm:$0xff]  ;;  %v1439_v7 = vld [vmem:[%s8116_s21 + $0x21a0] sm:$0xff] }
 0x389   : > { %5308 = vmatpush.msrb.mxu0 %v377_v31  ;;  %5327 = vmatpush.msrb.mxu1 %v530_v19  ;;  %v1151_v31 = vld [vmem:[%s8116_s21 + $0x18a0] sm:$0xff]  ;;  %v1286_v19 = vld [vmem:[%s8116_s21 + $0x1cd8] sm:$0xff]  ;;  %v1277_v38 = vld [vmem:[%s8116_s21 + $0x1c90] sm:$0xff] }
 0x38a   : > { %5348 = vmatpush.msrb.mxu2 %v665_v30  ;;  %5367 = vmatpush.msrb.mxu3 %v818_v46  ;;  %v4991_v6 = vpop.f32.mrf.mxu0  ;;  %v989_v30 = vld [vmem:[%s8116_s21 + $0x1390] sm:$0xff]  ;;  %v1142_v46 = vld [vmem:[%s8116_s21 + $0x1858] sm:$0xff] }
 0x38b   : > { %5309 = vmatpush.msrb.mxu0 %v368_v34  ;;  %5328 = vmatpush.msrb.mxu1 %v521_v23  ;;  %v4992_v28 = vadd.f32 %v4991_v6, %v4972_v9  ;;  %v1430_v34 = vld [vmem:[%s8116_s21 + $0x2158] sm:$0xff]  ;;  %v980_v23 = vld [vmem:[%s8116_s21 + $0x1348] sm:$0xff]  ;;  %v1133_v9 = vld [vmem:[%s8116_s21 + $0x1810] sm:$0xff] }
 0x38c   : > { %5349 = vmatpush.msrb.mxu2 %v656_v10  ;;  %5368 = vmatpush.msrb.mxu3 %v809_v44  ;;  %v1268_v10 = vld [vmem:[%s8116_s21 + $0x1c48] sm:$0xff]  ;;  %v1421_v44 = vld [vmem:[%s8116_s21 + $0x2110] sm:$0xff]  ;;  %v1259_v6 = vld [vmem:[%s8116_s21 + $0x1c00] sm:$0xff] }
 0x38d   : > { %5374 = vmatpush.msra.mxu0 %v1079_v52  ;;  %v5011_v11 = vpop.f32.mrf.mxu1  ;;  %5329 = vmatpush.msrb.mxu1 %v512_v4  ;;  %v971_v52 = vld [vmem:[%s8116_s21 + $0x1300] sm:$0xff]  ;;  %v1412_v4 = vld [vmem:[%s8116_s21 + $0x20c8] sm:$0xff] }
 0x38e   : > { %5414 = vmatpush.msra.mxu2 %v1367_v16  ;;  %5369 = vmatpush.msrb.mxu3 %v800_v32  ;;  %v5012_v25 = vadd.f32 %v5011_v11, %v4992_v28  ;;  %v5031_v53 = vpop.f32.mrf.mxu2  ;;  %v1124_v16 = vld [vmem:[%s8116_s21 + $0x17c8] sm:$0xff]  ;;  %v962_v32 = vld [vmem:[%s8116_s21 + $0x12b8] sm:$0xff]  ;;  %v1115_v28 = vld [vmem:[%s8116_s21 + $0x1780] sm:$0xff] }
 0x38f   : > { %5375 = vmatpush.msra.mxu0 %v1070_v18  ;;  %5394 = vmatpush.msra.mxu1 %v1223_v22  ;;  %v1250_v22 = vld [vmem:[%s8116_s21 + $0x1bb8] sm:$0xff]  ;;  %v953_v11 = vld [vmem:[%s8116_s21 + $0x1270] sm:$0xff] }
 0x390   : > { %5415 = vmatpush.msra.mxu2 %v1358_v14  ;;  %5434 = vmatpush.msra.mxu3 %v1511_v1  ;;  %v5032_v61 = vadd.f32 %v5031_v53, %v5012_v25  ;;  %v1403_v14 = vld [vmem:[%s8116_s21 + $0x2080] sm:$0xff]  ;;  %v1394_v25 = vld [vmem:[%s8116_s21 + $0x2038] sm:$0xff] }
 0x391   : > { %5376 = vmatpush.msra.mxu0 %v1061_v12  ;;  %5395 = vmatpush.msra.mxu1 %v1214_v5  ;;  %v5051_v20 = vpop.f32.mrf.mxu3  ;;  %v1106_v12 = vld [vmem:[%s8116_s21 + $0x1738] sm:$0xff]  ;;  %v1241_v5 = vld [vmem:[%s8116_s21 + $0x1b70] sm:$0xff] }
 0x392   : > { %5416 = vmatpush.msra.mxu2 %v1349_v63  ;;  %5435 = vmatpush.msra.mxu3 %v1502_v47  ;;  %v10071_v21 = vadd.f32 %v5051_v20, %v5032_v61  ;;  %v944_v63 = vld [vmem:[%s8116_s21 + $0x1228] sm:$0xff]  ;;  %v1385_v61 = vld [vmem:[%s8116_s21 + $0x1ff0] sm:$0xff]  ;;  %v1655_v20 = vld [vmem:[%s8116_s21 + $0x2860] sm:$0xff] }
 0x393   : > { %5377 = vmatpush.msra.mxu0 %v1052_v29  ;;  %5396 = vmatpush.msra.mxu1 %v1205_v49  ;;  %v1097_v29 = vld [vmem:[%s8116_s21 + $0x16f0] sm:$0xff]  ;;  %v1232_v49 = vld [vmem:[%s8116_s21 + $0x1b28] sm:$0xff] }
 0x394   : > { %5417 = vmatpush.msra.mxu2 %v1340_v2  ;;  %5436 = vmatpush.msra.mxu3 %v1493_v51  ;;  %v12471_v51 = vld [vmem:[#allocation4_spill] sm:$0xff] }
 0x395   : > { %5378 = vmatpush.msra.mxu0 %v1043_v0  ;;  %5397 = vmatpush.msra.mxu1 %v1196_v62  ;;  %v1943_v62 = vld [vmem:[%s8116_s21 + $0x3160] sm:$0xff] }
 0x396   : > { %5418 = vmatpush.msra.mxu2 %v1331_v37  ;;  %5437 = vmatpush.msra.mxu3 %v1484_v48  ;;  %v12472_v37 = vld [vmem:[#allocation5_spill] sm:$0xff] }
 0x397   : > { %5379 = vmatpush.msra.mxu0 %v1034_v33  ;;  %5398 = vmatpush.msra.mxu1 %v1187_v26  ;;  %v1376_v48 = vld [vmem:[%s8116_s21 + $0x1fa8] sm:$0xff] }
 0x398   : > { %5419 = vmatpush.msra.mxu2 %v1322_v36  ;;  %5438 = vmatpush.msra.mxu3 %v1475_v17  ;;  %v12473_v26 = vld [vmem:[#allocation6_spill] sm:$0xff]  ;;  %v1646_v36 = vld [vmem:[%s8116_s21 + $0x2818] sm:$0xff]  ;;  %v1799_v17 = vld [vmem:[%s8116_s21 + $0x2ce0] sm:$0xff] }
 0x399   : > { %5380 = vmatpush.msra.mxu0 %v1025_v24  ;;  %5399 = vmatpush.msra.mxu1 %v1178_v43  ;;  %v1934_v43 = vld [vmem:[%s8116_s21 + $0x3118] sm:$0xff] }
 0x39a   : > { %5420 = vmatpush.msra.mxu2 %v1313_v8  ;;  %5439 = vmatpush.msra.mxu3 %v1466_v27  ;;  %v2087_v8 = vld [vmem:[%s8116_s21 + $0x35e0] sm:$0xff]  ;;  %v12474_v27 = vld [vmem:[#allocation7_spill] sm:$0xff] }
 0x39b   : > { %5381 = vmatpush.msra.mxu0 %v1016_v35  ;;  %5400 = vmatpush.msra.mxu1 %v1169_v54  ;;  %v1637_v35 = vld [vmem:[%s8116_s21 + $0x27d0] sm:$0xff]  ;;  %v1790_v54 = vld [vmem:[%s8116_s21 + $0x2c98] sm:$0xff] }
 0x39c   : > { %5421 = vmatpush.msra.mxu2 %v1304_v45  ;;  %5440 = vmatpush.msra.mxu3 %v1457_v50  ;;  %v1925_v45 = vld [vmem:[%s8116_s21 + $0x30d0] sm:$0xff]  ;;  %v2078_v50 = vld [vmem:[%s8116_s21 + $0x3598] sm:$0xff] }
 0x39d   : > { %5382 = vmatpush.msra.mxu0 %v1007_v55  ;;  %5401 = vmatpush.msra.mxu1 %v1160_v3  ;;  %v1628_v55 = vld [vmem:[%s8116_s21 + $0x2788] sm:$0xff]  ;;  %v1781_v3 = vld [vmem:[%s8116_s21 + $0x2c50] sm:$0xff] }
 0x39e   : > { %5422 = vmatpush.msra.mxu2 %v1295_v56  ;;  %5441 = vmatpush.msra.mxu3 %v1448_v15  ;;  %v1916_v56 = vld [vmem:[%s8116_s21 + $0x3088] sm:$0xff]  ;;  %v2069_v15 = vld [vmem:[%s8116_s21 + $0x3550] sm:$0xff] }
 0x39f   : > { %5383 = vmatpush.msra.mxu0 %v998_v13  ;;  %5402 = vmatpush.msra.mxu1 %v1151_v31  ;;  %v1619_v13 = vld [vmem:[%s8116_s21 + $0x2740] sm:$0xff]  ;;  %v1772_v31 = vld [vmem:[%s8116_s21 + $0x2c08] sm:$0xff] }
 0x3a0   : > { %5423 = vmatpush.msra.mxu2 %v1286_v19  ;;  %5442 = vmatpush.msra.mxu3 %v1439_v7  ;;  %v1907_v19 = vld [vmem:[%s8116_s21 + $0x3040] sm:$0xff]  ;;  %v2060_v7 = vld [vmem:[%s8116_s21 + $0x3508] sm:$0xff] }
 0x3a1   : > { %5384 = vmatpush.msra.mxu0 %v989_v30  ;;  %5403 = vmatpush.msra.mxu1 %v1142_v46  ;;  %v1610_v30 = vld [vmem:[%s8116_s21 + $0x26f8] sm:$0xff]  ;;  %v1763_v46 = vld [vmem:[%s8116_s21 + $0x2bc0] sm:$0xff] }
 0x3a2   : > { %5424 = vmatpush.msra.mxu2 %v1277_v38  ;;  %5443 = vmatpush.msra.mxu3 %v1430_v34  ;;  %v1898_v38 = vld [vmem:[%s8116_s21 + $0x2ff8] sm:$0xff]  ;;  %v2051_v34 = vld [vmem:[%s8116_s21 + $0x34c0] sm:$0xff] }
 0x3a3   : > { %5385 = vmatpush.msra.mxu0 %v980_v23  ;;  %5404 = vmatpush.msra.mxu1 %v1133_v9  ;;  %v1601_v23 = vld [vmem:[%s8116_s21 + $0x26b0] sm:$0xff]  ;;  %v1754_v9 = vld [vmem:[%s8116_s21 + $0x2b78] sm:$0xff] }
 0x3a4   : > { %5425 = vmatpush.msra.mxu2 %v1268_v10  ;;  %5444 = vmatpush.msra.mxu3 %v1421_v44  ;;  %v5071_v18 = vpop.f32.mrf.mxu0  ;;  %v1889_v10 = vld [vmem:[%s8116_s21 + $0x2fb0] sm:$0xff]  ;;  %v2042_v44 = vld [vmem:[%s8116_s21 + $0x3478] sm:$0xff] }
 0x3a5   : > { %5386 = vmatpush.msra.mxu0 %v971_v52  ;;  %5405 = vmatpush.msra.mxu1 %v1124_v16  ;;  %v5072_v1 = vadd.f32 %v5071_v18, %v10071_v21  ;;  %v1088_v21 = vld [vmem:[%s8116_s21 + $0x16a8] sm:$0xff]  ;;  %v1745_v16 = vld [vmem:[%s8116_s21 + $0x2b30] sm:$0xff]  ;;  %v1871_v18 = vld [vmem:[%s8116_s21 + $0x2f20] sm:$0xff] }
 0x3a6   : > { %5426 = vmatpush.msra.mxu2 %v1259_v6  ;;  %5445 = vmatpush.msra.mxu3 %v1412_v4  ;;  %v1592_v52 = vld [vmem:[%s8116_s21 + $0x2668] sm:$0xff]  ;;  %v2033_v4 = vld [vmem:[%s8116_s21 + $0x3430] sm:$0xff] }
 0x3a7   : > { %5387 = vmatpush.msra.mxu0 %v962_v32  ;;  %5406 = vmatpush.msra.mxu1 %v1115_v28  ;;  %v5091_v53 = vpop.f32.mrf.mxu1  ;;  %v1880_v6 = vld [vmem:[%s8116_s21 + $0x2f68] sm:$0xff]  ;;  %v1583_v32 = vld [vmem:[%s8116_s21 + $0x2620] sm:$0xff] }
 0x3a8   : > { %5427 = vmatpush.msra.mxu2 %v1250_v22  ;;  %5446 = vmatpush.msra.mxu3 %v1403_v14  ;;  %v5092_v47 = vadd.f32 %v5091_v53, %v5072_v1  ;;  %v1736_v28 = vld [vmem:[%s8116_s21 + $0x2ae8] sm:$0xff]  ;;  %v1574_v14 = vld [vmem:[%s8116_s21 + $0x25d8] sm:$0xff]  ;;  %v1727_v1 = vld [vmem:[%s8116_s21 + $0x2aa0] sm:$0xff] }
 0x3a9   : > { %5388 = vmatpush.msra.mxu0 %v953_v11  ;;  %5407 = vmatpush.msra.mxu1 %v1106_v12  ;;  %v2024_v22 = vld [vmem:[%s8116_s21 + $0x33e8] sm:$0xff]  ;;  %v1862_v11 = vld [vmem:[%s8116_s21 + $0x2ed8] sm:$0xff]  ;;  %v2015_v12 = vld [vmem:[%s8116_s21 + $0x33a0] sm:$0xff] }
 0x3aa   : > { %5428 = vmatpush.msra.mxu2 %v1241_v5  ;;  %5447 = vmatpush.msra.mxu3 %v1394_v25  ;;  %v5111_v2 = vpop.f32.mrf.mxu2  ;;  %v1565_v5 = vld [vmem:[%s8116_s21 + $0x2590] sm:$0xff]  ;;  %v1718_v25 = vld [vmem:[%s8116_s21 + $0x2a58] sm:$0xff] }
 0x3ab   : > { %5350 = vmatmul.f32.vlgmr.msrb.gmra.mxu2 %v12471_v51  ;;  %5389 = vmatpush.msra.mxu0 %v944_v63  ;;  %v5112_v0 = vadd.f32 %v5111_v2, %v5092_v47  ;;  %v1853_v53 = vld [vmem:[%s8116_s21 + $0x2e90] sm:$0xff]  ;;  %v2006_v63 = vld [vmem:[%s8116_s21 + $0x3358] sm:$0xff]  ;;  %v1556_v47 = vld [vmem:[%s8116_s21 + $0x2548] sm:$0xff] }
 0x3ac   : > { %5408 = vmatpush.msra.mxu1 %v1097_v29  ;;  %5429 = vmatpush.msra.mxu2 %v1232_v49  ;;  %v1709_v29 = vld [vmem:[%s8116_s21 + $0x2a10] sm:$0xff]  ;;  %v1844_v49 = vld [vmem:[%s8116_s21 + $0x2e48] sm:$0xff]  ;;  %v1547_v2 = vld [vmem:[%s8116_s21 + $0x2500] sm:$0xff] }
 0x3ad   : > { %5448 = vmatpush.msra.mxu3 %v1385_v61  ;;  %5310 = vmatmul.f32.vlgmr.msrb.gmra.mxu0 %v12472_v37  ;;  %v5131_v33 = vpop.f32.mrf.mxu3  ;;  %v1997_v61 = vld [vmem:[%s8116_s21 + $0x3310] sm:$0xff] }
 0x3ae   : > { %5370 = vmatmul.f32.vlgmr.msrb.gmra.mxu3 %v12473_v26  ;;  %5454 = vmatpush.msrb.mxu0 %v1655_v20  ;;  %v10129_v24 = vadd.f32 %v5131_v33, %v5112_v0  ;;  %v1700_v20 = vld [vmem:[%s8116_s21 + $0x29c8] sm:$0xff]  ;;  %v1538_v33 = vld [vmem:[%s8116_s21 + $0x24b8] sm:$0xff] }
 0x3af   : > { %5494 = vmatpush.msrb.mxu2 %v1943_v62  ;;  %5409 = vmatpush.msra.mxu1 %v1088_v21  ;;  %v1835_v62 = vld [vmem:[%s8116_s21 + $0x2e00] sm:$0xff]  ;;  %v1988_v21 = vld [vmem:[%s8116_s21 + $0x32c8] sm:$0xff] }
 0x3b0   : > { %5449 = vmatpush.msra.mxu3 %v1376_v48  ;;  %5330 = vmatmul.f32.vlgmr.msrb.gmra.mxu1 %v12474_v27 }
 0x3b1   : > { %5455 = vmatpush.msrb.mxu0 %v1646_v36  ;;  %5474 = vmatpush.msrb.mxu1 %v1799_v17  ;;  %v1691_v36 = vld [vmem:[%s8116_s21 + $0x2980] sm:$0xff]  ;;  %v1826_v17 = vld [vmem:[%s8116_s21 + $0x2db8] sm:$0xff] }
 0x3b2   : > { %5495 = vmatpush.msrb.mxu2 %v1934_v43  ;;  %5514 = vmatpush.msrb.mxu3 %v2087_v8  ;;  %v1979_v43 = vld [vmem:[%s8116_s21 + $0x3280] sm:$0xff] }
 0x3b3   : > { %5456 = vmatpush.msrb.mxu0 %v1637_v35  ;;  %5475 = vmatpush.msrb.mxu1 %v1790_v54  ;;  %v1529_v35 = vld [vmem:[%s8116_s21 + $0x2470] sm:$0xff]  ;;  %v1682_v54 = vld [vmem:[%s8116_s21 + $0x2938] sm:$0xff] }
 0x3b4   : > { %5496 = vmatpush.msrb.mxu2 %v1925_v45  ;;  %5515 = vmatpush.msrb.mxu3 %v2078_v50  ;;  %v1817_v45 = vld [vmem:[%s8116_s21 + $0x2d70] sm:$0xff]  ;;  %v1970_v50 = vld [vmem:[%s8116_s21 + $0x3238] sm:$0xff] }
 0x3b5   : > { %5430 = vmatmul.f32.vlgmr.msra.gmra.mxu2 %v8238_v57  ;;  %5457 = vmatpush.msrb.mxu0 %v1628_v55  ;;  %v1520_v55 = vld [vmem:[%s8116_s21 + $0x2428] sm:$0xff] }
 0x3b6   : > { %5476 = vmatpush.msrb.mxu1 %v1781_v3  ;;  %5497 = vmatpush.msrb.mxu2 %v1916_v56  ;;  %v1673_v3 = vld [vmem:[%s8116_s21 + $0x28f0] sm:$0xff] }
 0x3b7   : > { %5516 = vmatpush.msrb.mxu3 %v2069_v15  ;;  %5390 = vmatmul.f32.vlgmr.msra.gmra.mxu0 %v8240_v58  ;;  %v1808_v15 = vld [vmem:[%s8116_s21 + $0x2d28] sm:$0xff] }
 0x3b8   : > { %5450 = vmatmul.f32.vlgmr.msra.gmra.mxu3 %v8242_v59  ;;  %5458 = vmatpush.msrb.mxu0 %v1619_v13  ;;  %v1961_v13 = vld [vmem:[%s8116_s21 + $0x31f0] sm:$0xff] }
 0x3b9   : > { %5477 = vmatpush.msrb.mxu1 %v1772_v31  ;;  %5498 = vmatpush.msrb.mxu2 %v1907_v19  ;;  %v2231_v19 = vld [vmem:[%s8116_s21 + $0x3a60] sm:$0xff] }
 0x3ba   : > { %5517 = vmatpush.msrb.mxu3 %v2060_v7  ;;  %5410 = vmatmul.f32.vlgmr.msra.gmra.mxu1 %v8244_v60  ;;  %v2519_v7 = vld [vmem:[%s8116_s21 + $0x4360] sm:$0xff] }
 0x3bb   : > { %5459 = vmatpush.msrb.mxu0 %v1610_v30  ;;  %5478 = vmatpush.msrb.mxu1 %v1763_v46  ;;  %v1664_v46 = vld [vmem:[%s8116_s21 + $0x28a8] sm:$0xff] }
 0x3bc   : > { %5499 = vmatpush.msrb.mxu2 %v1898_v38  ;;  %5518 = vmatpush.msrb.mxu3 %v2051_v34  ;;  %v1952_v38 = vld [vmem:[%s8116_s21 + $0x31a8] sm:$0xff] }
 0x3bd   : > { %5460 = vmatpush.msrb.mxu0 %v1601_v23  ;;  %5479 = vmatpush.msrb.mxu1 %v1754_v9  ;;  %v2222_v23 = vld [vmem:[%s8116_s21 + $0x3a18] sm:$0xff]  ;;  %v2375_v9 = vld [vmem:[%s8116_s21 + $0x3ee0] sm:$0xff] }
 0x3be   : > { %5500 = vmatpush.msrb.mxu2 %v1889_v10  ;;  %5519 = vmatpush.msrb.mxu3 %v2042_v44  ;;  %v2510_v10 = vld [vmem:[%s8116_s21 + $0x4318] sm:$0xff]  ;;  %v2663_v44 = vld [vmem:[%s8116_s21 + $0x47e0] sm:$0xff] }
 0x3bf   : > { %5461 = vmatpush.msrb.mxu0 %v1592_v52  ;;  %5480 = vmatpush.msrb.mxu1 %v1745_v16  ;;  %v2213_v52 = vld [vmem:[%s8116_s21 + $0x39d0] sm:$0xff]  ;;  %v2366_v16 = vld [vmem:[%s8116_s21 + $0x3e98] sm:$0xff] }
 0x3c0   : > { %5501 = vmatpush.msrb.mxu2 %v1880_v6  ;;  %5520 = vmatpush.msrb.mxu3 %v2033_v4  ;;  %v2501_v6 = vld [vmem:[%s8116_s21 + $0x42d0] sm:$0xff]  ;;  %v2654_v4 = vld [vmem:[%s8116_s21 + $0x4798] sm:$0xff] }
 0x3c1   : > { %5462 = vmatpush.msrb.mxu0 %v1583_v32  ;;  %5481 = vmatpush.msrb.mxu1 %v1736_v28  ;;  %v2204_v32 = vld [vmem:[%s8116_s21 + $0x3988] sm:$0xff]  ;;  %v2357_v28 = vld [vmem:[%s8116_s21 + $0x3e50] sm:$0xff] }
 0x3c2   : > { %5502 = vmatpush.msrb.mxu2 %v1871_v18  ;;  %5521 = vmatpush.msrb.mxu3 %v2024_v22  ;;  %v2492_v18 = vld [vmem:[%s8116_s21 + $0x4288] sm:$0xff]  ;;  %v2645_v22 = vld [vmem:[%s8116_s21 + $0x4750] sm:$0xff] }
 0x3c3   : > { %5463 = vmatpush.msrb.mxu0 %v1574_v14  ;;  %5482 = vmatpush.msrb.mxu1 %v1727_v1  ;;  %v2195_v14 = vld [vmem:[%s8116_s21 + $0x3940] sm:$0xff]  ;;  %v2348_v1 = vld [vmem:[%s8116_s21 + $0x3e08] sm:$0xff] }
 0x3c4   : > { %5503 = vmatpush.msrb.mxu2 %v1862_v11  ;;  %5522 = vmatpush.msrb.mxu3 %v2015_v12  ;;  %v2483_v11 = vld [vmem:[%s8116_s21 + $0x4240] sm:$0xff]  ;;  %v2636_v12 = vld [vmem:[%s8116_s21 + $0x4708] sm:$0xff] }
 0x3c5   : > { %5464 = vmatpush.msrb.mxu0 %v1565_v5  ;;  %5483 = vmatpush.msrb.mxu1 %v1718_v25  ;;  %v2186_v5 = vld [vmem:[%s8116_s21 + $0x38f8] sm:$0xff]  ;;  %v2339_v25 = vld [vmem:[%s8116_s21 + $0x3dc0] sm:$0xff] }
 0x3c6   : > { %5504 = vmatpush.msrb.mxu2 %v1853_v53  ;;  %5523 = vmatpush.msrb.mxu3 %v2006_v63  ;;  %v5151_v0 = vpop.f32.mrf.mxu0  ;;  %v2474_v53 = vld [vmem:[%s8116_s21 + $0x41f8] sm:$0xff]  ;;  %v2627_v63 = vld [vmem:[%s8116_s21 + $0x46c0] sm:$0xff] }
 0x3c7   : > { %5465 = vmatpush.msrb.mxu0 %v1556_v47  ;;  %5484 = vmatpush.msrb.mxu1 %v1709_v29  ;;  %v5152_v48 = vadd.f32 %v5151_v0, %v10129_v24  ;;  %v2177_v47 = vld [vmem:[%s8116_s21 + $0x38b0] sm:$0xff]  ;;  %v2330_v29 = vld [vmem:[%s8116_s21 + $0x3d78] sm:$0xff]  ;;  %v2456_v0 = vld [vmem:[%s8116_s21 + $0x4168] sm:$0xff] }
 0x3c8   : > { %5505 = vmatpush.msrb.mxu2 %v1844_v49  ;;  %5524 = vmatpush.msrb.mxu3 %v1997_v61  ;;  %v2465_v49 = vld [vmem:[%s8116_s21 + $0x41b0] sm:$0xff]  ;;  %v2618_v61 = vld [vmem:[%s8116_s21 + $0x4678] sm:$0xff] }
 0x3c9   : > { %5466 = vmatpush.msrb.mxu0 %v1547_v2  ;;  %5485 = vmatpush.msrb.mxu1 %v1700_v20  ;;  %v5171_v8 = vpop.f32.mrf.mxu1  ;;  %v2168_v2 = vld [vmem:[%s8116_s21 + $0x3868] sm:$0xff]  ;;  %v2321_v20 = vld [vmem:[%s8116_s21 + $0x3d30] sm:$0xff] }
 0x3ca   : > { %5506 = vmatpush.msrb.mxu2 %v1835_v62  ;;  %5525 = vmatpush.msrb.mxu3 %v1988_v21  ;;  %v5172_v24 = vadd.f32 %v5171_v8, %v5152_v48  ;;  %v2609_v62 = vld [vmem:[%s8116_s21 + $0x4630] sm:$0xff]  ;;  %v2159_v21 = vld [vmem:[%s8116_s21 + $0x3820] sm:$0xff]  ;;  %v2312_v48 = vld [vmem:[%s8116_s21 + $0x3ce8] sm:$0xff] }
 0x3cb   : > { %5467 = vmatpush.msrb.mxu0 %v1538_v33  ;;  %5486 = vmatpush.msrb.mxu1 %v1691_v36  ;;  %v2447_v33 = vld [vmem:[%s8116_s21 + $0x4120] sm:$0xff]  ;;  %v2600_v36 = vld [vmem:[%s8116_s21 + $0x45e8] sm:$0xff]  ;;  %v2438_v8 = vld [vmem:[%s8116_s21 + $0x40d8] sm:$0xff] }
 0x3cc   : > { %5507 = vmatpush.msrb.mxu2 %v1826_v17  ;;  %5526 = vmatpush.msrb.mxu3 %v1979_v43  ;;  %v5191_v56 = vpop.f32.mrf.mxu2  ;;  %v2150_v17 = vld [vmem:[%s8116_s21 + $0x37d8] sm:$0xff]  ;;  %v2303_v43 = vld [vmem:[%s8116_s21 + $0x3ca0] sm:$0xff] }
 0x3cd   : > { %5468 = vmatpush.msrb.mxu0 %v1529_v35  ;;  %5487 = vmatpush.msrb.mxu1 %v1682_v54  ;;  %v5192_v31 = vadd.f32 %v5191_v56, %v5172_v24  ;;  %v2591_v35 = vld [vmem:[%s8116_s21 + $0x45a0] sm:$0xff]  ;;  %v2141_v54 = vld [vmem:[%s8116_s21 + $0x3790] sm:$0xff]  ;;  %v2294_v24 = vld [vmem:[%s8116_s21 + $0x3c58] sm:$0xff] }
 0x3ce   : > { %5508 = vmatpush.msrb.mxu2 %v1817_v45  ;;  %5527 = vmatpush.msrb.mxu3 %v1970_v50  ;;  %v2429_v45 = vld [vmem:[%s8116_s21 + $0x4090] sm:$0xff]  ;;  %v2582_v50 = vld [vmem:[%s8116_s21 + $0x4558] sm:$0xff]  ;;  %v2420_v56 = vld [vmem:[%s8116_s21 + $0x4048] sm:$0xff] }
 0x3cf   : > { %5469 = vmatpush.msrb.mxu0 %v1520_v55  ;;  %5488 = vmatpush.msrb.mxu1 %v1673_v3  ;;  %v5211_v30 = vpop.f32.mrf.mxu3  ;;  %v2132_v55 = vld [vmem:[%s8116_s21 + $0x3748] sm:$0xff]  ;;  %v2285_v3 = vld [vmem:[%s8116_s21 + $0x3c10] sm:$0xff] }
 0x3d0   : > { %5509 = vmatpush.msrb.mxu2 %v1808_v15  ;;  %5528 = vmatpush.msrb.mxu3 %v1961_v13  ;;  %v10199_v34 = vadd.f32 %v5211_v30, %v5192_v31  ;;  %v2573_v15 = vld [vmem:[%s8116_s21 + $0x4510] sm:$0xff]  ;;  %v2123_v13 = vld [vmem:[%s8116_s21 + $0x3700] sm:$0xff]  ;;  %v2276_v31 = vld [vmem:[%s8116_s21 + $0x3bc8] sm:$0xff] }
 0x3d1   : > { %5470 = vmatmul.f32.vlgmr.msrb.gmra.mxu0 %v8299_v39  ;;  %5510 = vmatmul.f32.vlgmr.msrb.gmra.mxu2 %v8301_v40  ;;  %v2564_v30 = vld [vmem:[%s8116_s21 + $0x44c8] sm:$0xff] }
 0x3d2   : > { %5534 = vmatpush.msra.mxu0 %v2231_v19  ;;  %5574 = vmatpush.msra.mxu2 %v2519_v7  ;;  %v2411_v7 = vld [vmem:[%s8116_s21 + $0x4000] sm:$0xff] }
 0x3d3   : > { %5489 = vmatpush.msrb.mxu1 %v1664_v46  ;;  %5529 = vmatpush.msrb.mxu3 %v1952_v38  ;;  %v2114_v38 = vld [vmem:[%s8116_s21 + $0x36b8] sm:$0xff] }
 0x3d4   : > { %5490 = vmatmul.f32.vlgmr.msrb.gmra.mxu1 %v8304_v41  ;;  %5530 = vmatmul.f32.vlgmr.msrb.gmra.mxu3 %v8306_v42 }
 0x3d5   : > { %5535 = vmatpush.msra.mxu0 %v2222_v23  ;;  %5554 = vmatpush.msra.mxu1 %v2375_v9  ;;  %v2267_v23 = vld [vmem:[%s8116_s21 + $0x3b80] sm:$0xff]  ;;  %v2402_v9 = vld [vmem:[%s8116_s21 + $0x3fb8] sm:$0xff] }
 0x3d6   : > { %5575 = vmatpush.msra.mxu2 %v2510_v10  ;;  %5594 = vmatpush.msra.mxu3 %v2663_v44  ;;  %v2555_v10 = vld [vmem:[%s8116_s21 + $0x4480] sm:$0xff] }
 0x3d7   : > { %5536 = vmatpush.msra.mxu0 %v2213_v52  ;;  %5555 = vmatpush.msra.mxu1 %v2366_v16  ;;  %v2105_v52 = vld [vmem:[%s8116_s21 + $0x3670] sm:$0xff]  ;;  %v2258_v16 = vld [vmem:[%s8116_s21 + $0x3b38] sm:$0xff] }
 0x3d8   : > { %5576 = vmatpush.msra.mxu2 %v2501_v6  ;;  %5595 = vmatpush.msra.mxu3 %v2654_v4  ;;  %v2546_v6 = vld [vmem:[%s8116_s21 + $0x4438] sm:$0xff] }
 0x3d9   : > { %5537 = vmatpush.msra.mxu0 %v2204_v32  ;;  %5556 = vmatpush.msra.mxu1 %v2357_v28  ;;  %v2096_v32 = vld [vmem:[%s8116_s21 + $0x3628] sm:$0xff]  ;;  %v2249_v28 = vld [vmem:[%s8116_s21 + $0x3af0] sm:$0xff] }
 0x3da   : > { %5577 = vmatpush.msra.mxu2 %v2492_v18  ;;  %5596 = vmatpush.msra.mxu3 %v2645_v22  ;;  %v2384_v22 = vld [vmem:[%s8116_s21 + $0x3f28] sm:$0xff] }
 0x3db   : > { %5538 = vmatpush.msra.mxu0 %v2195_v14  ;;  %5557 = vmatpush.msra.mxu1 %v2348_v1  ;;  %v2537_v14 = vld [vmem:[%s8116_s21 + $0x43f0] sm:$0xff] }
 0x3dc   : > { %5578 = vmatpush.msra.mxu2 %v2483_v11  ;;  %5597 = vmatpush.msra.mxu3 %v2636_v12  ;;  %v2807_v11 = vld [vmem:[%s8116_s21 + $0x4c60] sm:$0xff] }
 0x3dd   : > { %5539 = vmatpush.msra.mxu0 %v2186_v5  ;;  %5558 = vmatpush.msra.mxu1 %v2339_v25  ;;  %v3095_v12 = vld [vmem:[%s8116_s21 + $0x5560] sm:$0xff]  ;;  %v2240_v25 = vld [vmem:[%s8116_s21 + $0x3aa8] sm:$0xff] }
 0x3de   : > { %5579 = vmatpush.msra.mxu2 %v2474_v53  ;;  %5598 = vmatpush.msra.mxu3 %v2627_v63  ;;  %v2528_v53 = vld [vmem:[%s8116_s21 + $0x43a8] sm:$0xff] }
 0x3df   : > { %5540 = vmatpush.msra.mxu0 %v2177_v47  ;;  %5559 = vmatpush.msra.mxu1 %v2330_v29  ;;  %v7971_v47 = vld.sshfl [vmem:[#allocation1 + $0x20] sm:$0xff pattern:$0x73625140]  ;;  %v7972_v29 = vld.sshfl [vmem:[#allocation1 + $0x30] sm:$0xff pattern:$0x73625140] }
 0x3e0   : > { %5580 = vmatpush.msra.mxu2 %v2465_v49  ;;  %5599 = vmatpush.msra.mxu3 %v2618_v61  ;;  %v2798_v49 = vld [vmem:[%s8116_s21 + $0x4c18] sm:$0xff]  ;;  %v2951_v61 = vld [vmem:[%s8116_s21 + $0x50e0] sm:$0xff] }
 0x3e1   : > { %5541 = vmatpush.msra.mxu0 %v2168_v2  ;;  %5560 = vmatpush.msra.mxu1 %v2321_v20  ;;  %v3086_v2 = vld [vmem:[%s8116_s21 + $0x5518] sm:$0xff]  ;;  %v3239_v20 = vld [vmem:[%s8116_s21 + $0x59e0] sm:$0xff] }
 0x3e2   : > { %5581 = vmatpush.msra.mxu2 %v2456_v0  ;;  %5600 = vmatpush.msra.mxu3 %v2609_v62  ;;  %v7973_v0 = vld.sshfl [vmem:[#allocation1 + $0x28] sm:$0xff pattern:$0x73625140]  ;;  %v7974_v62 = vld.sshfl [vmem:[#allocation1 + $0x38] sm:$0xff pattern:$0x73625140] }
 0x3e3   : > { %5542 = vmatpush.msra.mxu0 %v2159_v21  ;;  %5561 = vmatpush.msra.mxu1 %v2312_v48  ;;  %v2789_v21 = vld [vmem:[%s8116_s21 + $0x4bd0] sm:$0xff]  ;;  %v2942_v48 = vld [vmem:[%s8116_s21 + $0x5098] sm:$0xff] }
 0x3e4   : > { %5582 = vmatpush.msra.mxu2 %v2447_v33  ;;  %5601 = vmatpush.msra.mxu3 %v2600_v36  ;;  %v3077_v33 = vld [vmem:[%s8116_s21 + $0x54d0] sm:$0xff]  ;;  %v3230_v36 = vld [vmem:[%s8116_s21 + $0x5998] sm:$0xff] }
 0x3e5   : > { %5543 = vmatpush.msra.mxu0 %v2150_v17  ;;  %5562 = vmatpush.msra.mxu1 %v2303_v43  ;;  %v2780_v17 = vld [vmem:[%s8116_s21 + $0x4b88] sm:$0xff]  ;;  %v2933_v43 = vld [vmem:[%s8116_s21 + $0x5050] sm:$0xff] }
 0x3e6   : > { %5583 = vmatpush.msra.mxu2 %v2438_v8  ;;  %5602 = vmatpush.msra.mxu3 %v2591_v35  ;;  %v3068_v8 = vld [vmem:[%s8116_s21 + $0x5488] sm:$0xff]  ;;  %v3221_v35 = vld [vmem:[%s8116_s21 + $0x5950] sm:$0xff] }
 0x3e7   : > { %5544 = vmatpush.msra.mxu0 %v2141_v54  ;;  %5563 = vmatpush.msra.mxu1 %v2294_v24  ;;  %v2771_v54 = vld [vmem:[%s8116_s21 + $0x4b40] sm:$0xff]  ;;  %v2924_v24 = vld [vmem:[%s8116_s21 + $0x5008] sm:$0xff] }
 0x3e8   : > { %5584 = vmatpush.msra.mxu2 %v2429_v45  ;;  %5603 = vmatpush.msra.mxu3 %v2582_v50  ;;  %v5231_v19 = vpop.f32.mrf.mxu0  ;;  %v3059_v45 = vld [vmem:[%s8116_s21 + $0x5440] sm:$0xff]  ;;  %v3212_v50 = vld [vmem:[%s8116_s21 + $0x5908] sm:$0xff] }
 0x3e9   : > { %5545 = vmatpush.msra.mxu0 %v2132_v55  ;;  %5564 = vmatpush.msra.mxu1 %v2285_v3  ;;  %v5232_v46 = vadd.f32 %v5231_v19, %v10199_v34  ;;  %v2393_v34 = vld [vmem:[%s8116_s21 + $0x3f70] sm:$0xff]  ;;  %v2762_v55 = vld [vmem:[%s8116_s21 + $0x4af8] sm:$0xff]  ;;  %v2915_v3 = vld [vmem:[%s8116_s21 + $0x4fc0] sm:$0xff] }
 0x3ea   : > { %5585 = vmatpush.msra.mxu2 %v2420_v56  ;;  %5604 = vmatpush.msra.mxu3 %v2573_v15  ;;  %v3050_v56 = vld [vmem:[%s8116_s21 + $0x53f8] sm:$0xff]  ;;  %v3203_v15 = vld [vmem:[%s8116_s21 + $0x58c0] sm:$0xff]  ;;  %v3041_v19 = vld [vmem:[%s8116_s21 + $0x53b0] sm:$0xff] }
 0x3eb   : > { %5546 = vmatpush.msra.mxu0 %v2123_v13  ;;  %5565 = vmatpush.msra.mxu1 %v2276_v31  ;;  %v5251_v44 = vpop.f32.mrf.mxu1  ;;  %v2753_v13 = vld [vmem:[%s8116_s21 + $0x4ab0] sm:$0xff]  ;;  %v2906_v31 = vld [vmem:[%s8116_s21 + $0x4f78] sm:$0xff] }
 0x3ec   : > { %5586 = vmatpush.msra.mxu2 %v2411_v7  ;;  %5605 = vmatpush.msra.mxu3 %v2564_v30  ;;  %v5252_v4 = vadd.f32 %v5251_v44, %v5232_v46  ;;  %v3194_v7 = vld [vmem:[%s8116_s21 + $0x5878] sm:$0xff]  ;;  %v2744_v30 = vld [vmem:[%s8116_s21 + $0x4a68] sm:$0xff]  ;;  %v2897_v46 = vld [vmem:[%s8116_s21 + $0x4f30] sm:$0xff] }
 0x3ed   : > { %5547 = vmatpush.msra.mxu0 %v2114_v38  ;;  %5566 = vmatpush.msra.mxu1 %v2267_v23  ;;  %v3032_v38 = vld [vmem:[%s8116_s21 + $0x5368] sm:$0xff]  ;;  %v3185_v23 = vld [vmem:[%s8116_s21 + $0x5830] sm:$0xff]  ;;  %v3023_v44 = vld [vmem:[%s8116_s21 + $0x5320] sm:$0xff] }
 0x3ee   : > { %5587 = vmatpush.msra.mxu2 %v2402_v9  ;;  %5606 = vmatpush.msra.mxu3 %v2555_v10  ;;  %v5271_v18 = vpop.f32.mrf.mxu2  ;;  %v2735_v9 = vld [vmem:[%s8116_s21 + $0x4a20] sm:$0xff]  ;;  %v2888_v10 = vld [vmem:[%s8116_s21 + $0x4ee8] sm:$0xff] }
 0x3ef   : > { %5548 = vmatpush.msra.mxu0 %v2105_v52  ;;  %5567 = vmatpush.msra.mxu1 %v2258_v16  ;;  %v5272_v1 = vadd.f32 %v5271_v18, %v5252_v4  ;;  %v3176_v52 = vld [vmem:[%s8116_s21 + $0x57e8] sm:$0xff]  ;;  %v2726_v16 = vld [vmem:[%s8116_s21 + $0x49d8] sm:$0xff]  ;;  %v3167_v4 = vld [vmem:[%s8116_s21 + $0x57a0] sm:$0xff] }
 0x3f0   : > { %5588 = vmatpush.msra.mxu2 %v2393_v34  ;;  %5607 = vmatpush.msra.mxu3 %v2546_v6  ;;  %v2879_v34 = vld [vmem:[%s8116_s21 + $0x4ea0] sm:$0xff]  ;;  %v3014_v6 = vld [vmem:[%s8116_s21 + $0x52d8] sm:$0xff]  ;;  %v3005_v18 = vld [vmem:[%s8116_s21 + $0x5290] sm:$0xff] }
 0x3f1   : > { %5549 = vmatpush.msra.mxu0 %v2096_v32  ;;  %5568 = vmatpush.msra.mxu1 %v2249_v28  ;;  %v5291_v5 = vpop.f32.mrf.mxu3  ;;  %v2717_v32 = vld [vmem:[%s8116_s21 + $0x4990] sm:$0xff]  ;;  %v2870_v28 = vld [vmem:[%s8116_s21 + $0x4e58] sm:$0xff] }
 0x3f2   : > { %5589 = vmatpush.msra.mxu2 %v2384_v22  ;;  %5608 = vmatpush.msra.mxu3 %v2537_v14  ;;  %v10270_v63 = vadd.f32 %v5291_v5, %v5272_v1  ;;  %v3158_v22 = vld [vmem:[%s8116_s21 + $0x5758] sm:$0xff]  ;;  %v2708_v14 = vld [vmem:[%s8116_s21 + $0x4948] sm:$0xff]  ;;  %v2861_v1 = vld [vmem:[%s8116_s21 + $0x4e10] sm:$0xff] }
 0x3f3   : > { %5550 = vmatmul.f32.vlgmr.msra.gmra.mxu0 %v7971_v47  ;;  %5590 = vmatmul.f32.vlgmr.msra.gmra.mxu2 %v7972_v29  ;;  %v2699_v5 = vld [vmem:[%s8116_s21 + $0x4900] sm:$0xff]  ;;  %v3140_v47 = vld [vmem:[%s8116_s21 + $0x56c8] sm:$0xff]  ;;  %v2690_v29 = vld [vmem:[%s8116_s21 + $0x48b8] sm:$0xff] }
 0x3f4   : > { %5614 = vmatpush.msrb.mxu0 %v2807_v11  ;;  %5654 = vmatpush.msrb.mxu2 %v3095_v12  ;;  %v2996_v11 = vld [vmem:[%s8116_s21 + $0x5248] sm:$0xff]  ;;  %v3149_v12 = vld [vmem:[%s8116_s21 + $0x5710] sm:$0xff] }
 0x3f5   : > { %5569 = vmatpush.msra.mxu1 %v2240_v25  ;;  %5609 = vmatpush.msra.mxu3 %v2528_v53  ;;  %v2852_v25 = vld [vmem:[%s8116_s21 + $0x4dc8] sm:$0xff]  ;;  %v2987_v53 = vld [vmem:[%s8116_s21 + $0x5200] sm:$0xff] }
 0x3f6   : > { %5570 = vmatmul.f32.vlgmr.msra.gmra.mxu1 %v7973_v0  ;;  %5610 = vmatmul.f32.vlgmr.msra.gmra.mxu3 %v7974_v62  ;;  %v2834_v0 = vld [vmem:[%s8116_s21 + $0x4d38] sm:$0xff]  ;;  %v2969_v62 = vld [vmem:[%s8116_s21 + $0x5170] sm:$0xff] }
 0x3f7   : > { %5615 = vmatpush.msrb.mxu0 %v2798_v49  ;;  %5634 = vmatpush.msrb.mxu1 %v2951_v61  ;;  %v2843_v49 = vld [vmem:[%s8116_s21 + $0x4d80] sm:$0xff]  ;;  %v2978_v61 = vld [vmem:[%s8116_s21 + $0x51b8] sm:$0xff] }
 0x3f8   : > { %5655 = vmatpush.msrb.mxu2 %v3086_v2  ;;  %5674 = vmatpush.msrb.mxu3 %v3239_v20  ;;  %v3131_v2 = vld [vmem:[%s8116_s21 + $0x5680] sm:$0xff]  ;;  %v2681_v20 = vld [vmem:[%s8116_s21 + $0x4870] sm:$0xff] }
 0x3f9   : > { %5616 = vmatpush.msrb.mxu0 %v2789_v21  ;;  %5635 = vmatpush.msrb.mxu1 %v2942_v48  ;;  %v3122_v21 = vld [vmem:[%s8116_s21 + $0x5638] sm:$0xff]  ;;  %v2672_v48 = vld [vmem:[%s8116_s21 + $0x4828] sm:$0xff] }
 0x3fa   : > { %5656 = vmatpush.msrb.mxu2 %v3077_v33  ;;  %5675 = vmatpush.msrb.mxu3 %v3230_v36  ;;  %v2825_v33 = vld [vmem:[%s8116_s21 + $0x4cf0] sm:$0xff]  ;;  %v2960_v36 = vld [vmem:[%s8116_s21 + $0x5128] sm:$0xff] }
 0x3fb   : > { %5617 = vmatpush.msrb.mxu0 %v2780_v17  ;;  %5636 = vmatpush.msrb.mxu1 %v2933_v43  ;;  %v3113_v17 = vld [vmem:[%s8116_s21 + $0x55f0] sm:$0xff]  ;;  %v504_v43 = vld [vmem:[%s8116_s21 + $0x468] sm:$0xff] }
 0x3fc   : > { %5657 = vmatpush.msrb.mxu2 %v3068_v8  ;;  %5676 = vmatpush.msrb.mxu3 %v3221_v35  ;;  %v792_v8 = vld [vmem:[%s8116_s21 + $0xd68] sm:$0xff] }
 0x3fd   : > { %5618 = vmatpush.msrb.mxu0 %v2771_v54  ;;  %5637 = vmatpush.msrb.mxu1 %v2924_v24  ;;  %v2816_v35 = vld [vmem:[%s8116_s21 + $0x4ca8] sm:$0xff]  ;;  %v7975_v24 = vld.sshfl [vmem:[#allocation1] sm:$0xff pattern:$0x73625140] }
 0x3fe   : > { %5658 = vmatpush.msrb.mxu2 %v3059_v45  ;;  %5677 = vmatpush.msrb.mxu3 %v3212_v50  ;;  %v3104_v54 = vld [vmem:[%s8116_s21 + $0x55a8] sm:$0xff]  ;;  %v7976_v45 = vld.sshfl [vmem:[#allocation1 + $0x10] sm:$0xff pattern:$0x73625140]  ;;  %v495_v50 = vld [vmem:[%s8116_s21 + $0x420] sm:$0xff] }
 0x3ff   : > { %5619 = vmatpush.msrb.mxu0 %v2762_v55  ;;  %5638 = vmatpush.msrb.mxu1 %v2915_v3  ;;  %v648_v55 = vld [vmem:[%s8116_s21 + $0x8e8] sm:$0xff]  ;;  %v783_v3 = vld [vmem:[%s8116_s21 + $0xd20] sm:$0xff] }
 0x400   : > { %5659 = vmatpush.msrb.mxu2 %v3050_v56  ;;  %5678 = vmatpush.msrb.mxu3 %v3203_v15  ;;  %v936_v56 = vld [vmem:[%s8116_s21 + $0x11e8] sm:$0xff] }
 0x401   : > { %5620 = vmatpush.msrb.mxu0 %v2753_v13  ;;  %5639 = vmatpush.msrb.mxu1 %v2906_v31  ;;  %v7977_v15 = vld.sshfl [vmem:[#allocation1 + $0x8] sm:$0xff pattern:$0x73625140]  ;;  %v7978_v13 = vld.sshfl [vmem:[#allocation1 + $0x18] sm:$0xff pattern:$0x73625140] }
 0x402   : > { %5660 = vmatpush.msrb.mxu2 %v3041_v19  ;;  %5679 = vmatpush.msrb.mxu3 %v3194_v7  ;;  %v486_v31 = vld [vmem:[%s8116_s21 + $0x3d8] sm:$0xff]  ;;  %v639_v19 = vld [vmem:[%s8116_s21 + $0x8a0] sm:$0xff] }
 0x403   : > { %5621 = vmatpush.msrb.mxu0 %v2744_v30  ;;  %5640 = vmatpush.msrb.mxu1 %v2897_v46  ;;  %v774_v7 = vld [vmem:[%s8116_s21 + $0xcd8] sm:$0xff]  ;;  %v927_v30 = vld [vmem:[%s8116_s21 + $0x11a0] sm:$0xff]  ;;  %v477_v46 = vld [vmem:[%s8116_s21 + $0x390] sm:$0xff] }
 0x404   : > { %5661 = vmatpush.msrb.mxu2 %v3032_v38  ;;  %5680 = vmatpush.msrb.mxu3 %v3185_v23  ;;  %v630_v38 = vld [vmem:[%s8116_s21 + $0x858] sm:$0xff]  ;;  %v765_v23 = vld [vmem:[%s8116_s21 + $0xc90] sm:$0xff] }
 0x405   : > { %5622 = vmatpush.msrb.mxu0 %v2735_v9  ;;  %5641 = vmatpush.msrb.mxu1 %v2888_v10  ;;  %v918_v9 = vld [vmem:[%s8116_s21 + $0x1158] sm:$0xff]  ;;  %v468_v10 = vld [vmem:[%s8116_s21 + $0x348] sm:$0xff] }
 0x406   : > { %5662 = vmatpush.msrb.mxu2 %v3023_v44  ;;  %5681 = vmatpush.msrb.mxu3 %v3176_v52  ;;  %v621_v44 = vld [vmem:[%s8116_s21 + $0x810] sm:$0xff]  ;;  %v756_v52 = vld [vmem:[%s8116_s21 + $0xc48] sm:$0xff] }
 0x407   : > { %5623 = vmatpush.msrb.mxu0 %v2726_v16  ;;  %5642 = vmatpush.msrb.mxu1 %v2879_v34  ;;  %v909_v16 = vld [vmem:[%s8116_s21 + $0x1110] sm:$0xff]  ;;  %v459_v34 = vld [vmem:[%s8116_s21 + $0x300] sm:$0xff] }
 0x408   : > { %5663 = vmatpush.msrb.mxu2 %v3014_v6  ;;  %5682 = vmatpush.msrb.mxu3 %v3167_v4  ;;  %v612_v6 = vld [vmem:[%s8116_s21 + $0x7c8] sm:$0xff]  ;;  %v747_v4 = vld [vmem:[%s8116_s21 + $0xc00] sm:$0xff] }
 0x409   : > { %5624 = vmatpush.msrb.mxu0 %v2717_v32  ;;  %5643 = vmatpush.msrb.mxu1 %v2870_v28  ;;  %v900_v32 = vld [vmem:[%s8116_s21 + $0x10c8] sm:$0xff]  ;;  %v450_v28 = vld [vmem:[%s8116_s21 + $0x2b8] sm:$0xff] }
 0x40a   : > { %5664 = vmatpush.msrb.mxu2 %v3005_v18  ;;  %5683 = vmatpush.msrb.mxu3 %v3158_v22  ;;  %v603_v18 = vld [vmem:[%s8116_s21 + $0x780] sm:$0xff]  ;;  %v738_v22 = vld [vmem:[%s8116_s21 + $0xbb8] sm:$0xff] }
 0x40b   : > { %5625 = vmatpush.msrb.mxu0 %v2708_v14  ;;  %5644 = vmatpush.msrb.mxu1 %v2861_v1  ;;  %v891_v14 = vld [vmem:[%s8116_s21 + $0x1080] sm:$0xff]  ;;  %v441_v1 = vld [vmem:[%s8116_s21 + $0x270] sm:$0xff] }
 0x40c   : > { %5665 = vmatpush.msrb.mxu2 %v2996_v11  ;;  %5684 = vmatpush.msrb.mxu3 %v3149_v12  ;;  %v594_v11 = vld [vmem:[%s8116_s21 + $0x738] sm:$0xff]  ;;  %v729_v12 = vld [vmem:[%s8116_s21 + $0xb70] sm:$0xff] }
 0x40d   : > { %5626 = vmatpush.msrb.mxu0 %v2699_v5  ;;  %5645 = vmatpush.msrb.mxu1 %v2852_v25  ;;  %v882_v5 = vld [vmem:[%s8116_s21 + $0x1038] sm:$0xff]  ;;  %v432_v25 = vld [vmem:[%s8116_s21 + $0x228] sm:$0xff] }
 0x40e   : > { %5666 = vmatpush.msrb.mxu2 %v2987_v53  ;;  %5685 = vmatpush.msrb.mxu3 %v3140_v47  ;;  %v585_v53 = vld [vmem:[%s8116_s21 + $0x6f0] sm:$0xff]  ;;  %v720_v47 = vld [vmem:[%s8116_s21 + $0xb28] sm:$0xff] }
 0x40f   : > { %5627 = vmatpush.msrb.mxu0 %v2690_v29  ;;  %5646 = vmatpush.msrb.mxu1 %v2843_v49  ;;  %v873_v29 = vld [vmem:[%s8116_s21 + $0xff0] sm:$0xff]  ;;  %v423_v49 = vld [vmem:[%s8116_s21 + $0x1e0] sm:$0xff] }
 0x410   : > { %5667 = vmatpush.msrb.mxu2 %v2978_v61  ;;  %5686 = vmatpush.msrb.mxu3 %v3131_v2  ;;  %v576_v61 = vld [vmem:[%s8116_s21 + $0x6a8] sm:$0xff]  ;;  %v711_v2 = vld [vmem:[%s8116_s21 + $0xae0] sm:$0xff] }
 0x411   : > { %5628 = vmatpush.msrb.mxu0 %v2681_v20  ;;  %5647 = vmatpush.msrb.mxu1 %v2834_v0  ;;  %v864_v20 = vld [vmem:[%s8116_s21 + $0xfa8] sm:$0xff]  ;;  %v414_v0 = vld [vmem:[%s8116_s21 + $0x198] sm:$0xff] }
 0x412   : > { %5668 = vmatpush.msrb.mxu2 %v2969_v62  ;;  %5687 = vmatpush.msrb.mxu3 %v3122_v21  ;;  %v567_v62 = vld [vmem:[%s8116_s21 + $0x660] sm:$0xff]  ;;  %v702_v21 = vld [vmem:[%s8116_s21 + $0xa98] sm:$0xff] }
 0x413   : > { %5629 = vmatpush.msrb.mxu0 %v2672_v48  ;;  %5648 = vmatpush.msrb.mxu1 %v2825_v33  ;;  %v855_v48 = vld [vmem:[%s8116_s21 + $0xf60] sm:$0xff]  ;;  %v405_v33 = vld [vmem:[%s8116_s21 + $0x150] sm:$0xff] }
 0x414   : > { %5669 = vmatpush.msrb.mxu2 %v2960_v36  ;;  %5688 = vmatpush.msrb.mxu3 %v3113_v17  ;;  %v558_v36 = vld [vmem:[%s8116_s21 + $0x618] sm:$0xff] }
 0x415   : > { %5630 = vmatmul.f32.vlgmr.msrb.gmra.mxu0 %v7975_v24  ;;  %5670 = vmatmul.f32.vlgmr.msrb.gmra.mxu2 %v7976_v45  ;;  %v684_v24 = vld [vmem:[%s8116_s21 + $0xa08] sm:$0xff]  ;;  %v837_v45 = vld [vmem:[%s8116_s21 + $0xed0] sm:$0xff] }
 0x416   : > { %5694 = vmatpush.msra.mxu0 %v504_v43  ;;  %5734 = vmatpush.msra.mxu2 %v792_v8  ;;  %v693_v43 = vld [vmem:[%s8116_s21 + $0xa50] sm:$0xff]  ;;  %v846_v8 = vld [vmem:[%s8116_s21 + $0xf18] sm:$0xff] }
 0x417   : > { %5649 = vmatpush.msrb.mxu1 %v2816_v35  ;;  %5689 = vmatpush.msrb.mxu3 %v3104_v54  ;;  %v396_v35 = vld [vmem:[%s8116_s21 + $0x108] sm:$0xff]  ;;  %v549_v54 = vld [vmem:[%s8116_s21 + $0x5d0] sm:$0xff] }
 0x418   : > { %5650 = vmatmul.f32.vlgmr.msrb.gmra.mxu1 %v7977_v15  ;;  %5690 = vmatmul.f32.vlgmr.msrb.gmra.mxu3 %v7978_v13  ;;  %v675_v13 = vld [vmem:[%s8116_s21 + $0x9c0] sm:$0xff] }
 0x419   : > { %5695 = vmatpush.msra.mxu0 %v495_v50  ;;  %5714 = vmatpush.msra.mxu1 %v648_v55  ;;  %v387_v55 = vld [vmem:[%s8116_s21 + $0xc0] sm:$0xff] }
 0x41a   : > { %5735 = vmatpush.msra.mxu2 %v783_v3  ;;  %5754 = vmatpush.msra.mxu3 %v936_v56  ;;  %v540_v3 = vld [vmem:[%s8116_s21 + $0x588] sm:$0xff] }
 0x41b   : > { %5696 = vmatpush.msra.mxu0 %v486_v31  ;;  %5715 = vmatpush.msra.mxu1 %v639_v19  ;;  %v828_v31 = vld [vmem:[%s8116_s21 + $0xe88] sm:$0xff]  ;;  %v378_v19 = vld [vmem:[%s8116_s21 + $0x78] sm:$0xff] }
 0x41c   : > { %5736 = vmatpush.msra.mxu2 %v774_v7  ;;  %5755 = vmatpush.msra.mxu3 %v927_v30  ;;  %v531_v7 = vld [vmem:[%s8116_s21 + $0x540] sm:$0xff] }
 0x41d   : > { %5697 = vmatpush.msra.mxu0 %v477_v46  ;;  %5716 = vmatpush.msra.mxu1 %v630_v38  ;;  %v666_v46 = vld [vmem:[%s8116_s21 + $0x978] sm:$0xff]  ;;  %v819_v38 = vld [vmem:[%s8116_s21 + $0xe40] sm:$0xff] }
 0x41e   : > { %5737 = vmatpush.msra.mxu2 %v765_v23  ;;  %5756 = vmatpush.msra.mxu3 %v918_v9  ;;  %v369_v9 = vld [vmem:[%s8116_s21 + $0x30] sm:$0xff] }
 0x41f   : > { %5698 = vmatpush.msra.mxu0 %v468_v10  ;;  %5717 = vmatpush.msra.mxu1 %v621_v44  ;;  %v522_v10 = vld [vmem:[%s8116_s21 + $0x4f8] sm:$0xff] }
 0x420   : > { %5738 = vmatpush.msra.mxu2 %v756_v52  ;;  %5757 = vmatpush.msra.mxu3 %v909_v16  ;;  %v657_v52 = vld [vmem:[%s8116_s21 + $0x930] sm:$0xff]  ;;  %v810_v16 = vld [vmem:[%s8116_s21 + $0xdf8] sm:$0xff] }
 0x421   : > { %5699 = vmatpush.msra.mxu0 %v459_v34  ;;  %5718 = vmatpush.msra.mxu1 %v612_v6  ;;  %v1080_v34 = vld [vmem:[%s8116_s21 + $0x1668] sm:$0xff] }
 0x422   : > { %5739 = vmatpush.msra.mxu2 %v747_v4  ;;  %5758 = vmatpush.msra.mxu3 %v900_v32  ;;  %v1368_v6 = vld [vmem:[%s8116_s21 + $0x1f68] sm:$0xff]  ;;  %v513_v32 = vld [vmem:[%s8116_s21 + $0x4b0] sm:$0xff] }
 0x423   : > { %5700 = vmatpush.msra.mxu0 %v450_v28  ;;  %5719 = vmatpush.msra.mxu1 %v603_v18  ;;  %v801_v28 = vld [vmem:[%s8116_s21 + $0xdb0] sm:$0xff] }
 0x424   : > { %5740 = vmatpush.msra.mxu2 %v738_v22  ;;  %5759 = vmatpush.msra.mxu3 %v891_v14  ;;  %v1071_v22 = vld [vmem:[%s8116_s21 + $0x1620] sm:$0xff]  ;;  %v1224_v14 = vld [vmem:[%s8116_s21 + $0x1ae8] sm:$0xff] }
 0x425   : > { %5701 = vmatpush.msra.mxu0 %v441_v1  ;;  %5720 = vmatpush.msra.mxu1 %v594_v11  ;;  %v1359_v1 = vld [vmem:[%s8116_s21 + $0x1f20] sm:$0xff]  ;;  %v1512_v11 = vld [vmem:[%s8116_s21 + $0x23e8] sm:$0xff] }
 0x426   : > { %5741 = vmatpush.msra.mxu2 %v729_v12  ;;  %5760 = vmatpush.msra.mxu3 %v882_v5  ;;  %v1062_v5 = vld [vmem:[%s8116_s21 + $0x15d8] sm:$0xff] }
 0x427   : > { %5702 = vmatpush.msra.mxu0 %v432_v25  ;;  %5721 = vmatpush.msra.mxu1 %v585_v53  ;;  %v1215_v25 = vld [vmem:[%s8116_s21 + $0x1aa0] sm:$0xff] }
 0x428   : > { %5742 = vmatpush.msra.mxu2 %v720_v47  ;;  %5761 = vmatpush.msra.mxu3 %v873_v29  ;;  %v1350_v29 = vld [vmem:[%s8116_s21 + $0x1ed8] sm:$0xff] }
 0x429   : > { %5703 = vmatpush.msra.mxu0 %v423_v49  ;;  %5722 = vmatpush.msra.mxu1 %v576_v61  ;;  %v1503_v49 = vld [vmem:[%s8116_s21 + $0x23a0] sm:$0xff]  ;;  %v1053_v61 = vld [vmem:[%s8116_s21 + $0x1590] sm:$0xff] }
 0x42a   : > { %5743 = vmatpush.msra.mxu2 %v711_v2  ;;  %5762 = vmatpush.msra.mxu3 %v864_v20  ;;  %v5311_v17 = vpop.f32.mrf.mxu0  ;;  %v1206_v2 = vld [vmem:[%s8116_s21 + $0x1a58] sm:$0xff] }
 0x42b   : > { %5704 = vmatpush.msra.mxu0 %v414_v0  ;;  %5723 = vmatpush.msra.mxu1 %v567_v62  ;;  %v1341_v0 = vld [vmem:[%s8116_s21 + $0x1e90] sm:$0xff]  ;;  %v1494_v62 = vld [vmem:[%s8116_s21 + $0x2358] sm:$0xff] }
 0x42c   : > { %5744 = vmatpush.msra.mxu2 %v702_v21  ;;  %5763 = vmatpush.msra.mxu3 %v855_v48  ;;  %v1044_v48 = vld [vmem:[%s8116_s21 + $0x1548] sm:$0xff] }
 0x42d   : > { %5705 = vmatpush.msra.mxu0 %v405_v33  ;;  %5724 = vmatpush.msra.mxu1 %v558_v36  ;;  %v5331_v50 = vpop.f32.mrf.mxu1  ;;  %v1197_v33 = vld [vmem:[%s8116_s21 + $0x1a10] sm:$0xff] }
 0x42e   : > { %5745 = vmatpush.msra.mxu2 %v693_v43  ;;  %5764 = vmatpush.msra.mxu3 %v846_v8  ;;  %v5332_v56 = vadd.f32 %v5331_v50, %v5311_v17  ;;  %v5351_v15 = vpop.f32.mrf.mxu2  ;;  %v1332_v17 = vld [vmem:[%s8116_s21 + $0x1e48] sm:$0xff]  ;;  %v1485_v43 = vld [vmem:[%s8116_s21 + $0x2310] sm:$0xff]  ;;  %v1035_v8 = vld [vmem:[%s8116_s21 + $0x1500] sm:$0xff] }
 0x42f   : > { %5706 = vmatpush.msra.mxu0 %v396_v35  ;;  %5725 = vmatpush.msra.mxu1 %v549_v54  ;;  %v1188_v35 = vld [vmem:[%s8116_s21 + $0x19c8] sm:$0xff]  ;;  %v1323_v54 = vld [vmem:[%s8116_s21 + $0x1e00] sm:$0xff] }
 0x430   : > { %5746 = vmatpush.msra.mxu2 %v684_v24  ;;  %5765 = vmatpush.msra.mxu3 %v837_v45  ;;  %v5352_v30 = vadd.f32 %v5351_v15, %v5332_v56  ;;  %v1476_v24 = vld [vmem:[%s8116_s21 + $0x22c8] sm:$0xff]  ;;  %v1026_v45 = vld [vmem:[%s8116_s21 + $0x14b8] sm:$0xff]  ;;  %v1179_v50 = vld [vmem:[%s8116_s21 + $0x1980] sm:$0xff] }
 0x431   : > { %5707 = vmatpush.msra.mxu0 %v387_v55  ;;  %5726 = vmatpush.msra.mxu1 %v540_v3  ;;  %v5371_v23 = vpop.f32.mrf.mxu3  ;;  %v1314_v55 = vld [vmem:[%s8116_s21 + $0x1db8] sm:$0xff]  ;;  %v1467_v3 = vld [vmem:[%s8116_s21 + $0x2280] sm:$0xff]  ;;  %v1017_v56 = vld [vmem:[%s8116_s21 + $0x1470] sm:$0xff] }
 0x432   : > { %5747 = vmatpush.msra.mxu2 %v675_v13  ;;  %5766 = vmatpush.msra.mxu3 %v828_v31  ;;  %v5372_v44 = vadd.f32 %v5371_v23, %v5352_v30  ;;  %v1170_v15 = vld [vmem:[%s8116_s21 + $0x1938] sm:$0xff]  ;;  %v1305_v13 = vld [vmem:[%s8116_s21 + $0x1d70] sm:$0xff]  ;;  %v1296_v30 = vld [vmem:[%s8116_s21 + $0x1d28] sm:$0xff] }
 0x433   : > { %5708 = vmatpush.msra.mxu0 %v378_v19  ;;  %5727 = vmatpush.msra.mxu1 %v531_v7  ;;  %v1458_v31 = vld [vmem:[%s8116_s21 + $0x2238] sm:$0xff]  ;;  %v1008_v19 = vld [vmem:[%s8116_s21 + $0x1428] sm:$0xff]  ;;  %v1161_v7 = vld [vmem:[%s8116_s21 + $0x18f0] sm:$0xff] }
 0x434   : > { %5748 = vmatpush.msra.mxu2 %v666_v46  ;;  %5767 = vmatpush.msra.mxu3 %v819_v38  ;;  %v5391_v4 = vpop.f32.mrf.mxu0  ;;  %v1449_v46 = vld [vmem:[%s8116_s21 + $0x21f0] sm:$0xff]  ;;  %v999_v38 = vld [vmem:[%s8116_s21 + $0x13e0] sm:$0xff]  ;;  %v1152_v23 = vld [vmem:[%s8116_s21 + $0x18a8] sm:$0xff] }
 0x435   : > { %5709 = vmatpush.msra.mxu0 %v369_v9  ;;  %5728 = vmatpush.msra.mxu1 %v522_v10  ;;  %v5392_v18 = vadd.f32 %v5391_v4, %v5372_v44  ;;  %v1287_v9 = vld [vmem:[%s8116_s21 + $0x1ce0] sm:$0xff]  ;;  %v1440_v10 = vld [vmem:[%s8116_s21 + $0x21a8] sm:$0xff]  ;;  %v990_v44 = vld [vmem:[%s8116_s21 + $0x1398] sm:$0xff] }
 0x436   : > { %5749 = vmatpush.msra.mxu2 %v657_v52  ;;  %5768 = vmatpush.msra.mxu3 %v810_v16  ;;  %v1143_v52 = vld [vmem:[%s8116_s21 + $0x1860] sm:$0xff]  ;;  %v1278_v16 = vld [vmem:[%s8116_s21 + $0x1c98] sm:$0xff] }
 0x437   : > { %5774 = vmatpush.msrb.mxu0 %v1080_v34  ;;  %v5411_v12 = vpop.f32.mrf.mxu1  ;;  %5729 = vmatpush.msra.mxu1 %v513_v32  ;;  %v1431_v34 = vld [vmem:[%s8116_s21 + $0x2160] sm:$0xff]  ;;  %v1134_v4 = vld [vmem:[%s8116_s21 + $0x1818] sm:$0xff]  ;;  %v1269_v32 = vld [vmem:[%s8116_s21 + $0x1c50] sm:$0xff] }
 0x438   : > { %5814 = vmatpush.msrb.mxu2 %v1368_v6  ;;  %5769 = vmatpush.msra.mxu3 %v801_v28  ;;  %v5412_v53 = vadd.f32 %v5411_v12, %v5392_v18  ;;  %v5431_v47 = vpop.f32.mrf.mxu2  ;;  %v981_v6 = vld [vmem:[%s8116_s21 + $0x1350] sm:$0xff]  ;;  %v1422_v28 = vld [vmem:[%s8116_s21 + $0x2118] sm:$0xff]  ;;  %v972_v18 = vld [vmem:[%s8116_s21 + $0x1308] sm:$0xff] }
 0x439   : > { %5775 = vmatpush.msrb.mxu0 %v1071_v22  ;;  %5794 = vmatpush.msrb.mxu1 %v1224_v14  ;;  %v1125_v22 = vld [vmem:[%s8116_s21 + $0x17d0] sm:$0xff]  ;;  %v1260_v14 = vld [vmem:[%s8116_s21 + $0x1c08] sm:$0xff] }
 0x43a   : > { %5815 = vmatpush.msrb.mxu2 %v1359_v1  ;;  %5834 = vmatpush.msrb.mxu3 %v1512_v11  ;;  %v5432_v20 = vadd.f32 %v5431_v47, %v5412_v53  ;;  %v1413_v1 = vld [vmem:[%s8116_s21 + $0x20d0] sm:$0xff]  ;;  %v963_v11 = vld [vmem:[%s8116_s21 + $0x12c0] sm:$0xff]  ;;  %v1116_v12 = vld [vmem:[%s8116_s21 + $0x1788] sm:$0xff] }
 0x43b   : > { %5776 = vmatpush.msrb.mxu0 %v1062_v5  ;;  %5795 = vmatpush.msrb.mxu1 %v1215_v25  ;;  %v5451_v21 = vpop.f32.mrf.mxu3  ;;  %v1251_v25 = vld [vmem:[%s8116_s21 + $0x1bc0] sm:$0xff]  ;;  %v1404_v53 = vld [vmem:[%s8116_s21 + $0x2088] sm:$0xff] }
 0x43c   : > { %5816 = vmatpush.msrb.mxu2 %v1350_v29  ;;  %5835 = vmatpush.msrb.mxu3 %v1503_v49  ;;  %v10414_v36 = vadd.f32 %v5451_v21, %v5432_v20  ;;  %v954_v29 = vld [vmem:[%s8116_s21 + $0x1278] sm:$0xff]  ;;  %v1107_v49 = vld [vmem:[%s8116_s21 + $0x1740] sm:$0xff] }
 0x43d   : > { %5777 = vmatpush.msrb.mxu0 %v1053_v61  ;;  %5796 = vmatpush.msrb.mxu1 %v1206_v2  ;;  %v1242_v61 = vld [vmem:[%s8116_s21 + $0x1b78] sm:$0xff]  ;;  %v1395_v2 = vld [vmem:[%s8116_s21 + $0x2040] sm:$0xff] }
 0x43e   : > { %5817 = vmatpush.msrb.mxu2 %v1341_v0  ;;  %5836 = vmatpush.msrb.mxu3 %v1494_v62  ;;  %v945_v0 = vld [vmem:[%s8116_s21 + $0x1230] sm:$0xff]  ;;  %v1098_v21 = vld [vmem:[%s8116_s21 + $0x16f8] sm:$0xff] }
 0x43f   : > { %5778 = vmatpush.msrb.mxu0 %v1044_v48  ;;  %5797 = vmatpush.msrb.mxu1 %v1197_v33  ;;  %v1233_v48 = vld [vmem:[%s8116_s21 + $0x1b30] sm:$0xff]  ;;  %v1386_v33 = vld [vmem:[%s8116_s21 + $0x1ff8] sm:$0xff] }
 0x440   : > { %5818 = vmatpush.msrb.mxu2 %v1332_v17  ;;  %5837 = vmatpush.msrb.mxu3 %v1485_v43  ;;  %v1656_v17 = vld [vmem:[%s8116_s21 + $0x2868] sm:$0xff] }
 0x441   : > { %5779 = vmatpush.msrb.mxu0 %v1035_v8  ;;  %5798 = vmatpush.msrb.mxu1 %v1188_v35  ;;  %v1944_v8 = vld [vmem:[%s8116_s21 + $0x3168] sm:$0xff]  ;;  %v1089_v35 = vld [vmem:[%s8116_s21 + $0x16b0] sm:$0xff] }
 0x442   : > { %5819 = vmatpush.msrb.mxu2 %v1323_v54  ;;  %5838 = vmatpush.msrb.mxu3 %v1476_v24  ;;  %v1377_v54 = vld [vmem:[%s8116_s21 + $0x1fb0] sm:$0xff] }
 0x443   : > { %5780 = vmatpush.msrb.mxu0 %v1026_v45  ;;  %5799 = vmatpush.msrb.mxu1 %v1179_v50  ;;  %v1647_v45 = vld [vmem:[%s8116_s21 + $0x2820] sm:$0xff]  ;;  %v1800_v50 = vld [vmem:[%s8116_s21 + $0x2ce8] sm:$0xff] }
 0x444   : > { %5820 = vmatpush.msrb.mxu2 %v1314_v55  ;;  %5839 = vmatpush.msrb.mxu3 %v1467_v3  ;;  %v1935_v3 = vld [vmem:[%s8116_s21 + $0x3120] sm:$0xff] }
 0x445   : > { %5781 = vmatpush.msrb.mxu0 %v1017_v56  ;;  %5800 = vmatpush.msrb.mxu1 %v1170_v15  ;;  %v2088_v56 = vld [vmem:[%s8116_s21 + $0x35e8] sm:$0xff]  ;;  %v1638_v15 = vld [vmem:[%s8116_s21 + $0x27d8] sm:$0xff] }
 0x446   : > { %5821 = vmatpush.msrb.mxu2 %v1305_v13  ;;  %5840 = vmatpush.msrb.mxu3 %v1458_v31  ;;  %v1791_v13 = vld [vmem:[%s8116_s21 + $0x2ca0] sm:$0xff]  ;;  %v1926_v31 = vld [vmem:[%s8116_s21 + $0x30d8] sm:$0xff] }
 0x447   : > { %5782 = vmatpush.msrb.mxu0 %v1008_v19  ;;  %5801 = vmatpush.msrb.mxu1 %v1161_v7  ;;  %v2079_v19 = vld [vmem:[%s8116_s21 + $0x35a0] sm:$0xff]  ;;  %v1629_v7 = vld [vmem:[%s8116_s21 + $0x2790] sm:$0xff] }
 0x448   : > { %5822 = vmatpush.msrb.mxu2 %v1296_v30  ;;  %5841 = vmatpush.msrb.mxu3 %v1449_v46  ;;  %v1782_v30 = vld [vmem:[%s8116_s21 + $0x2c58] sm:$0xff]  ;;  %v1917_v46 = vld [vmem:[%s8116_s21 + $0x3090] sm:$0xff] }
 0x449   : > { %5783 = vmatpush.msrb.mxu0 %v999_v38  ;;  %5802 = vmatpush.msrb.mxu1 %v1152_v23  ;;  %v2070_v38 = vld [vmem:[%s8116_s21 + $0x3558] sm:$0xff]  ;;  %v1620_v23 = vld [vmem:[%s8116_s21 + $0x2748] sm:$0xff] }
 0x44a   : > { %5823 = vmatpush.msrb.mxu2 %v1287_v9  ;;  %5842 = vmatpush.msrb.mxu3 %v1440_v10  ;;  %v1773_v9 = vld [vmem:[%s8116_s21 + $0x2c10] sm:$0xff]  ;;  %v1908_v10 = vld [vmem:[%s8116_s21 + $0x3048] sm:$0xff] }
 0x44b   : > { %5784 = vmatpush.msrb.mxu0 %v990_v44  ;;  %5803 = vmatpush.msrb.mxu1 %v1143_v52  ;;  %v2061_v44 = vld [vmem:[%s8116_s21 + $0x3510] sm:$0xff]  ;;  %v1611_v52 = vld [vmem:[%s8116_s21 + $0x2700] sm:$0xff] }
 0x44c   : > { %5824 = vmatpush.msrb.mxu2 %v1278_v16  ;;  %5843 = vmatpush.msrb.mxu3 %v1431_v34  ;;  %v1764_v16 = vld [vmem:[%s8116_s21 + $0x2bc8] sm:$0xff]  ;;  %v1899_v34 = vld [vmem:[%s8116_s21 + $0x3000] sm:$0xff] }
 0x44d   : > { %5785 = vmatpush.msrb.mxu0 %v981_v6  ;;  %5804 = vmatpush.msrb.mxu1 %v1134_v4  ;;  %v2052_v6 = vld [vmem:[%s8116_s21 + $0x34c8] sm:$0xff]  ;;  %v1602_v4 = vld [vmem:[%s8116_s21 + $0x26b8] sm:$0xff] }
 0x44e   : > { %5825 = vmatpush.msrb.mxu2 %v1269_v32  ;;  %5844 = vmatpush.msrb.mxu3 %v1422_v28  ;;  %v5471_v5 = vpop.f32.mrf.mxu0  ;;  %v1755_v32 = vld [vmem:[%s8116_s21 + $0x2b80] sm:$0xff]  ;;  %v1890_v28 = vld [vmem:[%s8116_s21 + $0x2fb8] sm:$0xff] }
 0x44f   : > { %5786 = vmatpush.msrb.mxu0 %v972_v18  ;;  %5805 = vmatpush.msrb.mxu1 %v1125_v22  ;;  %v5472_v47 = vadd.f32 %v5471_v5, %v10414_v36  ;;  %v2043_v18 = vld [vmem:[%s8116_s21 + $0x3480] sm:$0xff]  ;;  %v1593_v22 = vld [vmem:[%s8116_s21 + $0x2670] sm:$0xff] }
 0x450   : > { %5826 = vmatpush.msrb.mxu2 %v1260_v14  ;;  %5845 = vmatpush.msrb.mxu3 %v1413_v1  ;;  %v1746_v14 = vld [vmem:[%s8116_s21 + $0x2b38] sm:$0xff]  ;;  %v1881_v1 = vld [vmem:[%s8116_s21 + $0x2f70] sm:$0xff] }
 0x451   : > { %5787 = vmatpush.msrb.mxu0 %v963_v11  ;;  %5806 = vmatpush.msrb.mxu1 %v1116_v12  ;;  %v5491_v20 = vpop.f32.mrf.mxu1  ;;  %v2034_v11 = vld [vmem:[%s8116_s21 + $0x3438] sm:$0xff]  ;;  %v1584_v12 = vld [vmem:[%s8116_s21 + $0x2628] sm:$0xff]  ;;  %v1737_v5 = vld [vmem:[%s8116_s21 + $0x2af0] sm:$0xff] }
 0x452   : > { %5827 = vmatpush.msrb.mxu2 %v1251_v25  ;;  %5846 = vmatpush.msrb.mxu3 %v1404_v53  ;;  %v5492_v62 = vadd.f32 %v5491_v20, %v5472_v47  ;;  %v1872_v25 = vld [vmem:[%s8116_s21 + $0x2f28] sm:$0xff]  ;;  %v2025_v53 = vld [vmem:[%s8116_s21 + $0x33f0] sm:$0xff]  ;;  %v1575_v47 = vld [vmem:[%s8116_s21 + $0x25e0] sm:$0xff] }
 0x453   : > { %5788 = vmatpush.msrb.mxu0 %v954_v29  ;;  %5807 = vmatpush.msrb.mxu1 %v1107_v49  ;;  %v1728_v29 = vld [vmem:[%s8116_s21 + $0x2aa8] sm:$0xff]  ;;  %v1863_v49 = vld [vmem:[%s8116_s21 + $0x2ee0] sm:$0xff] }
 0x454   : > { %5828 = vmatpush.msrb.mxu2 %v1242_v61  ;;  %5847 = vmatpush.msrb.mxu3 %v1395_v2  ;;  %v5511_v36 = vpop.f32.mrf.mxu2  ;;  %v2016_v61 = vld [vmem:[%s8116_s21 + $0x33a8] sm:$0xff]  ;;  %v1566_v2 = vld [vmem:[%s8116_s21 + $0x2598] sm:$0xff]  ;;  %v1719_v20 = vld [vmem:[%s8116_s21 + $0x2a60] sm:$0xff] }
 0x455   : > { %5750 = vmatmul.f32.vlgmr.msra.gmra.mxu2 %v12471_v51  ;;  %5789 = vmatpush.msrb.mxu0 %v945_v0  ;;  %v5512_v43 = vadd.f32 %v5511_v36, %v5492_v62  ;;  %v1854_v0 = vld [vmem:[%s8116_s21 + $0x2e98] sm:$0xff]  ;;  %v2007_v62 = vld [vmem:[%s8116_s21 + $0x3360] sm:$0xff] }
 0x456   : > { %5808 = vmatpush.msrb.mxu1 %v1098_v21  ;;  %5829 = vmatpush.msrb.mxu2 %v1233_v48  ;;  %v1557_v21 = vld [vmem:[%s8116_s21 + $0x2550] sm:$0xff]  ;;  %v1710_v48 = vld [vmem:[%s8116_s21 + $0x2a18] sm:$0xff] }
 0x457   : > { %5848 = vmatpush.msrb.mxu3 %v1386_v33  ;;  %5710 = vmatmul.f32.vlgmr.msra.gmra.mxu0 %v12472_v37  ;;  %v5531_v24 = vpop.f32.mrf.mxu3  ;;  %v1845_v33 = vld [vmem:[%s8116_s21 + $0x2e50] sm:$0xff]  ;;  %v1998_v36 = vld [vmem:[%s8116_s21 + $0x3318] sm:$0xff] }
 0x458   : > { %5770 = vmatmul.f32.vlgmr.msra.gmra.mxu3 %v12473_v26  ;;  %5854 = vmatpush.msra.mxu0 %v1656_v17  ;;  %v10472_v55 = vadd.f32 %v5531_v24, %v5512_v43  ;;  %v1548_v17 = vld [vmem:[%s8116_s21 + $0x2508] sm:$0xff]  ;;  %v1701_v43 = vld [vmem:[%s8116_s21 + $0x29d0] sm:$0xff] }
 0x459   : > { %5894 = vmatpush.msra.mxu2 %v1944_v8  ;;  %5809 = vmatpush.msrb.mxu1 %v1089_v35  ;;  %v1836_v35 = vld [vmem:[%s8116_s21 + $0x2e08] sm:$0xff] }
 0x45a   : > { %5849 = vmatpush.msrb.mxu3 %v1377_v54  ;;  %5730 = vmatmul.f32.vlgmr.msra.gmra.mxu1 %v12474_v27  ;;  %v1989_v54 = vld [vmem:[%s8116_s21 + $0x32d0] sm:$0xff] }
 0x45b   : > { %5855 = vmatpush.msra.mxu0 %v1647_v45  ;;  %5874 = vmatpush.msra.mxu1 %v1800_v50  ;;  %v1539_v45 = vld [vmem:[%s8116_s21 + $0x24c0] sm:$0xff]  ;;  %v1692_v50 = vld [vmem:[%s8116_s21 + $0x2988] sm:$0xff] }
 0x45c   : > { %5895 = vmatpush.msra.mxu2 %v1935_v3  ;;  %5914 = vmatpush.msra.mxu3 %v2088_v56  ;;  %v1827_v3 = vld [vmem:[%s8116_s21 + $0x2dc0] sm:$0xff]  ;;  %v1980_v56 = vld [vmem:[%s8116_s21 + $0x3288] sm:$0xff] }
 0x45d   : > { %5856 = vmatpush.msra.mxu0 %v1638_v15  ;;  %5875 = vmatpush.msra.mxu1 %v1791_v13  ;;  %v1530_v13 = vld [vmem:[%s8116_s21 + $0x2478] sm:$0xff] }
 0x45e   : > { %5896 = vmatpush.msra.mxu2 %v1926_v31  ;;  %5915 = vmatpush.msra.mxu3 %v2079_v19  ;;  %v1683_v31 = vld [vmem:[%s8116_s21 + $0x2940] sm:$0xff]  ;;  %v1818_v19 = vld [vmem:[%s8116_s21 + $0x2d78] sm:$0xff] }
 0x45f   : > { %5830 = vmatmul.f32.vlgmr.msrb.gmra.mxu2 %v8238_v57  ;;  %5857 = vmatpush.msra.mxu0 %v1629_v7  ;;  %v1971_v7 = vld [vmem:[%s8116_s21 + $0x3240] sm:$0xff] }
 0x460   : > { %5876 = vmatpush.msra.mxu1 %v1782_v30  ;;  %5897 = vmatpush.msra.mxu2 %v1917_v46  ;;  %v1521_v30 = vld [vmem:[%s8116_s21 + $0x2430] sm:$0xff]  ;;  %v1674_v46 = vld [vmem:[%s8116_s21 + $0x28f8] sm:$0xff] }
 0x461   : > { %5916 = vmatpush.msra.mxu3 %v2070_v38  ;;  %5790 = vmatmul.f32.vlgmr.msrb.gmra.mxu0 %v8240_v58 }
 0x462   : > { %5850 = vmatmul.f32.vlgmr.msrb.gmra.mxu3 %v8242_v59  ;;  %5858 = vmatpush.msra.mxu0 %v1620_v23  ;;  %v1809_v23 = vld [vmem:[%s8116_s21 + $0x2d30] sm:$0xff] }
 0x463   : > { %5877 = vmatpush.msra.mxu1 %v1773_v9  ;;  %5898 = vmatpush.msra.mxu2 %v1908_v10  ;;  %v1962_v9 = vld [vmem:[%s8116_s21 + $0x31f8] sm:$0xff] }
 0x464   : > { %5917 = vmatpush.msra.mxu3 %v2061_v44  ;;  %5810 = vmatmul.f32.vlgmr.msrb.gmra.mxu1 %v8244_v60  ;;  %v2232_v44 = vld [vmem:[%s8116_s21 + $0x3a68] sm:$0xff] }
 0x465   : > { %5859 = vmatpush.msra.mxu0 %v1611_v52  ;;  %5878 = vmatpush.msra.mxu1 %v1764_v16  ;;  %v2520_v52 = vld [vmem:[%s8116_s21 + $0x4368] sm:$0xff] }
 0x466   : > { %5899 = vmatpush.msra.mxu2 %v1899_v34  ;;  %5918 = vmatpush.msra.mxu3 %v2052_v6  ;;  %v1665_v34 = vld [vmem:[%s8116_s21 + $0x28b0] sm:$0xff] }
 0x467   : > { %5860 = vmatpush.msra.mxu0 %v1602_v4  ;;  %5879 = vmatpush.msra.mxu1 %v1755_v32  ;;  %v1953_v6 = vld [vmem:[%s8116_s21 + $0x31b0] sm:$0xff]  ;;  %v2223_v32 = vld [vmem:[%s8116_s21 + $0x3a20] sm:$0xff] }
 0x468   : > { %5900 = vmatpush.msra.mxu2 %v1890_v28  ;;  %5919 = vmatpush.msra.mxu3 %v2043_v18  ;;  %v2376_v28 = vld [vmem:[%s8116_s21 + $0x3ee8] sm:$0xff]  ;;  %v2511_v18 = vld [vmem:[%s8116_s21 + $0x4320] sm:$0xff] }
 0x469   : > { %5861 = vmatpush.msra.mxu0 %v1593_v22  ;;  %5880 = vmatpush.msra.mxu1 %v1746_v14  ;;  %v2664_v22 = vld [vmem:[%s8116_s21 + $0x47e8] sm:$0xff]  ;;  %v2214_v14 = vld [vmem:[%s8116_s21 + $0x39d8] sm:$0xff] }
 0x46a   : > { %5901 = vmatpush.msra.mxu2 %v1881_v1  ;;  %5920 = vmatpush.msra.mxu3 %v2034_v11  ;;  %v2367_v1 = vld [vmem:[%s8116_s21 + $0x3ea0] sm:$0xff]  ;;  %v2502_v11 = vld [vmem:[%s8116_s21 + $0x42d8] sm:$0xff] }
 0x46b   : > { %5862 = vmatpush.msra.mxu0 %v1584_v12  ;;  %5881 = vmatpush.msra.mxu1 %v1737_v5  ;;  %v2655_v12 = vld [vmem:[%s8116_s21 + $0x47a0] sm:$0xff]  ;;  %v2205_v5 = vld [vmem:[%s8116_s21 + $0x3990] sm:$0xff] }
 0x46c   : > { %5902 = vmatpush.msra.mxu2 %v1872_v25  ;;  %5921 = vmatpush.msra.mxu3 %v2025_v53  ;;  %v2358_v25 = vld [vmem:[%s8116_s21 + $0x3e58] sm:$0xff]  ;;  %v2493_v53 = vld [vmem:[%s8116_s21 + $0x4290] sm:$0xff] }
 0x46d   : > { %5863 = vmatpush.msra.mxu0 %v1575_v47  ;;  %5882 = vmatpush.msra.mxu1 %v1728_v29  ;;  %v2646_v47 = vld [vmem:[%s8116_s21 + $0x4758] sm:$0xff]  ;;  %v2196_v29 = vld [vmem:[%s8116_s21 + $0x3948] sm:$0xff] }
 0x46e   : > { %5903 = vmatpush.msra.mxu2 %v1863_v49  ;;  %5922 = vmatpush.msra.mxu3 %v2016_v61  ;;  %v2349_v49 = vld [vmem:[%s8116_s21 + $0x3e10] sm:$0xff]  ;;  %v2484_v61 = vld [vmem:[%s8116_s21 + $0x4248] sm:$0xff] }
 0x46f   : > { %5864 = vmatpush.msra.mxu0 %v1566_v2  ;;  %5883 = vmatpush.msra.mxu1 %v1719_v20  ;;  %v2637_v2 = vld [vmem:[%s8116_s21 + $0x4710] sm:$0xff]  ;;  %v2187_v20 = vld [vmem:[%s8116_s21 + $0x3900] sm:$0xff] }
 0x470   : > { %5904 = vmatpush.msra.mxu2 %v1854_v0  ;;  %5923 = vmatpush.msra.mxu3 %v2007_v62  ;;  %v5551_v8 = vpop.f32.mrf.mxu0  ;;  %v2340_v0 = vld [vmem:[%s8116_s21 + $0x3dc8] sm:$0xff]  ;;  %v2475_v62 = vld [vmem:[%s8116_s21 + $0x4200] sm:$0xff] }
 0x471   : > { %5865 = vmatpush.msra.mxu0 %v1557_v21  ;;  %5884 = vmatpush.msra.mxu1 %v1710_v48  ;;  %v5552_v24 = vadd.f32 %v5551_v8, %v10472_v55  ;;  %v2628_v21 = vld [vmem:[%s8116_s21 + $0x46c8] sm:$0xff]  ;;  %v2178_v48 = vld [vmem:[%s8116_s21 + $0x38b8] sm:$0xff] }
 0x472   : > { %5905 = vmatpush.msra.mxu2 %v1845_v33  ;;  %5924 = vmatpush.msra.mxu3 %v1998_v36  ;;  %v2331_v33 = vld [vmem:[%s8116_s21 + $0x3d80] sm:$0xff]  ;;  %v2466_v36 = vld [vmem:[%s8116_s21 + $0x41b8] sm:$0xff] }
 0x473   : > { %5866 = vmatpush.msra.mxu0 %v1548_v17  ;;  %5885 = vmatpush.msra.mxu1 %v1701_v43  ;;  %v5571_v15 = vpop.f32.mrf.mxu1  ;;  %v2619_v17 = vld [vmem:[%s8116_s21 + $0x4680] sm:$0xff]  ;;  %v2169_v43 = vld [vmem:[%s8116_s21 + $0x3870] sm:$0xff]  ;;  %v2322_v8 = vld [vmem:[%s8116_s21 + $0x3d38] sm:$0xff] }
 0x474   : > { %5906 = vmatpush.msra.mxu2 %v1836_v35  ;;  %5925 = vmatpush.msra.mxu3 %v1989_v54  ;;  %v5572_v55 = vadd.f32 %v5571_v15, %v5552_v24  ;;  %v2457_v35 = vld [vmem:[%s8116_s21 + $0x4170] sm:$0xff]  ;;  %v2610_v54 = vld [vmem:[%s8116_s21 + $0x4638] sm:$0xff]  ;;  %v2160_v24 = vld [vmem:[%s8116_s21 + $0x3828] sm:$0xff] }
 0x475   : > { %5867 = vmatpush.msra.mxu0 %v1539_v45  ;;  %5886 = vmatpush.msra.mxu1 %v1692_v50  ;;  %v2313_v45 = vld [vmem:[%s8116_s21 + $0x3cf0] sm:$0xff]  ;;  %v2448_v50 = vld [vmem:[%s8116_s21 + $0x4128] sm:$0xff] }
 0x476   : > { %5907 = vmatpush.msra.mxu2 %v1827_v3  ;;  %5926 = vmatpush.msra.mxu3 %v1980_v56  ;;  %v5591_v38 = vpop.f32.mrf.mxu2  ;;  %v2601_v3 = vld [vmem:[%s8116_s21 + $0x45f0] sm:$0xff]  ;;  %v2151_v56 = vld [vmem:[%s8116_s21 + $0x37e0] sm:$0xff]  ;;  %v2304_v15 = vld [vmem:[%s8116_s21 + $0x3ca8] sm:$0xff] }
 0x477   : > { %5868 = vmatpush.msra.mxu0 %v1530_v13  ;;  %5887 = vmatpush.msra.mxu1 %v1683_v31  ;;  %v5592_v10 = vadd.f32 %v5591_v38, %v5572_v55  ;;  %v2439_v13 = vld [vmem:[%s8116_s21 + $0x40e0] sm:$0xff]  ;;  %v2592_v31 = vld [vmem:[%s8116_s21 + $0x45a8] sm:$0xff]  ;;  %v2142_v55 = vld [vmem:[%s8116_s21 + $0x3798] sm:$0xff] }
 0x478   : > { %5908 = vmatpush.msra.mxu2 %v1818_v19  ;;  %5927 = vmatpush.msra.mxu3 %v1971_v7  ;;  %v2295_v19 = vld [vmem:[%s8116_s21 + $0x3c60] sm:$0xff]  ;;  %v2430_v7 = vld [vmem:[%s8116_s21 + $0x4098] sm:$0xff] }
 0x479   : > { %5869 = vmatpush.msra.mxu0 %v1521_v30  ;;  %5888 = vmatpush.msra.mxu1 %v1674_v46  ;;  %v5611_v16 = vpop.f32.mrf.mxu3  ;;  %v2583_v30 = vld [vmem:[%s8116_s21 + $0x4560] sm:$0xff]  ;;  %v2133_v46 = vld [vmem:[%s8116_s21 + $0x3750] sm:$0xff]  ;;  %v2286_v38 = vld [vmem:[%s8116_s21 + $0x3c18] sm:$0xff] }
 0x47a   : > { %5909 = vmatpush.msra.mxu2 %v1809_v23  ;;  %5928 = vmatpush.msra.mxu3 %v1962_v9  ;;  %v10542_v4 = vadd.f32 %v5611_v16, %v5592_v10  ;;  %v2421_v23 = vld [vmem:[%s8116_s21 + $0x4050] sm:$0xff]  ;;  %v2574_v9 = vld [vmem:[%s8116_s21 + $0x4518] sm:$0xff]  ;;  %v2124_v10 = vld [vmem:[%s8116_s21 + $0x3708] sm:$0xff] }
 0x47b   : > { %5870 = vmatmul.f32.vlgmr.msra.gmra.mxu0 %v8299_v39  ;;  %5910 = vmatmul.f32.vlgmr.msra.gmra.mxu2 %v8301_v40  ;;  %v2412_v16 = vld [vmem:[%s8116_s21 + $0x4008] sm:$0xff] }
 0x47c   : > { %5934 = vmatpush.msrb.mxu0 %v2232_v44  ;;  %5974 = vmatpush.msrb.mxu2 %v2520_v52  ;;  %v2277_v44 = vld [vmem:[%s8116_s21 + $0x3bd0] sm:$0xff] }
 0x47d   : > { %5889 = vmatpush.msra.mxu1 %v1665_v34  ;;  %5929 = vmatpush.msra.mxu3 %v1953_v6  ;;  %v2565_v34 = vld [vmem:[%s8116_s21 + $0x44d0] sm:$0xff] }
 0x47e   : > { %5890 = vmatmul.f32.vlgmr.msra.gmra.mxu1 %v8304_v41  ;;  %5930 = vmatmul.f32.vlgmr.msra.gmra.mxu3 %v8306_v42 }
 0x47f   : > { %5935 = vmatpush.msrb.mxu0 %v2223_v32  ;;  %5954 = vmatpush.msrb.mxu1 %v2376_v28  ;;  %v2115_v32 = vld [vmem:[%s8116_s21 + $0x36c0] sm:$0xff]  ;;  %v2268_v28 = vld [vmem:[%s8116_s21 + $0x3b88] sm:$0xff] }
 0x480   : > { %5975 = vmatpush.msrb.mxu2 %v2511_v18  ;;  %5994 = vmatpush.msrb.mxu3 %v2664_v22  ;;  %v2403_v18 = vld [vmem:[%s8116_s21 + $0x3fc0] sm:$0xff]  ;;  %v2556_v22 = vld [vmem:[%s8116_s21 + $0x4488] sm:$0xff] }
 0x481   : > { %5936 = vmatpush.msrb.mxu0 %v2214_v14  ;;  %5955 = vmatpush.msrb.mxu1 %v2367_v1  ;;  %v2106_v1 = vld [vmem:[%s8116_s21 + $0x3678] sm:$0xff] }
 0x482   : > { %5976 = vmatpush.msrb.mxu2 %v2502_v11  ;;  %5995 = vmatpush.msrb.mxu3 %v2655_v12  ;;  %v2259_v11 = vld [vmem:[%s8116_s21 + $0x3b40] sm:$0xff] }
 0x483   : > { %5937 = vmatpush.msrb.mxu0 %v2205_v5  ;;  %5956 = vmatpush.msrb.mxu1 %v2358_v25  ;;  %v2547_v12 = vld [vmem:[%s8116_s21 + $0x4440] sm:$0xff]  ;;  %v2097_v25 = vld [vmem:[%s8116_s21 + $0x3630] sm:$0xff] }
 0x484   : > { %5977 = vmatpush.msrb.mxu2 %v2493_v53  ;;  %5996 = vmatpush.msrb.mxu3 %v2646_v47  ;;  %v2250_v53 = vld [vmem:[%s8116_s21 + $0x3af8] sm:$0xff] }
 0x485   : > { %5938 = vmatpush.msrb.mxu0 %v2196_v29  ;;  %5957 = vmatpush.msrb.mxu1 %v2349_v49  ;;  %v2385_v29 = vld [vmem:[%s8116_s21 + $0x3f30] sm:$0xff]  ;;  %v2538_v49 = vld [vmem:[%s8116_s21 + $0x43f8] sm:$0xff] }
 0x486   : > { %5978 = vmatpush.msrb.mxu2 %v2484_v61  ;;  %5997 = vmatpush.msrb.mxu3 %v2637_v2  ;;  %v2808_v2 = vld [vmem:[%s8116_s21 + $0x4c68] sm:$0xff] }
 0x487   : > { %5939 = vmatpush.msrb.mxu0 %v2187_v20  ;;  %5958 = vmatpush.msrb.mxu1 %v2340_v0  ;;  %v3096_v20 = vld [vmem:[%s8116_s21 + $0x5568] sm:$0xff] }
 0x488   : > { %5979 = vmatpush.msrb.mxu2 %v2475_v62  ;;  %5998 = vmatpush.msrb.mxu3 %v2628_v21  ;;  %v2241_v62 = vld [vmem:[%s8116_s21 + $0x3ab0] sm:$0xff] }
 0x489   : > { %5940 = vmatpush.msrb.mxu0 %v2178_v48  ;;  %5959 = vmatpush.msrb.mxu1 %v2331_v33  ;;  %v2529_v21 = vld [vmem:[%s8116_s21 + $0x43b0] sm:$0xff]  ;;  %v7979_v33 = vld.sshfl [vmem:[#allocation1 + $0x20] sm:$0xff pattern:$0x73625140] }
 0x48a   : > { %5980 = vmatpush.msrb.mxu2 %v2466_v36  ;;  %5999 = vmatpush.msrb.mxu3 %v2619_v17  ;;  %v7980_v36 = vld.sshfl [vmem:[#allocation1 + $0x30] sm:$0xff pattern:$0x73625140]  ;;  %v2799_v17 = vld [vmem:[%s8116_s21 + $0x4c20] sm:$0xff] }
 0x48b   : > { %5941 = vmatpush.msrb.mxu0 %v2169_v43  ;;  %5960 = vmatpush.msrb.mxu1 %v2322_v8  ;;  %v2952_v43 = vld [vmem:[%s8116_s21 + $0x50e8] sm:$0xff] }
 0x48c   : > { %5981 = vmatpush.msrb.mxu2 %v2457_v35  ;;  %6000 = vmatpush.msrb.mxu3 %v2610_v54  ;;  %v3087_v35 = vld [vmem:[%s8116_s21 + $0x5520] sm:$0xff]  ;;  %v3240_v54 = vld [vmem:[%s8116_s21 + $0x59e8] sm:$0xff] }
 0x48d   : > { %5942 = vmatpush.msrb.mxu0 %v2160_v24  ;;  %5961 = vmatpush.msrb.mxu1 %v2313_v45  ;;  %v7981_v24 = vld.sshfl [vmem:[#allocation1 + $0x28] sm:$0xff pattern:$0x73625140]  ;;  %v7982_v45 = vld.sshfl [vmem:[#allocation1 + $0x38] sm:$0xff pattern:$0x73625140] }
 0x48e   : > { %5982 = vmatpush.msrb.mxu2 %v2448_v50  ;;  %6001 = vmatpush.msrb.mxu3 %v2601_v3  ;;  %v2790_v50 = vld [vmem:[%s8116_s21 + $0x4bd8] sm:$0xff]  ;;  %v2943_v3 = vld [vmem:[%s8116_s21 + $0x50a0] sm:$0xff] }
 0x48f   : > { %5943 = vmatpush.msrb.mxu0 %v2151_v56  ;;  %5962 = vmatpush.msrb.mxu1 %v2304_v15  ;;  %v3078_v15 = vld [vmem:[%s8116_s21 + $0x54d8] sm:$0xff] }
 0x490   : > { %5983 = vmatpush.msrb.mxu2 %v2439_v13  ;;  %6002 = vmatpush.msrb.mxu3 %v2592_v31  ;;  %v3231_v13 = vld [vmem:[%s8116_s21 + $0x59a0] sm:$0xff]  ;;  %v2781_v31 = vld [vmem:[%s8116_s21 + $0x4b90] sm:$0xff] }
 0x491   : > { %5944 = vmatpush.msrb.mxu0 %v2142_v55  ;;  %5963 = vmatpush.msrb.mxu1 %v2295_v19  ;;  %v2934_v55 = vld [vmem:[%s8116_s21 + $0x5058] sm:$0xff]  ;;  %v3069_v19 = vld [vmem:[%s8116_s21 + $0x5490] sm:$0xff] }
 0x492   : > { %5984 = vmatpush.msrb.mxu2 %v2430_v7  ;;  %6003 = vmatpush.msrb.mxu3 %v2583_v30  ;;  %v5631_v52 = vpop.f32.mrf.mxu0  ;;  %v3222_v7 = vld [vmem:[%s8116_s21 + $0x5958] sm:$0xff]  ;;  %v2925_v30 = vld [vmem:[%s8116_s21 + $0x5010] sm:$0xff] }
 0x493   : > { %5945 = vmatpush.msrb.mxu0 %v2133_v46  ;;  %5964 = vmatpush.msrb.mxu1 %v2286_v38  ;;  %v5632_v6 = vadd.f32 %v5631_v52, %v10542_v4  ;;  %v2394_v4 = vld [vmem:[%s8116_s21 + $0x3f78] sm:$0xff]  ;;  %v3060_v46 = vld [vmem:[%s8116_s21 + $0x5448] sm:$0xff]  ;;  %v3213_v38 = vld [vmem:[%s8116_s21 + $0x5910] sm:$0xff] }
 0x494   : > { %5985 = vmatpush.msrb.mxu2 %v2421_v23  ;;  %6004 = vmatpush.msrb.mxu3 %v2574_v9  ;;  %v2763_v23 = vld [vmem:[%s8116_s21 + $0x4b00] sm:$0xff]  ;;  %v2916_v9 = vld [vmem:[%s8116_s21 + $0x4fc8] sm:$0xff]  ;;  %v2754_v52 = vld [vmem:[%s8116_s21 + $0x4ab8] sm:$0xff] }
 0x495   : > { %5946 = vmatpush.msrb.mxu0 %v2124_v10  ;;  %5965 = vmatpush.msrb.mxu1 %v2277_v44  ;;  %v5651_v14 = vpop.f32.mrf.mxu1  ;;  %v3051_v10 = vld [vmem:[%s8116_s21 + $0x5400] sm:$0xff]  ;;  %v3204_v44 = vld [vmem:[%s8116_s21 + $0x58c8] sm:$0xff] }
 0x496   : > { %5986 = vmatpush.msrb.mxu2 %v2412_v16  ;;  %6005 = vmatpush.msrb.mxu3 %v2565_v34  ;;  %v5652_v5 = vadd.f32 %v5651_v14, %v5632_v6  ;;  %v2907_v16 = vld [vmem:[%s8116_s21 + $0x4f80] sm:$0xff]  ;;  %v3042_v34 = vld [vmem:[%s8116_s21 + $0x53b8] sm:$0xff]  ;;  %v2736_v14 = vld [vmem:[%s8116_s21 + $0x4a28] sm:$0xff] }
 0x497   : > { %5947 = vmatpush.msrb.mxu0 %v2115_v32  ;;  %5966 = vmatpush.msrb.mxu1 %v2268_v28  ;;  %v3195_v6 = vld [vmem:[%s8116_s21 + $0x5880] sm:$0xff]  ;;  %v2745_v32 = vld [vmem:[%s8116_s21 + $0x4a70] sm:$0xff]  ;;  %v2898_v28 = vld [vmem:[%s8116_s21 + $0x4f38] sm:$0xff] }
 0x498   : > { %5987 = vmatpush.msrb.mxu2 %v2403_v18  ;;  %6006 = vmatpush.msrb.mxu3 %v2556_v22  ;;  %v5671_v47 = vpop.f32.mrf.mxu2  ;;  %v3033_v18 = vld [vmem:[%s8116_s21 + $0x5370] sm:$0xff]  ;;  %v3186_v22 = vld [vmem:[%s8116_s21 + $0x5838] sm:$0xff] }
 0x499   : > { %5948 = vmatpush.msrb.mxu0 %v2106_v1  ;;  %5967 = vmatpush.msrb.mxu1 %v2259_v11  ;;  %v5672_v61 = vadd.f32 %v5671_v47, %v5652_v5  ;;  %v2889_v1 = vld [vmem:[%s8116_s21 + $0x4ef0] sm:$0xff]  ;;  %v3024_v11 = vld [vmem:[%s8116_s21 + $0x5328] sm:$0xff]  ;;  %v2718_v47 = vld [vmem:[%s8116_s21 + $0x4998] sm:$0xff] }
 0x49a   : > { %5988 = vmatpush.msrb.mxu2 %v2394_v4  ;;  %6007 = vmatpush.msrb.mxu3 %v2547_v12  ;;  %v3177_v4 = vld [vmem:[%s8116_s21 + $0x57f0] sm:$0xff]  ;;  %v2727_v12 = vld [vmem:[%s8116_s21 + $0x49e0] sm:$0xff]  ;;  %v2880_v5 = vld [vmem:[%s8116_s21 + $0x4ea8] sm:$0xff] }
 0x49b   : > { %5949 = vmatpush.msrb.mxu0 %v2097_v25  ;;  %5968 = vmatpush.msrb.mxu1 %v2250_v53  ;;  %v5691_v0 = vpop.f32.mrf.mxu3  ;;  %v3015_v25 = vld [vmem:[%s8116_s21 + $0x52e0] sm:$0xff]  ;;  %v3168_v53 = vld [vmem:[%s8116_s21 + $0x57a8] sm:$0xff] }
 0x49c   : > { %5989 = vmatpush.msrb.mxu2 %v2385_v29  ;;  %6008 = vmatpush.msrb.mxu3 %v2538_v49  ;;  %v5692_v48 = vadd.f32 %v5691_v0, %v5672_v61  ;;  %v2871_v29 = vld [vmem:[%s8116_s21 + $0x4e60] sm:$0xff]  ;;  %v3006_v49 = vld [vmem:[%s8116_s21 + $0x5298] sm:$0xff]  ;;  %v2997_v0 = vld [vmem:[%s8116_s21 + $0x5250] sm:$0xff] }
 0x49d   : > { %5950 = vmatmul.f32.vlgmr.msrb.gmra.mxu0 %v7979_v33  ;;  %5990 = vmatmul.f32.vlgmr.msrb.gmra.mxu2 %v7980_v36  ;;  %v3159_v61 = vld [vmem:[%s8116_s21 + $0x5760] sm:$0xff]  ;;  %v2988_v33 = vld [vmem:[%s8116_s21 + $0x5208] sm:$0xff]  ;;  %v3141_v36 = vld [vmem:[%s8116_s21 + $0x56d0] sm:$0xff] }
 0x49e   : > { %6014 = vmatpush.msra.mxu0 %v2808_v2  ;;  %6054 = vmatpush.msra.mxu2 %v3096_v20  ;;  %v6905_v8 = vrot.slane %v5692_v48, 6  ;;  %v2709_v2 = vld [vmem:[%s8116_s21 + $0x4950] sm:$0xff]  ;;  %v2862_v20 = vld [vmem:[%s8116_s21 + $0x4e18] sm:$0xff] }
 0x49f   : > { %5969 = vmatpush.msrb.mxu1 %v2241_v62  ;;  %6009 = vmatpush.msrb.mxu3 %v2529_v21  ;;  %v3150_v62 = vld [vmem:[%s8116_s21 + $0x5718] sm:$0xff]  ;;  %v2700_v21 = vld [vmem:[%s8116_s21 + $0x4908] sm:$0xff]  ;;  %v2853_v48 = vld [vmem:[%s8116_s21 + $0x4dd0] sm:$0xff] }
 0x4a0   : > { %5970 = vmatmul.f32.vlgmr.msrb.gmra.mxu1 %v7981_v24  ;;  %6010 = vmatmul.f32.vlgmr.msrb.gmra.mxu3 %v7982_v45  ;;  %v10621_v56 = vsel %vm6908_vm1, %v10270_v63, %v6905_v8  ;;  %v2772_v63 = vld [vmem:[%s8116_s21 + $0x4b48] sm:$0xff]  ;;  %v2979_v8 = vld [vmem:[%s8116_s21 + $0x51c0] sm:$0xff]  ;;  %v2970_v45 = vld [vmem:[%s8116_s21 + $0x5178] sm:$0xff] }
 0x4a1   : > { %6015 = vmatpush.msra.mxu0 %v2799_v17  ;;  %6034 = vmatpush.msra.mxu1 %v2952_v43  ;;  %v2691_v17 = vld [vmem:[%s8116_s21 + $0x48c0] sm:$0xff]  ;;  %v2844_v43 = vld [vmem:[%s8116_s21 + $0x4d88] sm:$0xff] }
 0x4a2   : > { %6055 = vmatpush.msra.mxu2 %v3087_v35  ;;  %6074 = vmatpush.msra.mxu3 %v3240_v54  ;;  %v3132_v35 = vld [vmem:[%s8116_s21 + $0x5688] sm:$0xff]  ;;  %v2682_v54 = vld [vmem:[%s8116_s21 + $0x4878] sm:$0xff]  ;;  %v2835_v24 = vld [vmem:[%s8116_s21 + $0x4d40] sm:$0xff] }
 0x4a3   : > { %6016 = vmatpush.msra.mxu0 %v2790_v50  ;;  %6035 = vmatpush.msra.mxu1 %v2943_v3  ;;  %v3123_v50 = vld [vmem:[%s8116_s21 + $0x5640] sm:$0xff]  ;;  %v2673_v3 = vld [vmem:[%s8116_s21 + $0x4830] sm:$0xff] }
 0x4a4   : > { %6056 = vmatpush.msra.mxu2 %v3078_v15  ;;  %6075 = vmatpush.msra.mxu3 %v3231_v13  ;;  %v2826_v15 = vld [vmem:[%s8116_s21 + $0x4cf8] sm:$0xff]  ;;  %v2961_v13 = vld [vmem:[%s8116_s21 + $0x5130] sm:$0xff] }
 0x4a5   : > { %6017 = vmatpush.msra.mxu0 %v2781_v31  ;;  %6036 = vmatpush.msra.mxu1 %v2934_v55  ;;  %v3114_v31 = vld [vmem:[%s8116_s21 + $0x55f8] sm:$0xff]  ;;  %v505_v55 = vld [vmem:[%s8116_s21 + $0x470] sm:$0xff] }
 0x4a6   : > { %6057 = vmatpush.msra.mxu2 %v3069_v19  ;;  %6076 = vmatpush.msra.mxu3 %v3222_v7  ;;  %v793_v19 = vld [vmem:[%s8116_s21 + $0xd70] sm:$0xff] }
 0x4a7   : > { %6018 = vmatpush.msra.mxu0 %v2772_v63  ;;  %6037 = vmatpush.msra.mxu1 %v2925_v30  ;;  %v2817_v7 = vld [vmem:[%s8116_s21 + $0x4cb0] sm:$0xff]  ;;  %v7983_v30 = vld.sshfl [vmem:[#allocation1] sm:$0xff pattern:$0x73625140] }
 0x4a8   : > { %6058 = vmatpush.msra.mxu2 %v3060_v46  ;;  %6077 = vmatpush.msra.mxu3 %v3213_v38  ;;  %v3105_v63 = vld [vmem:[%s8116_s21 + $0x55b0] sm:$0xff]  ;;  %v496_v38 = vld [vmem:[%s8116_s21 + $0x428] sm:$0xff] }
 0x4a9   : > { %6019 = vmatpush.msra.mxu0 %v2763_v23  ;;  %6038 = vmatpush.msra.mxu1 %v2916_v9  ;;  %v7984_v46 = vld.sshfl [vmem:[#allocation1 + $0x10] sm:$0xff pattern:$0x73625140]  ;;  %v784_v9 = vld [vmem:[%s8116_s21 + $0xd28] sm:$0xff] }
 0x4aa   : > { %6059 = vmatpush.msra.mxu2 %v3051_v10  ;;  %6078 = vmatpush.msra.mxu3 %v3204_v44  ;;  %v649_v23 = vld [vmem:[%s8116_s21 + $0x8f0] sm:$0xff]  ;;  %v7985_v44 = vld.sshfl [vmem:[#allocation1 + $0x8] sm:$0xff pattern:$0x73625140] }
 0x4ab   : > { %6020 = vmatpush.msra.mxu0 %v2754_v52  ;;  %6039 = vmatpush.msra.mxu1 %v2907_v16  ;;  %v937_v10 = vld [vmem:[%s8116_s21 + $0x11f0] sm:$0xff]  ;;  %v7986_v52 = vld.sshfl [vmem:[#allocation1 + $0x18] sm:$0xff pattern:$0x73625140]  ;;  %v487_v16 = vld [vmem:[%s8116_s21 + $0x3e0] sm:$0xff] }
 0x4ac   : > { %6060 = vmatpush.msra.mxu2 %v3042_v34  ;;  %6079 = vmatpush.msra.mxu3 %v3195_v6  ;;  %v640_v34 = vld [vmem:[%s8116_s21 + $0x8a8] sm:$0xff]  ;;  %v775_v6 = vld [vmem:[%s8116_s21 + $0xce0] sm:$0xff] }
 0x4ad   : > { %6021 = vmatpush.msra.mxu0 %v2745_v32  ;;  %6040 = vmatpush.msra.mxu1 %v2898_v28  ;;  %v928_v32 = vld [vmem:[%s8116_s21 + $0x11a8] sm:$0xff]  ;;  %v478_v28 = vld [vmem:[%s8116_s21 + $0x398] sm:$0xff] }
 0x4ae   : > { %6061 = vmatpush.msra.mxu2 %v3033_v18  ;;  %6080 = vmatpush.msra.mxu3 %v3186_v22  ;;  %v631_v18 = vld [vmem:[%s8116_s21 + $0x860] sm:$0xff]  ;;  %v766_v22 = vld [vmem:[%s8116_s21 + $0xc98] sm:$0xff] }
 0x4af   : > { %6022 = vmatpush.msra.mxu0 %v2736_v14  ;;  %6041 = vmatpush.msra.mxu1 %v2889_v1  ;;  %v919_v14 = vld [vmem:[%s8116_s21 + $0x1160] sm:$0xff]  ;;  %v469_v1 = vld [vmem:[%s8116_s21 + $0x350] sm:$0xff] }
 0x4b0   : > { %6062 = vmatpush.msra.mxu2 %v3024_v11  ;;  %6081 = vmatpush.msra.mxu3 %v3177_v4  ;;  %v622_v11 = vld [vmem:[%s8116_s21 + $0x818] sm:$0xff]  ;;  %v757_v4 = vld [vmem:[%s8116_s21 + $0xc50] sm:$0xff] }
 0x4b1   : > { %6023 = vmatpush.msra.mxu0 %v2727_v12  ;;  %6042 = vmatpush.msra.mxu1 %v2880_v5  ;;  %v910_v12 = vld [vmem:[%s8116_s21 + $0x1118] sm:$0xff]  ;;  %v460_v5 = vld [vmem:[%s8116_s21 + $0x308] sm:$0xff] }
 0x4b2   : > { %6063 = vmatpush.msra.mxu2 %v3015_v25  ;;  %6082 = vmatpush.msra.mxu3 %v3168_v53  ;;  %v613_v25 = vld [vmem:[%s8116_s21 + $0x7d0] sm:$0xff]  ;;  %v748_v53 = vld [vmem:[%s8116_s21 + $0xc08] sm:$0xff] }
 0x4b3   : > { %6024 = vmatpush.msra.mxu0 %v2718_v47  ;;  %6043 = vmatpush.msra.mxu1 %v2871_v29  ;;  %v901_v47 = vld [vmem:[%s8116_s21 + $0x10d0] sm:$0xff]  ;;  %v451_v29 = vld [vmem:[%s8116_s21 + $0x2c0] sm:$0xff] }
 0x4b4   : > { %6064 = vmatpush.msra.mxu2 %v3006_v49  ;;  %6083 = vmatpush.msra.mxu3 %v3159_v61  ;;  %v604_v49 = vld [vmem:[%s8116_s21 + $0x788] sm:$0xff]  ;;  %v739_v61 = vld [vmem:[%s8116_s21 + $0xbc0] sm:$0xff] }
 0x4b5   : > { %6025 = vmatpush.msra.mxu0 %v2709_v2  ;;  %6044 = vmatpush.msra.mxu1 %v2862_v20  ;;  %v892_v2 = vld [vmem:[%s8116_s21 + $0x1088] sm:$0xff]  ;;  %v442_v20 = vld [vmem:[%s8116_s21 + $0x278] sm:$0xff] }
 0x4b6   : > { %6065 = vmatpush.msra.mxu2 %v2997_v0  ;;  %6084 = vmatpush.msra.mxu3 %v3150_v62  ;;  %v595_v0 = vld [vmem:[%s8116_s21 + $0x740] sm:$0xff]  ;;  %v730_v62 = vld [vmem:[%s8116_s21 + $0xb78] sm:$0xff] }
 0x4b7   : > { %6026 = vmatpush.msra.mxu0 %v2700_v21  ;;  %6045 = vmatpush.msra.mxu1 %v2853_v48  ;;  %v883_v21 = vld [vmem:[%s8116_s21 + $0x1040] sm:$0xff]  ;;  %v433_v48 = vld [vmem:[%s8116_s21 + $0x230] sm:$0xff] }
 0x4b8   : > { %6066 = vmatpush.msra.mxu2 %v2988_v33  ;;  %6085 = vmatpush.msra.mxu3 %v3141_v36  ;;  %v586_v33 = vld [vmem:[%s8116_s21 + $0x6f8] sm:$0xff]  ;;  %v721_v36 = vld [vmem:[%s8116_s21 + $0xb30] sm:$0xff] }
 0x4b9   : > { %6027 = vmatpush.msra.mxu0 %v2691_v17  ;;  %6046 = vmatpush.msra.mxu1 %v2844_v43  ;;  %v874_v17 = vld [vmem:[%s8116_s21 + $0xff8] sm:$0xff]  ;;  %v424_v43 = vld [vmem:[%s8116_s21 + $0x1e8] sm:$0xff] }
 0x4ba   : > { %6067 = vmatpush.msra.mxu2 %v2979_v8  ;;  %6086 = vmatpush.msra.mxu3 %v3132_v35  ;;  %v577_v8 = vld [vmem:[%s8116_s21 + $0x6b0] sm:$0xff]  ;;  %v712_v35 = vld [vmem:[%s8116_s21 + $0xae8] sm:$0xff] }
 0x4bb   : > { %6028 = vmatpush.msra.mxu0 %v2682_v54  ;;  %6047 = vmatpush.msra.mxu1 %v2835_v24  ;;  %v865_v54 = vld [vmem:[%s8116_s21 + $0xfb0] sm:$0xff]  ;;  %v415_v24 = vld [vmem:[%s8116_s21 + $0x1a0] sm:$0xff] }
 0x4bc   : > { %6068 = vmatpush.msra.mxu2 %v2970_v45  ;;  %6087 = vmatpush.msra.mxu3 %v3123_v50  ;;  %v568_v45 = vld [vmem:[%s8116_s21 + $0x668] sm:$0xff]  ;;  %v703_v50 = vld [vmem:[%s8116_s21 + $0xaa0] sm:$0xff] }
 0x4bd   : > { %6029 = vmatpush.msra.mxu0 %v2673_v3  ;;  %6048 = vmatpush.msra.mxu1 %v2826_v15  ;;  %v856_v3 = vld [vmem:[%s8116_s21 + $0xf68] sm:$0xff]  ;;  %v406_v15 = vld [vmem:[%s8116_s21 + $0x158] sm:$0xff] }
 0x4be   : > { %6069 = vmatpush.msra.mxu2 %v2961_v13  ;;  %6088 = vmatpush.msra.mxu3 %v3114_v31  ;;  %v559_v13 = vld [vmem:[%s8116_s21 + $0x620] sm:$0xff]  ;;  %v694_v31 = vld [vmem:[%s8116_s21 + $0xa58] sm:$0xff] }
 0x4bf   : > { %6030 = vmatmul.f32.vlgmr.msra.gmra.mxu0 %v7983_v30  ;;  %6070 = vmatmul.f32.vlgmr.msra.gmra.mxu2 %v7984_v46  ;;  %v838_v30 = vld [vmem:[%s8116_s21 + $0xed8] sm:$0xff]  ;;  %v388_v46 = vld [vmem:[%s8116_s21 + $0xc8] sm:$0xff] }
 0x4c0   : > { %6094 = vmatpush.msrb.mxu0 %v505_v55  ;;  %6134 = vmatpush.msrb.mxu2 %v793_v19  ;;  %v847_v55 = vld [vmem:[%s8116_s21 + $0xf20] sm:$0xff]  ;;  %v397_v19 = vld [vmem:[%s8116_s21 + $0x110] sm:$0xff] }
 0x4c1   : > { %6049 = vmatpush.msra.mxu1 %v2817_v7  ;;  %6089 = vmatpush.msra.mxu3 %v3105_v63  ;;  %v550_v7 = vld [vmem:[%s8116_s21 + $0x5d8] sm:$0xff]  ;;  %v685_v63 = vld [vmem:[%s8116_s21 + $0xa10] sm:$0xff] }
 0x4c2   : > { %6050 = vmatmul.f32.vlgmr.msra.gmra.mxu1 %v7985_v44  ;;  %6090 = vmatmul.f32.vlgmr.msra.gmra.mxu3 %v7986_v52  ;;  %v532_v44 = vld [vmem:[%s8116_s21 + $0x548] sm:$0xff]  ;;  %v667_v52 = vld [vmem:[%s8116_s21 + $0x980] sm:$0xff] }
 0x4c3   : > { %6095 = vmatpush.msrb.mxu0 %v496_v38  ;;  %6114 = vmatpush.msrb.mxu1 %v649_v23  ;;  %v541_v38 = vld [vmem:[%s8116_s21 + $0x590] sm:$0xff]  ;;  %v676_v23 = vld [vmem:[%s8116_s21 + $0x9c8] sm:$0xff] }
 0x4c4   : > { %6135 = vmatpush.msrb.mxu2 %v784_v9  ;;  %6154 = vmatpush.msrb.mxu3 %v937_v10  ;;  %v829_v9 = vld [vmem:[%s8116_s21 + $0xe90] sm:$0xff]  ;;  %v379_v10 = vld [vmem:[%s8116_s21 + $0x80] sm:$0xff] }
 0x4c5   : > { %6096 = vmatpush.msrb.mxu0 %v487_v16  ;;  %6115 = vmatpush.msrb.mxu1 %v640_v34  ;;  %v820_v16 = vld [vmem:[%s8116_s21 + $0xe48] sm:$0xff]  ;;  %v370_v34 = vld [vmem:[%s8116_s21 + $0x38] sm:$0xff] }
 0x4c6   : > { %6136 = vmatpush.msrb.mxu2 %v775_v6  ;;  %6155 = vmatpush.msrb.mxu3 %v928_v32  ;;  %v523_v6 = vld [vmem:[%s8116_s21 + $0x500] sm:$0xff]  ;;  %v658_v32 = vld [vmem:[%s8116_s21 + $0x938] sm:$0xff] }
 0x4c7   : > { %6097 = vmatpush.msrb.mxu0 %v478_v28  ;;  %6116 = vmatpush.msrb.mxu1 %v631_v18  ;;  %v811_v28 = vld [vmem:[%s8116_s21 + $0xe00] sm:$0xff]  ;;  %v1081_v18 = vld [vmem:[%s8116_s21 + $0x1670] sm:$0xff] }
 0x4c8   : > { %6137 = vmatpush.msrb.mxu2 %v766_v22  ;;  %6156 = vmatpush.msrb.mxu3 %v919_v14  ;;  %v1369_v22 = vld [vmem:[%s8116_s21 + $0x1f70] sm:$0xff]  ;;  %v514_v14 = vld [vmem:[%s8116_s21 + $0x4b8] sm:$0xff] }
 0x4c9   : > { %6098 = vmatpush.msrb.mxu0 %v469_v1  ;;  %6117 = vmatpush.msrb.mxu1 %v622_v11  ;;  %v802_v1 = vld [vmem:[%s8116_s21 + $0xdb8] sm:$0xff]  ;;  %v1072_v11 = vld [vmem:[%s8116_s21 + $0x1628] sm:$0xff] }
 0x4ca   : > { %6138 = vmatpush.msrb.mxu2 %v757_v4  ;;  %6157 = vmatpush.msrb.mxu3 %v910_v12  ;;  %v1225_v4 = vld [vmem:[%s8116_s21 + $0x1af0] sm:$0xff]  ;;  %v1360_v12 = vld [vmem:[%s8116_s21 + $0x1f28] sm:$0xff] }
 0x4cb   : > { %6099 = vmatpush.msrb.mxu0 %v460_v5  ;;  %6118 = vmatpush.msrb.mxu1 %v613_v25  ;;  %v1513_v5 = vld [vmem:[%s8116_s21 + $0x23f0] sm:$0xff]  ;;  %v1063_v25 = vld [vmem:[%s8116_s21 + $0x15e0] sm:$0xff] }
 0x4cc   : > { %6139 = vmatpush.msrb.mxu2 %v748_v53  ;;  %6158 = vmatpush.msrb.mxu3 %v901_v47  ;;  %v1216_v53 = vld [vmem:[%s8116_s21 + $0x1aa8] sm:$0xff]  ;;  %v1351_v47 = vld [vmem:[%s8116_s21 + $0x1ee0] sm:$0xff] }
 0x4cd   : > { %6100 = vmatpush.msrb.mxu0 %v451_v29  ;;  %6119 = vmatpush.msrb.mxu1 %v604_v49  ;;  %v1504_v29 = vld [vmem:[%s8116_s21 + $0x23a8] sm:$0xff]  ;;  %v1054_v49 = vld [vmem:[%s8116_s21 + $0x1598] sm:$0xff] }
 0x4ce   : > { %6140 = vmatpush.msrb.mxu2 %v739_v61  ;;  %6159 = vmatpush.msrb.mxu3 %v892_v2  ;;  %v1207_v61 = vld [vmem:[%s8116_s21 + $0x1a60] sm:$0xff]  ;;  %v1342_v2 = vld [vmem:[%s8116_s21 + $0x1e98] sm:$0xff] }
 0x4cf   : > { %6101 = vmatpush.msrb.mxu0 %v442_v20  ;;  %6120 = vmatpush.msrb.mxu1 %v595_v0  ;;  %v1495_v20 = vld [vmem:[%s8116_s21 + $0x2360] sm:$0xff]  ;;  %v1045_v0 = vld [vmem:[%s8116_s21 + $0x1550] sm:$0xff] }
 0x4d0   : > { %6141 = vmatpush.msrb.mxu2 %v730_v62  ;;  %6160 = vmatpush.msrb.mxu3 %v883_v21  ;;  %v1198_v62 = vld [vmem:[%s8116_s21 + $0x1a18] sm:$0xff]  ;;  %v1333_v21 = vld [vmem:[%s8116_s21 + $0x1e50] sm:$0xff] }
 0x4d1   : > { %6102 = vmatpush.msrb.mxu0 %v433_v48  ;;  %6121 = vmatpush.msrb.mxu1 %v586_v33  ;;  %v1486_v48 = vld [vmem:[%s8116_s21 + $0x2318] sm:$0xff]  ;;  %v1036_v33 = vld [vmem:[%s8116_s21 + $0x1508] sm:$0xff] }
 0x4d2   : > { %6142 = vmatpush.msrb.mxu2 %v721_v36  ;;  %6161 = vmatpush.msrb.mxu3 %v874_v17  ;;  %v1189_v36 = vld [vmem:[%s8116_s21 + $0x19d0] sm:$0xff]  ;;  %v1324_v17 = vld [vmem:[%s8116_s21 + $0x1e08] sm:$0xff] }
 0x4d3   : > { %6103 = vmatpush.msrb.mxu0 %v424_v43  ;;  %6122 = vmatpush.msrb.mxu1 %v577_v8  ;;  %v1477_v43 = vld [vmem:[%s8116_s21 + $0x22d0] sm:$0xff]  ;;  %v1027_v8 = vld [vmem:[%s8116_s21 + $0x14c0] sm:$0xff] }
 0x4d4   : > { %6143 = vmatpush.msrb.mxu2 %v712_v35  ;;  %6162 = vmatpush.msrb.mxu3 %v865_v54  ;;  %v1180_v35 = vld [vmem:[%s8116_s21 + $0x1988] sm:$0xff]  ;;  %v1315_v54 = vld [vmem:[%s8116_s21 + $0x1dc0] sm:$0xff] }
 0x4d5   : > { %6104 = vmatpush.msrb.mxu0 %v415_v24  ;;  %6123 = vmatpush.msrb.mxu1 %v568_v45  ;;  %v1468_v24 = vld [vmem:[%s8116_s21 + $0x2288] sm:$0xff]  ;;  %v1018_v45 = vld [vmem:[%s8116_s21 + $0x1478] sm:$0xff] }
 0x4d6   : > { %6144 = vmatpush.msrb.mxu2 %v703_v50  ;;  %6163 = vmatpush.msrb.mxu3 %v856_v3  ;;  %v1171_v50 = vld [vmem:[%s8116_s21 + $0x1940] sm:$0xff]  ;;  %v1306_v3 = vld [vmem:[%s8116_s21 + $0x1d78] sm:$0xff] }
 0x4d7   : > { %6105 = vmatpush.msrb.mxu0 %v406_v15  ;;  %6124 = vmatpush.msrb.mxu1 %v559_v13  ;;  %v1459_v15 = vld [vmem:[%s8116_s21 + $0x2240] sm:$0xff]  ;;  %v1009_v13 = vld [vmem:[%s8116_s21 + $0x1430] sm:$0xff] }
 0x4d8   : > { %6145 = vmatpush.msrb.mxu2 %v694_v31  ;;  %6164 = vmatpush.msrb.mxu3 %v847_v55  ;;  %v1162_v31 = vld [vmem:[%s8116_s21 + $0x18f8] sm:$0xff]  ;;  %v1297_v55 = vld [vmem:[%s8116_s21 + $0x1d30] sm:$0xff] }
 0x4d9   : > { %6106 = vmatpush.msrb.mxu0 %v397_v19  ;;  %6125 = vmatpush.msrb.mxu1 %v550_v7  ;;  %v1450_v19 = vld [vmem:[%s8116_s21 + $0x21f8] sm:$0xff]  ;;  %v1000_v7 = vld [vmem:[%s8116_s21 + $0x13e8] sm:$0xff] }
 0x4da   : > { %6146 = vmatpush.msrb.mxu2 %v685_v63  ;;  %6165 = vmatpush.msrb.mxu3 %v838_v30  ;;  %v1153_v63 = vld [vmem:[%s8116_s21 + $0x18b0] sm:$0xff]  ;;  %v1288_v30 = vld [vmem:[%s8116_s21 + $0x1ce8] sm:$0xff] }
 0x4db   : > { %6107 = vmatpush.msrb.mxu0 %v388_v46  ;;  %6126 = vmatpush.msrb.mxu1 %v541_v38  ;;  %v1441_v46 = vld [vmem:[%s8116_s21 + $0x21b0] sm:$0xff]  ;;  %v991_v38 = vld [vmem:[%s8116_s21 + $0x13a0] sm:$0xff] }
 0x4dc   : > { %6147 = vmatpush.msrb.mxu2 %v676_v23  ;;  %6166 = vmatpush.msrb.mxu3 %v829_v9  ;;  %v1144_v23 = vld [vmem:[%s8116_s21 + $0x1868] sm:$0xff]  ;;  %v1279_v9 = vld [vmem:[%s8116_s21 + $0x1ca0] sm:$0xff] }
 0x4dd   : > { %6108 = vmatpush.msrb.mxu0 %v379_v10  ;;  %6127 = vmatpush.msrb.mxu1 %v532_v44  ;;  %v1432_v10 = vld [vmem:[%s8116_s21 + $0x2168] sm:$0xff]  ;;  %v982_v44 = vld [vmem:[%s8116_s21 + $0x1358] sm:$0xff] }
 0x4de   : > { %6148 = vmatpush.msrb.mxu2 %v667_v52  ;;  %6167 = vmatpush.msrb.mxu3 %v820_v16  ;;  %v1135_v52 = vld [vmem:[%s8116_s21 + $0x1820] sm:$0xff]  ;;  %v1270_v16 = vld [vmem:[%s8116_s21 + $0x1c58] sm:$0xff] }
 0x4df   : > { %6109 = vmatpush.msrb.mxu0 %v370_v34  ;;  %6128 = vmatpush.msrb.mxu1 %v523_v6  ;;  %v1423_v34 = vld [vmem:[%s8116_s21 + $0x2120] sm:$0xff]  ;;  %v973_v6 = vld [vmem:[%s8116_s21 + $0x1310] sm:$0xff] }
 0x4e0   : > { %6149 = vmatpush.msrb.mxu2 %v658_v32  ;;  %6168 = vmatpush.msrb.mxu3 %v811_v28  ;;  %v1126_v32 = vld [vmem:[%s8116_s21 + $0x17d8] sm:$0xff]  ;;  %v1261_v28 = vld [vmem:[%s8116_s21 + $0x1c10] sm:$0xff] }
 0x4e1   : > { %6174 = vmatpush.msra.mxu0 %v1081_v18  ;;  %6129 = vmatpush.msrb.mxu1 %v514_v14  ;;  %v1414_v18 = vld [vmem:[%s8116_s21 + $0x20d8] sm:$0xff]  ;;  %v1117_v14 = vld [vmem:[%s8116_s21 + $0x1790] sm:$0xff] }
 0x4e2   : > { %6214 = vmatpush.msra.mxu2 %v1369_v22  ;;  %6169 = vmatpush.msrb.mxu3 %v802_v1  ;;  %v964_v22 = vld [vmem:[%s8116_s21 + $0x12c8] sm:$0xff] }
 0x4e3   : > { %6175 = vmatpush.msra.mxu0 %v1072_v11  ;;  %6194 = vmatpush.msra.mxu1 %v1225_v4  ;;  %v1252_v1 = vld [vmem:[%s8116_s21 + $0x1bc8] sm:$0xff]  ;;  %v1405_v11 = vld [vmem:[%s8116_s21 + $0x2090] sm:$0xff]  ;;  %v955_v4 = vld [vmem:[%s8116_s21 + $0x1280] sm:$0xff] }
 0x4e4   : > { %6215 = vmatpush.msra.mxu2 %v1360_v12  ;;  %6234 = vmatpush.msra.mxu3 %v1513_v5  ;;  %v1108_v12 = vld [vmem:[%s8116_s21 + $0x1748] sm:$0xff]  ;;  %v1243_v5 = vld [vmem:[%s8116_s21 + $0x1b80] sm:$0xff] }
 0x4e5   : > { %6176 = vmatpush.msra.mxu0 %v1063_v25  ;;  %6195 = vmatpush.msra.mxu1 %v1216_v53  ;;  %v1396_v25 = vld [vmem:[%s8116_s21 + $0x2048] sm:$0xff]  ;;  %v946_v53 = vld [vmem:[%s8116_s21 + $0x1238] sm:$0xff] }
 0x4e6   : > { %6216 = vmatpush.msra.mxu2 %v1351_v47  ;;  %6235 = vmatpush.msra.mxu3 %v1504_v29  ;;  %v1099_v47 = vld [vmem:[%s8116_s21 + $0x1700] sm:$0xff]  ;;  %v1234_v29 = vld [vmem:[%s8116_s21 + $0x1b38] sm:$0xff] }
 0x4e7   : > { %6177 = vmatpush.msra.mxu0 %v1054_v49  ;;  %6196 = vmatpush.msra.mxu1 %v1207_v61  ;;  %v1387_v49 = vld [vmem:[%s8116_s21 + $0x2000] sm:$0xff]  ;;  %v1657_v61 = vld [vmem:[%s8116_s21 + $0x2870] sm:$0xff] }
 0x4e8   : > { %6217 = vmatpush.msra.mxu2 %v1342_v2  ;;  %6236 = vmatpush.msra.mxu3 %v1495_v20  ;;  %v1945_v2 = vld [vmem:[%s8116_s21 + $0x3170] sm:$0xff]  ;;  %v1090_v20 = vld [vmem:[%s8116_s21 + $0x16b8] sm:$0xff] }
 0x4e9   : > { %6178 = vmatpush.msra.mxu0 %v1045_v0  ;;  %6197 = vmatpush.msra.mxu1 %v1198_v62  ;;  %v1378_v0 = vld [vmem:[%s8116_s21 + $0x1fb8] sm:$0xff]  ;;  %v1648_v62 = vld [vmem:[%s8116_s21 + $0x2828] sm:$0xff] }
 0x4ea   : > { %6218 = vmatpush.msra.mxu2 %v1333_v21  ;;  %6237 = vmatpush.msra.mxu3 %v1486_v48  ;;  %v1801_v21 = vld [vmem:[%s8116_s21 + $0x2cf0] sm:$0xff]  ;;  %v1936_v48 = vld [vmem:[%s8116_s21 + $0x3128] sm:$0xff] }
 0x4eb   : > { %6179 = vmatpush.msra.mxu0 %v1036_v33  ;;  %6198 = vmatpush.msra.mxu1 %v1189_v36  ;;  %v2089_v33 = vld [vmem:[%s8116_s21 + $0x35f0] sm:$0xff]  ;;  %v1639_v36 = vld [vmem:[%s8116_s21 + $0x27e0] sm:$0xff] }
 0x4ec   : > { %6219 = vmatpush.msra.mxu2 %v1324_v17  ;;  %6238 = vmatpush.msra.mxu3 %v1477_v43  ;;  %v1792_v17 = vld [vmem:[%s8116_s21 + $0x2ca8] sm:$0xff]  ;;  %v1927_v43 = vld [vmem:[%s8116_s21 + $0x30e0] sm:$0xff] }
 0x4ed   : > { %6180 = vmatpush.msra.mxu0 %v1027_v8  ;;  %6199 = vmatpush.msra.mxu1 %v1180_v35  ;;  %v2080_v8 = vld [vmem:[%s8116_s21 + $0x35a8] sm:$0xff]  ;;  %v1630_v35 = vld [vmem:[%s8116_s21 + $0x2798] sm:$0xff] }
 0x4ee   : > { %6220 = vmatpush.msra.mxu2 %v1315_v54  ;;  %6239 = vmatpush.msra.mxu3 %v1468_v24  ;;  %v1783_v54 = vld [vmem:[%s8116_s21 + $0x2c60] sm:$0xff]  ;;  %v1918_v24 = vld [vmem:[%s8116_s21 + $0x3098] sm:$0xff] }
 0x4ef   : > { %6181 = vmatpush.msra.mxu0 %v1018_v45  ;;  %6200 = vmatpush.msra.mxu1 %v1171_v50  ;;  %v2071_v45 = vld [vmem:[%s8116_s21 + $0x3560] sm:$0xff]  ;;  %v1621_v50 = vld [vmem:[%s8116_s21 + $0x2750] sm:$0xff] }
 0x4f0   : > { %6221 = vmatpush.msra.mxu2 %v1306_v3  ;;  %6240 = vmatpush.msra.mxu3 %v1459_v15  ;;  %v1774_v3 = vld [vmem:[%s8116_s21 + $0x2c18] sm:$0xff]  ;;  %v1909_v15 = vld [vmem:[%s8116_s21 + $0x3050] sm:$0xff] }
 0x4f1   : > { %6182 = vmatpush.msra.mxu0 %v1009_v13  ;;  %6201 = vmatpush.msra.mxu1 %v1162_v31  ;;  %v2062_v13 = vld [vmem:[%s8116_s21 + $0x3518] sm:$0xff]  ;;  %v1612_v31 = vld [vmem:[%s8116_s21 + $0x2708] sm:$0xff] }
 0x4f2   : > { %6222 = vmatpush.msra.mxu2 %v1297_v55  ;;  %6241 = vmatpush.msra.mxu3 %v1450_v19  ;;  %v1765_v55 = vld [vmem:[%s8116_s21 + $0x2bd0] sm:$0xff]  ;;  %v1900_v19 = vld [vmem:[%s8116_s21 + $0x3008] sm:$0xff] }
 0x4f3   : > { %6183 = vmatpush.msra.mxu0 %v1000_v7  ;;  %6202 = vmatpush.msra.mxu1 %v1153_v63  ;;  %v2053_v7 = vld [vmem:[%s8116_s21 + $0x34d0] sm:$0xff]  ;;  %v1603_v63 = vld [vmem:[%s8116_s21 + $0x26c0] sm:$0xff] }
 0x4f4   : > { %6223 = vmatpush.msra.mxu2 %v1288_v30  ;;  %6242 = vmatpush.msra.mxu3 %v1441_v46  ;;  %v1756_v30 = vld [vmem:[%s8116_s21 + $0x2b88] sm:$0xff]  ;;  %v1891_v46 = vld [vmem:[%s8116_s21 + $0x2fc0] sm:$0xff] }
 0x4f5   : > { %6184 = vmatpush.msra.mxu0 %v991_v38  ;;  %6203 = vmatpush.msra.mxu1 %v1144_v23  ;;  %v2044_v38 = vld [vmem:[%s8116_s21 + $0x3488] sm:$0xff]  ;;  %v1594_v23 = vld [vmem:[%s8116_s21 + $0x2678] sm:$0xff] }
 0x4f6   : > { %6224 = vmatpush.msra.mxu2 %v1279_v9  ;;  %6243 = vmatpush.msra.mxu3 %v1432_v10  ;;  %v1747_v9 = vld [vmem:[%s8116_s21 + $0x2b40] sm:$0xff]  ;;  %v1882_v10 = vld [vmem:[%s8116_s21 + $0x2f78] sm:$0xff] }
 0x4f7   : > { %6185 = vmatpush.msra.mxu0 %v982_v44  ;;  %6204 = vmatpush.msra.mxu1 %v1135_v52  ;;  %v2035_v44 = vld [vmem:[%s8116_s21 + $0x3440] sm:$0xff]  ;;  %v1585_v52 = vld [vmem:[%s8116_s21 + $0x2630] sm:$0xff] }
 0x4f8   : > { %6225 = vmatpush.msra.mxu2 %v1270_v16  ;;  %6244 = vmatpush.msra.mxu3 %v1423_v34  ;;  %v1738_v16 = vld [vmem:[%s8116_s21 + $0x2af8] sm:$0xff]  ;;  %v1873_v34 = vld [vmem:[%s8116_s21 + $0x2f30] sm:$0xff] }
 0x4f9   : > { %6186 = vmatpush.msra.mxu0 %v973_v6  ;;  %6205 = vmatpush.msra.mxu1 %v1126_v32  ;;  %v2026_v6 = vld [vmem:[%s8116_s21 + $0x33f8] sm:$0xff]  ;;  %v1576_v32 = vld [vmem:[%s8116_s21 + $0x25e8] sm:$0xff] }
 0x4fa   : > { %6226 = vmatpush.msra.mxu2 %v1261_v28  ;;  %6245 = vmatpush.msra.mxu3 %v1414_v18  ;;  %v1729_v28 = vld [vmem:[%s8116_s21 + $0x2ab0] sm:$0xff]  ;;  %v1864_v18 = vld [vmem:[%s8116_s21 + $0x2ee8] sm:$0xff] }
 0x4fb   : > { %6187 = vmatpush.msra.mxu0 %v964_v22  ;;  %6206 = vmatpush.msra.mxu1 %v1117_v14  ;;  %v2017_v22 = vld [vmem:[%s8116_s21 + $0x33b0] sm:$0xff]  ;;  %v1567_v14 = vld [vmem:[%s8116_s21 + $0x25a0] sm:$0xff] }
 0x4fc   : > { %6227 = vmatpush.msra.mxu2 %v1252_v1  ;;  %6246 = vmatpush.msra.mxu3 %v1405_v11  ;;  %v1720_v1 = vld [vmem:[%s8116_s21 + $0x2a68] sm:$0xff]  ;;  %v1855_v11 = vld [vmem:[%s8116_s21 + $0x2ea0] sm:$0xff] }
 0x4fd   : > { %6188 = vmatpush.msra.mxu0 %v955_v4  ;;  %6207 = vmatpush.msra.mxu1 %v1108_v12  ;;  %v2008_v4 = vld [vmem:[%s8116_s21 + $0x3368] sm:$0xff]  ;;  %v1558_v12 = vld [vmem:[%s8116_s21 + $0x2558] sm:$0xff] }
 0x4fe   : > { %6228 = vmatpush.msra.mxu2 %v1243_v5  ;;  %6247 = vmatpush.msra.mxu3 %v1396_v25  ;;  %v1711_v5 = vld [vmem:[%s8116_s21 + $0x2a20] sm:$0xff]  ;;  %v1846_v25 = vld [vmem:[%s8116_s21 + $0x2e58] sm:$0xff] }
 0x4ff   : > { %6150 = vmatmul.f32.vlgmr.msrb.gmra.mxu2 %v12471_v51  ;;  %6189 = vmatpush.msra.mxu0 %v946_v53  ;;  %v1999_v53 = vld [vmem:[%s8116_s21 + $0x3320] sm:$0xff] }
 0x500   : > { %6208 = vmatpush.msra.mxu1 %v1099_v47  ;;  %6229 = vmatpush.msra.mxu2 %v1234_v29  ;;  %v1549_v47 = vld [vmem:[%s8116_s21 + $0x2510] sm:$0xff]  ;;  %v1702_v29 = vld [vmem:[%s8116_s21 + $0x29d8] sm:$0xff] }
 0x501   : > { %6248 = vmatpush.msra.mxu3 %v1387_v49  ;;  %6110 = vmatmul.f32.vlgmr.msrb.gmra.mxu0 %v12472_v37  ;;  %v1837_v49 = vld [vmem:[%s8116_s21 + $0x2e10] sm:$0xff] }
 0x502   : > { %6170 = vmatmul.f32.vlgmr.msrb.gmra.mxu3 %v12473_v26  ;;  %6254 = vmatpush.msrb.mxu0 %v1657_v61  ;;  %v1990_v61 = vld [vmem:[%s8116_s21 + $0x32d8] sm:$0xff] }
 0x503   : > { %6294 = vmatpush.msrb.mxu2 %v1945_v2  ;;  %6209 = vmatpush.msra.mxu1 %v1090_v20  ;;  %v1540_v2 = vld [vmem:[%s8116_s21 + $0x24c8] sm:$0xff]  ;;  %v1693_v20 = vld [vmem:[%s8116_s21 + $0x2990] sm:$0xff] }
 0x504   : > { %6249 = vmatpush.msra.mxu3 %v1378_v0  ;;  %6130 = vmatmul.f32.vlgmr.msrb.gmra.mxu1 %v12474_v27  ;;  %v1828_v0 = vld [vmem:[%s8116_s21 + $0x2dc8] sm:$0xff] }
 0x505   : > { %6255 = vmatpush.msrb.mxu0 %v1648_v62  ;;  %6274 = vmatpush.msrb.mxu1 %v1801_v21  ;;  %v1981_v62 = vld [vmem:[%s8116_s21 + $0x3290] sm:$0xff]  ;;  %v1531_v21 = vld [vmem:[%s8116_s21 + $0x2480] sm:$0xff] }
 0x506   : > { %6295 = vmatpush.msrb.mxu2 %v1936_v48  ;;  %6314 = vmatpush.msrb.mxu3 %v2089_v33  ;;  %v1684_v48 = vld [vmem:[%s8116_s21 + $0x2948] sm:$0xff]  ;;  %v1819_v33 = vld [vmem:[%s8116_s21 + $0x2d80] sm:$0xff] }
 0x507   : > { %6256 = vmatpush.msrb.mxu0 %v1639_v36  ;;  %6275 = vmatpush.msrb.mxu1 %v1792_v17  ;;  %v1972_v36 = vld [vmem:[%s8116_s21 + $0x3248] sm:$0xff]  ;;  %v1522_v17 = vld [vmem:[%s8116_s21 + $0x2438] sm:$0xff] }
 0x508   : > { %6296 = vmatpush.msrb.mxu2 %v1927_v43  ;;  %6315 = vmatpush.msrb.mxu3 %v2080_v8  ;;  %v1675_v43 = vld [vmem:[%s8116_s21 + $0x2900] sm:$0xff]  ;;  %v1810_v8 = vld [vmem:[%s8116_s21 + $0x2d38] sm:$0xff] }
 0x509   : > { %6230 = vmatmul.f32.vlgmr.msra.gmra.mxu2 %v8238_v57  ;;  %6257 = vmatpush.msrb.mxu0 %v1630_v35  ;;  %v1963_v35 = vld [vmem:[%s8116_s21 + $0x3200] sm:$0xff] }
 0x50a   : > { %6276 = vmatpush.msrb.mxu1 %v1783_v54  ;;  %6297 = vmatpush.msrb.mxu2 %v1918_v24  ;;  %v2233_v54 = vld [vmem:[%s8116_s21 + $0x3a70] sm:$0xff] }
 0x50b   : > { %6316 = vmatpush.msrb.mxu3 %v2071_v45  ;;  %6190 = vmatmul.f32.vlgmr.msra.gmra.mxu0 %v8240_v58  ;;  %v2521_v24 = vld [vmem:[%s8116_s21 + $0x4370] sm:$0xff]  ;;  %v1666_v45 = vld [vmem:[%s8116_s21 + $0x28b8] sm:$0xff] }
 0x50c   : > { %6250 = vmatmul.f32.vlgmr.msra.gmra.mxu3 %v8242_v59  ;;  %6258 = vmatpush.msrb.mxu0 %v1621_v50  ;;  %v1954_v50 = vld [vmem:[%s8116_s21 + $0x31b8] sm:$0xff] }
 0x50d   : > { %6277 = vmatpush.msrb.mxu1 %v1774_v3  ;;  %6298 = vmatpush.msrb.mxu2 %v1909_v15  ;;  %v2224_v3 = vld [vmem:[%s8116_s21 + $0x3a28] sm:$0xff]  ;;  %v2377_v15 = vld [vmem:[%s8116_s21 + $0x3ef0] sm:$0xff] }
 0x50e   : > { %6317 = vmatpush.msrb.mxu3 %v2062_v13  ;;  %6210 = vmatmul.f32.vlgmr.msra.gmra.mxu1 %v8244_v60  ;;  %v2512_v13 = vld [vmem:[%s8116_s21 + $0x4328] sm:$0xff] }
 0x50f   : > { %6259 = vmatpush.msrb.mxu0 %v1612_v31  ;;  %6278 = vmatpush.msrb.mxu1 %v1765_v55  ;;  %v2665_v31 = vld [vmem:[%s8116_s21 + $0x47f0] sm:$0xff]  ;;  %v2215_v55 = vld [vmem:[%s8116_s21 + $0x39e0] sm:$0xff] }
 0x510   : > { %6299 = vmatpush.msrb.mxu2 %v1900_v19  ;;  %6318 = vmatpush.msrb.mxu3 %v2053_v7  ;;  %v2368_v19 = vld [vmem:[%s8116_s21 + $0x3ea8] sm:$0xff]  ;;  %v2503_v7 = vld [vmem:[%s8116_s21 + $0x42e0] sm:$0xff] }
 0x511   : > { %6260 = vmatpush.msrb.mxu0 %v1603_v63  ;;  %6279 = vmatpush.msrb.mxu1 %v1756_v30  ;;  %v2656_v63 = vld [vmem:[%s8116_s21 + $0x47a8] sm:$0xff]  ;;  %v2206_v30 = vld [vmem:[%s8116_s21 + $0x3998] sm:$0xff] }
 0x512   : > { %6300 = vmatpush.msrb.mxu2 %v1891_v46  ;;  %6319 = vmatpush.msrb.mxu3 %v2044_v38  ;;  %v2359_v46 = vld [vmem:[%s8116_s21 + $0x3e60] sm:$0xff]  ;;  %v2494_v38 = vld [vmem:[%s8116_s21 + $0x4298] sm:$0xff] }
 0x513   : > { %6261 = vmatpush.msrb.mxu0 %v1594_v23  ;;  %6280 = vmatpush.msrb.mxu1 %v1747_v9  ;;  %v2647_v23 = vld [vmem:[%s8116_s21 + $0x4760] sm:$0xff]  ;;  %v2197_v9 = vld [vmem:[%s8116_s21 + $0x3950] sm:$0xff] }
 0x514   : > { %6301 = vmatpush.msrb.mxu2 %v1882_v10  ;;  %6320 = vmatpush.msrb.mxu3 %v2035_v44  ;;  %v2350_v10 = vld [vmem:[%s8116_s21 + $0x3e18] sm:$0xff]  ;;  %v2485_v44 = vld [vmem:[%s8116_s21 + $0x4250] sm:$0xff] }
 0x515   : > { %6262 = vmatpush.msrb.mxu0 %v1585_v52  ;;  %6281 = vmatpush.msrb.mxu1 %v1738_v16  ;;  %v2638_v52 = vld [vmem:[%s8116_s21 + $0x4718] sm:$0xff]  ;;  %v2188_v16 = vld [vmem:[%s8116_s21 + $0x3908] sm:$0xff] }
 0x516   : > { %6302 = vmatpush.msrb.mxu2 %v1873_v34  ;;  %6321 = vmatpush.msrb.mxu3 %v2026_v6  ;;  %v2341_v34 = vld [vmem:[%s8116_s21 + $0x3dd0] sm:$0xff]  ;;  %v2476_v6 = vld [vmem:[%s8116_s21 + $0x4208] sm:$0xff] }
 0x517   : > { %6263 = vmatpush.msrb.mxu0 %v1576_v32  ;;  %6282 = vmatpush.msrb.mxu1 %v1729_v28  ;;  %v2629_v32 = vld [vmem:[%s8116_s21 + $0x46d0] sm:$0xff]  ;;  %v2179_v28 = vld [vmem:[%s8116_s21 + $0x38c0] sm:$0xff] }
 0x518   : > { %6303 = vmatpush.msrb.mxu2 %v1864_v18  ;;  %6322 = vmatpush.msrb.mxu3 %v2017_v22  ;;  %v2332_v18 = vld [vmem:[%s8116_s21 + $0x3d88] sm:$0xff]  ;;  %v2467_v22 = vld [vmem:[%s8116_s21 + $0x41c0] sm:$0xff] }
 0x519   : > { %6264 = vmatpush.msrb.mxu0 %v1567_v14  ;;  %6283 = vmatpush.msrb.mxu1 %v1720_v1  ;;  %v2620_v14 = vld [vmem:[%s8116_s21 + $0x4688] sm:$0xff]  ;;  %v2170_v1 = vld [vmem:[%s8116_s21 + $0x3878] sm:$0xff] }
 0x51a   : > { %6304 = vmatpush.msrb.mxu2 %v1855_v11  ;;  %6323 = vmatpush.msrb.mxu3 %v2008_v4  ;;  %v2323_v11 = vld [vmem:[%s8116_s21 + $0x3d40] sm:$0xff]  ;;  %v2458_v4 = vld [vmem:[%s8116_s21 + $0x4178] sm:$0xff] }
 0x51b   : > { %6265 = vmatpush.msrb.mxu0 %v1558_v12  ;;  %6284 = vmatpush.msrb.mxu1 %v1711_v5  ;;  %v2611_v12 = vld [vmem:[%s8116_s21 + $0x4640] sm:$0xff]  ;;  %v2161_v5 = vld [vmem:[%s8116_s21 + $0x3830] sm:$0xff] }
 0x51c   : > { %6305 = vmatpush.msrb.mxu2 %v1846_v25  ;;  %6324 = vmatpush.msrb.mxu3 %v1999_v53  ;;  %v2314_v25 = vld [vmem:[%s8116_s21 + $0x3cf8] sm:$0xff]  ;;  %v2449_v53 = vld [vmem:[%s8116_s21 + $0x4130] sm:$0xff] }
 0x51d   : > { %6266 = vmatpush.msrb.mxu0 %v1549_v47  ;;  %6285 = vmatpush.msrb.mxu1 %v1702_v29  ;;  %v2602_v47 = vld [vmem:[%s8116_s21 + $0x45f8] sm:$0xff]  ;;  %v2152_v29 = vld [vmem:[%s8116_s21 + $0x37e8] sm:$0xff] }
 0x51e   : > { %6306 = vmatpush.msrb.mxu2 %v1837_v49  ;;  %6325 = vmatpush.msrb.mxu3 %v1990_v61  ;;  %v2305_v49 = vld [vmem:[%s8116_s21 + $0x3cb0] sm:$0xff]  ;;  %v2440_v61 = vld [vmem:[%s8116_s21 + $0x40e8] sm:$0xff] }
 0x51f   : > { %6267 = vmatpush.msrb.mxu0 %v1540_v2  ;;  %6286 = vmatpush.msrb.mxu1 %v1693_v20  ;;  %v2593_v2 = vld [vmem:[%s8116_s21 + $0x45b0] sm:$0xff]  ;;  %v2143_v20 = vld [vmem:[%s8116_s21 + $0x37a0] sm:$0xff] }
 0x520   : > { %6307 = vmatpush.msrb.mxu2 %v1828_v0  ;;  %6326 = vmatpush.msrb.mxu3 %v1981_v62  ;;  %v2296_v0 = vld [vmem:[%s8116_s21 + $0x3c68] sm:$0xff]  ;;  %v2431_v62 = vld [vmem:[%s8116_s21 + $0x40a0] sm:$0xff] }
 0x521   : > { %6268 = vmatpush.msrb.mxu0 %v1531_v21  ;;  %6287 = vmatpush.msrb.mxu1 %v1684_v48  ;;  %v2584_v21 = vld [vmem:[%s8116_s21 + $0x4568] sm:$0xff]  ;;  %v2134_v48 = vld [vmem:[%s8116_s21 + $0x3758] sm:$0xff] }
 0x522   : > { %6308 = vmatpush.msrb.mxu2 %v1819_v33  ;;  %6327 = vmatpush.msrb.mxu3 %v1972_v36  ;;  %v2287_v33 = vld [vmem:[%s8116_s21 + $0x3c20] sm:$0xff]  ;;  %v2422_v36 = vld [vmem:[%s8116_s21 + $0x4058] sm:$0xff] }
 0x523   : > { %6269 = vmatpush.msrb.mxu0 %v1522_v17  ;;  %6288 = vmatpush.msrb.mxu1 %v1675_v43  ;;  %v2575_v17 = vld [vmem:[%s8116_s21 + $0x4520] sm:$0xff]  ;;  %v2125_v43 = vld [vmem:[%s8116_s21 + $0x3710] sm:$0xff] }
 0x524   : > { %6309 = vmatpush.msrb.mxu2 %v1810_v8  ;;  %6328 = vmatpush.msrb.mxu3 %v1963_v35  ;;  %v2278_v8 = vld [vmem:[%s8116_s21 + $0x3bd8] sm:$0xff]  ;;  %v2413_v35 = vld [vmem:[%s8116_s21 + $0x4010] sm:$0xff] }
 0x525   : > { %6270 = vmatmul.f32.vlgmr.msrb.gmra.mxu0 %v8299_v39  ;;  %6310 = vmatmul.f32.vlgmr.msrb.gmra.mxu2 %v8301_v40 }
 0x526   : > { %6334 = vmatpush.msra.mxu0 %v2233_v54  ;;  %6374 = vmatpush.msra.mxu2 %v2521_v24  ;;  %v2566_v54 = vld [vmem:[%s8116_s21 + $0x44d8] sm:$0xff]  ;;  %v2116_v24 = vld [vmem:[%s8116_s21 + $0x36c8] sm:$0xff] }
 0x527   : > { %6289 = vmatpush.msrb.mxu1 %v1666_v45  ;;  %6329 = vmatpush.msrb.mxu3 %v1954_v50  ;;  %v2269_v45 = vld [vmem:[%s8116_s21 + $0x3b90] sm:$0xff]  ;;  %v2404_v50 = vld [vmem:[%s8116_s21 + $0x3fc8] sm:$0xff] }
 0x528   : > { %6290 = vmatmul.f32.vlgmr.msrb.gmra.mxu1 %v8304_v41  ;;  %6330 = vmatmul.f32.vlgmr.msrb.gmra.mxu3 %v8306_v42 }
 0x529   : > { %6335 = vmatpush.msra.mxu0 %v2224_v3  ;;  %6354 = vmatpush.msra.mxu1 %v2377_v15  ;;  %v2557_v3 = vld [vmem:[%s8116_s21 + $0x4490] sm:$0xff]  ;;  %v2107_v15 = vld [vmem:[%s8116_s21 + $0x3680] sm:$0xff] }
 0x52a   : > { %6375 = vmatpush.msra.mxu2 %v2512_v13  ;;  %6394 = vmatpush.msra.mxu3 %v2665_v31  ;;  %v2260_v13 = vld [vmem:[%s8116_s21 + $0x3b48] sm:$0xff]  ;;  %v2395_v31 = vld [vmem:[%s8116_s21 + $0x3f80] sm:$0xff] }
 0x52b   : > { %6336 = vmatpush.msra.mxu0 %v2215_v55  ;;  %6355 = vmatpush.msra.mxu1 %v2368_v19  ;;  %v2548_v55 = vld [vmem:[%s8116_s21 + $0x4448] sm:$0xff]  ;;  %v2098_v19 = vld [vmem:[%s8116_s21 + $0x3638] sm:$0xff] }
 0x52c   : > { %6376 = vmatpush.msra.mxu2 %v2503_v7  ;;  %6395 = vmatpush.msra.mxu3 %v2656_v63  ;;  %v2251_v7 = vld [vmem:[%s8116_s21 + $0x3b00] sm:$0xff]  ;;  %v2386_v63 = vld [vmem:[%s8116_s21 + $0x3f38] sm:$0xff] }
 0x52d   : > { %6337 = vmatpush.msra.mxu0 %v2206_v30  ;;  %6356 = vmatpush.msra.mxu1 %v2359_v46  ;;  %v2539_v30 = vld [vmem:[%s8116_s21 + $0x4400] sm:$0xff]  ;;  %v2809_v46 = vld [vmem:[%s8116_s21 + $0x4c70] sm:$0xff] }
 0x52e   : > { %6377 = vmatpush.msra.mxu2 %v2494_v38  ;;  %6396 = vmatpush.msra.mxu3 %v2647_v23  ;;  %v3097_v38 = vld [vmem:[%s8116_s21 + $0x5570] sm:$0xff]  ;;  %v2242_v23 = vld [vmem:[%s8116_s21 + $0x3ab8] sm:$0xff] }
 0x52f   : > { %6338 = vmatpush.msra.mxu0 %v2197_v9  ;;  %6357 = vmatpush.msra.mxu1 %v2350_v10  ;;  %v2530_v9 = vld [vmem:[%s8116_s21 + $0x43b8] sm:$0xff]  ;;  %v7987_v10 = vld.sshfl [vmem:[#allocation1 + $0x20] sm:$0xff pattern:$0x73625140] }
 0x530   : > { %6378 = vmatpush.msra.mxu2 %v2485_v44  ;;  %6397 = vmatpush.msra.mxu3 %v2638_v52  ;;  %v7988_v44 = vld.sshfl [vmem:[#allocation1 + $0x30] sm:$0xff pattern:$0x73625140]  ;;  %v2800_v52 = vld [vmem:[%s8116_s21 + $0x4c28] sm:$0xff] }
 0x531   : > { %6339 = vmatpush.msra.mxu0 %v2188_v16  ;;  %6358 = vmatpush.msra.mxu1 %v2341_v34  ;;  %v2953_v16 = vld [vmem:[%s8116_s21 + $0x50f0] sm:$0xff]  ;;  %v3088_v34 = vld [vmem:[%s8116_s21 + $0x5528] sm:$0xff] }
 0x532   : > { %6379 = vmatpush.msra.mxu2 %v2476_v6  ;;  %6398 = vmatpush.msra.mxu3 %v2629_v32  ;;  %v3241_v6 = vld [vmem:[%s8116_s21 + $0x59f0] sm:$0xff]  ;;  %v7989_v32 = vld.sshfl [vmem:[#allocation1 + $0x28] sm:$0xff pattern:$0x73625140] }
 0x533   : > { %6340 = vmatpush.msra.mxu0 %v2179_v28  ;;  %6359 = vmatpush.msra.mxu1 %v2332_v18  ;;  %v7990_v28 = vld.sshfl [vmem:[#allocation1 + $0x38] sm:$0xff pattern:$0x73625140]  ;;  %v2791_v18 = vld [vmem:[%s8116_s21 + $0x4be0] sm:$0xff] }
 0x534   : > { %6380 = vmatpush.msra.mxu2 %v2467_v22  ;;  %6399 = vmatpush.msra.mxu3 %v2620_v14  ;;  %v2944_v22 = vld [vmem:[%s8116_s21 + $0x50a8] sm:$0xff]  ;;  %v3079_v14 = vld [vmem:[%s8116_s21 + $0x54e0] sm:$0xff] }
 0x535   : > { %6341 = vmatpush.msra.mxu0 %v2170_v1  ;;  %6360 = vmatpush.msra.mxu1 %v2323_v11  ;;  %v3232_v1 = vld [vmem:[%s8116_s21 + $0x59a8] sm:$0xff]  ;;  %v2782_v11 = vld [vmem:[%s8116_s21 + $0x4b98] sm:$0xff] }
 0x536   : > { %6381 = vmatpush.msra.mxu2 %v2458_v4  ;;  %6400 = vmatpush.msra.mxu3 %v2611_v12  ;;  %v2935_v4 = vld [vmem:[%s8116_s21 + $0x5060] sm:$0xff]  ;;  %v3070_v12 = vld [vmem:[%s8116_s21 + $0x5498] sm:$0xff] }
 0x537   : > { %6342 = vmatpush.msra.mxu0 %v2161_v5  ;;  %6361 = vmatpush.msra.mxu1 %v2314_v25  ;;  %v3223_v5 = vld [vmem:[%s8116_s21 + $0x5960] sm:$0xff]  ;;  %v2773_v25 = vld [vmem:[%s8116_s21 + $0x4b50] sm:$0xff] }
 0x538   : > { %6382 = vmatpush.msra.mxu2 %v2449_v53  ;;  %6401 = vmatpush.msra.mxu3 %v2602_v47  ;;  %v2926_v53 = vld [vmem:[%s8116_s21 + $0x5018] sm:$0xff]  ;;  %v3061_v47 = vld [vmem:[%s8116_s21 + $0x5450] sm:$0xff] }
 0x539   : > { %6343 = vmatpush.msra.mxu0 %v2152_v29  ;;  %6362 = vmatpush.msra.mxu1 %v2305_v49  ;;  %v3214_v29 = vld [vmem:[%s8116_s21 + $0x5918] sm:$0xff]  ;;  %v2764_v49 = vld [vmem:[%s8116_s21 + $0x4b08] sm:$0xff] }
 0x53a   : > { %6383 = vmatpush.msra.mxu2 %v2440_v61  ;;  %6402 = vmatpush.msra.mxu3 %v2593_v2  ;;  %v2917_v61 = vld [vmem:[%s8116_s21 + $0x4fd0] sm:$0xff]  ;;  %v3052_v2 = vld [vmem:[%s8116_s21 + $0x5408] sm:$0xff] }
 0x53b   : > { %6344 = vmatpush.msra.mxu0 %v2143_v20  ;;  %6363 = vmatpush.msra.mxu1 %v2296_v0  ;;  %v3205_v20 = vld [vmem:[%s8116_s21 + $0x58d0] sm:$0xff]  ;;  %v2755_v0 = vld [vmem:[%s8116_s21 + $0x4ac0] sm:$0xff] }
 0x53c   : > { %6384 = vmatpush.msra.mxu2 %v2431_v62  ;;  %6403 = vmatpush.msra.mxu3 %v2584_v21  ;;  %v2908_v62 = vld [vmem:[%s8116_s21 + $0x4f88] sm:$0xff]  ;;  %v3043_v21 = vld [vmem:[%s8116_s21 + $0x53c0] sm:$0xff] }
 0x53d   : > { %6345 = vmatpush.msra.mxu0 %v2134_v48  ;;  %6364 = vmatpush.msra.mxu1 %v2287_v33  ;;  %v3196_v48 = vld [vmem:[%s8116_s21 + $0x5888] sm:$0xff]  ;;  %v2746_v33 = vld [vmem:[%s8116_s21 + $0x4a78] sm:$0xff] }
 0x53e   : > { %6385 = vmatpush.msra.mxu2 %v2422_v36  ;;  %6404 = vmatpush.msra.mxu3 %v2575_v17  ;;  %v2899_v36 = vld [vmem:[%s8116_s21 + $0x4f40] sm:$0xff]  ;;  %v3034_v17 = vld [vmem:[%s8116_s21 + $0x5378] sm:$0xff] }
 0x53f   : > { %6346 = vmatpush.msra.mxu0 %v2125_v43  ;;  %6365 = vmatpush.msra.mxu1 %v2278_v8  ;;  %v3187_v43 = vld [vmem:[%s8116_s21 + $0x5840] sm:$0xff]  ;;  %v2737_v8 = vld [vmem:[%s8116_s21 + $0x4a30] sm:$0xff] }
 0x540   : > { %6386 = vmatpush.msra.mxu2 %v2413_v35  ;;  %6405 = vmatpush.msra.mxu3 %v2566_v54  ;;  %v2890_v35 = vld [vmem:[%s8116_s21 + $0x4ef8] sm:$0xff]  ;;  %v3025_v54 = vld [vmem:[%s8116_s21 + $0x5330] sm:$0xff] }
 0x541   : > { %6347 = vmatpush.msra.mxu0 %v2116_v24  ;;  %6366 = vmatpush.msra.mxu1 %v2269_v45  ;;  %v3178_v24 = vld [vmem:[%s8116_s21 + $0x57f8] sm:$0xff]  ;;  %v2728_v45 = vld [vmem:[%s8116_s21 + $0x49e8] sm:$0xff] }
 0x542   : > { %6387 = vmatpush.msra.mxu2 %v2404_v50  ;;  %6406 = vmatpush.msra.mxu3 %v2557_v3  ;;  %v2881_v50 = vld [vmem:[%s8116_s21 + $0x4eb0] sm:$0xff]  ;;  %v3016_v3 = vld [vmem:[%s8116_s21 + $0x52e8] sm:$0xff] }
 0x543   : > { %6348 = vmatpush.msra.mxu0 %v2107_v15  ;;  %6367 = vmatpush.msra.mxu1 %v2260_v13  ;;  %v3169_v15 = vld [vmem:[%s8116_s21 + $0x57b0] sm:$0xff]  ;;  %v2719_v13 = vld [vmem:[%s8116_s21 + $0x49a0] sm:$0xff] }
 0x544   : > { %6388 = vmatpush.msra.mxu2 %v2395_v31  ;;  %6407 = vmatpush.msra.mxu3 %v2548_v55  ;;  %v2872_v31 = vld [vmem:[%s8116_s21 + $0x4e68] sm:$0xff]  ;;  %v3007_v55 = vld [vmem:[%s8116_s21 + $0x52a0] sm:$0xff] }
 0x545   : > { %6349 = vmatpush.msra.mxu0 %v2098_v19  ;;  %6368 = vmatpush.msra.mxu1 %v2251_v7  ;;  %v3160_v19 = vld [vmem:[%s8116_s21 + $0x5768] sm:$0xff]  ;;  %v2710_v7 = vld [vmem:[%s8116_s21 + $0x4958] sm:$0xff] }
 0x546   : > { %6389 = vmatpush.msra.mxu2 %v2386_v63  ;;  %6408 = vmatpush.msra.mxu3 %v2539_v30  ;;  %v2863_v63 = vld [vmem:[%s8116_s21 + $0x4e20] sm:$0xff]  ;;  %v2998_v30 = vld [vmem:[%s8116_s21 + $0x5258] sm:$0xff] }
 0x547   : > { %6350 = vmatmul.f32.vlgmr.msra.gmra.mxu0 %v7987_v10  ;;  %6390 = vmatmul.f32.vlgmr.msra.gmra.mxu2 %v7988_v44  ;;  %v3142_v10 = vld [vmem:[%s8116_s21 + $0x56d8] sm:$0xff]  ;;  %v2692_v44 = vld [vmem:[%s8116_s21 + $0x48c8] sm:$0xff] }
 0x548   : > { %6414 = vmatpush.msrb.mxu0 %v2809_v46  ;;  %6454 = vmatpush.msrb.mxu2 %v3097_v38  ;;  %v3151_v46 = vld [vmem:[%s8116_s21 + $0x5720] sm:$0xff]  ;;  %v2701_v38 = vld [vmem:[%s8116_s21 + $0x4910] sm:$0xff] }
 0x549   : > { %6369 = vmatpush.msra.mxu1 %v2242_v23  ;;  %6409 = vmatpush.msra.mxu3 %v2530_v9  ;;  %v2854_v23 = vld [vmem:[%s8116_s21 + $0x4dd8] sm:$0xff]  ;;  %v2989_v9 = vld [vmem:[%s8116_s21 + $0x5210] sm:$0xff] }
 0x54a   : > { %6370 = vmatmul.f32.vlgmr.msra.gmra.mxu1 %v7989_v32  ;;  %6410 = vmatmul.f32.vlgmr.msra.gmra.mxu3 %v7990_v28  ;;  %v2836_v32 = vld [vmem:[%s8116_s21 + $0x4d48] sm:$0xff]  ;;  %v2971_v28 = vld [vmem:[%s8116_s21 + $0x5180] sm:$0xff] }
 0x54b   : > { %6415 = vmatpush.msrb.mxu0 %v2800_v52  ;;  %6434 = vmatpush.msrb.mxu1 %v2953_v16  ;;  %v2845_v52 = vld [vmem:[%s8116_s21 + $0x4d90] sm:$0xff]  ;;  %v2980_v16 = vld [vmem:[%s8116_s21 + $0x51c8] sm:$0xff] }
 0x54c   : > { %6455 = vmatpush.msrb.mxu2 %v3088_v34  ;;  %6474 = vmatpush.msrb.mxu3 %v3241_v6  ;;  %v3133_v34 = vld [vmem:[%s8116_s21 + $0x5690] sm:$0xff]  ;;  %v2683_v6 = vld [vmem:[%s8116_s21 + $0x4880] sm:$0xff] }
 0x54d   : > { %6416 = vmatpush.msrb.mxu0 %v2791_v18  ;;  %6435 = vmatpush.msrb.mxu1 %v2944_v22  ;;  %v3124_v18 = vld [vmem:[%s8116_s21 + $0x5648] sm:$0xff]  ;;  %v2674_v22 = vld [vmem:[%s8116_s21 + $0x4838] sm:$0xff] }
 0x54e   : > { %6456 = vmatpush.msrb.mxu2 %v3079_v14  ;;  %6475 = vmatpush.msrb.mxu3 %v3232_v1  ;;  %v2827_v14 = vld [vmem:[%s8116_s21 + $0x4d00] sm:$0xff]  ;;  %v2962_v1 = vld [vmem:[%s8116_s21 + $0x5138] sm:$0xff] }
 0x54f   : > { %6417 = vmatpush.msrb.mxu0 %v2782_v11  ;;  %6436 = vmatpush.msrb.mxu1 %v2935_v4  ;;  %v3115_v11 = vld [vmem:[%s8116_s21 + $0x5600] sm:$0xff]  ;;  %v506_v4 = vld [vmem:[%s8116_s21 + $0x478] sm:$0xff] }
 0x550   : > { %6457 = vmatpush.msrb.mxu2 %v3070_v12  ;;  %6476 = vmatpush.msrb.mxu3 %v3223_v5  ;;  %v794_v12 = vld [vmem:[%s8116_s21 + $0xd78] sm:$0xff] }
 0x551   : > { %6418 = vmatpush.msrb.mxu0 %v2773_v25  ;;  %6437 = vmatpush.msrb.mxu1 %v2926_v53  ;;  %v2818_v5 = vld [vmem:[%s8116_s21 + $0x4cb8] sm:$0xff]  ;;  %v7991_v53 = vld.sshfl [vmem:[#allocation1] sm:$0xff pattern:$0x73625140] }
 0x552   : > { %6458 = vmatpush.msrb.mxu2 %v3061_v47  ;;  %6477 = vmatpush.msrb.mxu3 %v3214_v29  ;;  %v3106_v25 = vld [vmem:[%s8116_s21 + $0x55b8] sm:$0xff]  ;;  %v7992_v47 = vld.sshfl [vmem:[#allocation1 + $0x10] sm:$0xff pattern:$0x73625140] }
 0x553   : > { %6419 = vmatpush.msrb.mxu0 %v2764_v49  ;;  %6438 = vmatpush.msrb.mxu1 %v2917_v61  ;;  %v497_v29 = vld [vmem:[%s8116_s21 + $0x430] sm:$0xff]  ;;  %v650_v49 = vld [vmem:[%s8116_s21 + $0x8f8] sm:$0xff] }
 0x554   : > { %6459 = vmatpush.msrb.mxu2 %v3052_v2  ;;  %6478 = vmatpush.msrb.mxu3 %v3205_v20  ;;  %v785_v61 = vld [vmem:[%s8116_s21 + $0xd30] sm:$0xff]  ;;  %v938_v2 = vld [vmem:[%s8116_s21 + $0x11f8] sm:$0xff]  ;;  %v7993_v20 = vld.sshfl [vmem:[#allocation1 + $0x8] sm:$0xff pattern:$0x73625140] }
 0x555   : > { %6420 = vmatpush.msrb.mxu0 %v2755_v0  ;;  %6439 = vmatpush.msrb.mxu1 %v2908_v62  ;;  %v7994_v0 = vld.sshfl [vmem:[#allocation1 + $0x18] sm:$0xff pattern:$0x73625140]  ;;  %v488_v62 = vld [vmem:[%s8116_s21 + $0x3e8] sm:$0xff] }
 0x556   : > { %6460 = vmatpush.msrb.mxu2 %v3043_v21  ;;  %6479 = vmatpush.msrb.mxu3 %v3196_v48  ;;  %v641_v21 = vld [vmem:[%s8116_s21 + $0x8b0] sm:$0xff]  ;;  %v776_v48 = vld [vmem:[%s8116_s21 + $0xce8] sm:$0xff] }
 0x557   : > { %6421 = vmatpush.msrb.mxu0 %v2746_v33  ;;  %6440 = vmatpush.msrb.mxu1 %v2899_v36  ;;  %v929_v33 = vld [vmem:[%s8116_s21 + $0x11b0] sm:$0xff]  ;;  %v479_v36 = vld [vmem:[%s8116_s21 + $0x3a0] sm:$0xff] }
 0x558   : > { %6461 = vmatpush.msrb.mxu2 %v3034_v17  ;;  %6480 = vmatpush.msrb.mxu3 %v3187_v43  ;;  %v632_v17 = vld [vmem:[%s8116_s21 + $0x868] sm:$0xff]  ;;  %v767_v43 = vld [vmem:[%s8116_s21 + $0xca0] sm:$0xff] }
 0x559   : > { %6422 = vmatpush.msrb.mxu0 %v2737_v8  ;;  %6441 = vmatpush.msrb.mxu1 %v2890_v35  ;;  %v920_v8 = vld [vmem:[%s8116_s21 + $0x1168] sm:$0xff]  ;;  %v470_v35 = vld [vmem:[%s8116_s21 + $0x358] sm:$0xff] }
 0x55a   : > { %6462 = vmatpush.msrb.mxu2 %v3025_v54  ;;  %6481 = vmatpush.msrb.mxu3 %v3178_v24  ;;  %v623_v54 = vld [vmem:[%s8116_s21 + $0x820] sm:$0xff]  ;;  %v758_v24 = vld [vmem:[%s8116_s21 + $0xc58] sm:$0xff] }
 0x55b   : > { %6423 = vmatpush.msrb.mxu0 %v2728_v45  ;;  %6442 = vmatpush.msrb.mxu1 %v2881_v50  ;;  %v911_v45 = vld [vmem:[%s8116_s21 + $0x1120] sm:$0xff]  ;;  %v461_v50 = vld [vmem:[%s8116_s21 + $0x310] sm:$0xff] }
 0x55c   : > { %6463 = vmatpush.msrb.mxu2 %v3016_v3  ;;  %6482 = vmatpush.msrb.mxu3 %v3169_v15  ;;  %v614_v3 = vld [vmem:[%s8116_s21 + $0x7d8] sm:$0xff]  ;;  %v749_v15 = vld [vmem:[%s8116_s21 + $0xc10] sm:$0xff] }
 0x55d   : > { %6424 = vmatpush.msrb.mxu0 %v2719_v13  ;;  %6443 = vmatpush.msrb.mxu1 %v2872_v31  ;;  %v902_v13 = vld [vmem:[%s8116_s21 + $0x10d8] sm:$0xff]  ;;  %v452_v31 = vld [vmem:[%s8116_s21 + $0x2c8] sm:$0xff] }
 0x55e   : > { %6464 = vmatpush.msrb.mxu2 %v3007_v55  ;;  %6483 = vmatpush.msrb.mxu3 %v3160_v19  ;;  %v605_v55 = vld [vmem:[%s8116_s21 + $0x790] sm:$0xff]  ;;  %v740_v19 = vld [vmem:[%s8116_s21 + $0xbc8] sm:$0xff] }
 0x55f   : > { %6425 = vmatpush.msrb.mxu0 %v2710_v7  ;;  %6444 = vmatpush.msrb.mxu1 %v2863_v63  ;;  %v893_v7 = vld [vmem:[%s8116_s21 + $0x1090] sm:$0xff]  ;;  %v443_v63 = vld [vmem:[%s8116_s21 + $0x280] sm:$0xff] }
 0x560   : > { %6465 = vmatpush.msrb.mxu2 %v2998_v30  ;;  %6484 = vmatpush.msrb.mxu3 %v3151_v46  ;;  %v596_v30 = vld [vmem:[%s8116_s21 + $0x748] sm:$0xff]  ;;  %v731_v46 = vld [vmem:[%s8116_s21 + $0xb80] sm:$0xff] }
 0x561   : > { %6426 = vmatpush.msrb.mxu0 %v2701_v38  ;;  %6445 = vmatpush.msrb.mxu1 %v2854_v23  ;;  %v884_v38 = vld [vmem:[%s8116_s21 + $0x1048] sm:$0xff]  ;;  %v434_v23 = vld [vmem:[%s8116_s21 + $0x238] sm:$0xff] }
 0x562   : > { %6466 = vmatpush.msrb.mxu2 %v2989_v9  ;;  %6485 = vmatpush.msrb.mxu3 %v3142_v10  ;;  %v587_v9 = vld [vmem:[%s8116_s21 + $0x700] sm:$0xff]  ;;  %v722_v10 = vld [vmem:[%s8116_s21 + $0xb38] sm:$0xff] }
 0x563   : > { %6427 = vmatpush.msrb.mxu0 %v2692_v44  ;;  %6446 = vmatpush.msrb.mxu1 %v2845_v52  ;;  %v875_v44 = vld [vmem:[%s8116_s21 + $0x1000] sm:$0xff]  ;;  %v425_v52 = vld [vmem:[%s8116_s21 + $0x1f0] sm:$0xff] }
 0x564   : > { %6467 = vmatpush.msrb.mxu2 %v2980_v16  ;;  %6486 = vmatpush.msrb.mxu3 %v3133_v34  ;;  %v578_v16 = vld [vmem:[%s8116_s21 + $0x6b8] sm:$0xff]  ;;  %v713_v34 = vld [vmem:[%s8116_s21 + $0xaf0] sm:$0xff] }
 0x565   : > { %6428 = vmatpush.msrb.mxu0 %v2683_v6  ;;  %6447 = vmatpush.msrb.mxu1 %v2836_v32  ;;  %v866_v6 = vld [vmem:[%s8116_s21 + $0xfb8] sm:$0xff]  ;;  %v416_v32 = vld [vmem:[%s8116_s21 + $0x1a8] sm:$0xff] }
 0x566   : > { %6468 = vmatpush.msrb.mxu2 %v2971_v28  ;;  %6487 = vmatpush.msrb.mxu3 %v3124_v18  ;;  %v569_v28 = vld [vmem:[%s8116_s21 + $0x670] sm:$0xff]  ;;  %v704_v18 = vld [vmem:[%s8116_s21 + $0xaa8] sm:$0xff] }
 0x567   : > { %6429 = vmatpush.msrb.mxu0 %v2674_v22  ;;  %6448 = vmatpush.msrb.mxu1 %v2827_v14  ;;  %v857_v22 = vld [vmem:[%s8116_s21 + $0xf70] sm:$0xff]  ;;  %v407_v14 = vld [vmem:[%s8116_s21 + $0x160] sm:$0xff] }
 0x568   : > { %6469 = vmatpush.msrb.mxu2 %v2962_v1  ;;  %6488 = vmatpush.msrb.mxu3 %v3115_v11  ;;  %v560_v1 = vld [vmem:[%s8116_s21 + $0x628] sm:$0xff]  ;;  %v695_v11 = vld [vmem:[%s8116_s21 + $0xa60] sm:$0xff] }
 0x569   : > { %6430 = vmatmul.f32.vlgmr.msrb.gmra.mxu0 %v7991_v53  ;;  %6470 = vmatmul.f32.vlgmr.msrb.gmra.mxu2 %v7992_v47  ;;  %v839_v53 = vld [vmem:[%s8116_s21 + $0xee0] sm:$0xff]  ;;  %v389_v47 = vld [vmem:[%s8116_s21 + $0xd0] sm:$0xff] }
 0x56a   : > { %6494 = vmatpush.msra.mxu0 %v506_v4  ;;  %6534 = vmatpush.msra.mxu2 %v794_v12  ;;  %v848_v4 = vld [vmem:[%s8116_s21 + $0xf28] sm:$0xff]  ;;  %v398_v12 = vld [vmem:[%s8116_s21 + $0x118] sm:$0xff] }
 0x56b   : > { %6449 = vmatpush.msrb.mxu1 %v2818_v5  ;;  %6489 = vmatpush.msrb.mxu3 %v3106_v25  ;;  %v551_v5 = vld [vmem:[%s8116_s21 + $0x5e0] sm:$0xff]  ;;  %v686_v25 = vld [vmem:[%s8116_s21 + $0xa18] sm:$0xff] }
 0x56c   : > { %6450 = vmatmul.f32.vlgmr.msrb.gmra.mxu1 %v7993_v20  ;;  %6490 = vmatmul.f32.vlgmr.msrb.gmra.mxu3 %v7994_v0  ;;  %v533_v20 = vld [vmem:[%s8116_s21 + $0x550] sm:$0xff]  ;;  %v668_v0 = vld [vmem:[%s8116_s21 + $0x988] sm:$0xff] }
 0x56d   : > { %6495 = vmatpush.msra.mxu0 %v497_v29  ;;  %6514 = vmatpush.msra.mxu1 %v650_v49  ;;  %v542_v29 = vld [vmem:[%s8116_s21 + $0x598] sm:$0xff]  ;;  %v677_v49 = vld [vmem:[%s8116_s21 + $0x9d0] sm:$0xff] }
 0x56e   : > { %6535 = vmatpush.msra.mxu2 %v785_v61  ;;  %6554 = vmatpush.msra.mxu3 %v938_v2  ;;  %v830_v61 = vld [vmem:[%s8116_s21 + $0xe98] sm:$0xff]  ;;  %v380_v2 = vld [vmem:[%s8116_s21 + $0x88] sm:$0xff] }
 0x56f   : > { %6496 = vmatpush.msra.mxu0 %v488_v62  ;;  %6515 = vmatpush.msra.mxu1 %v641_v21  ;;  %v821_v62 = vld [vmem:[%s8116_s21 + $0xe50] sm:$0xff]  ;;  %v371_v21 = vld [vmem:[%s8116_s21 + $0x40] sm:$0xff] }
 0x570   : > { %6536 = vmatpush.msra.mxu2 %v776_v48  ;;  %6555 = vmatpush.msra.mxu3 %v929_v33  ;;  %v524_v48 = vld [vmem:[%s8116_s21 + $0x508] sm:$0xff]  ;;  %v659_v33 = vld [vmem:[%s8116_s21 + $0x940] sm:$0xff] }
 0x571   : > { %6497 = vmatpush.msra.mxu0 %v479_v36  ;;  %6516 = vmatpush.msra.mxu1 %v632_v17  ;;  %v812_v36 = vld [vmem:[%s8116_s21 + $0xe08] sm:$0xff]  ;;  %v11073_v17 = vpop.f32.mrf.mxu1 }
 0x572   : > { %6537 = vmatpush.msra.mxu2 %v767_v43  ;;  %6556 = vmatpush.msra.mxu3 %v920_v8  ;;  %v1082_v43 = vld [vmem:[%s8116_s21 + $0x1678] sm:$0xff] }
 0x573   : > { %6498 = vmatpush.msra.mxu0 %v470_v35  ;;  %6517 = vmatpush.msra.mxu1 %v623_v54  ;;  %v1370_v8 = vld [vmem:[%s8116_s21 + $0x1f78] sm:$0xff]  ;;  %v515_v35 = vld [vmem:[%s8116_s21 + $0x4c0] sm:$0xff] }
 0x574   : > { %6538 = vmatpush.msra.mxu2 %v758_v24  ;;  %6557 = vmatpush.msra.mxu3 %v911_v45  ;;  %v803_v54 = vld [vmem:[%s8116_s21 + $0xdc0] sm:$0xff]  ;;  %v11079_v24 = vpop.f32.mrf.mxu0  ;;  %v1073_v45 = vld [vmem:[%s8116_s21 + $0x1630] sm:$0xff] }
 0x575   : > { %6499 = vmatpush.msra.mxu0 %v461_v50  ;;  %6518 = vmatpush.msra.mxu1 %v614_v3  ;;  %v1226_v50 = vld [vmem:[%s8116_s21 + $0x1af8] sm:$0xff]  ;;  %v1361_v3 = vld [vmem:[%s8116_s21 + $0x1f30] sm:$0xff] }
 0x576   : > { %6539 = vmatpush.msra.mxu2 %v749_v15  ;;  %6558 = vmatpush.msra.mxu3 %v902_v13  ;;  %v1514_v15 = vld [vmem:[%s8116_s21 + $0x23f8] sm:$0xff]  ;;  %v11085_v13 = vpop.f32.mrf.mxu2 }
 0x577   : > { %6500 = vmatpush.msra.mxu0 %v452_v31  ;;  %6519 = vmatpush.msra.mxu1 %v605_v55  ;;  %v1064_v31 = vld [vmem:[%s8116_s21 + $0x15e8] sm:$0xff]  ;;  %v1217_v55 = vld [vmem:[%s8116_s21 + $0x1ab0] sm:$0xff] }
 0x578   : > { %6540 = vmatpush.msra.mxu2 %v740_v19  ;;  %6559 = vmatpush.msra.mxu3 %v893_v7  ;;  %v1352_v19 = vld [vmem:[%s8116_s21 + $0x1ee8] sm:$0xff]  ;;  %v1505_v7 = vld [vmem:[%s8116_s21 + $0x23b0] sm:$0xff] }
 0x579   : > { %6501 = vmatpush.msra.mxu0 %v443_v63  ;;  %6520 = vmatpush.msra.mxu1 %v596_v30  ;;  %v1055_v63 = vld [vmem:[%s8116_s21 + $0x15a0] sm:$0xff]  ;;  %v1208_v30 = vld [vmem:[%s8116_s21 + $0x1a68] sm:$0xff] }
 0x57a   : > { %6541 = vmatpush.msra.mxu2 %v731_v46  ;;  %6560 = vmatpush.msra.mxu3 %v884_v38  ;;  %v1343_v46 = vld [vmem:[%s8116_s21 + $0x1ea0] sm:$0xff]  ;;  %v1496_v38 = vld [vmem:[%s8116_s21 + $0x2368] sm:$0xff] }
 0x57b   : > { %6502 = vmatpush.msra.mxu0 %v434_v23  ;;  %6521 = vmatpush.msra.mxu1 %v587_v9  ;;  %v11095_v23 = vpop.f32.mrf.mxu3  ;;  %v1046_v9 = vld [vmem:[%s8116_s21 + $0x1558] sm:$0xff] }
 0x57c   : > { %6542 = vmatpush.msra.mxu2 %v722_v10  ;;  %6561 = vmatpush.msra.mxu3 %v875_v44  ;;  %v1199_v10 = vld [vmem:[%s8116_s21 + $0x1a20] sm:$0xff]  ;;  %v1334_v44 = vld [vmem:[%s8116_s21 + $0x1e58] sm:$0xff] }
 0x57d   : > { %6503 = vmatpush.msra.mxu0 %v425_v52  ;;  %6522 = vmatpush.msra.mxu1 %v578_v16  ;;  %v1487_v52 = vld [vmem:[%s8116_s21 + $0x2320] sm:$0xff]  ;;  %v11101_v16 = vpop.f32.mrf.mxu1 }
 0x57e   : > { %6543 = vmatpush.msra.mxu2 %v713_v34  ;;  %6562 = vmatpush.msra.mxu3 %v866_v6  ;;  %v1037_v34 = vld [vmem:[%s8116_s21 + $0x1510] sm:$0xff]  ;;  %v1190_v6 = vld [vmem:[%s8116_s21 + $0x19d8] sm:$0xff] }
 0x57f   : > { %6504 = vmatpush.msra.mxu0 %v416_v32  ;;  %6523 = vmatpush.msra.mxu1 %v569_v28  ;;  %v1325_v32 = vld [vmem:[%s8116_s21 + $0x1e10] sm:$0xff]  ;;  %v1478_v28 = vld [vmem:[%s8116_s21 + $0x22d8] sm:$0xff] }
 0x580   : > { %6544 = vmatpush.msra.mxu2 %v704_v18  ;;  %6563 = vmatpush.msra.mxu3 %v857_v22  ;;  %v11107_v18 = vpop.f32.mrf.mxu0  ;;  %v1028_v22 = vld [vmem:[%s8116_s21 + $0x14c8] sm:$0xff] }
 0x581   : > { %6505 = vmatpush.msra.mxu0 %v407_v14  ;;  %6524 = vmatpush.msra.mxu1 %v560_v1  ;;  %v1181_v14 = vld [vmem:[%s8116_s21 + $0x1990] sm:$0xff]  ;;  %v1316_v1 = vld [vmem:[%s8116_s21 + $0x1dc8] sm:$0xff] }
 0x582   : > { %6545 = vmatpush.msra.mxu2 %v695_v11  ;;  %6564 = vmatpush.msra.mxu3 %v848_v4  ;;  %v1469_v11 = vld [vmem:[%s8116_s21 + $0x2290] sm:$0xff]  ;;  %v11113_v4 = vpop.f32.mrf.mxu2 }
 0x583   : > { %6506 = vmatpush.msra.mxu0 %v398_v12  ;;  %6525 = vmatpush.msra.mxu1 %v551_v5  ;;  %v1019_v12 = vld [vmem:[%s8116_s21 + $0x1480] sm:$0xff]  ;;  %v1172_v5 = vld [vmem:[%s8116_s21 + $0x1948] sm:$0xff] }
 0x584   : > { %6546 = vmatpush.msra.mxu2 %v686_v25  ;;  %6565 = vmatpush.msra.mxu3 %v839_v53  ;;  %v1307_v25 = vld [vmem:[%s8116_s21 + $0x1d80] sm:$0xff]  ;;  %v1460_v53 = vld [vmem:[%s8116_s21 + $0x2248] sm:$0xff] }
 0x585   : > { %6507 = vmatpush.msra.mxu0 %v389_v47  ;;  %6526 = vmatpush.msra.mxu1 %v542_v29  ;;  %v1010_v47 = vld [vmem:[%s8116_s21 + $0x1438] sm:$0xff]  ;;  %v1163_v29 = vld [vmem:[%s8116_s21 + $0x1900] sm:$0xff] }
 0x586   : > { %6547 = vmatpush.msra.mxu2 %v677_v49  ;;  %6566 = vmatpush.msra.mxu3 %v830_v61  ;;  %v1298_v49 = vld [vmem:[%s8116_s21 + $0x1d38] sm:$0xff]  ;;  %v1451_v61 = vld [vmem:[%s8116_s21 + $0x2200] sm:$0xff] }
 0x587   : > { %6508 = vmatpush.msra.mxu0 %v380_v2  ;;  %6527 = vmatpush.msra.mxu1 %v533_v20  ;;  %v11123_v2 = vpop.f32.mrf.mxu3  ;;  %v11125_v20 = vpop.f32.mrf.mxu1 }
 0x588   : > { %6548 = vmatpush.msra.mxu2 %v668_v0  ;;  %6567 = vmatpush.msra.mxu3 %v821_v62  ;;  %v1001_v0 = vld [vmem:[%s8116_s21 + $0x13f0] sm:$0xff]  ;;  %v1154_v62 = vld [vmem:[%s8116_s21 + $0x18b8] sm:$0xff] }
 0x589   : > { %6509 = vmatpush.msra.mxu0 %v371_v21  ;;  %6528 = vmatpush.msra.mxu1 %v524_v48  ;;  %v1289_v21 = vld [vmem:[%s8116_s21 + $0x1cf0] sm:$0xff]  ;;  %v1442_v48 = vld [vmem:[%s8116_s21 + $0x21b8] sm:$0xff] }
 0x58a   : > { %6549 = vmatpush.msra.mxu2 %v659_v33  ;;  %6568 = vmatpush.msra.mxu3 %v812_v36  ;;  %v11131_v33 = vpop.f32.mrf.mxu0  ;;  %v992_v36 = vld [vmem:[%s8116_s21 + $0x13a8] sm:$0xff] }
 0x58b   : > { %6574 = vmatpush.msrb.mxu0 %v1082_v43  ;;  %6529 = vmatpush.msra.mxu1 %v515_v35  ;;  %v1145_v43 = vld [vmem:[%s8116_s21 + $0x1870] sm:$0xff] }
 0x58c   : > { %6614 = vmatpush.msrb.mxu2 %v1370_v8  ;;  %6569 = vmatpush.msra.mxu3 %v803_v54  ;;  %v1280_v8 = vld [vmem:[%s8116_s21 + $0x1ca8] sm:$0xff]  ;;  %v1433_v35 = vld [vmem:[%s8116_s21 + $0x2170] sm:$0xff]  ;;  %v11137_v54 = vpop.f32.mrf.mxu2 }
 0x58d   : > { %6575 = vmatpush.msrb.mxu0 %v1073_v45  ;;  %6594 = vmatpush.msrb.mxu1 %v1226_v50  ;;  %v983_v45 = vld [vmem:[%s8116_s21 + $0x1360] sm:$0xff]  ;;  %v1136_v50 = vld [vmem:[%s8116_s21 + $0x1828] sm:$0xff] }
 0x58e   : > { %6615 = vmatpush.msrb.mxu2 %v1361_v3  ;;  %6634 = vmatpush.msrb.mxu3 %v1514_v15  ;;  %v1271_v3 = vld [vmem:[%s8116_s21 + $0x1c60] sm:$0xff]  ;;  %v1424_v15 = vld [vmem:[%s8116_s21 + $0x2128] sm:$0xff] }
 0x58f   : > { %6576 = vmatpush.msrb.mxu0 %v1064_v31  ;;  %6595 = vmatpush.msrb.mxu1 %v1217_v55  ;;  %v974_v31 = vld [vmem:[%s8116_s21 + $0x1318] sm:$0xff]  ;;  %v1127_v55 = vld [vmem:[%s8116_s21 + $0x17e0] sm:$0xff] }
 0x590   : > { %6616 = vmatpush.msrb.mxu2 %v1352_v19  ;;  %6635 = vmatpush.msrb.mxu3 %v1505_v7  ;;  %v1262_v19 = vld [vmem:[%s8116_s21 + $0x1c18] sm:$0xff]  ;;  %v1415_v7 = vld [vmem:[%s8116_s21 + $0x20e0] sm:$0xff] }
 0x591   : > { %6577 = vmatpush.msrb.mxu0 %v1055_v63  ;;  %6596 = vmatpush.msrb.mxu1 %v1208_v30  ;;  %v11147_v63 = vpop.f32.mrf.mxu3  ;;  %v11149_v30 = vpop.f32.mrf.mxu1 }
 0x592   : > { %6617 = vmatpush.msrb.mxu2 %v1343_v46  ;;  %6636 = vmatpush.msrb.mxu3 %v1496_v38  ;;  %v965_v46 = vld [vmem:[%s8116_s21 + $0x12d0] sm:$0xff]  ;;  %v1118_v38 = vld [vmem:[%s8116_s21 + $0x1798] sm:$0xff] }
 0x593   : > { %6578 = vmatpush.msrb.mxu0 %v1046_v9  ;;  %6597 = vmatpush.msrb.mxu1 %v1199_v10  ;;  %v1253_v9 = vld [vmem:[%s8116_s21 + $0x1bd0] sm:$0xff]  ;;  %v1406_v10 = vld [vmem:[%s8116_s21 + $0x2098] sm:$0xff] }
 0x594   : > { %6618 = vmatpush.msrb.mxu2 %v1334_v44  ;;  %6637 = vmatpush.msrb.mxu3 %v1487_v52  ;;  %v11155_v44 = vpop.f32.mrf.mxu0  ;;  %v956_v52 = vld [vmem:[%s8116_s21 + $0x1288] sm:$0xff] }
 0x595   : > { %6579 = vmatpush.msrb.mxu0 %v1037_v34  ;;  %6598 = vmatpush.msrb.mxu1 %v1190_v6  ;;  %v1109_v34 = vld [vmem:[%s8116_s21 + $0x1750] sm:$0xff]  ;;  %v1244_v6 = vld [vmem:[%s8116_s21 + $0x1b88] sm:$0xff] }
 0x596   : > { %6619 = vmatpush.msrb.mxu2 %v1325_v32  ;;  %6638 = vmatpush.msrb.mxu3 %v1478_v28  ;;  %v1397_v32 = vld [vmem:[%s8116_s21 + $0x2050] sm:$0xff]  ;;  %v11161_v28 = vpop.f32.mrf.mxu2 }
 0x597   : > { %6580 = vmatpush.msrb.mxu0 %v1028_v22  ;;  %6599 = vmatpush.msrb.mxu1 %v1181_v14  ;;  %v947_v22 = vld [vmem:[%s8116_s21 + $0x1240] sm:$0xff]  ;;  %v1100_v14 = vld [vmem:[%s8116_s21 + $0x1708] sm:$0xff] }
 0x598   : > { %6620 = vmatpush.msrb.mxu2 %v1316_v1  ;;  %6639 = vmatpush.msrb.mxu3 %v1469_v11  ;;  %v1235_v1 = vld [vmem:[%s8116_s21 + $0x1b40] sm:$0xff]  ;;  %v1388_v11 = vld [vmem:[%s8116_s21 + $0x2008] sm:$0xff] }
 0x599   : > { %6581 = vmatpush.msrb.mxu0 %v1019_v12  ;;  %6600 = vmatpush.msrb.mxu1 %v1172_v5  ;;  %v1658_v12 = vld [vmem:[%s8116_s21 + $0x2878] sm:$0xff]  ;;  %v11169_v5 = vpop.f32.mrf.mxu3 }
 0x59a   : > { %6621 = vmatpush.msrb.mxu2 %v1307_v25  ;;  %6640 = vmatpush.msrb.mxu3 %v1460_v53  ;;  %v11171_v25 = vpop.f32.mrf.mxu1  ;;  %v1946_v53 = vld [vmem:[%s8116_s21 + $0x3178] sm:$0xff] }
 0x59b   : > { %6582 = vmatpush.msrb.mxu0 %v1010_v47  ;;  %6601 = vmatpush.msrb.mxu1 %v1163_v29  ;;  %v1091_v47 = vld [vmem:[%s8116_s21 + $0x16c0] sm:$0xff] }
 0x59c   : > { %6622 = vmatpush.msrb.mxu2 %v1298_v49  ;;  %6641 = vmatpush.msrb.mxu3 %v1451_v61  ;;  %v1379_v29 = vld [vmem:[%s8116_s21 + $0x1fc0] sm:$0xff]  ;;  %v1649_v49 = vld [vmem:[%s8116_s21 + $0x2830] sm:$0xff]  ;;  %v1802_v61 = vld [vmem:[%s8116_s21 + $0x2cf8] sm:$0xff] }
 0x59d   : > { %6583 = vmatpush.msrb.mxu0 %v1001_v0  ;;  %6602 = vmatpush.msrb.mxu1 %v1154_v62  ;;  %v1937_v0 = vld [vmem:[%s8116_s21 + $0x3130] sm:$0xff]  ;;  %v2090_v62 = vld [vmem:[%s8116_s21 + $0x35f8] sm:$0xff] }
 0x59e   : > { %6623 = vmatpush.msrb.mxu2 %v1289_v21  ;;  %6642 = vmatpush.msrb.mxu3 %v1442_v48  ;;  %v11184_v21 = vpop.f32.mrf.mxu2  ;;  %v1793_v48 = vld [vmem:[%s8116_s21 + $0x2cb0] sm:$0xff] }
 0x59f   : > { %6584 = vmatpush.msrb.mxu0 %v992_v36  ;;  %6603 = vmatpush.msrb.mxu1 %v1145_v43  ;;  %v2081_v36 = vld [vmem:[%s8116_s21 + $0x35b0] sm:$0xff]  ;;  %v1631_v43 = vld [vmem:[%s8116_s21 + $0x27a0] sm:$0xff] }
 0x5a0   : > { %6624 = vmatpush.msrb.mxu2 %v1280_v8  ;;  %6643 = vmatpush.msrb.mxu3 %v1433_v35  ;;  %v1784_v8 = vld [vmem:[%s8116_s21 + $0x2c68] sm:$0xff]  ;;  %v1919_v35 = vld [vmem:[%s8116_s21 + $0x30a0] sm:$0xff] }
 0x5a1   : > { %6585 = vmatpush.msrb.mxu0 %v983_v45  ;;  %6604 = vmatpush.msrb.mxu1 %v1136_v50  ;;  %v11196_v45 = vpop.f32.mrf.mxu3 }
 0x5a2   : > { %6625 = vmatpush.msrb.mxu2 %v1271_v3  ;;  %6644 = vmatpush.msrb.mxu3 %v1424_v15  ;;  %v6131_v50 = vpop.f32.mrf.mxu1  ;;  %v2072_v3 = vld [vmem:[%s8116_s21 + $0x3568] sm:$0xff]  ;;  %v1622_v15 = vld [vmem:[%s8116_s21 + $0x2758] sm:$0xff] }
 0x5a3   : > { %6586 = vmatpush.msrb.mxu0 %v974_v31  ;;  %6605 = vmatpush.msrb.mxu1 %v1127_v55  ;;  %v1775_v55 = vld [vmem:[%s8116_s21 + $0x2c20] sm:$0xff] }
 0x5a4   : > { %6626 = vmatpush.msrb.mxu2 %v1262_v19  ;;  %6645 = vmatpush.msrb.mxu3 %v1415_v7  ;;  %v2063_v19 = vld [vmem:[%s8116_s21 + $0x3520] sm:$0xff] }
 0x5a5   : > { %6587 = vmatpush.msrb.mxu0 %v965_v46  ;;  %6606 = vmatpush.msrb.mxu1 %v1118_v38  ;;  %v1613_v46 = vld [vmem:[%s8116_s21 + $0x2710] sm:$0xff]  ;;  %v1766_v38 = vld [vmem:[%s8116_s21 + $0x2bd8] sm:$0xff] }
 0x5a6   : > { %6627 = vmatpush.msrb.mxu2 %v1253_v9  ;;  %6646 = vmatpush.msrb.mxu3 %v1406_v10  ;;  %v6151_v7 = vpop.f32.mrf.mxu2  ;;  %v1901_v9 = vld [vmem:[%s8116_s21 + $0x3010] sm:$0xff]  ;;  %v2054_v10 = vld [vmem:[%s8116_s21 + $0x34d8] sm:$0xff] }
 0x5a7   : > { %6588 = vmatpush.msrb.mxu0 %v956_v52  ;;  %6607 = vmatpush.msrb.mxu1 %v1109_v34  ;;  %v2045_v34 = vld [vmem:[%s8116_s21 + $0x3490] sm:$0xff] }
 0x5a8   : > { %6628 = vmatpush.msrb.mxu2 %v1244_v6  ;;  %6647 = vmatpush.msrb.mxu3 %v1397_v32 }
 0x5a9   : > { %6550 = vmatmul.f32.vlgmr.msra.gmra.mxu2 %v12471_v51  ;;  %6589 = vmatpush.msrb.mxu0 %v947_v22  ;;  %v11177_v51 = vpop.f32.mrf.mxu0  ;;  %v6171_v32 = vpop.f32.mrf.mxu3  ;;  %v1595_v22 = vld [vmem:[%s8116_s21 + $0x2680] sm:$0xff] }
 0x5aa   : > { %6608 = vmatpush.msrb.mxu1 %v1100_v14  ;;  %6629 = vmatpush.msrb.mxu2 %v1235_v1  ;;  %v1883_v14 = vld [vmem:[%s8116_s21 + $0x2f80] sm:$0xff]  ;;  %v2036_v1 = vld [vmem:[%s8116_s21 + $0x3448] sm:$0xff] }
 0x5ab   : > { %6648 = vmatpush.msrb.mxu3 %v1388_v11  ;;  %6510 = vmatmul.f32.vlgmr.msra.gmra.mxu0 %v12472_v37  ;;  %v1640_v37 = vld [vmem:[%s8116_s21 + $0x27e8] sm:$0xff]  ;;  %v1586_v11 = vld [vmem:[%s8116_s21 + $0x2638] sm:$0xff] }
 0x5ac   : > { %6570 = vmatmul.f32.vlgmr.msra.gmra.mxu3 %v12473_v26  ;;  %6654 = vmatpush.msra.mxu0 %v1658_v12  ;;  %v1928_v26 = vld [vmem:[%s8116_s21 + $0x30e8] sm:$0xff]  ;;  %v1739_v12 = vld [vmem:[%s8116_s21 + $0x2b00] sm:$0xff] }
 0x5ad   : > { %6694 = vmatpush.msra.mxu2 %v1946_v53  ;;  %6609 = vmatpush.msrb.mxu1 %v1091_v47  ;;  %v1874_v53 = vld [vmem:[%s8116_s21 + $0x2f38] sm:$0xff]  ;;  %v2027_v47 = vld [vmem:[%s8116_s21 + $0x3400] sm:$0xff] }
 0x5ae   : > { %6649 = vmatpush.msrb.mxu3 %v1379_v29  ;;  %6530 = vmatmul.f32.vlgmr.msra.gmra.mxu1 %v12474_v27  ;;  %v5732_v27 = vadd.f32 %v11073_v17, %v11079_v24  ;;  %v1910_v17 = vld [vmem:[%s8116_s21 + $0x3058] sm:$0xff] }
 0x5af   : > { %6655 = vmatpush.msra.mxu0 %v1649_v49  ;;  %6674 = vmatpush.msra.mxu1 %v1802_v61  ;;  %v1577_v61 = vld [vmem:[%s8116_s21 + $0x25f0] sm:$0xff] }
 0x5b0   : > { %6695 = vmatpush.msra.mxu2 %v1937_v0  ;;  %6714 = vmatpush.msra.mxu3 %v2090_v62  ;;  %v1730_v0 = vld [vmem:[%s8116_s21 + $0x2ab8] sm:$0xff]  ;;  %v1865_v62 = vld [vmem:[%s8116_s21 + $0x2ef0] sm:$0xff] }
 0x5b1   : > { %6656 = vmatpush.msra.mxu0 %v1640_v37  ;;  %6675 = vmatpush.msra.mxu1 %v1793_v48  ;;  %v6111_v31 = vpop.f32.mrf.mxu0  ;;  %v2018_v37 = vld [vmem:[%s8116_s21 + $0x33b8] sm:$0xff]  ;;  %v1568_v48 = vld [vmem:[%s8116_s21 + $0x25a8] sm:$0xff] }
 0x5b2   : > { %6696 = vmatpush.msra.mxu2 %v1928_v26  ;;  %6715 = vmatpush.msra.mxu3 %v2081_v36  ;;  %v6132_v24 = vadd.f32 %v6131_v50, %v6111_v31  ;;  %v1721_v26 = vld [vmem:[%s8116_s21 + $0x2a70] sm:$0xff]  ;;  %v1856_v36 = vld [vmem:[%s8116_s21 + $0x2ea8] sm:$0xff]  ;;  %v1550_v31 = vld [vmem:[%s8116_s21 + $0x2518] sm:$0xff] }
 0x5b3   : > { %6630 = vmatmul.f32.vlgmr.msrb.gmra.mxu2 %v8238_v57  ;;  %6657 = vmatpush.msra.mxu0 %v1631_v43  ;;  %v5752_v57 = vadd.f32 %v11085_v13, %v5732_v27  ;;  %v1757_v13 = vld [vmem:[%s8116_s21 + $0x2b90] sm:$0xff]  ;;  %v1559_v27 = vld [vmem:[%s8116_s21 + $0x2560] sm:$0xff]  ;;  %v1712_v50 = vld [vmem:[%s8116_s21 + $0x2a28] sm:$0xff] }
 0x5b4   : > { %6676 = vmatpush.msra.mxu1 %v1784_v8  ;;  %6697 = vmatpush.msra.mxu2 %v1919_v35  ;;  %v6152_v52 = vadd.f32 %v6151_v7, %v6132_v24  ;;  %v2009_v43 = vld [vmem:[%s8116_s21 + $0x3370] sm:$0xff]  ;;  %v6211_v35 = vpop.f32.mrf.mxu1  ;;  %v1991_v24 = vld [vmem:[%s8116_s21 + $0x32e0] sm:$0xff] }
 0x5b5   : > { %6716 = vmatpush.msra.mxu3 %v2072_v3  ;;  %6590 = vmatmul.f32.vlgmr.msrb.gmra.mxu0 %v8240_v58  ;;  %v1604_v58 = vld [vmem:[%s8116_s21 + $0x26c8] sm:$0xff]  ;;  %v5772_v6 = vadd.f32 %v11095_v23, %v5752_v57  ;;  %v1847_v3 = vld [vmem:[%s8116_s21 + $0x2e60] sm:$0xff]  ;;  %v6231_v57 = vpop.f32.mrf.mxu2  ;;  %v1541_v7 = vld [vmem:[%s8116_s21 + $0x24d0] sm:$0xff] }
 0x5b6   : > { %6650 = vmatmul.f32.vlgmr.msrb.gmra.mxu3 %v8242_v59  ;;  %6658 = vmatpush.msra.mxu0 %v1622_v15  ;;  %v1892_v59 = vld [vmem:[%s8116_s21 + $0x2fc8] sm:$0xff]  ;;  %v6172_v23 = vadd.f32 %v6171_v32, %v6152_v52  ;;  %v1973_v52 = vld [vmem:[%s8116_s21 + $0x3250] sm:$0xff] }
 0x5b7   : > { %6677 = vmatpush.msra.mxu1 %v1775_v55  ;;  %6698 = vmatpush.msra.mxu2 %v1910_v17  ;;  %v5792_v29 = vadd.f32 %v11107_v18, %v5772_v6  ;;  %v2000_v15 = vld [vmem:[%s8116_s21 + $0x3328] sm:$0xff]  ;;  %v1703_v55 = vld [vmem:[%s8116_s21 + $0x29e0] sm:$0xff]  ;;  %v1838_v17 = vld [vmem:[%s8116_s21 + $0x2e18] sm:$0xff] }
 0x5b8   : > { %6717 = vmatpush.msra.mxu3 %v2063_v19  ;;  %6610 = vmatmul.f32.vlgmr.msrb.gmra.mxu1 %v8244_v60  ;;  %v1748_v60 = vld [vmem:[%s8116_s21 + $0x2b48] sm:$0xff]  ;;  %v1523_v6 = vld [vmem:[%s8116_s21 + $0x2440] sm:$0xff] }
 0x5b9   : > { %6659 = vmatpush.msra.mxu0 %v1613_v46  ;;  %6678 = vmatpush.msra.mxu1 %v1766_v38  ;;  %v6191_v49 = vpop.f32.mrf.mxu0  ;;  %v5812_v8 = vadd.f32 %v11101_v16, %v5792_v29  ;;  %v1694_v46 = vld [vmem:[%s8116_s21 + $0x2998] sm:$0xff]  ;;  %v1829_v38 = vld [vmem:[%s8116_s21 + $0x2dd0] sm:$0xff]  ;;  %v1676_v32 = vld [vmem:[%s8116_s21 + $0x2908] sm:$0xff] }
 0x5ba   : > { %6699 = vmatpush.msra.mxu2 %v1901_v9  ;;  %6718 = vmatpush.msra.mxu3 %v2054_v10  ;;  %v6192_v18 = vadd.f32 %v6191_v49, %v6172_v23  ;;  %v1982_v9 = vld [vmem:[%s8116_s21 + $0x3298] sm:$0xff]  ;;  %v1532_v10 = vld [vmem:[%s8116_s21 + $0x2488] sm:$0xff]  ;;  %v1667_v23 = vld [vmem:[%s8116_s21 + $0x28c0] sm:$0xff] }
 0x5bb   : > { %6660 = vmatpush.msra.mxu0 %v1604_v58  ;;  %6679 = vmatpush.msra.mxu1 %v1757_v13  ;;  %v5832_v19 = vadd.f32 %v11113_v4, %v5812_v8  ;;  %v1685_v58 = vld [vmem:[%s8116_s21 + $0x2950] sm:$0xff]  ;;  %v1820_v13 = vld [vmem:[%s8116_s21 + $0x2d88] sm:$0xff] }
 0x5bc   : > { %6700 = vmatpush.msra.mxu2 %v1892_v59  ;;  %6719 = vmatpush.msra.mxu3 %v2045_v34  ;;  %v6212_v16 = vadd.f32 %v6211_v35, %v6192_v18  ;;  %v6251_v34 = vpop.f32.mrf.mxu3  ;;  %v6291_v29 = vpop.f32.mrf.mxu1  ;;  %v2225_v49 = vld [vmem:[%s8116_s21 + $0x3a30] sm:$0xff] }
 0x5bd   : > { %6661 = vmatpush.msra.mxu0 %v1595_v22  ;;  %6680 = vmatpush.msra.mxu1 %v1748_v60  ;;  %v5852_v59 = vadd.f32 %v11123_v2, %v5832_v19  ;;  %v1811_v22 = vld [vmem:[%s8116_s21 + $0x2d40] sm:$0xff]  ;;  %v1964_v60 = vld [vmem:[%s8116_s21 + $0x3208] sm:$0xff]  ;;  %v2234_v2 = vld [vmem:[%s8116_s21 + $0x3a78] sm:$0xff] }
 0x5be   : > { %6701 = vmatpush.msra.mxu2 %v1883_v14  ;;  %6720 = vmatpush.msra.mxu3 %v2036_v1  ;;  %v6232_v4 = vadd.f32 %v6231_v57, %v6212_v16  ;;  %v2657_v18 = vld [vmem:[%s8116_s21 + $0x47b0] sm:$0xff]  ;;  %v2342_v16 = vld [vmem:[%s8116_s21 + $0x3dd8] sm:$0xff]  ;;  %v2180_v57 = vld [vmem:[%s8116_s21 + $0x38c8] sm:$0xff] }
 0x5bf   : > { %6662 = vmatpush.msra.mxu0 %v1586_v11  ;;  %6681 = vmatpush.msra.mxu1 %v1739_v12  ;;  %v5872_v14 = vadd.f32 %v11131_v33, %v5852_v59  ;;  %v2522_v12 = vld [vmem:[%s8116_s21 + $0x4378] sm:$0xff] }
 0x5c0   : > { %6702 = vmatpush.msra.mxu2 %v1874_v53  ;;  %6721 = vmatpush.msra.mxu3 %v2027_v47  ;;  %v6252_v11 = vadd.f32 %v6251_v34, %v6232_v4  ;;  %v1955_v53 = vld [vmem:[%s8116_s21 + $0x31c0] sm:$0xff]  ;;  %v2630_v19 = vld [vmem:[%s8116_s21 + $0x46d8] sm:$0xff]  ;;  %v2324_v4 = vld [vmem:[%s8116_s21 + $0x3d48] sm:$0xff] }
 0x5c1   : > { %6663 = vmatpush.msra.mxu0 %v1577_v61  ;;  %6682 = vmatpush.msra.mxu1 %v1730_v0  ;;  %v6271_v1 = vpop.f32.mrf.mxu0  ;;  %v5892_v33 = vadd.f32 %v11125_v20, %v5872_v14  ;;  %v2378_v61 = vld [vmem:[%s8116_s21 + $0x3ef8] sm:$0xff]  ;;  %v2513_v0 = vld [vmem:[%s8116_s21 + $0x4330] sm:$0xff] }
 0x5c2   : > { %6703 = vmatpush.msra.mxu2 %v1865_v62  ;;  %6722 = vmatpush.msra.mxu3 %v2018_v37  ;;  %v6272_v47 = vadd.f32 %v6271_v1, %v6252_v11  ;;  %v2666_v62 = vld [vmem:[%s8116_s21 + $0x47f8] sm:$0xff]  ;;  %v6311_v37 = vpop.f32.mrf.mxu2  ;;  %v2369_v20 = vld [vmem:[%s8116_s21 + $0x3eb0] sm:$0xff] }
 0x5c3   : > { %6664 = vmatpush.msra.mxu0 %v1568_v48  ;;  %6683 = vmatpush.msra.mxu1 %v1721_v26  ;;  %v2504_v26 = vld [vmem:[%s8116_s21 + $0x42e8] sm:$0xff]  ;;  %v2153_v14 = vld [vmem:[%s8116_s21 + $0x37f0] sm:$0xff] }
 0x5c4   : > { %6704 = vmatpush.msra.mxu2 %v1856_v36  ;;  %6723 = vmatpush.msra.mxu3 %v2009_v43  ;;  %v6292_v48 = vadd.f32 %v6291_v29, %v6272_v47  ;;  %v2360_v36 = vld [vmem:[%s8116_s21 + $0x3e68] sm:$0xff]  ;;  %v6331_v35 = vpop.f32.mrf.mxu3  ;;  %v2441_v11 = vld [vmem:[%s8116_s21 + $0x40f0] sm:$0xff] }
 0x5c5   : > { %6665 = vmatpush.msra.mxu0 %v1559_v27  ;;  %6684 = vmatpush.msra.mxu1 %v1712_v50  ;;  %v2648_v43 = vld [vmem:[%s8116_s21 + $0x4768] sm:$0xff]  ;;  %v2198_v27 = vld [vmem:[%s8116_s21 + $0x3958] sm:$0xff]  ;;  %v2351_v50 = vld [vmem:[%s8116_s21 + $0x3e20] sm:$0xff] }
 0x5c6   : > { %6705 = vmatpush.msra.mxu2 %v1847_v3  ;;  %6724 = vmatpush.msra.mxu3 %v2000_v15  ;;  %v2486_v3 = vld [vmem:[%s8116_s21 + $0x4258] sm:$0xff]  ;;  %v2639_v15 = vld [vmem:[%s8116_s21 + $0x4720] sm:$0xff]  ;;  %v2297_v47 = vld [vmem:[%s8116_s21 + $0x3c70] sm:$0xff] }
 0x5c7   : > { %6666 = vmatpush.msra.mxu0 %v1550_v31  ;;  %6685 = vmatpush.msra.mxu1 %v1703_v55  ;;  %v2585_v29 = vld [vmem:[%s8116_s21 + $0x4570] sm:$0xff] }
 0x5c8   : > { %6706 = vmatpush.msra.mxu2 %v1838_v17  ;;  %6725 = vmatpush.msra.mxu3 %v1991_v24  ;;  %v2477_v24 = vld [vmem:[%s8116_s21 + $0x4210] sm:$0xff] }
 0x5c9   : > { %6667 = vmatpush.msra.mxu0 %v1541_v7  ;;  %6686 = vmatpush.msra.mxu1 %v1694_v46  ;;  %v6351_v55 = vpop.f32.mrf.mxu0  ;;  %v2468_v46 = vld [vmem:[%s8116_s21 + $0x41c8] sm:$0xff] }
 0x5ca   : > { %6707 = vmatpush.msra.mxu2 %v1829_v38  ;;  %6726 = vmatpush.msra.mxu3 %v1982_v9  ;;  %v2621_v38 = vld [vmem:[%s8116_s21 + $0x4690] sm:$0xff]  ;;  %v6391_v34 = vpop.f32.mrf.mxu2 }
 0x5cb   : > { %6668 = vmatpush.msra.mxu0 %v1532_v10  ;;  %6687 = vmatpush.msra.mxu1 %v1685_v58  ;;  %v6371_v10 = vpop.f32.mrf.mxu1  ;;  %v2171_v58 = vld [vmem:[%s8116_s21 + $0x3880] sm:$0xff] }
 0x5cc   : > { %6708 = vmatpush.msra.mxu2 %v1820_v13  ;;  %6727 = vmatpush.msra.mxu3 %v1973_v52  ;;  %v2459_v13 = vld [vmem:[%s8116_s21 + $0x4180] sm:$0xff]  ;;  %v2612_v52 = vld [vmem:[%s8116_s21 + $0x4648] sm:$0xff] }
 0x5cd   : > { %6669 = vmatpush.msra.mxu0 %v1523_v6  ;;  %6688 = vmatpush.msra.mxu1 %v1676_v32  ;;  %v2315_v6 = vld [vmem:[%s8116_s21 + $0x3d00] sm:$0xff] }
 0x5ce   : > { %6709 = vmatpush.msra.mxu2 %v1811_v22  ;;  %6728 = vmatpush.msra.mxu3 %v1964_v60  ;;  %v2450_v22 = vld [vmem:[%s8116_s21 + $0x4138] sm:$0xff]  ;;  %v2603_v60 = vld [vmem:[%s8116_s21 + $0x4600] sm:$0xff] }
 0x5cf   : > { %6670 = vmatmul.f32.vlgmr.msra.gmra.mxu0 %v8299_v39  ;;  %6710 = vmatmul.f32.vlgmr.msra.gmra.mxu2 %v8301_v40  ;;  %v5912_v39 = vadd.f32 %v11137_v54, %v5892_v33  ;;  %v2216_v40 = vld [vmem:[%s8116_s21 + $0x39e8] sm:$0xff]  ;;  %v2207_v54 = vld [vmem:[%s8116_s21 + $0x39a0] sm:$0xff] }
 0x5d0   : > { %6734 = vmatpush.msrb.mxu0 %v2234_v2  ;;  %6774 = vmatpush.msrb.mxu2 %v2522_v12  ;;  %v2594_v2 = vld [vmem:[%s8116_s21 + $0x45b8] sm:$0xff]  ;;  %v2432_v33 = vld [vmem:[%s8116_s21 + $0x40a8] sm:$0xff] }
 0x5d1   : > { %6689 = vmatpush.msra.mxu1 %v1667_v23  ;;  %6729 = vmatpush.msra.mxu3 %v1955_v53  ;;  %v5932_v8 = vadd.f32 %v11147_v63, %v5912_v39  ;;  %v2189_v63 = vld [vmem:[%s8116_s21 + $0x3910] sm:$0xff]  ;;  %v6411_v23 = vpop.f32.mrf.mxu3  ;;  %v2144_v53 = vld [vmem:[%s8116_s21 + $0x37a8] sm:$0xff] }
 0x5d2   : > { %6690 = vmatmul.f32.vlgmr.msra.gmra.mxu1 %v8304_v41  ;;  %6730 = vmatmul.f32.vlgmr.msra.gmra.mxu3 %v8306_v42  ;;  %v6312_v41 = vadd.f32 %v6311_v37, %v6292_v48  ;;  %v2495_v42 = vld [vmem:[%s8116_s21 + $0x42a0] sm:$0xff]  ;;  %v2576_v39 = vld [vmem:[%s8116_s21 + $0x4528] sm:$0xff]  ;;  %v2126_v37 = vld [vmem:[%s8116_s21 + $0x3718] sm:$0xff] }
 0x5d3   : > { %6735 = vmatpush.msrb.mxu0 %v2225_v49  ;;  %6754 = vmatpush.msrb.mxu1 %v2378_v61  ;;  %v5952_v31 = vadd.f32 %v11155_v44, %v5932_v8  ;;  %v2333_v44 = vld [vmem:[%s8116_s21 + $0x3d90] sm:$0xff]  ;;  %v2288_v61 = vld [vmem:[%s8116_s21 + $0x3c28] sm:$0xff]  ;;  %v2567_v48 = vld [vmem:[%s8116_s21 + $0x44e0] sm:$0xff] }
 0x5d4   : > { %6775 = vmatpush.msrb.mxu2 %v2513_v0  ;;  %6794 = vmatpush.msrb.mxu3 %v2666_v62  ;;  %v6332_v17 = vadd.f32 %v6331_v35, %v6312_v41  ;;  %v2423_v62 = vld [vmem:[%s8116_s21 + $0x4060] sm:$0xff]  ;;  %v2405_v41 = vld [vmem:[%s8116_s21 + $0x3fd0] sm:$0xff] }
 0x5d5   : > { %6736 = vmatpush.msrb.mxu0 %v2216_v40  ;;  %6755 = vmatpush.msrb.mxu1 %v2369_v20  ;;  %v5972_v9 = vadd.f32 %v11149_v30, %v5952_v31  ;;  %v2162_v30 = vld [vmem:[%s8116_s21 + $0x3838] sm:$0xff]  ;;  %v2279_v40 = vld [vmem:[%s8116_s21 + $0x3be0] sm:$0xff]  ;;  %v2261_v35 = vld [vmem:[%s8116_s21 + $0x3b50] sm:$0xff] }
 0x5d6   : > { %6776 = vmatpush.msrb.mxu2 %v2504_v26  ;;  %6795 = vmatpush.msrb.mxu3 %v2657_v18  ;;  %v6352_v7 = vadd.f32 %v6351_v55, %v6332_v17  ;;  %v2414_v20 = vld [vmem:[%s8116_s21 + $0x4018] sm:$0xff]  ;;  %v2252_v31 = vld [vmem:[%s8116_s21 + $0x3b08] sm:$0xff] }
 0x5d7   : > { %6737 = vmatpush.msrb.mxu0 %v2207_v54  ;;  %6756 = vmatpush.msrb.mxu1 %v2360_v36  ;;  %v5992_v59 = vadd.f32 %v11161_v28, %v5972_v9  ;;  %v2306_v28 = vld [vmem:[%s8116_s21 + $0x3cb8] sm:$0xff]  ;;  %v2117_v54 = vld [vmem:[%s8116_s21 + $0x36d0] sm:$0xff] }
 0x5d8   : > { %6777 = vmatpush.msrb.mxu2 %v2495_v42  ;;  %6796 = vmatpush.msrb.mxu3 %v2648_v43  ;;  %v6372_v32 = vadd.f32 %v6371_v10, %v6352_v7  ;;  %v2270_v36 = vld [vmem:[%s8116_s21 + $0x3b98] sm:$0xff]  ;;  %v2531_v7 = vld [vmem:[%s8116_s21 + $0x43c0] sm:$0xff]  ;;  %v7996_v9 = vld.sshfl [vmem:[#allocation1 + $0x30] sm:$0xff pattern:$0x73625140] }
 0x5d9   : > { %6738 = vmatpush.msrb.mxu0 %v2198_v27  ;;  %6757 = vmatpush.msrb.mxu1 %v2351_v50  ;;  %v6012_v12 = vadd.f32 %v11169_v5, %v5992_v59  ;;  %v2135_v5 = vld [vmem:[%s8116_s21 + $0x3760] sm:$0xff]  ;;  %v2558_v42 = vld [vmem:[%s8116_s21 + $0x4498] sm:$0xff]  ;;  %v2396_v27 = vld [vmem:[%s8116_s21 + $0x3f88] sm:$0xff] }
 0x5da   : > { %6778 = vmatpush.msrb.mxu2 %v2486_v3  ;;  %6797 = vmatpush.msrb.mxu3 %v2639_v15  ;;  %v6392_v1 = vadd.f32 %v6391_v34, %v6372_v32  ;;  %v2549_v50 = vld [vmem:[%s8116_s21 + $0x4450] sm:$0xff]  ;;  %v2099_v15 = vld [vmem:[%s8116_s21 + $0x3640] sm:$0xff]  ;;  %v7997_v34 = vld.sshfl [vmem:[#allocation1 + $0x28] sm:$0xff pattern:$0x73625140] }
 0x5db   : > { %6739 = vmatpush.msrb.mxu0 %v2189_v63  ;;  %6758 = vmatpush.msrb.mxu1 %v2342_v16  ;;  %v6032_v49 = vadd.f32 %v11177_v51, %v6012_v12  ;;  %v2540_v63 = vld [vmem:[%s8116_s21 + $0x4408] sm:$0xff]  ;;  %v2801_v10 = vld [vmem:[%s8116_s21 + $0x4c30] sm:$0xff]  ;;  %v3071_v12 = vld [vmem:[%s8116_s21 + $0x54a0] sm:$0xff] }
 0x5dc   : > { %6779 = vmatpush.msrb.mxu2 %v2477_v24  ;;  %6798 = vmatpush.msrb.mxu3 %v2630_v19  ;;  %v6412_v0 = vadd.f32 %v6411_v23, %v6392_v1  ;;  %v2810_v24 = vld [vmem:[%s8116_s21 + $0x4c78] sm:$0xff]  ;;  %v356_v59 = vld [vmem:[#allocation2 + $0x8] sm:$0xff]  ;;  %v2783_v1 = vld [vmem:[%s8116_s21 + $0x4ba0] sm:$0xff] }
 0x5dd   : > { %6740 = vmatpush.msrb.mxu0 %v2180_v57  ;;  %6759 = vmatpush.msrb.mxu1 %v2333_v44  ;;  %v6052_v18 = vadd.f32 %v11171_v25, %v6032_v49  ;;  %v2108_v25 = vld [vmem:[%s8116_s21 + $0x3688] sm:$0xff]  ;;  %v3098_v19 = vld [vmem:[%s8116_s21 + $0x5578] sm:$0xff]  ;;  %v2243_v44 = vld [vmem:[%s8116_s21 + $0x3ac0] sm:$0xff] }
 0x5de   : > { %6780 = vmatpush.msrb.mxu2 %v2468_v46  ;;  %6799 = vmatpush.msrb.mxu3 %v2621_v38  ;;  %v7995_v38 = vld.sshfl [vmem:[#allocation1 + $0x20] sm:$0xff pattern:$0x73625140]  ;;  %v2945_v32 = vld [vmem:[%s8116_s21 + $0x50b0] sm:$0xff]  ;;  %v3224_v23 = vld [vmem:[%s8116_s21 + $0x5968] sm:$0xff] }
 0x5df   : > { %6741 = vmatpush.msrb.mxu0 %v2171_v58  ;;  %6760 = vmatpush.msrb.mxu1 %v2324_v4  ;;  %v6072_v8 = vadd.f32 %v11184_v21, %v6052_v18  ;;  %v2387_v21 = vld [vmem:[%s8116_s21 + $0x3f40] sm:$0xff]  ;;  %v2954_v58 = vld [vmem:[%s8116_s21 + $0x50f8] sm:$0xff] }
 0x5e0   : > { %6781 = vmatpush.msrb.mxu2 %v2459_v13  ;;  %6800 = vmatpush.msrb.mxu3 %v2612_v52  ;;  %v3089_v13 = vld [vmem:[%s8116_s21 + $0x5530] sm:$0xff]  ;;  %v3242_v52 = vld [vmem:[%s8116_s21 + $0x59f8] sm:$0xff]  ;;  %v2891_v18 = vld [vmem:[%s8116_s21 + $0x4f00] sm:$0xff] }
 0x5e1   : > { %6742 = vmatpush.msrb.mxu0 %v2162_v30  ;;  %6761 = vmatpush.msrb.mxu1 %v2315_v6  ;;  %v6092_v17 = vadd.f32 %v11196_v45, %v6072_v8  ;;  %v7998_v30 = vld.sshfl [vmem:[#allocation1 + $0x38] sm:$0xff pattern:$0x73625140]  ;;  %v2792_v6 = vld [vmem:[%s8116_s21 + $0x4be8] sm:$0xff] }
 0x5e2   : > { %6782 = vmatpush.msrb.mxu2 %v2450_v22  ;;  %6801 = vmatpush.msrb.mxu3 %v2603_v60  ;;  %v3080_v60 = vld [vmem:[%s8116_s21 + $0x54e8] sm:$0xff]  ;;  %v2918_v49 = vld [vmem:[%s8116_s21 + $0x4fd8] sm:$0xff] }
 0x5e3   : > { %6743 = vmatpush.msrb.mxu0 %v2153_v14  ;;  %6762 = vmatpush.msrb.mxu1 %v2306_v28  ;;  %v6906_v45 = vrot.slane %v6092_v17, 4  ;;  %v3233_v14 = vld [vmem:[%s8116_s21 + $0x59b0] sm:$0xff]  ;;  %v3170_v8 = vld [vmem:[%s8116_s21 + $0x57b8] sm:$0xff]  ;;  %v3143_v17 = vld [vmem:[%s8116_s21 + $0x56e0] sm:$0xff] }
 0x5e4   : > { %6783 = vmatpush.msrb.mxu2 %v2441_v11  ;;  %6802 = vmatpush.msrb.mxu3 %v2594_v2  ;;  %v2936_v11 = vld [vmem:[%s8116_s21 + $0x5068] sm:$0xff] }
 0x5e5   : > { %6744 = vmatpush.msrb.mxu0 %v2144_v53  ;;  %6763 = vmatpush.msrb.mxu1 %v2297_v47  ;;  %v2774_v53 = vld [vmem:[%s8116_s21 + $0x4b58] sm:$0xff]  ;;  %v2927_v47 = vld [vmem:[%s8116_s21 + $0x5020] sm:$0xff] }
 0x5e6   : > { %6784 = vmatpush.msrb.mxu2 %v2432_v33  ;;  %6803 = vmatpush.msrb.mxu3 %v2585_v29  ;;  %v6431_v51 = vpop.f32.mrf.mxu0  ;;  %v3215_v33 = vld [vmem:[%s8116_s21 + $0x5920] sm:$0xff]  ;;  %v2765_v29 = vld [vmem:[%s8116_s21 + $0x4b10] sm:$0xff] }
 0x5e7   : > { %6745 = vmatpush.msrb.mxu0 %v2135_v5  ;;  %6764 = vmatpush.msrb.mxu1 %v2288_v61  ;;  %v6432_v26 = vadd.f32 %v6431_v51, %v6412_v0  ;;  %v3053_v5 = vld [vmem:[%s8116_s21 + $0x5410] sm:$0xff]  ;;  %v3206_v61 = vld [vmem:[%s8116_s21 + $0x58d8] sm:$0xff]  ;;  %v2756_v0 = vld [vmem:[%s8116_s21 + $0x4ac8] sm:$0xff] }
 0x5e8   : > { %6785 = vmatpush.msrb.mxu2 %v2423_v62  ;;  %6804 = vmatpush.msrb.mxu3 %v2576_v39  ;;  %v2909_v62 = vld [vmem:[%s8116_s21 + $0x4f90] sm:$0xff]  ;;  %v3044_v39 = vld [vmem:[%s8116_s21 + $0x53c8] sm:$0xff] }
 0x5e9   : > { %6746 = vmatpush.msrb.mxu0 %v2126_v37  ;;  %6765 = vmatpush.msrb.mxu1 %v2279_v40  ;;  %v6451_v43 = vpop.f32.mrf.mxu1  ;;  %v3197_v37 = vld [vmem:[%s8116_s21 + $0x5890] sm:$0xff]  ;;  %v2747_v40 = vld [vmem:[%s8116_s21 + $0x4a80] sm:$0xff]  ;;  %v2900_v51 = vld [vmem:[%s8116_s21 + $0x4f48] sm:$0xff] }
 0x5ea   : > { %6786 = vmatpush.msrb.mxu2 %v2414_v20  ;;  %6805 = vmatpush.msrb.mxu3 %v2567_v48  ;;  %v6452_v3 = vadd.f32 %v6451_v43, %v6432_v26  ;;  %v3035_v20 = vld [vmem:[%s8116_s21 + $0x5380] sm:$0xff]  ;;  %v3188_v48 = vld [vmem:[%s8116_s21 + $0x5848] sm:$0xff]  ;;  %v2738_v26 = vld [vmem:[%s8116_s21 + $0x4a38] sm:$0xff] }
 0x5eb   : > { %6747 = vmatpush.msrb.mxu0 %v2117_v54  ;;  %6766 = vmatpush.msrb.mxu1 %v2270_v36  ;;  %v3026_v54 = vld [vmem:[%s8116_s21 + $0x5338] sm:$0xff]  ;;  %v3179_v36 = vld [vmem:[%s8116_s21 + $0x5800] sm:$0xff]  ;;  %v3017_v43 = vld [vmem:[%s8116_s21 + $0x52f0] sm:$0xff] }
 0x5ec   : > { %6787 = vmatpush.msrb.mxu2 %v2405_v41  ;;  %6806 = vmatpush.msrb.mxu3 %v2558_v42  ;;  %v6471_v55 = vpop.f32.mrf.mxu2  ;;  %v2729_v41 = vld [vmem:[%s8116_s21 + $0x49f0] sm:$0xff]  ;;  %v2882_v42 = vld [vmem:[%s8116_s21 + $0x4eb8] sm:$0xff] }
 0x5ed   : > { %6748 = vmatpush.msrb.mxu0 %v2108_v25  ;;  %6767 = vmatpush.msrb.mxu1 %v2261_v35  ;;  %v6472_v16 = vadd.f32 %v6471_v55, %v6452_v3  ;;  %v2720_v25 = vld [vmem:[%s8116_s21 + $0x49a8] sm:$0xff]  ;;  %v2873_v35 = vld [vmem:[%s8116_s21 + $0x4e70] sm:$0xff]  ;;  %v2711_v3 = vld [vmem:[%s8116_s21 + $0x4960] sm:$0xff] }
 0x5ee   : > { %6788 = vmatpush.msrb.mxu2 %v2396_v27  ;;  %6807 = vmatpush.msrb.mxu3 %v2549_v50  ;;  %v3008_v27 = vld [vmem:[%s8116_s21 + $0x52a8] sm:$0xff]  ;;  %v3161_v50 = vld [vmem:[%s8116_s21 + $0x5770] sm:$0xff] }
 0x5ef   : > { %6749 = vmatpush.msrb.mxu0 %v2099_v15  ;;  %6768 = vmatpush.msrb.mxu1 %v2252_v31  ;;  %v6491_v57 = vpop.f32.mrf.mxu3  ;;  %v2864_v15 = vld [vmem:[%s8116_s21 + $0x4e28] sm:$0xff]  ;;  %v2999_v31 = vld [vmem:[%s8116_s21 + $0x5260] sm:$0xff] }
 0x5f0   : > { %6789 = vmatpush.msrb.mxu2 %v2387_v21  ;;  %6808 = vmatpush.msrb.mxu3 %v2540_v63  ;;  %v6492_v46 = vadd.f32 %v6491_v57, %v6472_v16  ;;  %v3152_v55 = vld [vmem:[%s8116_s21 + $0x5728] sm:$0xff]  ;;  %v2702_v21 = vld [vmem:[%s8116_s21 + $0x4918] sm:$0xff]  ;;  %v2855_v63 = vld [vmem:[%s8116_s21 + $0x4de0] sm:$0xff] }
 0x5f1   : > { %6750 = vmatmul.f32.vlgmr.msrb.gmra.mxu0 %v7995_v38  ;;  %6790 = vmatmul.f32.vlgmr.msrb.gmra.mxu2 %v7996_v9  ;;  %v2990_v16 = vld [vmem:[%s8116_s21 + $0x5218] sm:$0xff]  ;;  %v2981_v57 = vld [vmem:[%s8116_s21 + $0x51d0] sm:$0xff]  ;;  %v2972_v38 = vld [vmem:[%s8116_s21 + $0x5188] sm:$0xff] }
 0x5f2   : > { %6814 = vmatpush.msra.mxu0 %v2810_v24  ;;  %6854 = vmatpush.msra.mxu2 %v3098_v19  ;;  %v6907_v4 = vrot.slane %v6492_v46, 2  ;;  %v2693_v24 = vld [vmem:[%s8116_s21 + $0x48d0] sm:$0xff]  ;;  %v2846_v19 = vld [vmem:[%s8116_s21 + $0x4d98] sm:$0xff] }
 0x5f3   : > { %6769 = vmatpush.msrb.mxu1 %v2243_v44  ;;  %6809 = vmatpush.msrb.mxu3 %v2531_v7  ;;  %v3134_v44 = vld [vmem:[%s8116_s21 + $0x5698] sm:$0xff]  ;;  %v2684_v7 = vld [vmem:[%s8116_s21 + $0x4888] sm:$0xff]  ;;  %v2837_v46 = vld [vmem:[%s8116_s21 + $0x4d50] sm:$0xff] }
 0x5f4   : > { %6770 = vmatmul.f32.vlgmr.msrb.gmra.mxu1 %v7997_v34  ;;  %6810 = vmatmul.f32.vlgmr.msrb.gmra.mxu3 %v7998_v30  ;;  %v6915_v22 = vsel %vm6910_vm2, %v6906_v45, %v6907_v4  ;;  %v3125_v9 = vld [vmem:[%s8116_s21 + $0x5650] sm:$0xff]  ;;  %v2675_v45 = vld [vmem:[%s8116_s21 + $0x4840] sm:$0xff]  ;;  %v3116_v4 = vld [vmem:[%s8116_s21 + $0x5608] sm:$0xff] }
 0x5f5   : > { %6815 = vmatpush.msra.mxu0 %v2801_v10  ;;  %6834 = vmatpush.msra.mxu1 %v2954_v58  ;;  %v6916_v28 = vsel %vm6912_vm3, %v10621_v56, %v6915_v22  ;;  %v3062_v56 = vld [vmem:[%s8116_s21 + $0x5458] sm:$0xff]  ;;  %v2828_v10 = vld [vmem:[%s8116_s21 + $0x4d08] sm:$0xff]  ;;  %v2963_v58 = vld [vmem:[%s8116_s21 + $0x5140] sm:$0xff] }
 0x5f6   : > { %6855 = vmatpush.msra.mxu2 %v3089_v13  ;;  %6874 = vmatpush.msra.mxu3 %v3242_v52  ;;  %v6920_v2 = vadd.f32 %v6916_v28, %v356_v59  ;;  %v2819_v13 = vld [vmem:[%s8116_s21 + $0x4cc0] sm:$0xff]  ;;  %v8000_v34 = vld.sshfl [vmem:[#allocation1 + $0x10] sm:$0xff pattern:$0x73625140] }
 0x5f7   : > { %6816 = vmatpush.msra.mxu0 %v2792_v6  ;;  %6835 = vmatpush.msra.mxu1 %v2945_v32  ;;  %v3107_v52 = vld [vmem:[%s8116_s21 + $0x55c0] sm:$0xff]  ;;  %v8001_v30 = vld.sshfl [vmem:[#allocation1 + $0x8] sm:$0xff pattern:$0x73625140] }
 0x5f8   : > { %6856 = vmatpush.msra.mxu2 %v3080_v60  ;;  %6875 = vmatpush.msra.mxu3 %v3233_v14  ;;  %6923 = vst [vmem:[#allocation2 + $0x8] sm:$0xff] %v6920_v2  ;;  %v7999_v59 = vld.sshfl [vmem:[#allocation1] sm:$0xff pattern:$0x73625140] }
 0x5f9   : > { %6817 = vmatpush.msra.mxu0 %v2783_v1  ;;  %6836 = vmatpush.msra.mxu1 %v2936_v11  ;;  %v8002_v6 = vld.sshfl [vmem:[#allocation1 + $0x18] sm:$0xff pattern:$0x73625140] }
 0x5fa   : > { %6857 = vmatpush.msra.mxu2 %v3071_v12  ;;  %6876 = vmatpush.msra.mxu3 %v3224_v23 }
 0x5fb   : > { %6818 = vmatpush.msra.mxu0 %v2774_v53  ;;  %6837 = vmatpush.msra.mxu1 %v2927_v47 }
 0x5fc   : > { %6858 = vmatpush.msra.mxu2 %v3062_v56  ;;  %6877 = vmatpush.msra.mxu3 %v3215_v33 }
 0x5fd   : > { %6819 = vmatpush.msra.mxu0 %v2765_v29  ;;  %6838 = vmatpush.msra.mxu1 %v2918_v49 }
 0x5fe   : > { %6859 = vmatpush.msra.mxu2 %v3053_v5  ;;  %6878 = vmatpush.msra.mxu3 %v3206_v61 }
 0x5ff   : > { %6820 = vmatpush.msra.mxu0 %v2756_v0  ;;  %6839 = vmatpush.msra.mxu1 %v2909_v62 }
 0x600   : > { %6860 = vmatpush.msra.mxu2 %v3044_v39  ;;  %6879 = vmatpush.msra.mxu3 %v3197_v37 }
 0x601   : > { %6821 = vmatpush.msra.mxu0 %v2747_v40  ;;  %6840 = vmatpush.msra.mxu1 %v2900_v51 }
 0x602   : > { %6861 = vmatpush.msra.mxu2 %v3035_v20  ;;  %6880 = vmatpush.msra.mxu3 %v3188_v48 }
 0x603   : > { %6822 = vmatpush.msra.mxu0 %v2738_v26  ;;  %6841 = vmatpush.msra.mxu1 %v2891_v18 }
 0x604   : > { %6862 = vmatpush.msra.mxu2 %v3026_v54  ;;  %6881 = vmatpush.msra.mxu3 %v3179_v36 }
 0x605   : > { %6823 = vmatpush.msra.mxu0 %v2729_v41  ;;  %6842 = vmatpush.msra.mxu1 %v2882_v42 }
 0x606   : > { %6863 = vmatpush.msra.mxu2 %v3017_v43  ;;  %6882 = vmatpush.msra.mxu3 %v3170_v8 }
 0x607   : > { %6824 = vmatpush.msra.mxu0 %v2720_v25  ;;  %6843 = vmatpush.msra.mxu1 %v2873_v35 }
 0x608   : > { %6864 = vmatpush.msra.mxu2 %v3008_v27  ;;  %6883 = vmatpush.msra.mxu3 %v3161_v50  ;;  %v357_v50 = vld [vmem:[#allocation2 + $0x10] sm:$0x3] }
 0x609   : > { %6825 = vmatpush.msra.mxu0 %v2711_v3  ;;  %6844 = vmatpush.msra.mxu1 %v2864_v15 }
 0x60a   : > { %6865 = vmatpush.msra.mxu2 %v2999_v31  ;;  %6884 = vmatpush.msra.mxu3 %v3152_v55 }
 0x60b   : > { %6826 = vmatpush.msra.mxu0 %v2702_v21  ;;  %6845 = vmatpush.msra.mxu1 %v2855_v63 }
 0x60c   : > { %6866 = vmatpush.msra.mxu2 %v2990_v16  ;;  %6885 = vmatpush.msra.mxu3 %v3143_v17 }
 0x60d   : > { %6827 = vmatpush.msra.mxu0 %v2693_v24  ;;  %6846 = vmatpush.msra.mxu1 %v2846_v19 }
 0x60e   : > { %6867 = vmatpush.msra.mxu2 %v2981_v57  ;;  %6886 = vmatpush.msra.mxu3 %v3134_v44 }
 0x60f   : > { %6828 = vmatpush.msra.mxu0 %v2684_v7  ;;  %6847 = vmatpush.msra.mxu1 %v2837_v46 }
 0x610   : > { %6868 = vmatpush.msra.mxu2 %v2972_v38  ;;  %6887 = vmatpush.msra.mxu3 %v3125_v9 }
 0x611   : > { %6829 = vmatpush.msra.mxu0 %v2675_v45  ;;  %6848 = vmatpush.msra.mxu1 %v2828_v10 }
 0x612   : > { %6869 = vmatpush.msra.mxu2 %v2963_v58  ;;  %6888 = vmatpush.msra.mxu3 %v3116_v4 }
 0x613   : > { %6830 = vmatmul.f32.vlgmr.msra.gmra.mxu0 %v7999_v59  ;;  %6870 = vmatmul.f32.vlgmr.msra.gmra.mxu2 %v8000_v34 }
 0x614   : > { %6849 = vmatpush.msra.mxu1 %v2819_v13  ;;  %6889 = vmatpush.msra.mxu3 %v3107_v52 }
 0x615   : > { %6850 = vmatmul.f32.vlgmr.msra.gmra.mxu1 %v8001_v30  ;;  %6890 = vmatmul.f32.vlgmr.msra.gmra.mxu3 %v8002_v6 }
 0x628   : > { %v6511_v22 = vpop.f32.mrf.mxu0 }
 0x62b   : > { %v6531_v32 = vpop.f32.mrf.mxu1 }
 0x62c   : > { %v6532_v60 = vadd.f32 %v6531_v32, %v6511_v22  ;;  %v6551_v14 = vpop.f32.mrf.mxu2 }
 0x62e   : > { %v6552_v28 = vadd.f32 %v6551_v14, %v6532_v60 }
 0x62f   : > { %v6571_v1 = vpop.f32.mrf.mxu3 }
 0x630   : > { %v6572_v11 = vadd.f32 %v6571_v1, %v6552_v28 }
 0x632   : > { %v6591_v2 = vpop.f32.mrf.mxu0 }
 0x633   : > { %v6592_v12 = vadd.f32 %v6591_v2, %v6572_v11 }
 0x635   : > { %v6611_v23 = vpop.f32.mrf.mxu1 }
 0x636   : > { %v6612_v53 = vadd.f32 %v6611_v23, %v6592_v12  ;;  %v6631_v47 = vpop.f32.mrf.mxu2 }
 0x638   : > { %v6632_v56 = vadd.f32 %v6631_v47, %v6612_v53 }
 0x639   : > { %v6651_v33 = vpop.f32.mrf.mxu3 }
 0x63a   : > { %v6652_v49 = vadd.f32 %v6651_v33, %v6632_v56 }
 0x64c   : > { %v6671_v29 = vpop.f32.mrf.mxu0 }
 0x64d   : > { %v6672_v5 = vadd.f32 %v6671_v29, %v6652_v49 }
 0x64f   : > { %v6691_v61 = vpop.f32.mrf.mxu1 }
 0x650   : > { %v6692_v62 = vadd.f32 %v6691_v61, %v6672_v5 }
 0x652   : > { %v6711_v0 = vpop.f32.mrf.mxu2 }
 0x653   : > { %v6712_v39 = vadd.f32 %v6711_v0, %v6692_v62 }
 0x655   : > { %v6731_v37 = vpop.f32.mrf.mxu3 }
 0x656   : > { %v6732_v51 = vadd.f32 %v6731_v37, %v6712_v39 }
 0x66e   : > { %v6751_v40 = vpop.f32.mrf.mxu0 }
 0x66f   : > { %v6752_v20 = vadd.f32 %v6751_v40, %v6732_v51 }
 0x671   : > { %v6771_v48 = vpop.f32.mrf.mxu1 }
 0x672   : > { %v6772_v18 = vadd.f32 %v6771_v48, %v6752_v20 }
 0x674   : > { %v6791_v26 = vpop.f32.mrf.mxu2 }
 0x675   : > { %v6792_v54 = vadd.f32 %v6791_v26, %v6772_v18 }
 0x677   : > { %v6811_v36 = vpop.f32.mrf.mxu3 }
 0x678   : > { %v6812_v41 = vadd.f32 %v6811_v36, %v6792_v54 }
 0x690   : > { %v6831_v42 = vpop.f32.mrf.mxu0 }
 0x691   : > { %v6832_v43 = vadd.f32 %v6831_v42, %v6812_v41 }
 0x692   : > { %v6851_v8 = vpop.f32.mrf.mxu1 }
 0x693   : > { %v6852_v25 = vadd.f32 %v6851_v8, %v6832_v43 }
 0x696   : > { %v6871_v35 = vpop.f32.mrf.mxu2 }
 0x697   : > { %v6872_v27 = vadd.f32 %v6871_v35, %v6852_v25 }
 0x698   : > { %v6891_v3 = vpop.f32.mrf.mxu3 }
 0x699   : > { %v6892_v15 = vadd.f32 %v6891_v3, %v6872_v27  ;;  %6929 = sbr.rel (%p7917_p6) target bundleno = 2336 (0x920), region = 64 }
 0x69b   : > { %v6921_v31 = vadd.f32 %v6892_v15, %v357_v50 }
 0x69d   : > { %6925 = vst.msk [vmem:[#allocation2 + $0x10] sm:$0x3] %vm6924_vm4, %v6921_v31 }
 0x69e   : > { %v7083_v55 = vld [vmem:[%s12420_s3 + $0x1f0] sm:$0xff]  ;;  %v7081_v16 = vld [vmem:[%s12420_s3 + $0x1e0] sm:$0xff] }
 0x69f   : > { %v7115_v21 = vld [vmem:[%s12420_s3 + $0x2f0] sm:$0xff]  ;;  %7336 = vmatpush.msra.mxu1 %v7083_v55  ;;  %v7113_v17 = vld [vmem:[%s12420_s3 + $0x2e0] sm:$0xff] }
 0x6a0   : > { %v7051_v63 = vld [vmem:[%s12420_s3 + $0xf0] sm:$0xff]  ;;  %7356 = vmatpush.msra.mxu2 %v7115_v21  ;;  %v7049_v19 = vld [vmem:[%s12420_s3 + $0xe0] sm:$0xff] }
 0x6a1   : > { %v7147_v24 = vld [vmem:[%s12420_s3 + $0x3f0] sm:$0xff]  ;;  %7316 = vmatpush.msra.mxu0 %v7051_v63  ;;  %7337 = vmatpush.msra.mxu1 %v7081_v16  ;;  %v7145_v7 = vld [vmem:[%s12420_s3 + $0x3e0] sm:$0xff] }
 0x6a2   : > { %7376 = vmatpush.msra.mxu3 %v7147_v24  ;;  %v7079_v57 = vld [vmem:[%s12420_s3 + $0x1d0] sm:$0xff]  ;;  %7357 = vmatpush.msra.mxu2 %v7113_v17  ;;  %v7077_v38 = vld [vmem:[%s12420_s3 + $0x1c0] sm:$0xff] }
 0x6a3   : > { %v7111_v44 = vld [vmem:[%s12420_s3 + $0x2d0] sm:$0xff]  ;;  %7317 = vmatpush.msra.mxu0 %v7049_v19  ;;  %v7109_v9 = vld [vmem:[%s12420_s3 + $0x2c0] sm:$0xff]  ;;  %7338 = vmatpush.msra.mxu1 %v7079_v57 }
 0x6a4   : > { %v7047_v46 = vld [vmem:[%s12420_s3 + $0xd0] sm:$0xff]  ;;  %7377 = vmatpush.msra.mxu3 %v7145_v7  ;;  %7358 = vmatpush.msra.mxu2 %v7111_v44  ;;  %v7045_v10 = vld [vmem:[%s12420_s3 + $0xc0] sm:$0xff] }
 0x6a5   : > { %v7143_v45 = vld [vmem:[%s12420_s3 + $0x3d0] sm:$0xff]  ;;  %v7141_v58 = vld [vmem:[%s12420_s3 + $0x3c0] sm:$0xff]  ;;  %7318 = vmatpush.msra.mxu0 %v7047_v46  ;;  %7339 = vmatpush.msra.mxu1 %v7077_v38 }
 0x6a6   : > { %7378 = vmatpush.msra.mxu3 %v7143_v45  ;;  %v7075_v4 = vld [vmem:[%s12420_s3 + $0x1b0] sm:$0xff]  ;;  %7359 = vmatpush.msra.mxu2 %v7109_v9  ;;  %v7073_v34 = vld [vmem:[%s12420_s3 + $0x1a0] sm:$0xff] }
 0x6a7   : > { %v7107_v13 = vld [vmem:[%s12420_s3 + $0x2b0] sm:$0xff]  ;;  %7319 = vmatpush.msra.mxu0 %v7045_v10  ;;  %v7105_v30 = vld [vmem:[%s12420_s3 + $0x2a0] sm:$0xff]  ;;  %7340 = vmatpush.msra.mxu1 %v7075_v4 }
 0x6a8   : > { %v7043_v52 = vld [vmem:[%s12420_s3 + $0xb0] sm:$0xff]  ;;  %7379 = vmatpush.msra.mxu3 %v7141_v58  ;;  %7360 = vmatpush.msra.mxu2 %v7107_v13  ;;  %v7041_v6 = vld [vmem:[%s12420_s3 + $0xa0] sm:$0xff] }
 0x6a9   : > { %v7139_v59 = vld [vmem:[%s12420_s3 + $0x3b0] sm:$0xff]  ;;  %v7137_v32 = vld [vmem:[%s12420_s3 + $0x3a0] sm:$0xff]  ;;  %7320 = vmatpush.msra.mxu0 %v7043_v52  ;;  %7341 = vmatpush.msra.mxu1 %v7073_v34 }
 0x6aa   : > { %7380 = vmatpush.msra.mxu3 %v7139_v59  ;;  %v7071_v22 = vld [vmem:[%s12420_s3 + $0x190] sm:$0xff]  ;;  %7361 = vmatpush.msra.mxu2 %v7105_v30  ;;  %v7069_v1 = vld [vmem:[%s12420_s3 + $0x180] sm:$0xff]  ;;  %v6932_v30 = vld [vmem:[#allocation2 + $0x10] sm:$0x3] }
 0x6ab   : > { %v7103_v60 = vld [vmem:[%s12420_s3 + $0x290] sm:$0xff]  ;;  %7321 = vmatpush.msra.mxu0 %v7041_v6  ;;  %v7101_v11 = vld [vmem:[%s12420_s3 + $0x280] sm:$0xff]  ;;  %7342 = vmatpush.msra.mxu1 %v7071_v22 }
 0x6ac   : > { %v7039_v14 = vld [vmem:[%s12420_s3 + $0x90] sm:$0xff]  ;;  %7381 = vmatpush.msra.mxu3 %v7137_v32  ;;  %7362 = vmatpush.msra.mxu2 %v7103_v60  ;;  %v7037_v2 = vld [vmem:[%s12420_s3 + $0x80] sm:$0xff] }
 0x6ad   : > { %v7135_v28 = vld [vmem:[%s12420_s3 + $0x390] sm:$0xff]  ;;  %v7133_v12 = vld [vmem:[%s12420_s3 + $0x380] sm:$0xff]  ;;  %7322 = vmatpush.msra.mxu0 %v7039_v14  ;;  %7343 = vmatpush.msra.mxu1 %v7069_v1 }
 0x6ae   : > { %7382 = vmatpush.msra.mxu3 %v7135_v28  ;;  %v7067_v23 = vld [vmem:[%s12420_s3 + $0x170] sm:$0xff]  ;;  %7363 = vmatpush.msra.mxu2 %v7101_v11  ;;  %v7065_v33 = vld [vmem:[%s12420_s3 + $0x160] sm:$0xff]  ;;  %v8003_v28 = vld [vmem:[%s12419_s2 + $0x8] ss:$0 sm:$0xff] }
 0x6af   : > { %v7099_v53 = vld [vmem:[%s12420_s3 + $0x270] sm:$0xff]  ;;  %7323 = vmatpush.msra.mxu0 %v7037_v2  ;;  %v7097_v29 = vld [vmem:[%s12420_s3 + $0x260] sm:$0xff]  ;;  %7344 = vmatpush.msra.mxu1 %v7067_v23 }
 0x6b0   : > { %v7035_v47 = vld [vmem:[%s12420_s3 + $0x70] sm:$0xff]  ;;  %7383 = vmatpush.msra.mxu3 %v7133_v12  ;;  %7364 = vmatpush.msra.mxu2 %v7099_v53  ;;  %v7033_v49 = vld [vmem:[%s12420_s3 + $0x60] sm:$0xff] }
 0x6b1   : > { %v7131_v56 = vld [vmem:[%s12420_s3 + $0x370] sm:$0xff]  ;;  %v7129_v5 = vld [vmem:[%s12420_s3 + $0x360] sm:$0xff]  ;;  %7324 = vmatpush.msra.mxu0 %v7035_v47  ;;  %7345 = vmatpush.msra.mxu1 %v7065_v33 }
 0x6b2   : > { %7384 = vmatpush.msra.mxu3 %v7131_v56  ;;  %v7063_v61 = vld [vmem:[%s12420_s3 + $0x150] sm:$0xff]  ;;  %7365 = vmatpush.msra.mxu2 %v7097_v29  ;;  %v7061_v37 = vld [vmem:[%s12420_s3 + $0x140] sm:$0xff] }
 0x6b3   : > { %v7095_v0 = vld [vmem:[%s12420_s3 + $0x250] sm:$0xff]  ;;  %7325 = vmatpush.msra.mxu0 %v7033_v49  ;;  %v7093_v40 = vld [vmem:[%s12420_s3 + $0x240] sm:$0xff]  ;;  %7346 = vmatpush.msra.mxu1 %v7063_v61  ;;  %v6963_v49 = vadd.f32 %v8003_v28, %v6932_v30 }
 0x6b4   : > { %v7031_v62 = vld [vmem:[%s12420_s3 + $0x50] sm:$0xff]  ;;  %7385 = vmatpush.msra.mxu3 %v7129_v5  ;;  %7366 = vmatpush.msra.mxu2 %v7095_v0  ;;  %v7029_v51 = vld [vmem:[%s12420_s3 + $0x40] sm:$0xff]  ;;  %v6930_v5 = vld [vmem:[#allocation2] sm:$0xff] }
 0x6b5   : > { %v7127_v39 = vld [vmem:[%s12420_s3 + $0x350] sm:$0xff]  ;;  %v7125_v20 = vld [vmem:[%s12420_s3 + $0x340] sm:$0xff]  ;;  %7326 = vmatpush.msra.mxu0 %v7031_v62  ;;  %7347 = vmatpush.msra.mxu1 %v7061_v37 }
 0x6b6   : > { %7386 = vmatpush.msra.mxu3 %v7127_v39  ;;  %v7059_v48 = vld [vmem:[%s12420_s3 + $0x130] sm:$0xff]  ;;  %7367 = vmatpush.msra.mxu2 %v7093_v40  ;;  %v7057_v36 = vld [vmem:[%s12420_s3 + $0x120] sm:$0xff] }
 0x6b7   : > { %v7091_v26 = vld [vmem:[%s12420_s3 + $0x230] sm:$0xff]  ;;  %7327 = vmatpush.msra.mxu0 %v7029_v51  ;;  %v7089_v41 = vld [vmem:[%s12420_s3 + $0x220] sm:$0xff]  ;;  %7348 = vmatpush.msra.mxu1 %v7059_v48 }
 0x6b8   : > { %v7027_v18 = vld [vmem:[%s12420_s3 + $0x30] sm:$0xff]  ;;  %7387 = vmatpush.msra.mxu3 %v7125_v20  ;;  %7368 = vmatpush.msra.mxu2 %v7091_v26  ;;  %v7025_v42 = vld [vmem:[%s12420_s3 + $0x20] sm:$0xff]  ;;  %v7920_v20 = vmul.f32 -1.442695, %v6963_v49 }
 0x6b9   : > { %v7123_v54 = vld [vmem:[%s12420_s3 + $0x330] sm:$0xff]  ;;  %v7121_v43 = vld [vmem:[%s12420_s3 + $0x320] sm:$0xff]  ;;  %7328 = vmatpush.msra.mxu0 %v7027_v18  ;;  %7349 = vmatpush.msra.mxu1 %v7057_v36 }
 0x6ba   : > { %7388 = vmatpush.msra.mxu3 %v7123_v54  ;;  %v7055_v8 = vld [vmem:[%s12420_s3 + $0x110] sm:$0xff]  ;;  %7369 = vmatpush.msra.mxu2 %v7089_v41  ;;  %v7053_v50 = vld [vmem:[%s12420_s3 + $0x100] sm:$0xff]  ;;  %8006 = vpow2.f32 %v7920_v20 }
 0x6bb   : > { %v7087_v25 = vld [vmem:[%s12420_s3 + $0x210] sm:$0xff]  ;;  %7329 = vmatpush.msra.mxu0 %v7025_v42  ;;  %v7085_v3 = vld [vmem:[%s12420_s3 + $0x200] sm:$0xff]  ;;  %7350 = vmatpush.msra.mxu1 %v7055_v8 }
 0x6bc   : > { %v7023_v35 = vld [vmem:[%s12420_s3 + $0x10] sm:$0xff]  ;;  %7389 = vmatpush.msra.mxu3 %v7121_v43  ;;  %7370 = vmatpush.msra.mxu2 %v7087_v25  ;;  %v7021_v55 = vld [vmem:[%s12420_s3] sm:$0xff] }
 0x6bd   : > { %v7119_v27 = vld [vmem:[%s12420_s3 + $0x310] sm:$0xff]  ;;  %7330 = vmatpush.msra.mxu0 %v7023_v35  ;;  %v7117_v21 = vld [vmem:[%s12420_s3 + $0x300] sm:$0xff]  ;;  %7351 = vmatpush.msra.mxu1 %v7053_v50 }
 0x6be   : > { %v7211_v15 = vld [vmem:[%s12420_s3 + $0x5f0] sm:$0xff]  ;;  %7390 = vmatpush.msra.mxu3 %v7119_v27  ;;  %7371 = vmatpush.msra.mxu2 %v7085_v3  ;;  %v7209_v16 = vld [vmem:[%s12420_s3 + $0x5e0] sm:$0xff] }
 0x6bf   : > { %v7243_v31 = vld [vmem:[%s12420_s3 + $0x6f0] sm:$0xff]  ;;  %7416 = vmatpush.msrb.mxu1 %v7211_v15  ;;  %v7241_v17 = vld [vmem:[%s12420_s3 + $0x6e0] sm:$0xff]  ;;  %7331 = vmatpush.msra.mxu0 %v7021_v55 }
 0x6c0   : > { %v7179_v63 = vld [vmem:[%s12420_s3 + $0x4f0] sm:$0xff]  ;;  %7436 = vmatpush.msrb.mxu2 %v7243_v31  ;;  %7391 = vmatpush.msra.mxu3 %v7117_v21  ;;  %v7177_v19 = vld [vmem:[%s12420_s3 + $0x4e0] sm:$0xff] }
 0x6c1   : > { %v7275_v24 = vld [vmem:[%s12420_s3 + $0x7f0] sm:$0xff]  ;;  %7396 = vmatpush.msrb.mxu0 %v7179_v63  ;;  %7417 = vmatpush.msrb.mxu1 %v7209_v16  ;;  %v7273_v7 = vld [vmem:[%s12420_s3 + $0x7e0] sm:$0xff] }
 0x6c2   : > { %v7207_v57 = vld [vmem:[%s12420_s3 + $0x5d0] sm:$0xff]  ;;  %v7205_v38 = vld [vmem:[%s12420_s3 + $0x5c0] sm:$0xff]  ;;  %7437 = vmatpush.msrb.mxu2 %v7241_v17  ;;  %7456 = vmatpush.msrb.mxu3 %v7275_v24 }
 0x6c3   : > { %v7239_v44 = vld [vmem:[%s12420_s3 + $0x6d0] sm:$0xff]  ;;  %v7237_v9 = vld [vmem:[%s12420_s3 + $0x6c0] sm:$0xff]  ;;  %7397 = vmatpush.msrb.mxu0 %v7177_v19  ;;  %7418 = vmatpush.msrb.mxu1 %v7207_v57  ;;  %v8007_v57 = vpop.eup %8006 }
 0x6c4   : > { %v7175_v46 = vld [vmem:[%s12420_s3 + $0x4d0] sm:$0xff]  ;;  %v7173_v10 = vld [vmem:[%s12420_s3 + $0x4c0] sm:$0xff]  ;;  %7438 = vmatpush.msrb.mxu2 %v7239_v44  ;;  %7457 = vmatpush.msrb.mxu3 %v7273_v7 }
 0x6c5   : > { %v7271_v45 = vld [vmem:[%s12420_s3 + $0x7d0] sm:$0xff]  ;;  %v7269_v13 = vld [vmem:[%s12420_s3 + $0x7c0] sm:$0xff]  ;;  %7398 = vmatpush.msrb.mxu0 %v7175_v46  ;;  %7419 = vmatpush.msrb.mxu1 %v7205_v38 }
 0x6c6   : > { %v7203_v58 = vld [vmem:[%s12420_s3 + $0x5b0] sm:$0xff]  ;;  %v7201_v59 = vld [vmem:[%s12420_s3 + $0x5a0] sm:$0xff]  ;;  %7439 = vmatpush.msrb.mxu2 %v7237_v9  ;;  %7458 = vmatpush.msrb.mxu3 %v7271_v45  ;;  %v11743_v9 = vadd.f32 1.0, %v8007_v57 }
 0x6c7   : > { %v7235_v4 = vld [vmem:[%s12420_s3 + $0x6b0] sm:$0xff]  ;;  %v6933_v34 = vld [vmem:[%s12419_s2] sm:$0xff]  ;;  %7399 = vmatpush.msrb.mxu0 %v7173_v10  ;;  %7420 = vmatpush.msrb.mxu1 %v7203_v58 }
 0x6c8   : > { %v7171_v52 = vld [vmem:[%s12420_s3 + $0x4b0] sm:$0xff]  ;;  %v7233_v6 = vld [vmem:[%s12420_s3 + $0x6a0] sm:$0xff]  ;;  %v6937_v32 = vperm.slane %v6933_v34, 0  ;;  %v6938_v22 = vperm.slane %v6933_v34, 1  ;;  %v6939_v60 = vperm.slane %v6933_v34, 2  ;;  %v6940_v14 = vperm.slane %v6933_v34, 3  ;;  %7440 = vmatpush.msrb.mxu2 %v7235_v4  ;;  %7459 = vmatpush.msrb.mxu3 %v7269_v13 }
 0x6c9   : > { %v7267_v1 = vld [vmem:[%s12420_s3 + $0x7b0] sm:$0xff]  ;;  %v7169_v11 = vld [vmem:[%s12420_s3 + $0x4a0] sm:$0xff]  ;;  %v6941_v2 = vperm.slane %v6933_v34, 4  ;;  %v6942_v12 = vperm.slane %v6933_v34, 5  ;;  %v6943_v23 = vperm.slane %v6933_v34, 6  ;;  %v6944_v53 = vperm.slane %v6933_v34, 7  ;;  %7400 = vmatpush.msrb.mxu0 %v7171_v52  ;;  %7421 = vmatpush.msrb.mxu1 %v7201_v59 }
 0x6ca   : > { %v7199_v47 = vld [vmem:[%s12420_s3 + $0x590] sm:$0xff]  ;;  %v6947_v56 = vrot.slane %v6938_v22, 6  ;;  %v6948_v33 = vrot.slane %v6939_v60, 4  ;;  %v6949_v29 = vrot.slane %v6940_v14, 2  ;;  %v7265_v37 = vld [vmem:[%s12420_s3 + $0x7a0] sm:$0xff]  ;;  %7441 = vmatpush.msrb.mxu2 %v7233_v6  ;;  %7460 = vmatpush.msrb.mxu3 %v7267_v1  ;;  %vm7011_vm12 = vweird.f32 %v11743_v9 }
 0x6cb   : > { %v6950_v61 = vrot.slane %v6942_v12, 6  ;;  %v6951_v0 = vrot.slane %v6943_v23, 4  ;;  %v6952_v62 = vrot.slane %v6944_v53, 2  ;;  %v7231_v39 = vld [vmem:[%s12420_s3 + $0x690] sm:$0xff]  ;;  %v7197_v18 = vld [vmem:[%s12420_s3 + $0x580] sm:$0xff]  ;;  %7401 = vmatpush.msrb.mxu0 %v7169_v11  ;;  %7422 = vmatpush.msrb.mxu1 %v7199_v47 }
 0x6cc   : > { %v6953_v40 = vsel %vm6908_vm1, %v6937_v32, %v6947_v56  ;;  %v6954_v51 = vsel %vm6910_vm2, %v6948_v33, %v6949_v29  ;;  %v6931_v48 = vld [vmem:[#allocation2 + $0x8] sm:$0xff]  ;;  %v7229_v42 = vld [vmem:[%s12420_s3 + $0x680] sm:$0xff]  ;;  %7442 = vmatpush.msrb.mxu2 %v7231_v39  ;;  %7461 = vmatpush.msrb.mxu3 %v7265_v37 }
 0x6cd   : > { %v7167_v26 = vld [vmem:[%s12420_s3 + $0x490] sm:$0xff]  ;;  %v6955_v54 = vsel %vm6912_vm3, %v6953_v40, %v6954_v51  ;;  %v6956_v36 = vsel %vm6908_vm1, %v6941_v2, %v6950_v61  ;;  %v6957_v41 = vsel %vm6910_vm2, %v6951_v0, %v6952_v62  ;;  %v7165_v35 = vld [vmem:[%s12420_s3 + $0x480] sm:$0xff]  ;;  %7423 = vmatpush.msrb.mxu1 %v7197_v18  ;;  %vm7313_vm1 = vcmask 195584  }
 0x6ce   : > { %v7263_v43 = vld [vmem:[%s12420_s3 + $0x790] sm:$0xff]  ;;  %v6961_v8 = vadd.f32 %v6955_v54, %v6930_v5  ;;  %v6958_v25 = vsel %vm6912_vm3, %v6956_v36, %v6957_v41  ;;  %7402 = vmatpush.msrb.mxu0 %v7167_v26  ;;  %v7261_v15 = vld [vmem:[%s12420_s3 + $0x780] sm:$0xff]  ;;  %7443 = vmatpush.msrb.mxu2 %v7229_v42 }
 0x6cf   : > { %v7195_v27 = vld [vmem:[%s12420_s3 + $0x570] sm:$0xff]  ;;  %v6962_v50 = vadd.f32 %v6958_v25, %v6931_v48  ;;  %7462 = vmatpush.msrb.mxu3 %v7263_v43  ;;  %v7193_v21 = vld [vmem:[%s12420_s3 + $0x560] sm:$0xff] }
 0x6d0   : > { %v7227_v3 = vld [vmem:[%s12420_s3 + $0x670] sm:$0xff]  ;;  %v7918_v31 = vmul.f32 -1.442695, %v6961_v8  ;;  %7403 = vmatpush.msrb.mxu0 %v7165_v35  ;;  %7424 = vmatpush.msrb.mxu1 %v7195_v27  ;;  %v7225_v16 = vld [vmem:[%s12420_s3 + $0x660] sm:$0xff]  ;;  %v7017_v35 = vand.u32 2147483648, %v11743_v9 }
 0x6d1   : > { %v7163_v55 = vld [vmem:[%s12420_s3 + $0x470] sm:$0xff]  ;;  %v7919_v63 = vmul.f32 -1.442695, %v6962_v50  ;;  %7444 = vmatpush.msrb.mxu2 %v7227_v3  ;;  %7463 = vmatpush.msrb.mxu3 %v7261_v15  ;;  %v7161_v24 = vld [vmem:[%s12420_s3 + $0x460] sm:$0xff]  ;;  %v7015_v3 = vand.u32 2147483647, %v11743_v9 }
 0x6d2   : > { %v7259_v17 = vld [vmem:[%s12420_s3 + $0x770] sm:$0xff]  ;;  %8008 = vpow2.f32 %v7918_v31  ;;  %7404 = vmatpush.msrb.mxu0 %v7163_v55  ;;  %7425 = vmatpush.msrb.mxu1 %v7193_v21  ;;  %v7257_v7 = vld [vmem:[%s12420_s3 + $0x760] sm:$0xff]  ;;  %v7018_v55 = vor.u32 1.1754944e-38, %v7017_v35  ;;  %v7128_v35 = vld [vmem:[%s12420_s3 + $0x358] sm:$0xff] }
 0x6d3   : > { %v7191_v19 = vld [vmem:[%s12420_s3 + $0x550] sm:$0xff]  ;;  %8010 = vpow2.f32 %v7919_v63  ;;  %7445 = vmatpush.msrb.mxu2 %v7225_v16  ;;  %7464 = vmatpush.msrb.mxu3 %v7259_v17  ;;  %v7189_v38 = vld [vmem:[%s12420_s3 + $0x540] sm:$0xff]  ;;  %vm7016_vm0 = vcmp.eq.f32.partialorder %v7015_v3, 8.507059e+37  ;;  %v7084_v17 = vld [vmem:[%s12420_s3 + $0x1f8] sm:$0xff] }
 0x6d4   : > { %v7223_v44 = vld [vmem:[%s12420_s3 + $0x650] sm:$0xff]  ;;  %7405 = vmatpush.msrb.mxu0 %v7161_v24  ;;  %7426 = vmatpush.msrb.mxu1 %v7191_v19  ;;  %v7221_v45 = vld [vmem:[%s12420_s3 + $0x640] sm:$0xff]  ;;  %8012 = vrcp.f32 %v11743_v9  ;;  %v7116_v24 = vld [vmem:[%s12420_s3 + $0x2f8] sm:$0xff] }
 0x6d5   : > { %v7159_v46 = vld [vmem:[%s12420_s3 + $0x450] sm:$0xff]  ;;  %7446 = vmatpush.msrb.mxu2 %v7223_v44  ;;  %7465 = vmatpush.msrb.mxu3 %v7257_v7  ;;  %v7157_v58 = vld [vmem:[%s12420_s3 + $0x440] sm:$0xff]  ;;  %v7148_v19 = vld [vmem:[%s12420_s3 + $0x3f8] sm:$0xff] }
 0x6d6   : > { %v7255_v10 = vld [vmem:[%s12420_s3 + $0x750] sm:$0xff]  ;;  %7406 = vmatpush.msrb.mxu0 %v7159_v46  ;;  %7427 = vmatpush.msrb.mxu1 %v7189_v38  ;;  %v7253_v59 = vld [vmem:[%s12420_s3 + $0x740] sm:$0xff]  ;;  %v7092_v3 = vld [vmem:[%s12420_s3 + $0x238] sm:$0xff] }
 0x6d7   : > { %v7187_v4 = vld [vmem:[%s12420_s3 + $0x530] sm:$0xff]  ;;  %7447 = vmatpush.msrb.mxu2 %v7221_v45  ;;  %7466 = vmatpush.msrb.mxu3 %v7255_v10  ;;  %v7185_v32 = vld [vmem:[%s12420_s3 + $0x520] sm:$0xff]  ;;  %v7114_v45 = vld [vmem:[%s12420_s3 + $0x2e8] sm:$0xff] }
 0x6d8   : > { %v8009_v13 = vpop.eup %8008  ;;  %v7219_v52 = vld [vmem:[%s12420_s3 + $0x630] sm:$0xff]  ;;  %7407 = vmatpush.msrb.mxu0 %v7157_v58  ;;  %7428 = vmatpush.msrb.mxu1 %v7187_v4  ;;  %v7217_v22 = vld [vmem:[%s12420_s3 + $0x620] sm:$0xff]  ;;  %v7146_v10 = vld [vmem:[%s12420_s3 + $0x3e8] sm:$0xff] }
 0x6d9   : > { %v8011_v34 = vpop.eup %8010  ;;  %v6973_v30 = vadd.f32 1.0, %v8009_v13  ;;  %v7155_v6 = vld [vmem:[%s12420_s3 + $0x430] sm:$0xff]  ;;  %7448 = vmatpush.msrb.mxu2 %v7219_v52  ;;  %7467 = vmatpush.msrb.mxu3 %v7253_v59  ;;  %v7153_v28 = vld [vmem:[%s12420_s3 + $0x420] sm:$0xff]  ;;  %v7080_v4 = vld [vmem:[%s12420_s3 + $0x1d8] sm:$0xff] }
 0x6da   : > { %v7251_v60 = vld [vmem:[%s12420_s3 + $0x730] sm:$0xff]  ;;  %v6974_v14 = vadd.f32 1.0, %v8011_v34  ;;  %7408 = vmatpush.msrb.mxu0 %v7155_v6  ;;  %7429 = vmatpush.msrb.mxu1 %v7185_v32  ;;  %v7249_v2 = vld [vmem:[%s12420_s3 + $0x720] sm:$0xff]  ;;  %v11788_v12 = vpop.eup %8012  ;;  %v7112_v13 = vld [vmem:[%s12420_s3 + $0x2d8] sm:$0xff] }
 0x6db   : > { %8014 = vrcp.f32 %v6973_v30  ;;  %v7183_v1 = vld [vmem:[%s12420_s3 + $0x510] sm:$0xff]  ;;  %7449 = vmatpush.msrb.mxu2 %v7217_v22  ;;  %7468 = vmatpush.msrb.mxu3 %v7251_v60  ;;  %v7181_v53 = vld [vmem:[%s12420_s3 + $0x500] sm:$0xff]  ;;  %v7007_v33 = vmul.f32 %v11788_v12, %v11743_v9  ;;  %vm6981_vm5 = vweird.f32 %v6973_v30  ;;  %v6987_v62 = vand.u32 2147483648, %v6973_v30  ;;  %v7082_v9 = vld [vmem:[%s12420_s3 + $0x1e8] sm:$0xff] }
 0x6dc   : > { %v7215_v11 = vld [vmem:[%s12420_s3 + $0x610] sm:$0xff]  ;;  %8016 = vrcp.f32 %v6974_v14  ;;  %7409 = vmatpush.msrb.mxu0 %v7153_v28  ;;  %7430 = vmatpush.msrb.mxu1 %v7183_v1  ;;  %v7213_v47 = vld [vmem:[%s12420_s3 + $0x600] sm:$0xff]  ;;  %v6985_v51 = vand.u32 2147483647, %v6973_v30  ;;  %v7002_v20 = vand.u32 2147483648, %v6974_v14  ;;  %vm6996_vm7 = vweird.f32 %v6974_v14  ;;  %v7144_v52 = vld [vmem:[%s12420_s3 + $0x3d8] sm:$0xff] }
 0x6dd   : > { %v7151_v23 = vld [vmem:[%s12420_s3 + $0x410] sm:$0xff]  ;;  %7450 = vmatpush.msrb.mxu2 %v7215_v11  ;;  %7469 = vmatpush.msrb.mxu3 %v7249_v2  ;;  %v7149_v29 = vld [vmem:[%s12420_s3 + $0x400] sm:$0xff]  ;;  %v7008_v39 = vsub.f32 1.0, %v7007_v33  ;;  %v7000_v26 = vand.u32 2147483647, %v6974_v14  ;;  %v6988_v54 = vor.u32 1.1754944e-38, %v6987_v62  ;;  %vm7012_vm13 = vweird.f32 %v11788_v12 }
 0x6de   : > { %v7247_v56 = vld [vmem:[%s12420_s3 + $0x710] sm:$0xff]  ;;  %7410 = vmatpush.msrb.mxu0 %v7151_v23  ;;  %7431 = vmatpush.msrb.mxu1 %v7181_v53  ;;  %v7245_v49 = vld [vmem:[%s12420_s3 + $0x700] sm:$0xff]  ;;  %vm6986_vm10 = vcmp.eq.f32.partialorder %v6985_v51, 8.507059e+37  ;;  %v7003_v43 = vor.u32 1.1754944e-38, %v7002_v20  ;;  %vm7013_vm15 = vmor %vm7011_vm12, %vm7012_vm13 }
 0x6df   : > { %7451 = vmatpush.msrb.mxu2 %v7213_v47  ;;  %7470 = vmatpush.msrb.mxu3 %v7247_v56  ;;  %v7009_v36 = vmul.f32 %v11788_v12, %v7008_v39  ;;  %vm7001_vm14 = vcmp.eq.f32.partialorder %v7000_v26, 8.507059e+37  ;;  %v7281_v63 = vld [vmem:[%s12420_s3 + $0x820] sm:$0xff]  ;;  %v7279_v38 = vld [vmem:[%s12420_s3 + $0x810] sm:$0xff]  ;;  %v7052_v32 = vld [vmem:[%s12420_s3 + $0xf8] sm:$0xff] }
 0x6e0   : > { %7411 = vmatpush.msrb.mxu0 %v7149_v29  ;;  %v7277_v58 = vld [vmem:[%s12420_s3 + $0x800] sm:$0xff]  ;;  %v7078_v22 = vld [vmem:[%s12420_s3 + $0x1c8] sm:$0xff]  ;;  %v7076_v1 = vld [vmem:[%s12420_s3 + $0x1b8] sm:$0xff] }
 0x6e1   : > { %v8015_v5 = vpop.eup %8014  ;;  %7471 = vmatpush.msrb.mxu3 %v7245_v49  ;;  %v7010_v50 = vadd.f32 %v11788_v12, %v7009_v36  ;;  %v7110_v60 = vld [vmem:[%s12420_s3 + $0x2c8] sm:$0xff]  ;;  %v7108_v11 = vld [vmem:[%s12420_s3 + $0x2b8] sm:$0xff] }
 0x6e2   : > { %v8017_v61 = vpop.eup %8016  ;;  %v6977_v0 = vmul.f32 %v8015_v5, %v6973_v30  ;;  %vm6982_vm6 = vweird.f32 %v8015_v5  ;;  %v7050_v28 = vld [vmem:[%s12420_s3 + $0xe8] sm:$0xff]  ;;  %v7140_v2 = vld [vmem:[%s12420_s3 + $0x3b8] sm:$0xff] }
 0x6e3   : > { %v6992_v37 = vmul.f32 %v8017_v61, %v6974_v14  ;;  %vm6997_vm8 = vweird.f32 %v8017_v61  ;;  %vm6983_vm9 = vmor %vm6981_vm5, %vm6982_vm6  ;;  %v7014_v21 = vsel %vm7013_vm15, %v11788_v12, %v7010_v50  ;;  %v7142_v14 = vld [vmem:[%s12420_s3 + $0x3c8] sm:$0xff]  ;;  %v7048_v12 = vld [vmem:[%s12420_s3 + $0xd8] sm:$0xff] }
 0x6e4   : > { %v6978_v40 = vsub.f32 1.0, %v6977_v0  ;;  %vm6998_vm11 = vmor %vm6996_vm7, %vm6997_vm8  ;;  %v7019_v16 = vsel %vm7016_vm0, %v7018_v55, %v7014_v21  ;;  %v7074_v23 = vld [vmem:[%s12420_s3 + $0x1a8] sm:$0xff]  ;;  %v7072_v33 = vld [vmem:[%s12420_s3 + $0x198] sm:$0xff] }
 0x6e5   : > { %v6993_v48 = vsub.f32 1.0, %v6992_v37  ;;  %v7106_v53 = vld [vmem:[%s12420_s3 + $0x2a8] sm:$0xff]  ;;  %v7104_v49 = vld [vmem:[%s12420_s3 + $0x298] sm:$0xff] }
 0x6e6   : > { %v6979_v18 = vmul.f32 %v8015_v5, %v6978_v40  ;;  %v7138_v47 = vld [vmem:[%s12420_s3 + $0x3a8] sm:$0xff]  ;;  %v7136_v62 = vld [vmem:[%s12420_s3 + $0x398] sm:$0xff] }
 0x6e7   : > { %v6994_v41 = vmul.f32 %v8017_v61, %v6993_v48  ;;  %v7046_v56 = vld [vmem:[%s12420_s3 + $0xc8] sm:$0xff]  ;;  %v7068_v37 = vld [vmem:[%s12420_s3 + $0x178] sm:$0xff] }
 0x6e8   : > { %v6980_v42 = vadd.f32 %v8015_v5, %v6979_v18  ;;  %v7102_v0 = vld [vmem:[%s12420_s3 + $0x288] sm:$0xff]  ;;  %v7100_v40 = vld [vmem:[%s12420_s3 + $0x278] sm:$0xff] }
 0x6e9   : > { %v6995_v8 = vadd.f32 %v8017_v61, %v6994_v41  ;;  %v7042_v39 = vld [vmem:[%s12420_s3 + $0xa8] sm:$0xff]  ;;  %v7040_v20 = vld [vmem:[%s12420_s3 + $0x98] sm:$0xff] }
 0x6ea   : > { %v6984_v25 = vsel %vm6983_vm9, %v8015_v5, %v6980_v42  ;;  %v7044_v5 = vld [vmem:[%s12420_s3 + $0xb8] sm:$0xff]  ;;  %v7134_v51 = vld [vmem:[%s12420_s3 + $0x388] sm:$0xff] }
 0x6eb   : > { %v6989_v27 = vsel %vm6986_vm10, %v6988_v54, %v6984_v25  ;;  %v6999_v15 = vsel %vm6998_vm11, %v8017_v61, %v6995_v8  ;;  %v7070_v61 = vld [vmem:[%s12420_s3 + $0x188] sm:$0xff]  ;;  %v7132_v18 = vld [vmem:[%s12420_s3 + $0x378] sm:$0xff] }
 0x6ec   : > { %7292 = vst [vmem:[#allocation1] ss:$4 sm:$0xff] %v6989_v27  ;;  %v7004_v31 = vsel %vm7001_vm14, %v7003_v43, %v6999_v15  ;;  %v7066_v48 = vld [vmem:[%s12420_s3 + $0x168] sm:$0xff]  ;;  %v7064_v36 = vld [vmem:[%s12420_s3 + $0x158] sm:$0xff] }
 0x6ed   : > { %7294 = vst [vmem:[#allocation1 + $0x20] ss:$4 sm:$0xff] %v7004_v31  ;;  %v7098_v26 = vld [vmem:[%s12420_s3 + $0x268] sm:$0xff]  ;;  %v7096_v41 = vld [vmem:[%s12420_s3 + $0x258] sm:$0xff] }
 0x6ee   : > { %v7038_v54 = vld [vmem:[%s12420_s3 + $0x88] sm:$0xff]  ;;  %v7036_v43 = vld [vmem:[%s12420_s3 + $0x78] sm:$0xff] }
 0x6ef   : > { %v7130_v42 = vld [vmem:[%s12420_s3 + $0x368] sm:$0xff]  ;;  %v7060_v50 = vld [vmem:[%s12420_s3 + $0x138] sm:$0xff] }
 0x6f0   : > { %v7062_v8 = vld [vmem:[%s12420_s3 + $0x148] sm:$0xff]  ;;  %v7032_v31 = vld [vmem:[%s12420_s3 + $0x58] sm:$0xff] }
 0x6f1   : > { %v7094_v25 = vld [vmem:[%s12420_s3 + $0x248] sm:$0xff] }
 0x6f2   : > { %v7034_v27 = vld [vmem:[%s12420_s3 + $0x68] sm:$0xff] }
 0x6f3   : > { %v11829_v57 = vld.sshfl [vmem:[#allocation1 + $0x10] sm:$0xff pattern:$0x73625140]  ;;  %v11831_v44 = vld.sshfl [vmem:[#allocation1] sm:$0xff pattern:$0x73625140] }
 0x6f4   : > { %7372 = vmatmul.f32.vlgmr.msra.gmra.mxu2 %v11829_v57  ;;  %7332 = vmatmul.f32.vlgmr.msra.gmra.mxu0 %v11831_v44  ;;  %v11835_v7 = vld.sshfl [vmem:[#allocation1 + $0x8] sm:$0xff pattern:$0x73625140]  ;;  %v11837_v46 = vld.sshfl [vmem:[#allocation1 + $0x18] sm:$0xff pattern:$0x73625140] }
 0x6f5   : > { %7352 = vmatmul.f32.vlgmr.msra.gmra.mxu1 %v11835_v7  ;;  %7303 = vst [vmem:[#allocation1] ss:$4 sm:$0xff] %v7019_v16  ;;  %7392 = vmatmul.f32.vlgmr.msra.gmra.mxu3 %v11837_v46  ;;  %v11865_v59 = vld.sshfl [vmem:[#allocation1 + $0x30] sm:$0xff pattern:$0x73625140]  ;;  %v7126_v15 = vld [vmem:[%s12420_s3 + $0x348] sm:$0xff] }
 0x6f6   : > { %7489 = vmatpush.msra.mxu1 %v7281_v63  ;;  %7516 = vmatpush.msra.mxu2 %v7084_v17  ;;  %v11867_v34 = vld.sshfl [vmem:[#allocation1 + $0x20] sm:$0xff pattern:$0x73625140]  ;;  %v11869_v30 = vld.sshfl [vmem:[#allocation1 + $0x28] sm:$0xff pattern:$0x73625140] }
 0x6f7   : > { %7536 = vmatpush.msra.mxu3 %v7116_v24  ;;  %7556 = vmatpush.msra.mxu0 %v7148_v19  ;;  %v11871_v6 = vld.sshfl [vmem:[#allocation1 + $0x38] sm:$0xff pattern:$0x73625140]  ;;  %v7058_v55 = vld [vmem:[%s12420_s3 + $0x128] sm:$0xff] }
 0x6f8   : > { %7490 = vmatpush.msra.mxu1 %v7279_v38  ;;  %7517 = vmatpush.msra.mxu2 %v7082_v9  ;;  %v7090_v21 = vld [vmem:[%s12420_s3 + $0x228] sm:$0xff]  ;;  %v7124_v63 = vld [vmem:[%s12420_s3 + $0x338] sm:$0xff] }
 0x6f9   : > { %7537 = vmatpush.msra.mxu3 %v7114_v45  ;;  %7557 = vmatpush.msra.mxu0 %v7146_v10  ;;  %v7030_v16 = vld [vmem:[%s12420_s3 + $0x48] sm:$0xff]  ;;  %v7056_v17 = vld [vmem:[%s12420_s3 + $0x118] sm:$0xff] }
 0x6fa   : > { %7491 = vmatpush.msra.mxu1 %v7277_v58  ;;  %7518 = vmatpush.msra.mxu2 %v7080_v4  ;;  %v7088_v24 = vld [vmem:[%s12420_s3 + $0x218] sm:$0xff]  ;;  %v7122_v19 = vld [vmem:[%s12420_s3 + $0x328] sm:$0xff] }
 0x6fb   : > { %7538 = vmatpush.msra.mxu3 %v7112_v13  ;;  %7558 = vmatpush.msra.mxu0 %v7144_v52  ;;  %v7028_v38 = vld [vmem:[%s12420_s3 + $0x38] sm:$0xff]  ;;  %v7054_v9 = vld [vmem:[%s12420_s3 + $0x108] sm:$0xff] }
 0x6fc   : > { %7452 = vmatmul.f32.vlgmr.msrb.gmra.mxu2 %v11865_v59  ;;  %7412 = vmatmul.f32.vlgmr.msrb.gmra.mxu0 %v11867_v34  ;;  %v11919_v29 = vld.sshfl [vmem:[#allocation1] sm:$0xff pattern:$0x73625140]  ;;  %v7212_v45 = vld [vmem:[%s12420_s3 + $0x5f8] sm:$0xff]  ;;  %v7086_v10 = vld [vmem:[%s12420_s3 + $0x208] sm:$0xff] }
 0x6fd   : > { %7432 = vmatmul.f32.vlgmr.msrb.gmra.mxu1 %v11869_v30  ;;  %7472 = vmatmul.f32.vlgmr.msrb.gmra.mxu3 %v11871_v6  ;;  %v7026_v58 = vld [vmem:[%s12420_s3 + $0x28] sm:$0xff]  ;;  %v7244_v4 = vld [vmem:[%s12420_s3 + $0x6f8] sm:$0xff] }
 0x6fe   : > { %7496 = vmatpush.msrb.mxu1 %v7052_v32  ;;  %7519 = vmatpush.msra.mxu2 %v7078_v22  ;;  %v7210_v13 = vld [vmem:[%s12420_s3 + $0x5e8] sm:$0xff]  ;;  %v7120_v52 = vld [vmem:[%s12420_s3 + $0x318] sm:$0xff] }
 0x6ff   : > { %7539 = vmatpush.msra.mxu3 %v7110_v60  ;;  %7559 = vmatpush.msra.mxu0 %v7142_v14  ;;  %v7024_v32 = vld [vmem:[%s12420_s3 + $0x18] sm:$0xff]  ;;  %v7242_v22 = vld [vmem:[%s12420_s3 + $0x6e8] sm:$0xff] }
 0x700   : > { %7497 = vmatpush.msrb.mxu1 %v7050_v28  ;;  %7520 = vmatpush.msra.mxu2 %v7076_v1  ;;  %v7208_v60 = vld [vmem:[%s12420_s3 + $0x5d8] sm:$0xff]  ;;  %v7118_v14 = vld [vmem:[%s12420_s3 + $0x308] sm:$0xff] }
 0x701   : > { %7540 = vmatpush.msra.mxu3 %v7108_v11  ;;  %7560 = vmatpush.msra.mxu0 %v7140_v2  ;;  %v7022_v28 = vld [vmem:[%s12420_s3 + $0x8] sm:$0xff]  ;;  %v7240_v1 = vld [vmem:[%s12420_s3 + $0x6d8] sm:$0xff] }
 0x702   : > { %7498 = vmatpush.msrb.mxu1 %v7048_v12  ;;  %7521 = vmatpush.msra.mxu2 %v7074_v23  ;;  %v7180_v11 = vld [vmem:[%s12420_s3 + $0x4f8] sm:$0xff]  ;;  %v7206_v2 = vld [vmem:[%s12420_s3 + $0x5c8] sm:$0xff] }
 0x703   : > { %7541 = vmatpush.msra.mxu3 %v7106_v53  ;;  %7561 = vmatpush.msra.mxu0 %v7138_v47  ;;  %v7238_v12 = vld [vmem:[%s12420_s3 + $0x6c8] sm:$0xff]  ;;  %v7276_v23 = vld [vmem:[%s12420_s3 + $0x7f8] sm:$0xff] }
 0x704   : > { %7499 = vmatpush.msrb.mxu1 %v7046_v56  ;;  %7522 = vmatpush.msra.mxu2 %v7072_v33  ;;  %v7178_v53 = vld [vmem:[%s12420_s3 + $0x4e8] sm:$0xff]  ;;  %v7204_v47 = vld [vmem:[%s12420_s3 + $0x5b8] sm:$0xff] }
 0x705   : > { %7921 = vmatmul.msk.f32.vlgmr.msra.gmra.mxu1 %vm7313_vm1, %v11919_v29  ;;  %7542 = vmatpush.msra.mxu3 %v7104_v49  ;;  %v7236_v56 = vld [vmem:[%s12420_s3 + $0x6b8] sm:$0xff]  ;;  %v7274_v33 = vld [vmem:[%s12420_s3 + $0x7e8] sm:$0xff] }
 0x706   : > { %7500 = vmatpush.msrb.mxu1 %v7044_v5  ;;  %7523 = vmatpush.msra.mxu2 %v7070_v61  ;;  %v7176_v49 = vld [vmem:[%s12420_s3 + $0x4d8] sm:$0xff]  ;;  %v7202_v5 = vld [vmem:[%s12420_s3 + $0x5a8] sm:$0xff] }
 0x707   : > { %7543 = vmatpush.msra.mxu3 %v7102_v0  ;;  %7562 = vmatpush.msra.mxu0 %v7136_v62  ;;  %v7234_v61 = vld [vmem:[%s12420_s3 + $0x6a8] sm:$0xff]  ;;  %v7272_v0 = vld [vmem:[%s12420_s3 + $0x7d8] sm:$0xff] }
 0x708   : > { %7501 = vmatpush.msrb.mxu1 %v7042_v39  ;;  %7524 = vmatpush.msra.mxu2 %v7068_v37  ;;  %v7174_v62 = vld [vmem:[%s12420_s3 + $0x4c8] sm:$0xff]  ;;  %v7200_v39 = vld [vmem:[%s12420_s3 + $0x598] sm:$0xff] }
 0x709   : > { %7544 = vmatpush.msra.mxu3 %v7100_v40  ;;  %7563 = vmatpush.msra.mxu0 %v7134_v51  ;;  %v7232_v37 = vld [vmem:[%s12420_s3 + $0x698] sm:$0xff]  ;;  %v7270_v40 = vld [vmem:[%s12420_s3 + $0x7c8] sm:$0xff] }
 0x70a   : > { %7502 = vmatpush.msrb.mxu1 %v7040_v20  ;;  %7525 = vmatpush.msra.mxu2 %v7066_v48  ;;  %v7172_v51 = vld [vmem:[%s12420_s3 + $0x4b8] sm:$0xff]  ;;  %v7198_v20 = vld [vmem:[%s12420_s3 + $0x588] sm:$0xff] }
 0x70b   : > { %7545 = vmatpush.msra.mxu3 %v7098_v26  ;;  %7564 = vmatpush.msra.mxu0 %v7132_v18  ;;  %v7230_v48 = vld [vmem:[%s12420_s3 + $0x688] sm:$0xff]  ;;  %v7268_v26 = vld [vmem:[%s12420_s3 + $0x7b8] sm:$0xff] }
 0x70c   : > { %7503 = vmatpush.msrb.mxu1 %v7038_v54  ;;  %7526 = vmatpush.msra.mxu2 %v7064_v36  ;;  %v7170_v18 = vld [vmem:[%s12420_s3 + $0x4a8] sm:$0xff]  ;;  %v7196_v54 = vld [vmem:[%s12420_s3 + $0x578] sm:$0xff] }
 0x70d   : > { %7546 = vmatpush.msra.mxu3 %v7096_v41  ;;  %7565 = vmatpush.msra.mxu0 %v7130_v42  ;;  %v7228_v36 = vld [vmem:[%s12420_s3 + $0x678] sm:$0xff]  ;;  %v7266_v41 = vld [vmem:[%s12420_s3 + $0x7a8] sm:$0xff] }
 0x70e   : > { %7504 = vmatpush.msrb.mxu1 %v7036_v43  ;;  %7527 = vmatpush.msra.mxu2 %v7062_v8  ;;  %v7168_v42 = vld [vmem:[%s12420_s3 + $0x498] sm:$0xff]  ;;  %v7194_v43 = vld [vmem:[%s12420_s3 + $0x568] sm:$0xff] }
 0x70f   : > { %7547 = vmatpush.msra.mxu3 %v7094_v25  ;;  %7566 = vmatpush.msra.mxu0 %v7128_v35  ;;  %v7226_v8 = vld [vmem:[%s12420_s3 + $0x668] sm:$0xff]  ;;  %v7264_v25 = vld [vmem:[%s12420_s3 + $0x798] sm:$0xff] }
 0x710   : > { %7505 = vmatpush.msrb.mxu1 %v7034_v27  ;;  %7528 = vmatpush.msra.mxu2 %v7060_v50  ;;  %v7166_v35 = vld [vmem:[%s12420_s3 + $0x488] sm:$0xff]  ;;  %v7192_v27 = vld [vmem:[%s12420_s3 + $0x558] sm:$0xff] }
 0x711   : > { %7548 = vmatpush.msra.mxu3 %v7092_v3  ;;  %7567 = vmatpush.msra.mxu0 %v7126_v15  ;;  %v7224_v50 = vld [vmem:[%s12420_s3 + $0x658] sm:$0xff]  ;;  %v7190_v15 = vld [vmem:[%s12420_s3 + $0x548] sm:$0xff] }
 0x712   : > { %7506 = vmatpush.msrb.mxu1 %v7032_v31  ;;  %7529 = vmatpush.msra.mxu2 %v7058_v55  ;;  %v7164_v3 = vld [vmem:[%s12420_s3 + $0x478] sm:$0xff]  ;;  %v7222_v31 = vld [vmem:[%s12420_s3 + $0x648] sm:$0xff] }
 0x713   : > { %7549 = vmatpush.msra.mxu3 %v7090_v21  ;;  %7568 = vmatpush.msra.mxu0 %v7124_v63  ;;  %v7262_v55 = vld [vmem:[%s12420_s3 + $0x788] sm:$0xff]  ;;  %v7188_v63 = vld [vmem:[%s12420_s3 + $0x538] sm:$0xff] }
 0x714   : > { %7507 = vmatpush.msrb.mxu1 %v7030_v16  ;;  %7530 = vmatpush.msra.mxu2 %v7056_v17  ;;  %v7162_v21 = vld [vmem:[%s12420_s3 + $0x468] sm:$0xff]  ;;  %v7260_v16 = vld [vmem:[%s12420_s3 + $0x778] sm:$0xff] }
 0x715   : > { %7550 = vmatpush.msra.mxu3 %v7088_v24  ;;  %7569 = vmatpush.msra.mxu0 %v7122_v19  ;;  %v7160_v17 = vld [vmem:[%s12420_s3 + $0x458] sm:$0xff]  ;;  %v7158_v19 = vld [vmem:[%s12420_s3 + $0x448] sm:$0xff] }
 0x716   : > { %7508 = vmatpush.msrb.mxu1 %v7028_v38  ;;  %7531 = vmatpush.msra.mxu2 %v7054_v9  ;;  %v7220_v24 = vld [vmem:[%s12420_s3 + $0x638] sm:$0xff]  ;;  %v7218_v9 = vld [vmem:[%s12420_s3 + $0x628] sm:$0xff] }
 0x717   : > { %7551 = vmatpush.msra.mxu3 %v7086_v10  ;;  %7570 = vmatpush.msra.mxu0 %v7120_v52  ;;  %v7184_v38 = vld [vmem:[%s12420_s3 + $0x518] sm:$0xff]  ;;  %v7182_v10 = vld [vmem:[%s12420_s3 + $0x508] sm:$0xff] }
 0x718   : > { %7596 = vmatpush.msrb.mxu2 %v7212_v45  ;;  %7509 = vmatpush.msrb.mxu1 %v7026_v58  ;;  %v7258_v45 = vld [vmem:[%s12420_s3 + $0x768] sm:$0xff]  ;;  %v7216_v58 = vld [vmem:[%s12420_s3 + $0x618] sm:$0xff] }
 0x719   : > { %7616 = vmatpush.msrb.mxu3 %v7244_v4  ;;  %7571 = vmatpush.msra.mxu0 %v7118_v14  ;;  %v7256_v4 = vld [vmem:[%s12420_s3 + $0x758] sm:$0xff]  ;;  %v7254_v52 = vld [vmem:[%s12420_s3 + $0x748] sm:$0xff] }
 0x71a   : > { %7597 = vmatpush.msrb.mxu2 %v7210_v13  ;;  %7510 = vmatpush.msrb.mxu1 %v7024_v32  ;;  %v7214_v13 = vld [vmem:[%s12420_s3 + $0x608] sm:$0xff]  ;;  %v7152_v32 = vld [vmem:[%s12420_s3 + $0x418] sm:$0xff] }
 0x71b   : > { %7617 = vmatpush.msrb.mxu3 %v7242_v22  ;;  %7636 = vmatpush.msrb.mxu0 %v7276_v23  ;;  %v7252_v22 = vld [vmem:[%s12420_s3 + $0x738] sm:$0xff]  ;;  %v7250_v14 = vld [vmem:[%s12420_s3 + $0x728] sm:$0xff]  ;;  %v7724_v23 = vld [vmem:[%s12422_s5 + $0x50] sm:$0xff] }
 0x71c   : > { %7598 = vmatpush.msrb.mxu2 %v7208_v60  ;;  %7511 = vmatpush.msrb.mxu1 %v7022_v28  ;;  %v7150_v60 = vld [vmem:[%s12420_s3 + $0x408] sm:$0xff]  ;;  %v7248_v28 = vld [vmem:[%s12420_s3 + $0x718] sm:$0xff] }
 0x71d   : > { %7618 = vmatpush.msrb.mxu3 %v7240_v1  ;;  %7637 = vmatpush.msrb.mxu0 %v7274_v33  ;;  %v7278_v1 = vld [vmem:[%s12420_s3 + $0x808] sm:$0xff] }
 0x71e   : > { %7576 = vmatpush.msra.mxu1 %v7180_v11  ;;  %7599 = vmatpush.msrb.mxu2 %v7206_v2  ;;  %v7728_v11 = vld [vmem:[%s12422_s5 + $0x70] sm:$0xff]  ;;  %v7727_v2 = vld [vmem:[%s12422_s5 + $0x68] sm:$0xff] }
 0x71f   : > { %7619 = vmatpush.msrb.mxu3 %v7238_v12  ;;  %7638 = vmatpush.msrb.mxu0 %v7272_v0  ;;  %v12275_v12 = vld [vmem:[%s12421_s4] sm:$0x3]  ;;  %v7720_v0 = vld [vmem:[%s12422_s5 + $0x30] sm:$0xff] }
 0x720   : > { %7577 = vmatpush.msra.mxu1 %v7178_v53  ;;  %7600 = vmatpush.msrb.mxu2 %v7204_v47  ;;  %v7285_v53 = vperm.slane %v12275_v12, 0  ;;  %v7723_v47 = vld [vmem:[%s12422_s5 + $0x48] sm:$0xff] }
 0x721   : > { %7620 = vmatpush.msrb.mxu3 %v7236_v56  ;;  %7639 = vmatpush.msrb.mxu0 %v7270_v40  ;;  %v7722_v56 = vld [vmem:[%s12422_s5 + $0x40] sm:$0xff] }
 0x722   : > { %7578 = vmatpush.msra.mxu1 %v7176_v49  ;;  %7601 = vmatpush.msrb.mxu2 %v7202_v5  ;;  %v7721_v49 = vld [vmem:[%s12422_s5 + $0x38] sm:$0xff] }
 0x723   : > { %7621 = vmatpush.msrb.mxu3 %v7234_v61  ;;  %7640 = vmatpush.msrb.mxu0 %v7268_v26 }
 0x724   : > { %7579 = vmatpush.msra.mxu1 %v7174_v62  ;;  %7602 = vmatpush.msrb.mxu2 %v7200_v39  ;;  %v7719_v39 = vld [vmem:[%s12422_s5 + $0x28] sm:$0xff] }
 0x725   : > { %7622 = vmatpush.msrb.mxu3 %v7232_v37  ;;  %7641 = vmatpush.msrb.mxu0 %v7266_v41  ;;  %v7718_v37 = vld [vmem:[%s12422_s5 + $0x20] sm:$0xff] }
 0x726   : > { %7580 = vmatpush.msra.mxu1 %v7172_v51  ;;  %7603 = vmatpush.msrb.mxu2 %v7198_v20 }
 0x727   : > { %7623 = vmatpush.msrb.mxu3 %v7230_v48  ;;  %7642 = vmatpush.msrb.mxu0 %v7264_v25  ;;  %v7717_v48 = vld [vmem:[%s12422_s5 + $0x18] sm:$0xff] }
 0x728   : > { %7581 = vmatpush.msra.mxu1 %v7170_v18  ;;  %7604 = vmatpush.msrb.mxu2 %v7196_v54 }
 0x729   : > { %7624 = vmatpush.msrb.mxu3 %v7228_v36  ;;  %7532 = vmatmul.f32.vlgmr.msra.gmra.mxu2 %v11835_v7  ;;  %v7186_v7 = vld [vmem:[%s12420_s3 + $0x528] sm:$0xff]  ;;  %v7716_v36 = vld [vmem:[%s12422_s5 + $0x10] sm:$0xff] }
 0x72a   : > { %7582 = vmatpush.msra.mxu1 %v7168_v42  ;;  %7605 = vmatpush.msrb.mxu2 %v7194_v43  ;;  %v7715_v42 = vld [vmem:[%s12422_s5 + $0x8] sm:$0xff] }
 0x72b   : > { %7625 = vmatpush.msrb.mxu3 %v7226_v8  ;;  %7643 = vmatpush.msrb.mxu0 %v7262_v55  ;;  %v7714_v8 = vld [vmem:[%s12422_s5] sm:$0xff] }
 0x72c   : > { %7583 = vmatpush.msra.mxu1 %v7166_v35  ;;  %7606 = vmatpush.msrb.mxu2 %v7192_v27 }
 0x72d   : > { %7626 = vmatpush.msrb.mxu3 %v7224_v50  ;;  %7644 = vmatpush.msrb.mxu0 %v7260_v16 }
 0x72e   : > { %7584 = vmatpush.msra.mxu1 %v7164_v3  ;;  %7607 = vmatpush.msrb.mxu2 %v7190_v15 }
 0x72f   : > { %7627 = vmatpush.msrb.mxu3 %v7222_v31  ;;  %7512 = vmatmul.f32.vlgmr.msrb.gmra.mxu1 %v11831_v44  ;;  %v7154_v44 = vld [vmem:[%s12420_s3 + $0x428] sm:$0xff] }
 0x730   : > { %7585 = vmatpush.msra.mxu1 %v7162_v21  ;;  %7608 = vmatpush.msrb.mxu2 %v7188_v63 }
 0x731   : > { %7552 = vmatmul.f32.vlgmr.msra.gmra.mxu3 %v11829_v57  ;;  %v7156_v57 = vld [vmem:[%s12420_s3 + $0x438] sm:$0xff]  ;;  %7645 = vmatpush.msrb.mxu0 %v7258_v45 }
 0x732   : > { %7586 = vmatpush.msra.mxu1 %v7160_v17  ;;  %7609 = vmatpush.msrb.mxu2 %v7186_v7 }
 0x733   : > { %7628 = vmatpush.msrb.mxu3 %v7220_v24  ;;  %7646 = vmatpush.msrb.mxu0 %v7256_v4  ;;  %v7743_v4 = vld [vmem:[%s12422_s5 + $0xe8] sm:$0xff] }
 0x734   : > { %7587 = vmatpush.msra.mxu1 %v7158_v19  ;;  %7610 = vmatpush.msrb.mxu2 %v7184_v38 }
 0x735   : > { %7629 = vmatpush.msrb.mxu3 %v7218_v9  ;;  %7647 = vmatpush.msrb.mxu0 %v7254_v52  ;;  %v7286_v52 = vperm.slane %v12275_v12, 1  ;;  %v7734_v12 = vld [vmem:[%s12422_s5 + $0xa0] sm:$0xff] }
 0x736   : > { %7588 = vmatpush.msra.mxu1 %v7156_v57  ;;  %7611 = vmatpush.msrb.mxu2 %v7182_v10  ;;  %v7745_v10 = vld [vmem:[%s12422_s5 + $0xf8] sm:$0xff] }
 0x737   : > { %7630 = vmatpush.msrb.mxu3 %v7216_v58  ;;  %7612 = vmatmul.f32.vlgmr.msrb.gmra.mxu2 %v11869_v30  ;;  %v7282_v30 = vld [vmem:[%s12420_s3 + $0x828] sm:$0xff]  ;;  %v7744_v58 = vld [vmem:[%s12422_s5 + $0xf0] sm:$0xff] }
 0x738   : > { %7589 = vmatpush.msra.mxu1 %v7154_v44  ;;  %7572 = vmatmul.f32.vlgmr.msra.gmra.mxu0 %v11837_v46  ;;  %v7280_v46 = vld [vmem:[%s12420_s3 + $0x818] sm:$0xff]  ;;  %v7742_v44 = vld [vmem:[%s12422_s5 + $0xe0] sm:$0xff] }
 0x739   : > { %7631 = vmatpush.msrb.mxu3 %v7214_v13  ;;  %7648 = vmatpush.msrb.mxu0 %v7252_v22  ;;  %v7741_v13 = vld [vmem:[%s12422_s5 + $0xd8] sm:$0xff] }
 0x73a   : > { %7590 = vmatpush.msra.mxu1 %v7152_v32  ;;  %7632 = vmatmul.f32.vlgmr.msrb.gmra.mxu3 %v11865_v59  ;;  %v7246_v59 = vld [vmem:[%s12420_s3 + $0x708] sm:$0xff]  ;;  %v7740_v32 = vld [vmem:[%s12422_s5 + $0xd0] sm:$0xff] }
 0x73b   : > { %7649 = vmatpush.msrb.mxu0 %v7250_v14  ;;  %7770 = vmatpush.msra.mxu3 %v7745_v10  ;;  %v7739_v14 = vld [vmem:[%s12422_s5 + $0xc8] sm:$0xff] }
 0x73c   : > { %7591 = vmatpush.msra.mxu1 %v7150_v60  ;;  %v7810_v10 = vld [vmem:[%s12424_s7 + $0x8] sm:$0xff] }
 0x73d   : > { %7592 = vmatmul.f32.vlgmr.msra.gmra.mxu1 %v11867_v34  ;;  %7650 = vmatpush.msrb.mxu0 %v7248_v28  ;;  %v7729_v34 = vld [vmem:[%s12422_s5 + $0x78] sm:$0xff] }
 0x73e   : > { %7669 = vmatpush.msrb.mxu1 %v7282_v30  ;;  %7750 = vmatpush.msra.mxu2 %v7729_v34  ;;  %v7738_v30 = vld [vmem:[%s12422_s5 + $0xc0] sm:$0xff]  ;;  %v7736_v34 = vld [vmem:[%s12422_s5 + $0xb0] sm:$0xff] }
 0x73f   : > { %7651 = vmatpush.msrb.mxu0 %v7246_v59  ;;  %7771 = vmatpush.msra.mxu3 %v7744_v58  ;;  %v7809_v58 = vld [vmem:[%s12424_s7] sm:$0xff] }
 0x740   : > { %7670 = vmatpush.msrb.mxu1 %v7280_v46  ;;  %7652 = vmatmul.f32.vlgmr.msrb.gmra.mxu0 %v11871_v6  ;;  %v7726_v6 = vld [vmem:[%s12422_s5 + $0x60] sm:$0xff]  ;;  %v7737_v46 = vld [vmem:[%s12422_s5 + $0xb8] sm:$0xff] }
 0x741   : > { %7751 = vmatpush.msra.mxu2 %v7728_v11  ;;  %7772 = vmatpush.msra.mxu3 %v7743_v4 }
 0x742   : > { %7671 = vmatpush.msrb.mxu1 %v7278_v1 }
 0x743   : > { %7752 = vmatpush.msra.mxu2 %v7727_v2  ;;  %7773 = vmatpush.msra.mxu3 %v7742_v44  ;;  %v7735_v2 = vld [vmem:[%s12422_s5 + $0xa8] sm:$0xff] }
 0x745   : > { %7922 = vmatmul.msk.f32.vlgmr.msrb.gmra.mxu1 %vm7313_vm1, %v11919_v29  ;;  %7753 = vmatpush.msra.mxu2 %v7726_v6  ;;  %v7725_v29 = vld [vmem:[%s12422_s5 + $0x58] sm:$0xff]  ;;  %vm7868_vm1 = vcmask 1024  }
 0x746   : > { %7774 = vmatpush.msra.mxu3 %v7741_v13 }
 0x747   : > { %7754 = vmatpush.msra.mxu2 %v7725_v29 }
 0x748   : > { %7775 = vmatpush.msra.mxu3 %v7740_v32 }
 0x749   : > { %7755 = vmatpush.msra.mxu2 %v7724_v23 }
 0x74a   : > { %7776 = vmatpush.msra.mxu3 %v7739_v14 }
 0x74b   : > { %7756 = vmatpush.msra.mxu2 %v7723_v47 }
 0x74c   : > { %7777 = vmatpush.msra.mxu3 %v7738_v30 }
 0x74d   : > { %7757 = vmatpush.msra.mxu2 %v7722_v56 }
 0x74e   : > { %7778 = vmatpush.msra.mxu3 %v7737_v46 }
 0x74f   : > { %7758 = vmatpush.msra.mxu2 %v7721_v49 }
 0x750   : > { %7779 = vmatpush.msra.mxu3 %v7736_v34 }
 0x751   : > { %7759 = vmatpush.msra.mxu2 %v7720_v0 }
 0x752   : > { %7780 = vmatpush.msra.mxu3 %v7735_v2 }
 0x753   : > { %7760 = vmatpush.msra.mxu2 %v7719_v39  ;;  %v7730_v39 = vld [vmem:[%s12422_s5 + $0x80] sm:$0xff] }
 0x754   : > { %7781 = vmatpush.msra.mxu3 %v7734_v12 }
 0x755   : > { %7761 = vmatpush.msra.mxu2 %v7718_v37 }
 0x757   : > { %7762 = vmatpush.msra.mxu2 %v7717_v48 }
 0x759   : > { %7763 = vmatpush.msra.mxu2 %v7716_v36 }
 0x75b   : > { %7764 = vmatpush.msra.mxu2 %v7715_v42 }
 0x75d   : > { %7765 = vmatpush.msra.mxu2 %v7714_v8 }
 0x771   : > { %v7333_v33 = vpop.f32.mrf.mxu0 }
 0x772   : > { %v7334_v5 = vadd.f32 %v7333_v33, %v7285_v53  ;;  %v7353_v61 = vpop.f32.mrf.mxu1  ;;  %v7733_v53 = vld [vmem:[%s12422_s5 + $0x98] sm:$0xff]  ;;  %v7732_v33 = vld [vmem:[%s12422_s5 + $0x90] sm:$0xff] }
 0x773   : > { %7782 = vmatpush.msra.mxu3 %v7733_v53 }
 0x774   : > { %v7354_v62 = vadd.f32 %v7353_v61, %v7334_v5  ;;  %v7731_v61 = vld [vmem:[%s12422_s5 + $0x88] sm:$0xff] }
 0x775   : > { %7783 = vmatpush.msra.mxu3 %v7732_v33 }
 0x777   : > { %v7373_v40 = vpop.f32.mrf.mxu2  ;;  %7784 = vmatpush.msra.mxu3 %v7731_v61 }
 0x778   : > { %v7374_v51 = vadd.f32 %v7373_v40, %v7354_v62  ;;  %v7393_v20 = vpop.f32.mrf.mxu3 }
 0x779   : > { %v7413_v26 = vpop.f32.mrf.mxu0  ;;  %7785 = vmatpush.msra.mxu3 %v7730_v39 }
 0x77a   : > { %v7394_v18 = vadd.f32 %v7393_v20, %v7374_v51  ;;  %v7433_v54 = vpop.f32.mrf.mxu1 }
 0x77c   : > { %v7414_v41 = vadd.f32 %v7413_v26, %v7394_v18 }
 0x77e   : > { %v7434_v43 = vadd.f32 %v7433_v54, %v7414_v41 }
 0x77f   : > { %v7453_v25 = vpop.f32.mrf.mxu2 }
 0x780   : > { %v7454_v35 = vadd.f32 %v7453_v25, %v7434_v43  ;;  %v7473_v27 = vpop.f32.mrf.mxu3 }
 0x782   : > { %v7474_v50 = vadd.f32 %v7473_v27, %v7454_v35  ;;  %v7493_v3 = vpop.f32.mrf.mxu1 }
 0x784   : > { %v7494_v15 = vadd.f32 %v7493_v3, %v7474_v50  ;;  %v7824_v50 = vld [vmem:[%s12424_s7 + $0x78] sm:$0xff]  ;;  %v7823_v3 = vld [vmem:[%s12424_s7 + $0x70] sm:$0xff] }
 0x785   : > { %7829 = vmatpush.msra.mxu0 %v7824_v50 }
 0x786   : > { %v7923_v31 = vmul.f32 -1.442695, %v7494_v15  ;;  %v7822_v15 = vld [vmem:[%s12424_s7 + $0x68] sm:$0xff] }
 0x787   : > { %7830 = vmatpush.msra.mxu0 %v7823_v3 }
 0x788   : > { %8018 = vpow2.f32 %v7923_v31  ;;  %v7821_v31 = vld [vmem:[%s12424_s7 + $0x60] sm:$0xff] }
 0x789   : > { %7831 = vmatpush.msra.mxu0 %v7822_v15 }
 0x78b   : > { %7832 = vmatpush.msra.mxu0 %v7821_v31 }
 0x78e   : > { %v8019_v55 = vpop.eup %8018 }
 0x78f   : > { %v7682_v21 = vadd.f32 1.0, %v8019_v55  ;;  %v7820_v55 = vld [vmem:[%s12424_s7 + $0x58] sm:$0xff] }
 0x790   : > { %7833 = vmatpush.msra.mxu0 %v7820_v55 }
 0x791   : > { %8020 = vrcp.f32 %v7682_v21  ;;  %v7695_v7 = vand.u32 2147483648, %v7682_v21  ;;  %v7693_v19 = vand.u32 2147483647, %v7682_v21  ;;  %vm7689_vm3 = vweird.f32 %v7682_v21 }
 0x793   : > { %v7696_v9 = vor.u32 1.1754944e-38, %v7695_v7  ;;  %vm7694_vm5 = vcmp.eq.f32.partialorder %v7693_v19, 8.507059e+37  ;;  %v7815_v7 = vld [vmem:[%s12424_s7 + $0x30] sm:$0xff]  ;;  %v7813_v19 = vld [vmem:[%s12424_s7 + $0x20] sm:$0xff] }
 0x797   : > { %v8021_v63 = vpop.eup %8020 }
 0x798   : > { %v7685_v16 = vmul.f32 %v8021_v63, %v7682_v21  ;;  %vm7690_vm2 = vweird.f32 %v8021_v63  ;;  %v7819_v21 = vld [vmem:[%s12424_s7 + $0x50] sm:$0xff] }
 0x799   : > { %vm7691_vm4 = vmor %vm7689_vm3, %vm7690_vm2  ;;  %7834 = vmatpush.msra.mxu0 %v7819_v21 }
 0x79a   : > { %v7686_v17 = vsub.f32 1.0, %v7685_v16  ;;  %v7817_v16 = vld [vmem:[%s12424_s7 + $0x40] sm:$0xff] }
 0x79c   : > { %v7687_v24 = vmul.f32 %v8021_v63, %v7686_v17  ;;  %v7816_v17 = vld [vmem:[%s12424_s7 + $0x38] sm:$0xff] }
 0x79e   : > { %v7688_v38 = vadd.f32 %v8021_v63, %v7687_v24  ;;  %v7814_v24 = vld [vmem:[%s12424_s7 + $0x28] sm:$0xff] }
 0x7a0   : > { %v7692_v45 = vsel %vm7691_vm4, %v8021_v63, %v7688_v38  ;;  %v7818_v63 = vld [vmem:[%s12424_s7 + $0x48] sm:$0xff]  ;;  %v7812_v38 = vld [vmem:[%s12424_s7 + $0x18] sm:$0xff] }
 0x7a1   : > { %v7697_v57 = vsel %vm7694_vm5, %v7696_v9, %v7692_v45  ;;  %7835 = vmatpush.msra.mxu0 %v7818_v63  ;;  %v7811_v9 = vld [vmem:[%s12424_s7 + $0x10] sm:$0xff]  ;;  %v8004_v45 = vld [vmem:[%s12423_s6] ss:$0 sm:$0xff] }
 0x7a2   : > { %7766 = vmatmul.f32.vlgmr.msra.gmra.mxu2 %v7697_v57 }
 0x7a3   : > { %7836 = vmatpush.msra.mxu0 %v7817_v16 }
 0x7a5   : > { %7837 = vmatpush.msra.mxu0 %v7816_v17 }
 0x7a7   : > { %7838 = vmatpush.msra.mxu0 %v7815_v7 }
 0x7a9   : > { %7839 = vmatpush.msra.mxu0 %v7814_v24 }
 0x7ab   : > { %7840 = vmatpush.msra.mxu0 %v7813_v19 }
 0x7ac   : > { %v7513_v22 = vpop.f32.mrf.mxu1  ;;  %v7533_v60 = vpop.f32.mrf.mxu2 }
 0x7ad   : > { %v7514_v28 = vadd.f32 %v7513_v22, %v7286_v52  ;;  %7841 = vmatpush.msra.mxu0 %v7812_v38 }
 0x7af   : > { %v7534_v59 = vadd.f32 %v7533_v60, %v7514_v28  ;;  %7842 = vmatpush.msra.mxu0 %v7811_v9 }
 0x7b1   : > { %7843 = vmatpush.msra.mxu0 %v7810_v10 }
 0x7b3   : > { %7844 = vmatpush.msra.mxu0 %v7809_v58 }
 0x7b4   : > { %v7553_v1 = vpop.f32.mrf.mxu3 }
 0x7b5   : > { %v7554_v11 = vadd.f32 %v7553_v1, %v7534_v59  ;;  %v7573_v6 = vpop.f32.mrf.mxu0 }
 0x7b7   : > { %v7574_v29 = vadd.f32 %v7573_v6, %v7554_v11  ;;  %v8005_v6 = vld [vmem:[#allocation3] ss:$0 sm:$0xff] }
 0x7ba   : > { %v7593_v23 = vpop.f32.mrf.mxu1  ;;  %v7613_v56 = vpop.f32.mrf.mxu2 }
 0x7bb   : > { %v7594_v47 = vadd.f32 %v7593_v23, %v7574_v29 }
 0x7bd   : > { %v7614_v49 = vadd.f32 %v7613_v56, %v7594_v47  ;;  %v7633_v5 = vpop.f32.mrf.mxu3  ;;  %v7653_v62 = vpop.f32.mrf.mxu0 }
 0x7bf   : > { %v7634_v0 = vadd.f32 %v7633_v5, %v7614_v49 }
 0x7c1   : > { %v7654_v37 = vadd.f32 %v7653_v62, %v7634_v0 }
 0x7c2   : > { %v7673_v40 = vpop.f32.mrf.mxu1 }
 0x7c3   : > { %v7674_v51 = vadd.f32 %v7673_v40, %v7654_v37 }
 0x7c5   : > { %v7924_v20 = vmul.f32 -1.442695, %v7674_v51 }
 0x7c7   : > { %8022 = vpow2.f32 %v7924_v20 }
 0x7cd   : > { %v8023_v48 = vpop.eup %8022 }
 0x7ce   : > { %v7683_v26 = vadd.f32 1.0, %v8023_v48 }
 0x7d0   : > { %8024 = vrcp.f32 %v7683_v26  ;;  %v7710_v41 = vand.u32 2147483648, %v7683_v26  ;;  %v7708_v43 = vand.u32 2147483647, %v7683_v26  ;;  %vm7704_vm7 = vweird.f32 %v7683_v26 }
 0x7d2   : > { %v7711_v25 = vor.u32 1.1754944e-38, %v7710_v41  ;;  %vm7709_vm9 = vcmp.eq.f32.partialorder %v7708_v43, 8.507059e+37 }
 0x7d6   : > { %v8025_v18 = vpop.eup %8024 }
 0x7d7   : > { %v7700_v54 = vmul.f32 %v8025_v18, %v7683_v26  ;;  %vm7705_vm6 = vweird.f32 %v8025_v18 }
 0x7d8   : > { %vm7706_vm8 = vmor %vm7704_vm7, %vm7705_vm6 }
 0x7d9   : > { %v7701_v36 = vsub.f32 1.0, %v7700_v54 }
 0x7db   : > { %v7702_v42 = vmul.f32 %v8025_v18, %v7701_v36 }
 0x7dd   : > { %v7703_v8 = vadd.f32 %v8025_v18, %v7702_v42 }
 0x7df   : > { %v7707_v35 = vsel %vm7706_vm8, %v8025_v18, %v7703_v8 }
 0x7e0   : > { %v7712_v27 = vsel %vm7709_vm9, %v7711_v25, %v7707_v35 }
 0x7e1   : > { %7786 = vmatmul.f32.vlgmr.msra.gmra.mxu3 %v7712_v27 }
 0x825   : > { %v7767_v57 = vpop.f32.mrf.mxu2 }
 0x826   : > { %v7768_v4 = vadd.f32 %v8004_v45, %v7767_v57 }
 0x864   : > { %v7787_v44 = vpop.f32.mrf.mxu3 }
 0x865   : > { %v7788_v13 = vadd.f32 %v7787_v44, %v7768_v4 }
 0x867   : > { %v7925_v52 = vmul.f32 -1.442695, %v7788_v13 }
 0x869   : > { %8026 = vpow2.f32 %v7925_v52 }
 0x86f   : > { %v8027_v32 = vpop.eup %8026 }
 0x870   : > { %v7793_v22 = vadd.f32 1.0, %v8027_v32 }
 0x872   : > { %8028 = vrcp.f32 %v7793_v22  ;;  %v7805_v28 = vand.u32 2147483648, %v7793_v22  ;;  %v7803_v59 = vand.u32 2147483647, %v7793_v22  ;;  %vm7799_vm11 = vweird.f32 %v7793_v22 }
 0x874   : > { %v7806_v34 = vor.u32 1.1754944e-38, %v7805_v28  ;;  %vm7804_vm13 = vcmp.eq.f32.partialorder %v7803_v59, 8.507059e+37 }
 0x878   : > { %v8029_v60 = vpop.eup %8028 }
 0x879   : > { %v7795_v14 = vmul.f32 %v8029_v60, %v7793_v22  ;;  %vm7800_vm10 = vweird.f32 %v8029_v60 }
 0x87a   : > { %vm7801_vm12 = vmor %vm7799_vm11, %vm7800_vm10 }
 0x87b   : > { %v7796_v30 = vsub.f32 1.0, %v7795_v14 }
 0x87d   : > { %v7797_v46 = vmul.f32 %v8029_v60, %v7796_v30 }
 0x87f   : > { %v7798_v1 = vadd.f32 %v8029_v60, %v7797_v46 }
 0x881   : > { %v7802_v11 = vsel %vm7801_vm12, %v8029_v60, %v7798_v1 }
 0x882   : > { %v7807_v2 = vsel %vm7804_vm13, %v7806_v34, %v7802_v11 }
 0x883   : > { %7845 = vmatmul.f32.vlgmr.msra.gmra.mxu0 %v7807_v2 }
 0x900   : > { %v7846_v29 = vpop.f32.mrf.mxu0 }
 0x901   : > { %v7847_v12 = vadd.f32 %v8005_v6, %v7846_v29 }
 0x903   : > { %v7926_v23 = vmul.f32 -1.442695, %v7847_v12 }
 0x905   : > { %8030 = vpow2.f32 %v7926_v23 }
 0x90b   : > { %v8031_v53 = vpop.eup %8030 }
 0x90c   : > { %v7852_v47 = vadd.f32 1.0, %v8031_v53 }
 0x90e   : > { %8032 = vrcp.f32 %v7852_v47  ;;  %v7864_v5 = vand.u32 2147483648, %v7852_v47  ;;  %v7862_v0 = vand.u32 2147483647, %v7852_v47  ;;  %vm7858_vm15 = vweird.f32 %v7852_v47 }
 0x910   : > { %v7865_v39 = vor.u32 1.1754944e-38, %v7864_v5  ;;  %vm7863_vm2 = vcmp.eq.f32.partialorder %v7862_v0, 8.507059e+37 }
 0x914   : > { %v8033_v56 = vpop.eup %8032 }
 0x915   : > { %v7854_v33 = vmul.f32 %v8033_v56, %v7852_v47  ;;  %vm7859_vm14 = vweird.f32 %v8033_v56 }
 0x916   : > { %vm7860_vm0 = vmor %vm7858_vm15, %vm7859_vm14 }
 0x917   : > { %v7855_v49 = vsub.f32 1.0, %v7854_v33 }
 0x919   : > { %v7856_v61 = vmul.f32 %v8033_v56, %v7855_v49 }
 0x91b   : > { %v7857_v62 = vadd.f32 %v8033_v56, %v7856_v61 }
 0x91d   : > { %v7861_v37 = vsel %vm7860_vm0, %v8033_v56, %v7857_v62 }
 0x91e   : > { %v7866_v40 = vsel %vm7863_vm2, %v7865_v39, %v7861_v37 }
 0x91f   : > { %7869 = vst.msk [vmem:[%s12426_s9] sm:$0x3] %vm7868_vm1, %v7866_v40 }
 0x920 PF: > { %s21_s11 = sadd.s32 1, %s8040_s11  }
 0x921   : > { %p18_p7 = scmp.ge.s32.totalorder %s21_s11, 4  }
 0x923   :  { %20 = sbr.rel (!%p18_p7) target bundleno = 3 (0x3), region = 95 }

</bundles_post_ra>
